<compile_context>
chip_gen: v7x
topology: tpu7x:2x2x1
jax: 0.10.0
libtpu: 0.0.40
codegen_flags: <defaults>
</compile_context>

<pallas_src>
import functools

import jax
import jax.numpy as jnp
from jax import lax
from jax.experimental import pallas as pl
from jax.experimental.pallas import tpu as pltpu

BN_EPS = 1e-5


# ---------------------------------------------------------------------------
# VMEM sizing helpers (per-generation limits, (8,128)-padding-aware budgets)
# ---------------------------------------------------------------------------
def _round_up(v, m):
    return -(-int(v) // m) * m


def _padded_f32_bytes(*dims):
    """VMEM bytes of an f32 value/block, modeling (8,128) tiling of the last two dims."""
    if len(dims) == 1:
        return _round_up(dims[0], 128) * 4
    lead = 1
    for d in dims[:-2]:
        lead *= int(d)
    return lead * _round_up(dims[-2], 8) * _round_up(dims[-1], 128) * 4


def _vmem_params():
    cap = 64 * 1024 * 1024  # conservative fallback (v7x physical VMEM)
    try:
        info = pltpu.get_tpu_info()
        cap = int(getattr(info, "vmem_capacity_bytes", cap) or cap)
    except Exception:
        pass
    limit = min(cap * 3 // 4, 96 * 1024 * 1024)  # ~96 MiB on v5e/v6e, ~48 MiB on v7x
    budget = limit // 3                          # per-pass working-set budget
    return limit, budget


# ---------------------------------------------------------------------------
# Pass 1: in-kernel H-upsample -> 3x3 conv (one MXU contraction) -> BN partials
# ---------------------------------------------------------------------------
def _conv_stats_kernel(x_ref, w_ref, y_ref, stats_ref, *, sf, tbh):
    # x_ref     : (H+2, Wu+2, Cin)  W-upsampled, zero-padded image of one batch
    #                               element (resident across the row-block axis).
    # w_ref     : (Cout, 9*Cin)     conv weights, columns ordered (dy, dx, ci).
    # y_ref     : (Cout, TH*Wu)     channel-major (NCHW-native), lane-dense tile.
    # stats_ref : (Cout, 2)         per-tile [sum, sum of squared deviations].
    r = pl.program_id(1)
    Wp2, Cin = x_ref.shape[1], x_ref.shape[2]
    Cout, M = y_ref.shape
    TH = tbh * sf
    Wu = Wp2 - 2

    # 1-row-halo window of *original-H* rows for this output row block.
    row0 = pl.multiple_of(r * tbh, tbh)
    xb = x_ref[pl.ds(row0, tbh + 2), :, :]                        # (tbh+2, Wu+2, Cin)

    # Nearest-neighbour H-upsample in VMEM: interior rows repeated sf times,
    # single halo rows (previous/next original row or the conv zero pad) used
    # exactly once.  Leading-dim broadcast + merge only (free reshapes).
    core = xb[1:tbh + 1]
    core = jnp.broadcast_to(core[:, None], (tbh, sf, Wp2, Cin)).reshape(TH, Wp2, Cin)
    xu = jnp.concatenate([xb[0:1], core, xb[tbh + 1:tbh + 2]], axis=0)  # (TH+2, Wu+2, Cin)

    # im2col patch built as a value (no scratch round trip): (M, 9*Cin).
    slabs = []
    for dy in range(3):
        for dx in range(3):
            slabs.append(xu[dy:dy + TH, dx:dx + Wu, :].reshape(M, Cin))
    patch = jnp.concatenate(slabs, axis=1)

    # Single MXU contraction producing the channel-major (Cout, M) result
    # directly (transposed-RHS contraction), so the store is lane-dense and
    # the final output is NCHW without any wrapper transpose.
    # Conv bias intentionally absent: it is exactly cancelled by the
    # training-mode BatchNorm mean subtraction.
    acc = jnp.einsum("ok,mk->om", w_ref[...], patch,
                     preferred_element_type=jnp.float32)           # (Cout, M)
    y_ref[...] = acc

    # Shifted per-tile BN partials (sum, M2); merged with Chan's formula in
    # plain JAX -> no global E[x^2]-E[x]^2 cancellation.
    s = jnp.sum(acc, axis=1, keepdims=True)                        # (Cout, 1)
    d = acc - s * (1.0 / M)
    m2 = jnp.sum(d * d, axis=1, keepdims=True)                     # (Cout, 1)
    stats_ref[...] = jnp.concatenate([s, m2], axis=1)


# ---------------------------------------------------------------------------
# Pass 2: lane-dense, NCHW-native normalize + ReLU (in-place via aliasing)
# ---------------------------------------------------------------------------
def _bn_relu_kernel(y_ref, scale_ref, shift_ref, o_ref):
    # y_ref / o_ref : (Cout, TC); scale_ref / shift_ref : (Cout, 1)
    o_ref[...] = jnp.maximum(y_ref[...] * scale_ref[...] + shift_ref[...], 0.0)


# ---------------------------------------------------------------------------
# Tile choosers (largest tiles whose padded working set fits the budget)
# ---------------------------------------------------------------------------
def _pick_conv_row_tile(N, H, W, sf, Cin, Cout, budget):
    Hu, Wu = H * sf, W * sf
    fixed = (2 * _padded_f32_bytes(H + 2, Wu + 2, Cin)     # resident input (dbl-buffered)
             + 2 * _padded_f32_bytes(Cout, 9 * Cin))       # weights (dbl-buffered)

    def cost(tbh):
        TH = tbh * sf
        M = TH * Wu
        return (fixed
                + 2 * _padded_f32_bytes(Cout, M)           # y output block (dbl-buffered)
                + 2 * _padded_f32_bytes(Cout, 2)           # stats block (dbl-buffered)
                + _padded_f32_bytes(TH + 2, Wu + 2, Cin)   # upsampled tile value
                + _padded_f32_bytes(M, 9 * Cin)            # im2col patch value
                + _padded_f32_bytes(M, Cout)               # MXU result (pre-transpose est.)
                + _padded_f32_bytes(Cout, M))              # channel-major result

    def legal(tbh):
        TH = tbh * sf
        return H % tbh == 0 and ((TH * Wu) % 128 == 0 or TH == Hu)

    cands = [t for t in range(1, H + 1) if legal(t)]       # tbh = H is always legal
    fits = [t for t in cands if cost(t) <= budget]
    tbh = max(fits) if fits else min(cands)
    # v7x megacore: keep at least 2 parallel grid steps when possible.
    if N * (H // tbh) < 2:
        smaller = [t for t in cands if t < tbh and cost(t) <= budget]
        if smaller:
            tbh = max(smaller)
    return tbh


def _pick_bn_chunk(HW, Cout, budget):
    cands = [c for c in range(128, HW + 1, 128) if HW % c == 0] or [HW]
    fits = [c for c in cands if 4 * _padded_f32_bytes(Cout, c) <= budget]
    return max(fits) if fits else min(cands)


# ---------------------------------------------------------------------------
# Wrapper
# ---------------------------------------------------------------------------
def scale_conv_bn_relu(x, conv_w, conv_b, bn_gamma, bn_beta, scale_factor,
                       *, row_tile=None):
    """ScaleConvBnRelu forward.  x: (N, Cin, H, W) f32 NCHW -> (N, Cout, Hu, Wu)."""
    del conv_b  # exactly cancelled by training-mode BatchNorm's mean subtraction
    N, Cin, H, W = x.shape
    Cout = conv_w.shape[0]
    sf = int(scale_factor)
    assert sf == scale_factor and sf >= 1, "integer scale_factor only"
    # TODO(synk): fractional scale_factor (non-integer nearest interp) not handled.
    Hu, Wu = H * sf, W * sf
    HW = Hu * Wu

    vmem_limit, budget = _vmem_params()
    x = x.astype(jnp.float32)

    # Single small wrapper fusion at original-H resolution (NCHW -> NHWC,
    # nearest W-upsample, zero pad).  No block gather, no upsampled-H
    # materialization: H-upsample and halo windows are handled in-kernel.
    x_nhwc = jnp.transpose(x, (0, 2, 3, 1))                       # (N, H, W, Cin)
    x_wup = jnp.repeat(x_nhwc, sf, axis=2)                        # (N, H, Wu, Cin)
    x_prep = jnp.pad(x_wup, ((0, 0), (1, 1), (1, 1), (0, 0)))     # (N, H+2, Wu+2, Cin)

    # PyTorch conv weight (Cout, Cin, 3, 3) -> (Cout, 9*Cin), columns (dy, dx, ci).
    w_mat = jnp.transpose(conv_w.astype(jnp.float32), (0, 2, 3, 1)).reshape(Cout, 9 * Cin)

    if row_tile is None:
        tbh = _pick_conv_row_tile(N, H, W, sf, Cin, Cout, budget)
    else:
        assert row_tile % sf == 0 and Hu % row_tile == 0, (row_tile, sf, Hu)
        tbh = row_tile // sf
        assert (tbh * sf * Wu) % 128 == 0 or tbh == H, "row_tile must give a lane-dense block"
    TH = tbh * sf
    nHb = H // tbh

    # --- pass 1: conv + per-tile BN partials ---------------------------------
    conv_kernel = functools.partial(_conv_stats_kernel, sf=sf, tbh=tbh)
    y, stats = pl.pallas_call(
        conv_kernel,
        grid=(N, nHb),
        in_specs=[
            # Whole padded image of batch n: block index depends only on n, so
            # Pallas DMAs it once per image and keeps it resident across r.
            pl.BlockSpec((None, H + 2, Wu + 2, Cin), lambda n, r: (n, 0, 0, 0)),
            pl.BlockSpec((Cout, 9 * Cin), lambda n, r: (0, 0)),
        ],
        out_specs=[
            pl.BlockSpec((None, Cout, TH * Wu), lambda n, r: (n, 0, r)),
            pl.BlockSpec((None, None, Cout, 2), lambda n, r: (n, r, 0, 0)),
        ],
        out_shape=[
            jax.ShapeDtypeStruct((N, Cout, HW), jnp.float32),
            jax.ShapeDtypeStruct((N, nHb, Cout, 2), jnp.float32),
        ],
        compiler_params=pltpu.CompilerParams(
            dimension_semantics=("parallel", "parallel"),
            vmem_limit_bytes=vmem_limit),
    )(x_prep, w_mat)

    # --- tiny BN statistics merge (Chan) + scale/shift folding (plain JAX) ---
    M_tile = TH * Wu
    count = N * HW
    s_t = stats[..., 0]                                           # (N, nHb, Cout)
    m2_t = stats[..., 1]
    total = jnp.sum(s_t, axis=(0, 1))                             # (Cout,)
    mean = total / count
    mean_t = s_t / M_tile
    m2 = jnp.sum(m2_t, axis=(0, 1)) + M_tile * jnp.sum((mean_t - mean) ** 2, axis=(0, 1))
    var = m2 / count                                              # biased (training BN)
    inv_std = lax.rsqrt(var + BN_EPS)
    scale = bn_gamma.astype(jnp.float32) * inv_std                # (Cout,)
    shift = bn_beta.astype(jnp.float32) - mean * scale            # (Cout,)

    # --- pass 2: normalize + ReLU, written NCHW-native and in place ----------
    TC = _pick_bn_chunk(HW, Cout, budget)
    out_flat = pl.pallas_call(
        _bn_relu_kernel,
        grid=(N, HW // TC),
        in_specs=[
            pl.BlockSpec((None, Cout, TC), lambda n, c: (n, 0, c)),
            pl.BlockSpec((Cout, 1), lambda n, c: (0, 0)),
            pl.BlockSpec((Cout, 1), lambda n, c: (0, 0)),
        ],
        out_specs=pl.BlockSpec((None, Cout, TC), lambda n, c: (n, 0, c)),
        out_shape=jax.ShapeDtypeStruct((N, Cout, HW), jnp.float32),
        input_output_aliases={0: 0},
        compiler_params=pltpu.CompilerParams(
            dimension_semantics=("parallel", "parallel"),
            vmem_limit_bytes=vmem_limit),
    )(y, scale.reshape(Cout, 1), shift.reshape(Cout, 1))

    return out_flat.reshape(N, Cout, Hu, Wu)                      # already NCHW


# ---------------------------------------------------------------------------
# Pure-JAX reference matching PyTorch semantics (training-mode BN, with bias)
# ---------------------------------------------------------------------------
def _reference(x_nchw, conv_w, conv_b, bn_gamma, bn_beta, sf):
    xu = jnp.repeat(jnp.repeat(x_nchw, sf, axis=2), sf, axis=3)
    y = lax.conv_general_dilated(
        xu, conv_w, window_strides=(1, 1), padding=((1, 1), (1, 1)),
        dimension_numbers=("NCHW", "OIHW", "NCHW"))
    y = y + conv_b[None, :, None, None]
    mean = jnp.mean(y, axis=(0, 2, 3), keepdims=True)
    var = jnp.mean((y - mean) ** 2, axis=(0, 2, 3), keepdims=True)
    y = (y - mean) * lax.rsqrt(var + BN_EPS)
    y = y * bn_gamma[None, :, None, None] + bn_beta[None, :, None, None]
    return jnp.maximum(y, 0.0)


if __name__ == "__main__":
    key = jax.random.PRNGKey(0)
    k_x, k_w, k_b, k_g, k_be = jax.random.split(key, 5)

    N, Cin, Cout, H, W = 2, 4, 8, 16, 16
    scale_factor = 2

    x = jax.random.normal(k_x, (N, Cin, H, W), dtype=jnp.float32)
    fan_in = Cin * 3 * 3
    conv_w = jax.random.normal(k_w, (Cout, Cin, 3, 3), dtype=jnp.float32) / jnp.sqrt(fan_in)
    conv_b = 0.1 * jax.random.normal(k_b, (Cout,), dtype=jnp.float32)
    bn_gamma = 1.0 + 0.1 * jax.random.normal(k_g, (Cout,), dtype=jnp.float32)
    bn_beta = 0.1 * jax.random.normal(k_be, (Cout,), dtype=jnp.float32)

    ref = _reference(x, conv_w, conv_b, bn_gamma, bn_beta, scale_factor)

    fwd_auto = jax.jit(functools.partial(scale_conv_bn_relu, scale_factor=scale_factor))
    fwd_tiled = jax.jit(functools.partial(scale_conv_bn_relu, scale_factor=scale_factor,
                                          row_tile=8))

    out_auto = jax.block_until_ready(fwd_auto(x, conv_w, conv_b, bn_gamma, bn_beta))
    out_tiled = jax.block_until_ready(fwd_tiled(x, conv_w, conv_b, bn_gamma, bn_beta))

    assert out_auto.shape == (N, Cout, H * scale_factor, W * scale_factor), out_auto.shape
    for out in (out_auto, out_tiled):
        err = float(jnp.max(jnp.abs(out - ref)))
        assert jnp.allclose(out, ref, atol=2e-4, rtol=2e-4), err

    print("KERNEL_OK")
</pallas_src>

<mosaic_0001>
module attributes {stable_mosaic.version = 11 : i64} {
  func.func @_conv_stats_kernel(%arg0: i32, %arg1: i32, %arg2: memref<1x18x34x4xf32, #tpu.memory_space<vmem>>, %arg3: memref<8x36xf32, #tpu.memory_space<vmem>>, %arg4: memref<1x8x1024xf32, #tpu.memory_space<vmem>>, %arg5: memref<1x1x8x2xf32, #tpu.memory_space<vmem>>) attributes {dimension_semantics = [#tpu.dimension_semantics<parallel>, #tpu.dimension_semantics<parallel>], iteration_bounds = array<i64: 2, 1>, scalar_prefetch = 0 : i64, scratch_operands = 0 : i64, tpu.core_type = #tpu.core_type<tc>, window_params = [{transform_indices = @transform_0, window_bounds = array<i64: 1, 18, 34, 4>}, {pipeline_mode = #tpu.pipeline_mode<synchronous>, transform_indices = @transform_1, window_bounds = array<i64: 8, 36>}, {transform_indices = @transform_2, window_bounds = array<i64: 1, 8, 1024>}, {transform_indices = @transform_3, window_bounds = array<i64: 1, 1, 8, 2>}]} {
    %c16_i32 = arith.constant 16 : i32
    %0 = arith.muli %arg1, %c16_i32 : i32
    %1 = tpu.assume_multiple %0, 16 : i32
    %c0 = arith.constant 0 : index
    %2 = arith.index_cast %1 : i32 to index
    %c0_0 = arith.constant 0 : index
    %c0_1 = arith.constant 0 : index
    %3 = vector.load %arg2[%c0, %2, %c0_0, %c0_1] : memref<1x18x34x4xf32, #tpu.memory_space<vmem>>, vector<1x18x34x4xf32>
    %4 = vector.shape_cast %3 : vector<1x18x34x4xf32> to vector<18x34x4xf32>
    %5 = vector.extract_strided_slice %4 {offsets = [1, 0, 0], sizes = [16, 34, 4], strides = [1, 1, 1]} : vector<18x34x4xf32> to vector<16x34x4xf32>
    %6 = vector.shape_cast %5 : vector<16x34x4xf32> to vector<16x1x34x4xf32>
    %7 = vector.shape_cast %6 : vector<16x1x34x4xf32> to vector<16x1x34x4xf32>
    %8 = vector.broadcast %7 : vector<16x1x34x4xf32> to vector<16x2x34x4xf32>
    %9 = vector.shape_cast %8 : vector<16x2x34x4xf32> to vector<32x34x4xf32>
    %10 = vector.extract_strided_slice %4 {offsets = [0, 0, 0], sizes = [1, 34, 4], strides = [1, 1, 1]} : vector<18x34x4xf32> to vector<1x34x4xf32>
    %11 = vector.extract_strided_slice %4 {offsets = [17, 0, 0], sizes = [1, 34, 4], strides = [1, 1, 1]} : vector<18x34x4xf32> to vector<1x34x4xf32>
    %12 = tpu.concatenate %10, %9, %11 in 0 : vector<1x34x4xf32>, vector<32x34x4xf32>, vector<1x34x4xf32> -> vector<34x34x4xf32>
    %13 = vector.extract_strided_slice %12 {offsets = [0, 0, 0], sizes = [32, 32, 4], strides = [1, 1, 1]} : vector<34x34x4xf32> to vector<32x32x4xf32>
    %14 = vector.shape_cast %13 : vector<32x32x4xf32> to vector<1024x4xf32>
    %15 = vector.extract_strided_slice %12 {offsets = [0, 1, 0], sizes = [32, 32, 4], strides = [1, 1, 1]} : vector<34x34x4xf32> to vector<32x32x4xf32>
    %16 = vector.shape_cast %15 : vector<32x32x4xf32> to vector<1024x4xf32>
    %17 = vector.extract_strided_slice %12 {offsets = [0, 2, 0], sizes = [32, 32, 4], strides = [1, 1, 1]} : vector<34x34x4xf32> to vector<32x32x4xf32>
    %18 = vector.shape_cast %17 : vector<32x32x4xf32> to vector<1024x4xf32>
    %19 = vector.extract_strided_slice %12 {offsets = [1, 0, 0], sizes = [32, 32, 4], strides = [1, 1, 1]} : vector<34x34x4xf32> to vector<32x32x4xf32>
    %20 = vector.shape_cast %19 : vector<32x32x4xf32> to vector<1024x4xf32>
    %21 = vector.extract_strided_slice %12 {offsets = [1, 1, 0], sizes = [32, 32, 4], strides = [1, 1, 1]} : vector<34x34x4xf32> to vector<32x32x4xf32>
    %22 = vector.shape_cast %21 : vector<32x32x4xf32> to vector<1024x4xf32>
    %23 = vector.extract_strided_slice %12 {offsets = [1, 2, 0], sizes = [32, 32, 4], strides = [1, 1, 1]} : vector<34x34x4xf32> to vector<32x32x4xf32>
    %24 = vector.shape_cast %23 : vector<32x32x4xf32> to vector<1024x4xf32>
    %25 = vector.extract_strided_slice %12 {offsets = [2, 0, 0], sizes = [32, 32, 4], strides = [1, 1, 1]} : vector<34x34x4xf32> to vector<32x32x4xf32>
    %26 = vector.shape_cast %25 : vector<32x32x4xf32> to vector<1024x4xf32>
    %27 = vector.extract_strided_slice %12 {offsets = [2, 1, 0], sizes = [32, 32, 4], strides = [1, 1, 1]} : vector<34x34x4xf32> to vector<32x32x4xf32>
    %28 = vector.shape_cast %27 : vector<32x32x4xf32> to vector<1024x4xf32>
    %29 = vector.extract_strided_slice %12 {offsets = [2, 2, 0], sizes = [32, 32, 4], strides = [1, 1, 1]} : vector<34x34x4xf32> to vector<32x32x4xf32>
    %30 = vector.shape_cast %29 : vector<32x32x4xf32> to vector<1024x4xf32>
    %31 = tpu.concatenate %14, %16, %18, %20, %22, %24, %26, %28, %30 in 1 : vector<1024x4xf32>, vector<1024x4xf32>, vector<1024x4xf32>, vector<1024x4xf32>, vector<1024x4xf32>, vector<1024x4xf32>, vector<1024x4xf32>, vector<1024x4xf32>, vector<1024x4xf32> -> vector<1024x36xf32>
    %c0_2 = arith.constant 0 : index
    %c0_3 = arith.constant 0 : index
    %32 = vector.load %arg3[%c0_2, %c0_3] : memref<8x36xf32, #tpu.memory_space<vmem>>, vector<8x36xf32>
    "tpu.trace_start"() <{level = 10 : i32, message = "ok,mk->om"}> : () -> ()
    %cst = arith.constant dense<0.000000e+00> : vector<8x1024xf32>
    %33 = tpu.matmul %32, %31, %cst {dimension_numbers = #tpu.dot_dimension_numbers<[1], [1], [0], [0], [0, 0, 1, 0], [], []>} : vector<8x36xf32>, vector<1024x36xf32>, vector<8x1024xf32> -> vector<8x1024xf32>
    "tpu.trace_stop"() : () -> ()
    %c0_4 = arith.constant 0 : index
    %c0_5 = arith.constant 0 : index
    %c0_6 = arith.constant 0 : index
    %34 = vector.load %arg4[%c0_4, %c0_5, %c0_6] : memref<1x8x1024xf32, #tpu.memory_space<vmem>>, vector<1x8x1024xf32>
    %35 = vector.shape_cast %34 : vector<1x8x1024xf32> to vector<8x1024xf32>
    %36 = vector.shape_cast %33 : vector<8x1024xf32> to vector<1x8x1024xf32>
    tpu.vector_store %arg4[%c0_4, %c0_5, %c0_6], %36 {strides = array<i32>} : memref<1x8x1024xf32, #tpu.memory_space<vmem>>, vector<1x8x1024xf32>,
    %cst_7 = arith.constant dense<0.000000e+00> : vector<8xf32>
    %37 = vector.multi_reduction <add>, %33, %cst_7 [1] : vector<8x1024xf32> to vector<8xf32>
    %38 = vector.shape_cast %37 : vector<8xf32> to vector<8x1xf32>
    %cst_8 = arith.constant 9.765625E-4 : f32
    %39 = vector.broadcast %cst_8 : f32 to vector<8x1xf32>
    %40 = arith.mulf %38, %39 : vector<8x1xf32>
    %41 = vector.broadcast %40 : vector<8x1xf32> to vector<8x1024xf32>
    %42 = arith.subf %33, %41 : vector<8x1024xf32>
    %43 = arith.mulf %42, %42 : vector<8x1024xf32>
    %cst_9 = arith.constant dense<0.000000e+00> : vector<8xf32>
    %44 = vector.multi_reduction <add>, %43, %cst_9 [1] : vector<8x1024xf32> to vector<8xf32>
    %45 = vector.shape_cast %44 : vector<8xf32> to vector<8x1xf32>
    %46 = tpu.concatenate %38, %45 in 1 : vector<8x1xf32>, vector<8x1xf32> -> vector<8x2xf32>
    %c0_10 = arith.constant 0 : index
    %c0_11 = arith.constant 0 : index
    %c0_12 = arith.constant 0 : index
    %c0_13 = arith.constant 0 : index
    %47 = vector.load %arg5[%c0_10, %c0_11, %c0_12, %c0_13] : memref<1x1x8x2xf32, #tpu.memory_space<vmem>>, vector<1x1x8x2xf32>
    %48 = vector.shape_cast %47 : vector<1x1x8x2xf32> to vector<8x2xf32>
    %49 = vector.shape_cast %46 : vector<8x2xf32> to vector<1x1x8x2xf32>
    tpu.vector_store %arg5[%c0_10, %c0_11, %c0_12, %c0_13], %49 {strides = array<i32>} : memref<1x1x8x2xf32, #tpu.memory_space<vmem>>, vector<1x1x8x2xf32>,
    return
  }
  func.func @transform_0(%arg0: i32, %arg1: i32) -> (i32, i32, i32, i32) {
    %c0_i32 = arith.constant 0 : i32
    %c0_i32_0 = arith.constant 0 : i32
    %c0_i32_1 = arith.constant 0 : i32
    %c0_i32_2 = arith.constant 0 : i32
    return %arg0, %c0_i32, %c0_i32_0, %c0_i32_1 : i32, i32, i32, i32
  }
  func.func @transform_1(%arg0: i32, %arg1: i32) -> (i32, i32) {
    %c0_i32 = arith.constant 0 : i32
    %c0_i32_0 = arith.constant 0 : i32
    %c0_i32_1 = arith.constant 0 : i32
    return %c0_i32, %c0_i32_0 : i32, i32
  }
  func.func @transform_2(%arg0: i32, %arg1: i32) -> (i32, i32, i32) {
    %c0_i32 = arith.constant 0 : i32
    %c0_i32_0 = arith.constant 0 : i32
    return %arg0, %c0_i32, %arg1 : i32, i32, i32
  }
  func.func @transform_3(%arg0: i32, %arg1: i32) -> (i32, i32, i32, i32) {
    %c0_i32 = arith.constant 0 : i32
    %c0_i32_0 = arith.constant 0 : i32
    %c0_i32_1 = arith.constant 0 : i32
    return %arg0, %arg1, %c0_i32, %c0_i32_0 : i32, i32, i32, i32
  }
}

module attributes {stable_mosaic.version = 11 : i64} {
  func.func @_bn_relu_kernel(%arg0: i32, %arg1: i32, %arg2: memref<1x8x1024xf32, #tpu.memory_space<vmem>>, %arg3: memref<8x1xf32, #tpu.memory_space<vmem>>, %arg4: memref<8x1xf32, #tpu.memory_space<vmem>>, %arg5: memref<1x8x1024xf32, #tpu.memory_space<vmem>>) attributes {dimension_semantics = [#tpu.dimension_semantics<parallel>, #tpu.dimension_semantics<parallel>], iteration_bounds = array<i64: 2, 1>, scalar_prefetch = 0 : i64, scratch_operands = 0 : i64, tpu.core_type = #tpu.core_type<tc>, window_params = [{transform_indices = @transform_0, window_bounds = array<i64: 1, 8, 1024>}, {pipeline_mode = #tpu.pipeline_mode<synchronous>, transform_indices = @transform_1, window_bounds = array<i64: 8, 1>}, {pipeline_mode = #tpu.pipeline_mode<synchronous>, transform_indices = @transform_2, window_bounds = array<i64: 8, 1>}, {transform_indices = @transform_3, window_bounds = array<i64: 1, 8, 1024>}]} {
    %c0 = arith.constant 0 : index
    %c0_0 = arith.constant 0 : index
    %c0_1 = arith.constant 0 : index
    %0 = vector.load %arg2[%c0, %c0_0, %c0_1] : memref<1x8x1024xf32, #tpu.memory_space<vmem>>, vector<1x8x1024xf32>
    %1 = vector.shape_cast %0 : vector<1x8x1024xf32> to vector<8x1024xf32>
    %c0_2 = arith.constant 0 : index
    %c0_3 = arith.constant 0 : index
    %2 = vector.load %arg3[%c0_2, %c0_3] : memref<8x1xf32, #tpu.memory_space<vmem>>, vector<8x1xf32>
    %3 = vector.broadcast %2 : vector<8x1xf32> to vector<8x1024xf32>
    %4 = arith.mulf %1, %3 : vector<8x1024xf32>
    %c0_4 = arith.constant 0 : index
    %c0_5 = arith.constant 0 : index
    %5 = vector.load %arg4[%c0_4, %c0_5] : memref<8x1xf32, #tpu.memory_space<vmem>>, vector<8x1xf32>
    %6 = vector.broadcast %5 : vector<8x1xf32> to vector<8x1024xf32>
    %7 = arith.addf %4, %6 : vector<8x1024xf32>
    %cst = arith.constant 0.000000e+00 : f32
    %8 = vector.broadcast %cst : f32 to vector<8x1024xf32>
    %9 = arith.maximumf %7, %8 : vector<8x1024xf32>
    %c0_6 = arith.constant 0 : index
    %c0_7 = arith.constant 0 : index
    %c0_8 = arith.constant 0 : index
    %10 = vector.load %arg5[%c0_6, %c0_7, %c0_8] : memref<1x8x1024xf32, #tpu.memory_space<vmem>>, vector<1x8x1024xf32>
    %11 = vector.shape_cast %10 : vector<1x8x1024xf32> to vector<8x1024xf32>
    %12 = vector.shape_cast %9 : vector<8x1024xf32> to vector<1x8x1024xf32>
    tpu.vector_store %arg5[%c0_6, %c0_7, %c0_8], %12 {strides = array<i32>} : memref<1x8x1024xf32, #tpu.memory_space<vmem>>, vector<1x8x1024xf32>,
    return
  }
  func.func @transform_0(%arg0: i32, %arg1: i32) -> (i32, i32, i32) {
    %c0_i32 = arith.constant 0 : i32
    %c0_i32_0 = arith.constant 0 : i32
    return %arg0, %c0_i32, %arg1 : i32, i32, i32
  }
  func.func @transform_1(%arg0: i32, %arg1: i32) -> (i32, i32) {
    %c0_i32 = arith.constant 0 : i32
    %c0_i32_0 = arith.constant 0 : i32
    %c0_i32_1 = arith.constant 0 : i32
    return %c0_i32, %c0_i32_0 : i32, i32
  }
  func.func @transform_2(%arg0: i32, %arg1: i32) -> (i32, i32) {
    %c0_i32 = arith.constant 0 : i32
    %c0_i32_0 = arith.constant 0 : i32
    %c0_i32_1 = arith.constant 0 : i32
    return %c0_i32, %c0_i32_0 : i32, i32
  }
  func.func @transform_3(%arg0: i32, %arg1: i32) -> (i32, i32, i32) {
    %c0_i32 = arith.constant 0 : i32
    %c0_i32_0 = arith.constant 0 : i32
    return %arg0, %c0_i32, %arg1 : i32, i32, i32
  }
}

</mosaic_0001>

<bundles_post_ra>
// kernel: scale_conv_bn_relu.3
= control target key start
LH: loop header
LB: loop body
LE: loop exit
PB: predicated region body
PF: predicated region fallthrough
CT: control target
= control target key end

     0   :  { %s433_s12 = smov 0   ;;  %s435_s13 = smov 0   ;;  %s472_s0 = inlined_call_operand.vmem [shape: f32[2,8,1024], index: 0, kind: input, shape index: {}, may-alias: {0,3}]   ;;  %s473_s1 = inlined_call_operand.vmem [shape: f32[8,1], index: 1, kind: input, shape index: {}]   ;;  %s474_s2 = inlined_call_operand.vmem [shape: f32[8,1], index: 2, kind: input, shape index: {}]   ;;  %s475_s3 = inlined_call_operand.vmem [shape: f32[2,8,1024], index: 3, kind: output, shape index: {}, may-alias: {0,3}]  }
   0x1   :  { %s437_s14 = smov 0  }
   0x2 LB: > { %s25_s15 = sadd.s32 1, %s406_s13  ;;  %p353_p0 = scmp.ge.s32.totalorder %s410_s14, 1  ;;  %s410_s14 = sphi %s437_s14, %s13_s14   ;;  %s406_s13 = sphi %s435_s13, %s477_s13   ;;  %s402_s12 = sphi %s433_s12, %s476_s12  }
   0x3   : > { %p27_p1 = scmp.ge.s32.totalorder %s25_s15, 2  ;;  %p158_p2 = scmp.lt.s32.totalorder %s410_s14, 3 }
   0x5   : > { %s479_s15 = smov (%p27_p1, %s25_s15), 0  ;;  %p159_p3 = pnand %p353_p0, %p158_p2 }
   0x6   : > { %v218_v0 = vld [vmem:[%s473_s1] sm:$0xff] (!%p159_p3)  ;;  %v412_v1 = vmov (!%p159_p3), 0   ;;  %p191_p4 = scmp.lt.s32.totalorder (!%p159_p3), %s402_s12, 1 }
   0x7   : > { %162 = sbr.rel (%p159_p3) target bundleno = 148 (0x94), region = 32  ;;  %387 = vset.pattern.permute.xlu0 (!%p159_p3), %v412_v1  ;;  %v232_v2 = vld [vmem:[%s474_s2] sm:$0xff] (!%p159_p3) }
   0x8   : > { %221 = vperm.xlu0 (!%p159_p3), %387, %v218_v0  }
   0xc   : > { %235 = vperm.xlu0 (!%p159_p3), %387, %v232_v2  }
   0xe   : > { %s481_s12 = smov (!%p191_p4, %s402_s12), 1 }
   0xf   : > { %s360_s20 = sshll.u32 %s481_s12, 6 }
  0x10   : > { %s198_s23 = scalar_lea.vmem %s472_s0, %s360_s20  ;;  %s208_s26 = scalar_lea.vmem %s475_s3, %s360_s20 }
  0x11   : > { %v210_v3 = vld [vmem:[%s198_s23] sm:$0xff]  ;;  %v211_v4 = vld [vmem:[%s198_s23 + $0x8] sm:$0xff]  ;;  %v212_v6 = vld [vmem:[%s198_s23 + $0x10] sm:$0xff] }
  0x12   : > { %v213_v7 = vld [vmem:[%s198_s23 + $0x18] sm:$0xff]  ;;  %v214_v8 = vld [vmem:[%s198_s23 + $0x20] sm:$0xff]  ;;  %v215_v9 = vld [vmem:[%s198_s23 + $0x28] sm:$0xff] }
  0x13   : > { %v216_v10 = vld [vmem:[%s198_s23 + $0x30] sm:$0xff]  ;;  %v217_v11 = vld [vmem:[%s198_s23 + $0x38] sm:$0xff] }
  0x87   : > { %v222_v5 = vpop.permute.xlu0 %221 }
  0x88   : > { %v224_v12 = vmul.f32 %v222_v5, %v210_v3  ;;  %v225_v13 = vmul.f32 %v222_v5, %v211_v4  ;;  %v226_v14 = vmul.f32 %v222_v5, %v212_v6  ;;  %v227_v15 = vmul.f32 %v222_v5, %v213_v7 }
  0x89   : > { %v228_v17 = vmul.f32 %v222_v5, %v214_v8  ;;  %v229_v18 = vmul.f32 %v222_v5, %v215_v9  ;;  %v230_v19 = vmul.f32 %v222_v5, %v216_v10  ;;  %v231_v20 = vmul.f32 %v222_v5, %v217_v11 }
  0x8b   : > { %v236_v16 = vpop.permute.xlu0 %235 }
  0x8c   : > { %v238_v21 = vadd.f32 %v236_v16, %v224_v12  ;;  %v239_v22 = vadd.f32 %v236_v16, %v225_v13  ;;  %v240_v23 = vadd.f32 %v236_v16, %v226_v14  ;;  %v241_v24 = vadd.f32 %v236_v16, %v227_v15 }
  0x8d   : > { %v242_v25 = vadd.f32 %v236_v16, %v228_v17  ;;  %v243_v26 = vadd.f32 %v236_v16, %v229_v18  ;;  %v244_v27 = vadd.f32 %v236_v16, %v230_v19  ;;  %v245_v28 = vadd.f32 %v236_v16, %v231_v20 }
  0x8e   : > { %v246_v29 = vmax.f32 %v238_v21, 0.0  ;;  %v247_v30 = vmax.f32 %v239_v22, 0.0  ;;  %v248_v31 = vmax.f32 %v240_v23, 0.0  ;;  %v249_v32 = vmax.f32 %v241_v24, 0.0 }
  0x8f   : > { %v250_v33 = vmax.f32 %v242_v25, 0.0  ;;  %v251_v34 = vmax.f32 %v243_v26, 0.0  ;;  %v252_v35 = vmax.f32 %v244_v27, 0.0  ;;  %v253_v36 = vmax.f32 %v245_v28, 0.0 }
  0x90   : > { %254 = vst [vmem:[%s208_s26] sm:$0xff] %v246_v29  ;;  %255 = vst [vmem:[%s208_s26 + $0x8] sm:$0xff] %v247_v30 }
  0x91   : > { %256 = vst [vmem:[%s208_s26 + $0x10] sm:$0xff] %v248_v31  ;;  %257 = vst [vmem:[%s208_s26 + $0x18] sm:$0xff] %v249_v32 }
  0x92   : > { %258 = vst [vmem:[%s208_s26 + $0x20] sm:$0xff] %v250_v33  ;;  %259 = vst [vmem:[%s208_s26 + $0x28] sm:$0xff] %v251_v34 }
  0x93   : > { %260 = vst [vmem:[%s208_s26 + $0x30] sm:$0xff] %v252_v35  ;;  %261 = vst [vmem:[%s208_s26 + $0x38] sm:$0xff] %v253_v36 }
  0x94 PF: > { %s13_s14 = sadd.s32 1, %s410_s14   ;;  %s476_s12 = smov %s406_s13 }
  0x95   : > { %p10_p5 = scmp.ge.s32.totalorder %s13_s14, 4   ;;  %s477_s13 = smov %s479_s15 }
  0x97   :  { %12 = sbr.rel (!%p10_p5) target bundleno = 2 (0x2), region = 62 }

// kernel: scale_conv_bn_relu.2
= control target key start
LH: loop header
LB: loop body
LE: loop exit
PB: predicated region body
PF: predicated region fallthrough
CT: control target
= control target key end

     0   :  { %s6051_s12 = smov 0   ;;  %s6053_s13 = smov 0   ;;  %s11998_s0 = inlined_call_operand.vmem [shape: f32[2,18,34,4], index: 0, kind: input, shape index: {}]   ;;  %s11999_s1 = inlined_call_operand.vmem [shape: f32[8,36], index: 1, kind: input, shape index: {}]   ;;  %s12000_s2 = inlined_call_operand.vmem [shape: f32[2,8,1024], index: 2, kind: output, shape index: {0}]   ;;  %s12001_s3 = inlined_call_operand.vmem [shape: f32[2,1,8,2], index: 3, kind: output, shape index: {1}]  }
   0x1   :  { %s6055_s14 = smov 0  }
   0x2 LB: > { %s26_s15 = sadd.s32 1, %s6017_s13  ;;  %p4078_p0 = scmp.ge.s32.totalorder %s6021_s14, 1  ;;  %s6021_s14 = sphi %s6055_s14, %s14_s14   ;;  %s6017_s13 = sphi %s6053_s13, %s13990_s13   ;;  %s6013_s12 = sphi %s6051_s12, %s13989_s12  }
   0x3   : > { %p28_p1 = scmp.ge.s32.totalorder %s26_s15, 2  ;;  %p156_p2 = scmp.lt.s32.totalorder %s6021_s14, 3 }
   0x5   : > { %s13992_s15 = smov (%p28_p1, %s26_s15), 0  ;;  %p157_p3 = pnand %p4078_p0, %p156_p2 }
   0x7   : > { %160 = sbr.rel (%p157_p3) target bundleno = 1310 (0x51e), region = 28 }
   0xe   : > { %p191_p4 = scmp.lt.s32.totalorder %s6013_s12, 1  ;;  %vm391_vm0 = vcmask 1046528   ;;  %s6023_s20 = smov 4   ;;  %vm545_vm1 = vcmask 1045504   ;;  %vm2318_vm2 = vcmask 31744   ;;  %vm2387_vm3 = vcmask 64512  }
   0xf   : > { %s6024_s21 = smov 8   ;;  %s6025_s22 = smov 12   ;;  %vm2456_vm4 = vcmask 97280   ;;  %vm2714_vm5 = vcmask 162816   ;;  %vm2585_vm6 = vcmask 130048   ;;  %vm2843_vm7 = vcmask 195584  }
  0x10   : > { %s13994_s12 = smov (!%p191_p4, %s6013_s12), 1  ;;  %s6026_s23 = smov 16   ;;  %vm2972_vm8 = vcmask 228352   ;;  %vm3101_vm9 = vcmask 261120   ;;  %vm3231_vm10 = vcmask 293888   ;;  %vm3946_vm12 = vcmask 7168  }
  0x11   : > { %s4546_s16 = smul.u32 720, %s13994_s12  ;;  %s6027_s24 = smov 20   ;;  %vm8826_vm11 = vmpackc.low %vm3231_vm10, %vm3231_vm10  ;;  %vm3948_vm13 = vcmask 15360  }
  0x12   : > { %s6028_s25 = smov 24   ;;  %s6029_s26 = smov 28  }
  0x13   : > { %s6075_s19 = scalar_lea.vmem %s11998_s0, %s4546_s16  ;;  %s6030_s27 = smov 32  }
  0x14   : > { %v6078_v0 = vld [vmem:[%s6075_s19 + $0x28] sm:$0xff]  ;;  %v6081_v1 = vld [vmem:[%s6075_s19 + $0x30] sm:$0xff]  ;;  %v6084_v2 = vld [vmem:[%s6075_s19 + $0x38] sm:$0xff]  ;;  %s4217_s7 = sshll.u32 %s13994_s12, 6  ;;  %s4082_s11 = sshll.u32 %s13994_s12, 3 }
  0x15   : > { %v401_v3 = vrot.slane %v6078_v0, 1  ;;  %v402_v4 = vrot.slane %v6081_v1, 1  ;;  %v404_v5 = vrot.slane %v6084_v2, 1  ;;  %v6090_v6 = vld [vmem:[%s6075_s19] sm:$0xff]  ;;  %v6093_v7 = vld [vmem:[%s6075_s19 + $0x8] sm:$0xff]  ;;  %v6096_v8 = vld [vmem:[%s6075_s19 + $0x10] sm:$0xff]  ;;  %s204_s10 = scalar_lea.vmem %s12000_s2, %s4217_s7  ;;  %s212_s18 = scalar_lea.vmem %s12001_s3, %s4082_s11 }
  0x16   : > { %v392_v9 = vrot.slane %v6090_v6, 1  ;;  %v393_v10 = vrot.slane %v6093_v7, 1  ;;  %v395_v11 = vrot.slane %v6096_v8, 1  ;;  %v6102_v12 = vld [vmem:[%s6075_s19 + $0x40] sm:$0xff]  ;;  %v6105_v13 = vld [vmem:[%s6075_s19 + $0x48] sm:$0x3] }
  0x17   : > { %v403_v14 = vsel %vm391_vm0, %v401_v3, %v402_v4  ;;  %v405_v15 = vsel %vm391_vm0, %v402_v4, %v404_v5  ;;  %v406_v16 = vrot.slane %v6102_v12, 1  ;;  %v408_v17 = vrot.slane %v6105_v13, 1  ;;  %v6112_v18 = vld [vmem:[%s6075_s19 + $0x18] sm:$0xff]  ;;  %v6115_v19 = vld [vmem:[%s6075_s19 + $0x20] sm:$0x3]  ;;  %v6124_v23 = vld [vmem:[%s6075_s19 + $0x68] sm:$0xff] }
  0x18   : > { %v6118_v20 = vld [vmem:[%s6075_s19 + $0x60] sm:$0xff]  ;;  %v6120_v21 = vpack.i.bf16 %v405_v15, %v403_v14  ;;  %v394_v22 = vsel %vm391_vm0, %v392_v9, %v393_v10  ;;  %v6127_v24 = vld [vmem:[%s6075_s19 + $0x70] sm:$0x3]  ;;  %v396_v26 = vsel %vm391_vm0, %v393_v10, %v395_v11  ;;  %v397_v29 = vrot.slane %v6112_v18, 1  ;;  %v6137_v30 = vld [vmem:[%s6075_s19 + $0x58] sm:$0xff] }
  0x19   : > { %v6130_v25 = vld [vmem:[%s6075_s19 + $0x50] sm:$0xff]  ;;  %v407_v27 = vsel %vm391_vm0, %v404_v5, %v406_v16  ;;  %v409_v28 = vsel %vm391_vm0, %v406_v16, %v408_v17  ;;  %v6140_v31 = vld [vmem:[%s6075_s19 + $0x88] sm:$0xff]  ;;  %v4579_v33 = vpack.i.bf16 %v396_v26, %v394_v22  ;;  %v399_v35 = vrot.slane %v6115_v19, 1  ;;  %v6152_v37 = vld [vmem:[%s6075_s19 + $0x98] sm:$0x3] }
  0x1a   : > { %12607 = vst [vmem:[#allocation2_spill] sm:$0xff] %v6120_v21  ;;  %v6143_v32 = vld [vmem:[%s6075_s19 + $0x90] sm:$0xff]  ;;  %4590 = vrot.lane.b32.xlu1 %v6120_v21, %s6023_s20  ;;  %v6147_v34 = vpack.i.bf16 %v409_v28, %v407_v27  ;;  %v413_v36 = vrot.slane %v6118_v20, 1  ;;  %v398_v38 = vsel %vm391_vm0, %v395_v11, %v397_v29  ;;  %v415_v39 = vrot.slane %v6124_v23, 1  ;;  %v6164_v46 = vld [vmem:[%s6075_s19 + $0x78] sm:$0xff]  ;;  %v6167_v47 = vld [vmem:[%s6075_s19 + $0x80] sm:$0xff] }
  0x1b   : > { %v417_v40 = vrot.slane %v6127_v24, 1  ;;  %v410_v41 = vrot.slane %v6130_v25, 1  ;;  %4580 = vrot.lane.b32.xlu0 %v4579_v33, %s6023_s20  ;;  %v400_v42 = vsel %vm391_vm0, %v397_v29, %v399_v35  ;;  %v411_v43 = vrot.slane %v6137_v30, 1  ;;  %v6173_v52 = vld [vmem:[%s6075_s19 + $0xb0] sm:$0xff]  ;;  %v6176_v53 = vld [vmem:[%s6075_s19 + $0xb8] sm:$0xff]  ;;  %v6188_v58 = vld [vmem:[%s6075_s19 + $0xa0] sm:$0xff] }
  0x1c   : > { %12608 = vst [vmem:[#allocation3_spill] sm:$0xff] %v6147_v34  ;;  %v422_v44 = vrot.slane %v6140_v31, 1  ;;  %v424_v45 = vrot.slane %v6143_v32, 1  ;;  %v4584_v48 = vpack.i.bf16 %v400_v42, %v398_v38  ;;  %v416_v49 = vsel %vm391_vm0, %v413_v36, %v415_v39  ;;  %v6179_v54 = vld [vmem:[%s6075_s19 + $0xc0] sm:$0x3]  ;;  %v6191_v59 = vld [vmem:[%s6075_s19 + $0xa8] sm:$0xff] }
  0x1d   : > { %v418_v50 = vsel %vm391_vm0, %v415_v39, %v417_v40  ;;  %v426_v51 = vrot.slane %v6152_v37, 1  ;;  %v412_v56 = vsel %vm391_vm0, %v410_v41, %v411_v43  ;;  %v414_v57 = vsel %vm391_vm0, %v411_v43, %v413_v36  ;;  %v6204_v10 = vld [vmem:[%s6075_s19 + $0xd8] sm:$0xff]  ;;  %v6207_v11 = vld [vmem:[%s6075_s19 + $0xe0] sm:$0xff]  ;;  %v6214_v22 = vld [vmem:[%s6075_s19 + $0xe8] sm:$0x3] }
  0x1e   : > { %4595 = vrot.lane.b32.xlu1 %v6147_v34, %s6023_s20  ;;  %v6183_v55 = vpack.i.bf16 %v418_v50, %v416_v49  ;;  %v425_v60 = vsel %vm391_vm0, %v422_v44, %v424_v45  ;;  %v419_v62 = vrot.slane %v6164_v46, 1  ;;  %v420_v63 = vrot.slane %v6167_v47, 1  ;;  %v6221_v27 = vld [vmem:[%s6075_s19 + $0xc8] sm:$0xff]  ;;  %v6224_v28 = vld [vmem:[%s6075_s19 + $0xd0] sm:$0xff]  ;;  %v6231_v38 = vld [vmem:[%s6075_s19 + $0x100] sm:$0xff] }
  0x1f   : > { %v427_v61 = vsel %vm391_vm0, %v424_v45, %v426_v51  ;;  %4585 = vrot.lane.b32.xlu0 %v4584_v48, %s6023_s20  ;;  %v6198_v3 = vpack.i.bf16 %v414_v57, %v412_v56  ;;  %v431_v4 = vrot.slane %v6173_v52, 1  ;;  %v433_v5 = vrot.slane %v6176_v53, 1  ;;  %v6234_v39 = vld [vmem:[%s6075_s19 + $0x108] sm:$0xff]  ;;  %v6242_v42 = vld [vmem:[%s6075_s19 + $0x110] sm:$0x3]  ;;  %v6258_v57 = vld [vmem:[%s6075_s19 + $0xf8] sm:$0xff] }
  0x20   : > { %12609 = vst [vmem:[#allocation4_spill] sm:$0xff] %v6183_v55  ;;  %v435_v9 = vrot.slane %v6179_v54, 1  ;;  %v421_v14 = vsel %vm391_vm0, %v419_v62, %v420_v63  ;;  %v423_v15 = vsel %vm391_vm0, %v420_v63, %v422_v44  ;;  %v428_v16 = vrot.slane %v6188_v58, 1  ;;  %v6255_v56 = vld [vmem:[%s6075_s19 + $0xf0] sm:$0xff]  ;;  %v6328_v21 = vld [vmem:[%s6075_s19 + $0x178] sm:$0xff] }
  0x21   : > { %12610 = vst [vmem:[#allocation5_spill] sm:$0xff] %v6198_v3  ;;  %v429_v17 = vrot.slane %v6191_v59, 1  ;;  %v6218_v26 = vpack.i.bf16 %v427_v61, %v425_v60  ;;  %v434_v29 = vsel %vm391_vm0, %v431_v4, %v433_v5  ;;  %v440_v35 = vrot.slane %v6204_v10, 1  ;;  %12622 = vst [vmem:[#allocation17_spill] sm:$0xff] %v6328_v21 }
  0x22   : > { %4605 = vrot.lane.b32.xlu1 %v6183_v55, %s6023_s20  ;;  %v436_v33 = vsel %vm391_vm0, %v433_v5, %v435_v9  ;;  %v442_v36 = vrot.slane %v6207_v11, 1  ;;  %v6238_v40 = vpack.i.bf16 %v423_v15, %v421_v14  ;;  %v444_v41 = vrot.slane %v6214_v22, 1  ;;  %v6271_v5 = vld [vmem:[%s6075_s19 + $0x130] sm:$0xff]  ;;  %v6274_v9 = vld [vmem:[%s6075_s19 + $0x138] sm:$0x3] }
  0x23   : > { %12611 = vst [vmem:[#allocation6_spill] sm:$0xff] %v6218_v26  ;;  %4600 = vrot.lane.b32.xlu0 %v6198_v3, %s6023_s20  ;;  %v430_v43 = vsel %vm391_vm0, %v428_v16, %v429_v17  ;;  %v432_v44 = vsel %vm391_vm0, %v429_v17, %v431_v4  ;;  %v437_v45 = vrot.slane %v6221_v27, 1  ;;  %v438_v48 = vrot.slane %v6224_v28, 1  ;;  %v6268_v4 = vld [vmem:[%s6075_s19 + $0x128] sm:$0xff] }
  0x24   : > { %12612 = vst [vmem:[#allocation7_spill] sm:$0xff] %v6238_v40  ;;  %v6250_v49 = vpack.i.bf16 %v436_v33, %v434_v29  ;;  %v449_v50 = vrot.slane %v6231_v38, 1  ;;  %v451_v51 = vrot.slane %v6234_v39, 1  ;;  %v443_v60 = vsel %vm391_vm0, %v440_v35, %v442_v36  ;;  %v6321_v3 = vld [vmem:[%s6075_s19 + $0x148] sm:$0xff] }
  0x25   : > { %v445_v61 = vsel %vm391_vm0, %v442_v36, %v444_v41  ;;  %v453_v62 = vrot.slane %v6242_v42, 1  ;;  %v6265_v63 = vpack.i.bf16 %v432_v44, %v430_v43  ;;  %v439_v14 = vsel %vm391_vm0, %v437_v45, %v438_v48  ;;  %v6286_v36 = vld [vmem:[%s6075_s19 + $0x118] sm:$0xff]  ;;  %v6289_v41 = vld [vmem:[%s6075_s19 + $0x120] sm:$0xff]  ;;  %12621 = vst [vmem:[#allocation16_spill] sm:$0xff] %v6321_v3 }
  0x26   : > { %4615 = vrot.lane.b32.xlu1 %v6218_v26, %s6023_s20  ;;  %12613 = vst [vmem:[#allocation8_spill] sm:$0xff] %v6250_v49  ;;  %v441_v15 = vsel %vm391_vm0, %v438_v48, %v440_v35  ;;  %v446_v16 = vrot.slane %v6255_v56, 1  ;;  %v447_v17 = vrot.slane %v6258_v57, 1  ;;  %v6282_v29 = vpack.i.bf16 %v445_v61, %v443_v60  ;;  %v6296_v48 = vld [vmem:[%s6075_s19 + $0x150] sm:$0xff]  ;;  %v6303_v61 = vld [vmem:[%s6075_s19 + $0x158] sm:$0xff] }
  0x27   : > { %4610 = vrot.lane.b32.xlu0 %v6238_v40, %s6023_s20  ;;  %12614 = vst [vmem:[#allocation9_spill] sm:$0xff] %v6265_v63  ;;  %v452_v33 = vsel %vm391_vm0, %v449_v50, %v451_v51  ;;  %v454_v43 = vsel %vm391_vm0, %v451_v51, %v453_v62  ;;  %v458_v35 = vrot.slane %v6268_v4, 1  ;;  %v460_v44 = vrot.slane %v6271_v5, 1  ;;  %12617 = vst [vmem:[#allocation12_spill] sm:$0xff] %v6303_v61  ;;  %v6306_v51 = vld [vmem:[%s6075_s19 + $0x160] sm:$0x3] }
  0x28   : > { %12615 = vst [vmem:[#allocation10_spill] sm:$0xff] %v6282_v29  ;;  %v462_v45 = vrot.slane %v6274_v9, 1  ;;  %v6300_v60 = vpack.i.bf16 %v441_v15, %v439_v14  ;;  %12618 = vst [vmem:[#allocation13_spill] sm:$0xff] %v6306_v51  ;;  %v448_v62 = vsel %vm391_vm0, %v446_v16, %v447_v17  ;;  %v455_v40 = vrot.slane %v6286_v36, 1 }
  0x29   : > { %v456_v26 = vrot.slane %v6289_v41, 1  ;;  %v6314_v14 = vpack.i.bf16 %v454_v43, %v452_v33  ;;  %v467_v15 = vrot.slane %v6296_v48, 1  ;;  %v461_v16 = vsel %vm391_vm0, %v458_v35, %v460_v44  ;;  %v6331_v33 = vld [vmem:[%s6075_s19 + $0x180] sm:$0xff] }
  0x2a   : > { %4625 = vrot.lane.b32.xlu1 %v6250_v49, %s6023_s20  ;;  %12616 = vst [vmem:[#allocation11_spill] sm:$0xff] %v6300_v60  ;;  %v450_v49 = vsel %vm391_vm0, %v447_v17, %v449_v50  ;;  %v463_v50 = vsel %vm391_vm0, %v460_v44, %v462_v45  ;;  %v469_v17 = vrot.slane %v6303_v61, 1  ;;  %v471_v55 = vrot.slane %v6306_v51, 1  ;;  %12623 = vst [vmem:[#allocation18_spill] sm:$0xff] %v6331_v33 }
  0x2b   : > { %4620 = vrot.lane.b32.xlu0 %v6265_v63, %s6023_s20  ;;  %12619 = vst [vmem:[#allocation14_spill] sm:$0xff] %v6314_v14  ;;  %v6318_v63 = vld [vmem:[%s6075_s19 + $0x140] sm:$0xff]  ;;  %v6335_v43 = vpack.i.bf16 %v450_v49, %v448_v62  ;;  %v457_v44 = vsel %vm391_vm0, %v455_v40, %v456_v26  ;;  %v459_v45 = vsel %vm391_vm0, %v456_v26, %v458_v35  ;;  %v465_v51 = vrot.slane %v6321_v3, 1  ;;  %v6354_v40 = vld [vmem:[%s6075_s19 + $0x170] sm:$0xff] }
  0x2c   : > { %12620 = vst [vmem:[#allocation15_spill] sm:$0xff] %v6318_v63  ;;  %v464_v34 = vrot.slane %v6318_v63, 1  ;;  %v6346_v61 = vpack.i.bf16 %v463_v50, %v461_v16  ;;  %v476_v49 = vrot.slane %v6328_v21, 1  ;;  %v478_v62 = vrot.slane %v6331_v33, 1  ;;  %12628 = vst [vmem:[#allocation23_spill] sm:$0xff] %v6354_v40  ;;  %v6364_v50 = vld [vmem:[%s6075_s19 + $0x1a0] sm:$0xff] }
  0x2d   : > { %12624 = vst [vmem:[#allocation19_spill] sm:$0xff] %v6335_v43  ;;  %v470_v26 = vsel %vm391_vm0, %v467_v15, %v469_v17  ;;  %v472_v35 = vsel %vm391_vm0, %v469_v17, %v471_v55  ;;  %v6361_v16 = vpack.i.bf16 %v459_v45, %v457_v44  ;;  %12630 = vst [vmem:[#allocation25_spill] sm:$0xff] %v6364_v50  ;;  %v6370_v33 = vld [vmem:[%s6075_s19 + $0x1b0] sm:$0x3]  ;;  %v474_v17 = vrot.slane %v6354_v40, 1 }
  0x2e   : > { %4635 = vrot.lane.b32.xlu1 %v6282_v29, %s6023_s20  ;;  %v6338_v29 = vld [vmem:[%s6075_s19 + $0x188] sm:$0x3]  ;;  %12626 = vst [vmem:[#allocation21_spill] sm:$0xff] %v6346_v61  ;;  %12632 = vst [vmem:[#allocation27_spill] sm:$0xff] %v6370_v33  ;;  %v466_v21 = vsel %vm391_vm0, %v464_v34, %v465_v51  ;;  %v468_v63 = vsel %vm391_vm0, %v465_v51, %v467_v15  ;;  %v6378_v44 = vpack.i.bf16 %v472_v35, %v470_v26  ;;  %v6395_v26 = vld [vmem:[%s6075_s19 + $0x1d0] sm:$0xff] }
  0x2f   : > { %4630 = vrot.lane.b32.xlu0 %v6300_v60, %s6023_s20  ;;  %12625 = vst [vmem:[#allocation20_spill] sm:$0xff] %v6338_v29  ;;  %v6351_v60 = vld [vmem:[%s6075_s19 + $0x168] sm:$0xff]  ;;  %v480_v3 = vrot.slane %v6338_v29, 1  ;;  %12629 = vst [vmem:[#allocation24_spill] sm:$0xff] %v6361_v16  ;;  %v479_v45 = vsel %vm391_vm0, %v476_v49, %v478_v62  ;;  %v6385_v29 = vld [vmem:[%s6075_s19 + $0x198] sm:$0xff]  ;;  %v485_v51 = vrot.slane %v6364_v50, 1  ;;  %v6399_v35 = vpack.i.bf16 %v468_v63, %v466_v21 }
  0x30   : > { %12627 = vst [vmem:[#allocation22_spill] sm:$0xff] %v6351_v60  ;;  %v473_v55 = vrot.slane %v6351_v60, 1  ;;  %12633 = vst [vmem:[#allocation28_spill] sm:$0xff] %v6378_v44  ;;  %v489_v40 = vrot.slane %v6370_v33, 1  ;;  %v6392_v60 = vld [vmem:[%s6075_s19 + $0x1c8] sm:$0xff]  ;;  %v496_v63 = vrot.slane %v6395_v26, 1 }
  0x31   : > { %12635 = vst [vmem:[#allocation30_spill] sm:$0xff] %v6385_v29  ;;  %v481_v34 = vsel %vm391_vm0, %v478_v62, %v480_v3  ;;  %12636 = vst [vmem:[#allocation31_spill] sm:$0xff] %v6392_v60  ;;  %v477_v62 = vsel %vm391_vm0, %v474_v17, %v476_v49  ;;  %v494_v21 = vrot.slane %v6392_v60, 1 }
  0x32   : > { %4645 = vrot.lane.b32.xlu1 %v6314_v14, %s6023_s20  ;;  %v6367_v14 = vld [vmem:[%s6075_s19 + $0x1a8] sm:$0xff]  ;;  %12637 = vst [vmem:[#allocation32_spill] sm:$0xff] %v6395_v26  ;;  %12638 = vst [vmem:[#allocation33_spill] sm:$0xff] %v6399_v35  ;;  %v475_v3 = vsel %vm391_vm0, %v473_v55, %v474_v17  ;;  %v6410_v50 = vpack.i.bf16 %v481_v34, %v479_v45  ;;  %v6418_v55 = vld [vmem:[%s6075_s19 + $0x1c0] sm:$0xff] }
  0x33   : > { %4640 = vrot.lane.b32.xlu0 %v6335_v43, %s6023_s20  ;;  %12631 = vst [vmem:[#allocation26_spill] sm:$0xff] %v6367_v14  ;;  %v6382_v43 = vld [vmem:[%s6075_s19 + $0x190] sm:$0xff]  ;;  %v487_v15 = vrot.slane %v6367_v14, 1  ;;  %v483_v14 = vrot.slane %v6385_v29, 1  ;;  %12642 = vst [vmem:[#allocation37_spill] sm:$0xff] %v6418_v55  ;;  %v6425_v45 = vpack.i.bf16 %v477_v62, %v475_v3  ;;  %v497_v62 = vsel %vm391_vm0, %v494_v21, %v496_v63 }
  0x34   : > { %12634 = vst [vmem:[#allocation29_spill] sm:$0xff] %v6382_v43  ;;  %v482_v33 = vrot.slane %v6382_v43, 1  ;;  %12640 = vst [vmem:[#allocation35_spill] sm:$0xff] %v6410_v50  ;;  %v6428_v34 = vld [vmem:[%s6075_s19 + $0x1f0] sm:$0xff]  ;;  %v6434_v26 = vld [vmem:[%s6075_s19 + $0x200] sm:$0x3] }
  0x35   : > { %v488_v49 = vsel %vm391_vm0, %v485_v51, %v487_v15  ;;  %v490_v17 = vsel %vm391_vm0, %v487_v15, %v489_v40  ;;  %12643 = vst [vmem:[#allocation38_spill] sm:$0xff] %v6425_v45  ;;  %12644 = vst [vmem:[#allocation39_spill] sm:$0xff] %v6428_v34  ;;  %v486_v43 = vsel %vm391_vm0, %v483_v14, %v485_v51  ;;  %v492_v15 = vrot.slane %v6418_v55, 1 }
  0x36   : > { %4655 = vrot.lane.b32.xlu1 %v6346_v61, %s6023_s20  ;;  %v6402_v61 = vld [vmem:[%s6075_s19 + $0x1d8] sm:$0x3]  ;;  %12646 = vst [vmem:[#allocation41_spill] sm:$0xff] %v6434_v26  ;;  %v484_v60 = vsel %vm391_vm0, %v482_v33, %v483_v14  ;;  %v6442_v3 = vpack.i.bf16 %v490_v17, %v488_v49  ;;  %v503_v14 = vrot.slane %v6428_v34, 1  ;;  %v507_v55 = vrot.slane %v6434_v26, 1  ;;  %v6459_v49 = vld [vmem:[%s6075_s19 + $0x220] sm:$0xff] }
  0x37   : > { %4650 = vrot.lane.b32.xlu0 %v6361_v16, %s6023_s20  ;;  %12639 = vst [vmem:[#allocation34_spill] sm:$0xff] %v6402_v61  ;;  %v6415_v16 = vld [vmem:[%s6075_s19 + $0x1b8] sm:$0xff]  ;;  %v498_v29 = vrot.slane %v6402_v61, 1  ;;  %v6449_v61 = vld [vmem:[%s6075_s19 + $0x1e8] sm:$0xff]  ;;  %12651 = vst [vmem:[#allocation46_spill] sm:$0xff] %v6459_v49  ;;  %v6463_v17 = vpack.i.bf16 %v486_v43, %v484_v60  ;;  %v514_v43 = vrot.slane %v6459_v49, 1 }
  0x38   : > { %12641 = vst [vmem:[#allocation36_spill] sm:$0xff] %v6415_v16  ;;  %v491_v40 = vrot.slane %v6415_v16, 1  ;;  %12647 = vst [vmem:[#allocation42_spill] sm:$0xff] %v6442_v3  ;;  %v6456_v16 = vld [vmem:[%s6075_s19 + $0x218] sm:$0xff]  ;;  %v6498_v49 = vld [vmem:[%s6075_s19 + $0x250] sm:$0x3] }
  0x39   : > { %12649 = vst [vmem:[#allocation44_spill] sm:$0xff] %v6449_v61  ;;  %v499_v33 = vsel %vm391_vm0, %v496_v63, %v498_v29  ;;  %12650 = vst [vmem:[#allocation45_spill] sm:$0xff] %v6456_v16  ;;  %v495_v63 = vsel %vm391_vm0, %v492_v15, %v494_v21  ;;  %v512_v60 = vrot.slane %v6456_v16, 1 }
  0x3a   : > { %4665 = vrot.lane.b32.xlu1 %v6378_v44, %s6023_s20  ;;  %v6431_v44 = vld [vmem:[%s6075_s19 + $0x1f8] sm:$0xff]  ;;  %12652 = vst [vmem:[#allocation47_spill] sm:$0xff] %v6463_v17  ;;  %v493_v29 = vsel %vm391_vm0, %v491_v40, %v492_v15  ;;  %v6474_v34 = vpack.i.bf16 %v499_v33, %v497_v62  ;;  %v6482_v40 = vld [vmem:[%s6075_s19 + $0x210] sm:$0xff]  ;;  %v6492_v33 = vld [vmem:[%s6075_s19 + $0x240] sm:$0xff] }
  0x3b   : > { %4660 = vrot.lane.b32.xlu0 %v6399_v35, %s6023_s20  ;;  %12645 = vst [vmem:[#allocation40_spill] sm:$0xff] %v6431_v44  ;;  %v6446_v35 = vld [vmem:[%s6075_s19 + $0x1e0] sm:$0xff]  ;;  %v505_v51 = vrot.slane %v6431_v44, 1  ;;  %v501_v44 = vrot.slane %v6449_v61, 1  ;;  %12656 = vst [vmem:[#allocation51_spill] sm:$0xff] %v6482_v40  ;;  %v6489_v62 = vpack.i.bf16 %v495_v63, %v493_v29  ;;  %v515_v63 = vsel %vm391_vm0, %v512_v60, %v514_v43 }
  0x3c   : > { %12648 = vst [vmem:[#allocation43_spill] sm:$0xff] %v6446_v35  ;;  %v500_v26 = vrot.slane %v6446_v35, 1  ;;  %12654 = vst [vmem:[#allocation49_spill] sm:$0xff] %v6474_v34 }
  0x3d   : > { %v506_v21 = vsel %vm391_vm0, %v503_v14, %v505_v51  ;;  %v508_v15 = vsel %vm391_vm0, %v505_v51, %v507_v55  ;;  %12657 = vst [vmem:[#allocation52_spill] sm:$0xff] %v6489_v62  ;;  %12658 = vst [vmem:[#allocation53_spill] sm:$0xff] %v6492_v33  ;;  %v504_v35 = vsel %vm391_vm0, %v501_v44, %v503_v14  ;;  %v510_v51 = vrot.slane %v6482_v40, 1 }
  0x3e   : > { %4675 = vrot.lane.b32.xlu1 %v6410_v50, %s6023_s20  ;;  %v6466_v50 = vld [vmem:[%s6075_s19 + $0x228] sm:$0x3]  ;;  %12660 = vst [vmem:[#allocation55_spill] sm:$0xff] %v6498_v49  ;;  %v502_v16 = vsel %vm391_vm0, %v500_v26, %v501_v44  ;;  %v6506_v29 = vpack.i.bf16 %v508_v15, %v506_v21  ;;  %v521_v44 = vrot.slane %v6492_v33, 1  ;;  %v525_v40 = vrot.slane %v6498_v49, 1  ;;  %v6523_v21 = vld [vmem:[%s6075_s19 + $0x270] sm:$0xff] }
  0x3f   : > { %4670 = vrot.lane.b32.xlu0 %v6425_v45, %s6023_s20  ;;  %12653 = vst [vmem:[#allocation48_spill] sm:$0xff] %v6466_v50  ;;  %v6479_v45 = vld [vmem:[%s6075_s19 + $0x208] sm:$0xff]  ;;  %v516_v61 = vrot.slane %v6466_v50, 1  ;;  %v6513_v50 = vld [vmem:[%s6075_s19 + $0x238] sm:$0xff]  ;;  %12665 = vst [vmem:[#allocation60_spill] sm:$0xff] %v6523_v21  ;;  %v6527_v15 = vpack.i.bf16 %v504_v35, %v502_v16  ;;  %v532_v35 = vrot.slane %v6523_v21, 1 }
  0x40   : > { %12655 = vst [vmem:[#allocation50_spill] sm:$0xff] %v6479_v45  ;;  %v509_v55 = vrot.slane %v6479_v45, 1  ;;  %12661 = vst [vmem:[#allocation56_spill] sm:$0xff] %v6506_v29  ;;  %v6520_v45 = vld [vmem:[%s6075_s19 + $0x268] sm:$0xff]  ;;  %v6562_v21 = vld [vmem:[%s6075_s19 + $0x2a0] sm:$0x3] }
  0x41   : > { %12663 = vst [vmem:[#allocation58_spill] sm:$0xff] %v6513_v50  ;;  %v517_v26 = vsel %vm391_vm0, %v514_v43, %v516_v61  ;;  %12664 = vst [vmem:[#allocation59_spill] sm:$0xff] %v6520_v45  ;;  %v513_v43 = vsel %vm391_vm0, %v510_v51, %v512_v60  ;;  %v530_v16 = vrot.slane %v6520_v45, 1 }
  0x42   : > { %4685 = vrot.lane.b32.xlu1 %v6442_v3, %s6023_s20  ;;  %v6495_v3 = vld [vmem:[%s6075_s19 + $0x248] sm:$0xff]  ;;  %12666 = vst [vmem:[#allocation61_spill] sm:$0xff] %v6527_v15  ;;  %v511_v61 = vsel %vm391_vm0, %v509_v55, %v510_v51  ;;  %v6538_v33 = vpack.i.bf16 %v517_v26, %v515_v63  ;;  %v6546_v55 = vld [vmem:[%s6075_s19 + $0x260] sm:$0xff]  ;;  %v6556_v26 = vld [vmem:[%s6075_s19 + $0x290] sm:$0xff] }
  0x43   : > { %4680 = vrot.lane.b32.xlu0 %v6463_v17, %s6023_s20  ;;  %12659 = vst [vmem:[#allocation54_spill] sm:$0xff] %v6495_v3  ;;  %v6510_v17 = vld [vmem:[%s6075_s19 + $0x230] sm:$0xff]  ;;  %v523_v14 = vrot.slane %v6495_v3, 1  ;;  %v519_v3 = vrot.slane %v6513_v50, 1  ;;  %12669 = vst [vmem:[#allocation64_spill] sm:$0xff] %v6546_v55  ;;  %v6553_v63 = vpack.i.bf16 %v513_v43, %v511_v61  ;;  %v6577_v43 = vsel %vm391_vm0, %v530_v16, %v532_v35 }
  0x44   : > { %12662 = vst [vmem:[#allocation57_spill] sm:$0xff] %v6510_v17  ;;  %v518_v49 = vrot.slane %v6510_v17, 1  ;;  %12668 = vst [vmem:[#allocation63_spill] sm:$0xff] %v6538_v33 }
  0x45   : > { %v524_v60 = vsel %vm391_vm0, %v521_v44, %v523_v14  ;;  %v526_v51 = vsel %vm391_vm0, %v523_v14, %v525_v40  ;;  %12670 = vst [vmem:[#allocation65_spill] sm:$0xff] %v6553_v63  ;;  %v6568_v17 = vsel %vm391_vm0, %v519_v3, %v521_v44  ;;  %v528_v14 = vrot.slane %v6546_v55, 1  ;;  %12674 = vst [vmem:[#allocation69_spill] sm:$0xff] %v6577_v43 }
  0x46   : > { %4695 = vrot.lane.b32.xlu1 %v6474_v34, %s6023_s20  ;;  %v6530_v34 = vld [vmem:[%s6075_s19 + $0x278] sm:$0x3]  ;;  %v6565_v45 = vsel %vm391_vm0, %v518_v49, %v519_v3  ;;  %12672 = vst [vmem:[#allocation67_spill] sm:$0xff] %v6568_v17  ;;  %v6574_v61 = vpack.i.bf16 %v526_v51, %v524_v60  ;;  %v539_v3 = vrot.slane %v6556_v26, 1  ;;  %v543_v55 = vrot.slane %v6562_v21, 1 }
  0x47   : > { %4690 = vrot.lane.b32.xlu0 %v6489_v62, %s6023_s20  ;;  %12667 = vst [vmem:[#allocation62_spill] sm:$0xff] %v6530_v34  ;;  %v6543_v62 = vld [vmem:[%s6075_s19 + $0x258] sm:$0xff]  ;;  %v534_v50 = vrot.slane %v6530_v34, 1  ;;  %12671 = vst [vmem:[#allocation66_spill] sm:$0xff] %v6565_v45  ;;  %v6583_v34 = vld [vmem:[%s6075_s19 + $0x288] sm:$0xff]  ;;  %v6595_v60 = vpack.i.bf16 %v6568_v17, %v6565_v45  ;;  %v549_v17 = vrot.slane %v6096_v8, 2 }
  0x48   : > { %v527_v40 = vrot.slane %v6543_v62, 1  ;;  %12673 = vst [vmem:[#allocation68_spill] sm:$0xff] %v6574_v61  ;;  %v551_v45 = vrot.slane %v6112_v18, 2  ;;  %v546_v18 = vrot.slane %v6090_v6, 2 }
  0x49   : > { %v6586_v49 = vsel %vm391_vm0, %v532_v35, %v534_v50  ;;  %12676 = vst [vmem:[#allocation71_spill] sm:$0xff] %v6595_v60  ;;  %v537_v35 = vrot.slane %v6583_v34, 1 }
  0x4a   : > { %4705 = vrot.lane.b32.xlu1 %v6506_v29, %s6023_s20  ;;  %v6559_v29 = vld [vmem:[%s6075_s19 + $0x298] sm:$0xff]  ;;  %12675 = vst [vmem:[#allocation70_spill] sm:$0xff] %v6586_v49  ;;  %v6598_v51 = vsel %vm391_vm0, %v527_v40, %v528_v14 }
  0x4b   : > { %4700 = vrot.lane.b32.xlu0 %v6527_v15, %s6023_s20  ;;  %v6580_v15 = vld [vmem:[%s6075_s19 + $0x280] sm:$0xff]  ;;  %v541_v44 = vrot.slane %v6559_v29, 1  ;;  %12677 = vst [vmem:[#allocation72_spill] sm:$0xff] %v6598_v51  ;;  %v6626_v8 = vsel %vm391_vm0, %v537_v35, %v539_v3 }
  0x4c   : > { %v536_v50 = vrot.slane %v6580_v15, 1  ;;  %12682 = vst [vmem:[#allocation77_spill] sm:$0xff] %v6626_v8 }
  0x4d   : > { %v542_v40 = vsel %vm391_vm0, %v539_v3, %v541_v44  ;;  %v562_v3 = vrot.slane %v6105_v13, 2  ;;  %v569_v13 = vrot.slane %v6124_v23, 2 }
  0x4e   : > { %4715 = vrot.lane.b32.xlu1 %v6538_v33, %s6023_s20  ;;  %v6601_v33 = vsel %vm391_vm0, %v528_v14, %v530_v16  ;;  %v544_v16 = vsel %vm391_vm0, %v541_v44, %v543_v55  ;;  %v553_v14 = vrot.slane %v6115_v19, 2  ;;  %v547_v55 = vrot.slane %v6093_v7, 2 }
  0x4f   : > { %4710 = vrot.lane.b32.xlu0 %v6553_v63, %s6023_s20  ;;  %12678 = vst [vmem:[#allocation73_spill] sm:$0xff] %v6601_v33  ;;  %v6609_v63 = vpack.i.bf16 %v6586_v49, %v6577_v43  ;;  %v6623_v49 = vsel %vm391_vm0, %v536_v50, %v537_v35  ;;  %v6632_v19 = vpack.i.bf16 %v544_v16, %v542_v40  ;;  %v558_v43 = vrot.slane %v6084_v2, 2 }
  0x50   : > { %12681 = vst [vmem:[#allocation76_spill] sm:$0xff] %v6623_v49  ;;  %v552_v44 = vsel %vm545_vm1, %v549_v17, %v551_v45  ;;  %v560_v50 = vrot.slane %v6102_v12, 2  ;;  %v6643_v6 = vpack.i.bf16 %v6626_v8, %v6623_v49  ;;  %v548_v7 = vsel %vm545_vm1, %v546_v18, %v547_v55  ;;  %v12707_v49 = vld [vmem:[#allocation23_spill] sm:$0xff] }
  0x51   : > { %12679 = vst [vmem:[#allocation74_spill] sm:$0xff] %v6609_v63  ;;  %12683 = vst [vmem:[#allocation78_spill] sm:$0xff] %v6632_v19  ;;  %v550_v35 = vsel %vm545_vm1, %v547_v55, %v549_v17  ;;  %v555_v40 = vrot.slane %v6078_v0, 2  ;;  %v567_v12 = vrot.slane %v6118_v20, 2  ;;  %v571_v18 = vrot.slane %v6127_v24, 2 }
  0x52   : > { %4725 = vrot.lane.b32.xlu1 %v6574_v61, %s6023_s20  ;;  %v6620_v61 = vpack.i.bf16 %v6601_v33, %v6598_v51  ;;  %12684 = vst [vmem:[#allocation79_spill] sm:$0xff] %v6643_v6  ;;  %v561_v16 = vsel %vm545_vm1, %v558_v43, %v560_v50  ;;  %v4749_v0 = vpack.i.bf16 %v550_v35, %v548_v7  ;;  %v565_v20 = vrot.slane %v6137_v30, 2  ;;  %v12710_v33 = vld [vmem:[#allocation26_spill] sm:$0xff] }
  0x53   : > { %4720 = vrot.lane.b32.xlu0 %v6595_v60, %s6023_s20  ;;  %v554_v60 = vsel %vm545_vm1, %v551_v45, %v553_v14  ;;  %v556_v45 = vrot.slane %v6081_v1, 2  ;;  %v563_v14 = vsel %vm545_vm1, %v560_v50, %v562_v3  ;;  %v570_v55 = vsel %vm545_vm1, %v567_v12, %v569_v13 }
  0x54   : > { %12680 = vst [vmem:[#allocation75_spill] sm:$0xff] %v6620_v61  ;;  %v4754_v2 = vpack.i.bf16 %v554_v60, %v552_v44  ;;  %v564_v60 = vrot.slane %v6130_v25, 2  ;;  %v6663_v23 = vpack.i.bf16 %v563_v14, %v561_v16  ;;  %v572_v24 = vsel %vm545_vm1, %v569_v13, %v571_v18 }
  0x55   : > { %v557_v1 = vsel %vm545_vm1, %v555_v40, %v556_v45  ;;  %v559_v17 = vsel %vm545_vm1, %v556_v45, %v558_v43  ;;  %v576_v44 = vrot.slane %v6140_v31, 2  ;;  %v578_v50 = vrot.slane %v6143_v32, 2 }
  0x56   : > { %4735 = vrot.lane.b32.xlu1 %v6609_v63, %s6023_s20  ;;  %12685 = vst [vmem:[#allocation80_spill] sm:$0xff] %v6663_v23  ;;  %v580_v3 = vrot.slane %v6152_v37, 2  ;;  %v6671_v25 = vpack.i.bf16 %v559_v17, %v557_v1  ;;  %v566_v30 = vsel %vm545_vm1, %v564_v60, %v565_v20  ;;  %v568_v43 = vsel %vm545_vm1, %v565_v20, %v567_v12 }
  0x57   : > { %4730 = vrot.lane.b32.xlu0 %v6620_v61, %s6023_s20  ;;  %v573_v7 = vrot.slane %v6164_v46, 2  ;;  %v574_v35 = vrot.slane %v6167_v47, 2  ;;  %v6679_v31 = vpack.i.bf16 %v572_v24, %v570_v55  ;;  %v585_v32 = vrot.slane %v6173_v52, 2 }
  0x58   : > { %12686 = vst [vmem:[#allocation81_spill] sm:$0xff] %v6671_v25  ;;  %v587_v37 = vrot.slane %v6176_v53, 2  ;;  %v579_v40 = vsel %vm545_vm1, %v576_v44, %v578_v50  ;;  %v581_v45 = vsel %vm545_vm1, %v578_v50, %v580_v3  ;;  %v6688_v12 = vpack.i.bf16 %v568_v43, %v566_v30 }
  0x59   : > { %12687 = vst [vmem:[#allocation82_spill] sm:$0xff] %v6679_v31  ;;  %v575_v13 = vsel %vm545_vm1, %v573_v7, %v574_v35  ;;  %v577_v16 = vsel %vm545_vm1, %v574_v35, %v576_v44  ;;  %v582_v14 = vrot.slane %v6188_v58, 2  ;;  %v583_v18 = vrot.slane %v6191_v59, 2 }
  0x5a   : > { %4745 = vrot.lane.b32.xlu1 %v6632_v19, %s6023_s20  ;;  %12688 = vst [vmem:[#allocation83_spill] sm:$0xff] %v6688_v12  ;;  %v594_v17 = vrot.slane %v6204_v10, 2  ;;  %v596_v60 = vrot.slane %v6207_v11, 2  ;;  %v598_v20 = vrot.slane %v6214_v22, 2  ;;  %v6705_v55 = vpack.i.bf16 %v577_v16, %v575_v13 }
  0x5b   : > { %4740 = vrot.lane.b32.xlu0 %v6643_v6, %s6023_s20  ;;  %v584_v24 = vsel %vm545_vm1, %v582_v14, %v583_v18  ;;  %v586_v44 = vsel %vm545_vm1, %v583_v18, %v585_v32  ;;  %v591_v50 = vrot.slane %v6221_v27, 2  ;;  %v592_v3 = vrot.slane %v6224_v28, 2 }
  0x5c   : > { %12690 = vst [vmem:[#allocation85_spill] sm:$0xff] %v6705_v55  ;;  %v603_v22 = vrot.slane %v6231_v38, 2  ;;  %v605_v43 = vrot.slane %v6234_v39, 2  ;;  %v597_v7 = vsel %vm545_vm1, %v594_v17, %v596_v60  ;;  %v599_v35 = vsel %vm545_vm1, %v596_v60, %v598_v20 }
  0x5d   : > { %v601_v13 = vrot.slane %v6258_v57, 2  ;;  %v6730_v16 = vpack.i.bf16 %v599_v35, %v597_v7  ;;  %v612_v18 = vrot.slane %v6268_v4, 2 }
  0x5e   : > { %4755 = vrot.lane.b32.xlu1 %v4754_v2, %s6024_s21  ;;  %v589_v2 = vrot.slane %v6179_v54, 2  ;;  %v588_v54 = vsel %vm545_vm1, %v585_v32, %v587_v37  ;;  %v6722_v32 = vpack.i.bf16 %v586_v44, %v584_v24  ;;  %v609_v24 = vrot.slane %v6286_v36, 2 }
  0x5f   : > { %4750 = vrot.lane.b32.xlu0 %v4749_v0, %s6024_s21  ;;  %v6696_v0 = vpack.i.bf16 %v581_v45, %v579_v40  ;;  %v593_v40 = vsel %vm545_vm1, %v591_v50, %v592_v3  ;;  %v595_v45 = vsel %vm545_vm1, %v592_v3, %v594_v17  ;;  %12693 = vst [vmem:[#allocation88_spill] sm:$0xff] %v6730_v16  ;;  %v610_v44 = vrot.slane %v6289_v41, 2  ;;  %v12696_v3 = vld [vmem:[#allocation12_spill] sm:$0xff] }
  0x60   : > { %v590_v1 = vsel %vm545_vm1, %v587_v37, %v589_v2  ;;  %v607_v37 = vrot.slane %v6242_v42, 2  ;;  %12692 = vst [vmem:[#allocation87_spill] sm:$0xff] %v6722_v32  ;;  %v600_v2 = vrot.slane %v6255_v56, 2  ;;  %v606_v42 = vsel %vm545_vm1, %v603_v22, %v605_v43 }
  0x61   : > { %12689 = vst [vmem:[#allocation84_spill] sm:$0xff] %v6696_v0  ;;  %v6713_v30 = vpack.i.bf16 %v590_v1, %v588_v54  ;;  %v614_v54 = vrot.slane %v6271_v5, 2  ;;  %v616_v1 = vrot.slane %v6274_v9, 2  ;;  %v6739_v17 = vpack.i.bf16 %v595_v45, %v593_v40 }
  0x62   : > { %4765 = vrot.lane.b32.xlu1 %v6663_v23, %s6024_s21  ;;  %v608_v14 = vsel %vm545_vm1, %v605_v43, %v607_v37  ;;  %v602_v60 = vsel %vm545_vm1, %v600_v2, %v601_v13  ;;  %v604_v20 = vsel %vm545_vm1, %v601_v13, %v603_v22  ;;  %v621_v9 = vrot.slane %v6296_v48, 2  ;;  %v12697_v37 = vld [vmem:[#allocation13_spill] sm:$0xff]  ;;  %v12699_v13 = vld [vmem:[#allocation15_spill] sm:$0xff] }
  0x63   : > { %4760 = vrot.lane.b32.xlu0 %v6671_v25, %s6024_s21  ;;  %12691 = vst [vmem:[#allocation86_spill] sm:$0xff] %v6713_v30  ;;  %12694 = vst [vmem:[#allocation89_spill] sm:$0xff] %v6739_v17  ;;  %v6747_v50 = vpack.i.bf16 %v608_v14, %v606_v42  ;;  %v623_v43 = vrot.slane %v12696_v3, 2  ;;  %v615_v7 = vsel %vm545_vm1, %v612_v18, %v614_v54  ;;  %v625_v40 = vrot.slane %v12697_v37, 2  ;;  %v12700_v14 = vld [vmem:[#allocation16_spill] sm:$0xff]  ;;  %v12702_v37 = vld [vmem:[#allocation17_spill] sm:$0xff] }
  0x64   : > { %v617_v35 = vsel %vm545_vm1, %v614_v54, %v616_v1  ;;  %v6756_v22 = vpack.i.bf16 %v604_v20, %v602_v60  ;;  %v611_v45 = vsel %vm545_vm1, %v609_v24, %v610_v44  ;;  %v613_v2 = vsel %vm545_vm1, %v610_v44, %v612_v18  ;;  %v12703_v20 = vld [vmem:[#allocation18_spill] sm:$0xff]  ;;  %v12704_v24 = vld [vmem:[#allocation20_spill] sm:$0xff] }
  0x65   : > { %12695 = vst [vmem:[#allocation90_spill] sm:$0xff] %v6747_v50  ;;  %v618_v42 = vrot.slane %v12699_v13, 2  ;;  %v619_v19 = vrot.slane %v12700_v14, 2  ;;  %v6764_v8 = vpack.i.bf16 %v617_v35, %v615_v7  ;;  %v624_v54 = vsel %vm545_vm1, %v621_v9, %v623_v43  ;;  %v12706_v35 = vld [vmem:[#allocation22_spill] sm:$0xff] }
  0x66   : > { %4775 = vrot.lane.b32.xlu1 %v6679_v31, %s6024_s21  ;;  %12698 = vst [vmem:[#allocation12_spill] sm:$0xff] %v6756_v22  ;;  %v626_v1 = vsel %vm545_vm1, %v623_v43, %v625_v40  ;;  %v630_v60 = vrot.slane %v12702_v37, 2  ;;  %v632_v6 = vrot.slane %v12703_v20, 2  ;;  %v634_v63 = vrot.slane %v12704_v24, 2  ;;  %v12709_v40 = vld [vmem:[#allocation25_spill] sm:$0xff] }
  0x67   : > { %4770 = vrot.lane.b32.xlu0 %v6688_v12, %s6024_s21  ;;  %12701 = vst [vmem:[#allocation13_spill] sm:$0xff] %v6764_v8  ;;  %v6773_v18 = vpack.i.bf16 %v613_v2, %v611_v45  ;;  %v620_v44 = vsel %vm545_vm1, %v618_v42, %v619_v19  ;;  %v622_v7 = vsel %vm545_vm1, %v619_v19, %v621_v9  ;;  %v627_v61 = vrot.slane %v12706_v35, 2  ;;  %v12711_v42 = vld [vmem:[#allocation27_spill] sm:$0xff]  ;;  %v12714_v12 = vld [vmem:[#allocation30_spill] sm:$0xff] }
  0x68   : > { %v6781_v43 = vpack.i.bf16 %v626_v1, %v624_v54  ;;  %v639_v24 = vrot.slane %v12709_v40, 2  ;;  %v641_v31 = vrot.slane %v12710_v33, 2  ;;  %v633_v45 = vsel %vm545_vm1, %v630_v60, %v632_v6  ;;  %v12713_v1 = vld [vmem:[#allocation29_spill] sm:$0xff] }
  0x69   : > { %12705 = vst [vmem:[#allocation15_spill] sm:$0xff] %v6773_v18  ;;  %v635_v2 = vsel %vm545_vm1, %v632_v6, %v634_v63  ;;  %v6790_v19 = vpack.i.bf16 %v622_v7, %v620_v44  ;;  %v12717_v7 = vld [vmem:[#allocation32_spill] sm:$0xff] }
  0x6a   : > { %4785 = vrot.lane.b32.xlu1 %v6696_v0, %s6024_s21  ;;  %12708 = vst [vmem:[#allocation16_spill] sm:$0xff] %v6781_v43  ;;  %v642_v63 = vsel %vm545_vm1, %v639_v24, %v641_v31  ;;  %v12721_v0 = vld [vmem:[#allocation37_spill] sm:$0xff] }
  0x6b   : > { %4780 = vrot.lane.b32.xlu0 %v6705_v55, %s6024_s21  ;;  %12712 = vst [vmem:[#allocation17_spill] sm:$0xff] %v6790_v19  ;;  %v12728_v55 = vld [vmem:[#allocation44_spill] sm:$0xff] }
  0x6c   : > { %v655_v51 = vrot.slane %v12728_v55, 2  ;;  %v12735_v55 = vld [vmem:[#allocation51_spill] sm:$0xff] }
  0x6e   : > { %4795 = vrot.lane.b32.xlu1 %v6713_v30, %s6024_s21  ;;  %v643_v30 = vrot.slane %v12711_v42, 2  ;;  %v12716_v42 = vld [vmem:[#allocation31_spill] sm:$0xff] }
  0x6f   : > { %4790 = vrot.lane.b32.xlu0 %v6722_v32, %s6024_s21  ;;  %v637_v32 = vrot.slane %v12714_v12, 2  ;;  %v648_v44 = vrot.slane %v12716_v42, 2 }
  0x70   : > { %v644_v6 = vsel %vm545_vm1, %v641_v31, %v643_v30  ;;  %v12723_v30 = vld [vmem:[#allocation39_spill] sm:$0xff] }
  0x71   : > { %v6815_v31 = vpack.i.bf16 %v644_v6, %v642_v63  ;;  %v12727_v6 = vld [vmem:[#allocation43_spill] sm:$0xff] }
  0x72   : > { %4805 = vrot.lane.b32.xlu1 %v6730_v16, %s6024_s21  ;;  %v6798_v16 = vpack.i.bf16 %v635_v2, %v633_v45  ;;  %v640_v45 = vsel %vm545_vm1, %v637_v32, %v639_v24  ;;  %v12720_v2 = vld [vmem:[#allocation36_spill] sm:$0xff] }
  0x73   : > { %4800 = vrot.lane.b32.xlu0 %v6739_v17, %s6024_s21  ;;  %v646_v17 = vrot.slane %v12721_v0, 2  ;;  %12722 = vst [vmem:[#allocation22_spill] sm:$0xff] %v6815_v31 }
  0x74   : > { %12715 = vst [vmem:[#allocation18_spill] sm:$0xff] %v6798_v16 }
  0x75   : > { %v649_v63 = vsel %vm545_vm1, %v646_v17, %v648_v44 }
  0x76   : > { %4815 = vrot.lane.b32.xlu1 %v6747_v50, %s6024_s21  ;;  %v628_v50 = vrot.slane %v12707_v49, 2 }
  0x77   : > { %4810 = vrot.lane.b32.xlu0 %v6756_v22, %s6024_s21  ;;  %v636_v22 = vrot.slane %v12713_v1, 2 }
  0x78   : > { %v629_v9 = vsel %vm545_vm1, %v627_v61, %v628_v50  ;;  %v631_v54 = vsel %vm545_vm1, %v628_v50, %v630_v60  ;;  %v12718_v61 = vld [vmem:[#allocation34_spill] sm:$0xff] }
  0x79   : > { %v652_v23 = vrot.slane %v12718_v61, 2  ;;  %v6807_v50 = vpack.i.bf16 %v631_v54, %v629_v9  ;;  %v638_v60 = vsel %vm545_vm1, %v636_v22, %v637_v32  ;;  %v657_v61 = vrot.slane %v12723_v30, 2  ;;  %v12725_v22 = vld [vmem:[#allocation41_spill] sm:$0xff] }
  0x7a   : > { %4825 = vrot.lane.b32.xlu1 %v6764_v8, %s6024_s21  ;;  %v650_v8 = vrot.slane %v12717_v7, 2  ;;  %v6824_v32 = vpack.i.bf16 %v640_v45, %v638_v60  ;;  %v12731_v45 = vld [vmem:[#allocation46_spill] sm:$0xff] }
  0x7b   : > { %4820 = vrot.lane.b32.xlu0 %v6773_v18, %s6024_s21  ;;  %12719 = vst [vmem:[#allocation20_spill] sm:$0xff] %v6807_v50  ;;  %v12724_v18 = vld [vmem:[#allocation40_spill] sm:$0xff] }
  0x7c   : > { %v659_v25 = vrot.slane %v12724_v18, 2  ;;  %v651_v9 = vsel %vm545_vm1, %v648_v44, %v650_v8  ;;  %v653_v54 = vsel %vm545_vm1, %v650_v8, %v652_v23  ;;  %12726 = vst [vmem:[#allocation23_spill] sm:$0xff] %v6824_v32 }
  0x7d   : > { %v6832_v18 = vpack.i.bf16 %v653_v54, %v651_v9  ;;  %v658_v9 = vsel %vm545_vm1, %v655_v51, %v657_v61  ;;  %v12734_v54 = vld [vmem:[#allocation50_spill] sm:$0xff] }
  0x7e   : > { %4835 = vrot.lane.b32.xlu1 %v6781_v43, %s6024_s21  ;;  %v645_v43 = vrot.slane %v12720_v2, 2  ;;  %v660_v8 = vsel %vm545_vm1, %v657_v61, %v659_v25 }
  0x7f   : > { %4830 = vrot.lane.b32.xlu0 %v6790_v19, %s6024_s21  ;;  %v661_v19 = vrot.slane %v12725_v22, 2  ;;  %12729 = vst [vmem:[#allocation25_spill] sm:$0xff] %v6832_v18  ;;  %v12730_v22 = vld [vmem:[#allocation45_spill] sm:$0xff] }
  0x80   : > { %v647_v24 = vsel %vm545_vm1, %v645_v43, %v646_v17  ;;  %v666_v60 = vrot.slane %v12730_v22, 2  ;;  %v12732_v43 = vld [vmem:[#allocation48_spill] sm:$0xff] }
  0x81   : > { %v662_v23 = vsel %vm545_vm1, %v659_v25, %v661_v19  ;;  %v670_v30 = vrot.slane %v12732_v43, 2  ;;  %v6841_v17 = vpack.i.bf16 %v649_v63, %v647_v24  ;;  %v12737_v19 = vld [vmem:[#allocation53_spill] sm:$0xff] }
  0x82   : > { %4845 = vrot.lane.b32.xlu1 %v6798_v16, %s6024_s21  ;;  %v654_v16 = vrot.slane %v12727_v6, 2  ;;  %v664_v6 = vrot.slane %v12735_v55, 2  ;;  %v6849_v25 = vpack.i.bf16 %v662_v23, %v660_v8  ;;  %v675_v43 = vrot.slane %v12737_v19, 2 }
  0x83   : > { %4840 = vrot.lane.b32.xlu0 %v6807_v50, %s6024_s21  ;;  %v668_v50 = vrot.slane %v12731_v45, 2  ;;  %12733 = vst [vmem:[#allocation26_spill] sm:$0xff] %v6841_v17  ;;  %v12738_v45 = vld [vmem:[#allocation54_spill] sm:$0xff] }
  0x84   : > { %v656_v44 = vsel %vm545_vm1, %v654_v16, %v655_v51  ;;  %12736 = vst [vmem:[#allocation27_spill] sm:$0xff] %v6849_v25  ;;  %v677_v22 = vrot.slane %v12738_v45, 2  ;;  %v12739_v16 = vld [vmem:[#allocation55_spill] sm:$0xff]  ;;  %v667_v23 = vsel %vm545_vm1, %v664_v6, %v666_v60  ;;  %v12743_v45 = vld [vmem:[#allocation58_spill] sm:$0xff] }
  0x85   : > { %v669_v24 = vsel %vm545_vm1, %v666_v60, %v668_v50  ;;  %v671_v63 = vsel %vm545_vm1, %v668_v50, %v670_v30  ;;  %v6860_v61 = vpack.i.bf16 %v658_v9, %v656_v44  ;;  %v673_v55 = vrot.slane %v12743_v45, 2  ;;  %v12746_v9 = vld [vmem:[#allocation59_spill] sm:$0xff] }
  0x86   : > { %4855 = vrot.lane.b32.xlu1 %v6815_v31, %s6024_s21  ;;  %v663_v31 = vrot.slane %v12734_v54, 2  ;;  %v6870_v50 = vpack.i.bf16 %v671_v63, %v669_v24  ;;  %v678_v30 = vsel %vm545_vm1, %v675_v43, %v677_v22 }
  0x87   : > { %4850 = vrot.lane.b32.xlu0 %v6824_v32, %s6024_s21  ;;  %v679_v32 = vrot.slane %v12739_v16, 2  ;;  %12741 = vst [vmem:[#allocation30_spill] sm:$0xff] %v6860_v61  ;;  %v684_v16 = vrot.slane %v12746_v9, 2  ;;  %v676_v63 = vsel %vm545_vm1, %v673_v55, %v675_v43 }
  0x88   : > { %v665_v8 = vsel %vm545_vm1, %v663_v31, %v664_v6  ;;  %12745 = vst [vmem:[#allocation32_spill] sm:$0xff] %v6870_v50  ;;  %v12747_v31 = vld [vmem:[#allocation60_spill] sm:$0xff]  ;;  %v12748_v6 = vld [vmem:[#allocation62_spill] sm:$0xff] }
  0x89   : > { %v680_v44 = vsel %vm545_vm1, %v677_v22, %v679_v32  ;;  %v688_v60 = vrot.slane %v12748_v6, 2  ;;  %v12751_v32 = vld [vmem:[#allocation64_spill] sm:$0xff] }
  0x8a   : > { %4865 = vrot.lane.b32.xlu1 %v6832_v18, %s6024_s21  ;;  %v12742_v18 = vld [vmem:[#allocation57_spill] sm:$0xff]  ;;  %v682_v22 = vrot.slane %v12751_v32, 2  ;;  %v6891_v6 = vpack.i.bf16 %v680_v44, %v678_v30 }
  0x8b   : > { %4860 = vrot.lane.b32.xlu0 %v6841_v17, %s6024_s21  ;;  %v672_v19 = vrot.slane %v12742_v18, 2  ;;  %v686_v17 = vrot.slane %v12747_v31, 2 }
  0x8c   : > { %v6858_v51 = vpop.permute.xlu1 %4590  ;;  %12753 = vst [vmem:[#allocation41_spill] sm:$0xff] %v6891_v6  ;;  %v685_v44 = vsel %vm545_vm1, %v682_v22, %v684_v16 }
  0x8d   : > { %12740 = vst [vmem:[#allocation29_spill] sm:$0xff] %v6858_v51  ;;  %v6866_v54 = vpop.permute.xlu0 %4580  ;;  %v674_v24 = vsel %vm545_vm1, %v672_v19, %v673_v55  ;;  %v695_v19 = vrot.slane %v6559_v29, 2  ;;  %v697_v55 = vrot.slane %v6562_v21, 2 }
  0x8e   : > { %12744 = vst [vmem:[#allocation31_spill] sm:$0xff] %v6866_v54  ;;  %4875 = vrot.lane.b32.xlu1 %v6849_v25, %s6024_s21  ;;  %v6881_v54 = vpack.i.bf16 %v667_v23, %v665_v8  ;;  %v681_v25 = vrot.slane %v6543_v62, 2  ;;  %v687_v8 = vsel %vm545_vm1, %v684_v16, %v686_v17  ;;  %v689_v23 = vsel %vm545_vm1, %v686_v17, %v688_v60 }
  0x8f   : > { %4870 = vrot.lane.b32.xlu0 %v6860_v61, %s6024_s21  ;;  %v693_v61 = vrot.slane %v6556_v26, 2  ;;  %v6912_v21 = vpack.i.bf16 %v689_v23, %v687_v8 }
  0x90   : > { %v6879_v51 = vpop.permute.xlu1 %4595  ;;  %12750 = vst [vmem:[#allocation36_spill] sm:$0xff] %v6881_v54  ;;  %v683_v30 = vsel %vm545_vm1, %v681_v25, %v682_v22 }
  0x91   : > { %12749 = vst [vmem:[#allocation34_spill] sm:$0xff] %v6879_v51  ;;  %v6887_v9 = vpop.permute.xlu0 %4585  ;;  %v691_v51 = vrot.slane %v6583_v34, 2  ;;  %12755 = vst [vmem:[#allocation55_spill] sm:$0xff] %v6912_v21  ;;  %v696_v60 = vsel %vm545_vm1, %v693_v61, %v695_v19  ;;  %v6920_v16 = vpack.i.bf16 %v685_v44, %v683_v30 }
  0x92   : > { %12752 = vst [vmem:[#allocation37_spill] sm:$0xff] %v6887_v9  ;;  %4885 = vrot.lane.b32.xlu1 %v6870_v50, %s6024_s21  ;;  %v6902_v9 = vpack.i.bf16 %v676_v63, %v674_v24  ;;  %v690_v50 = vrot.slane %v6580_v15, 2  ;;  %v698_v24 = vsel %vm545_vm1, %v695_v19, %v697_v55 }
  0x93   : > { %4880 = vrot.lane.b32.xlu0 %v6881_v54, %s6024_s21  ;;  %12756 = vst [vmem:[#allocation57_spill] sm:$0xff] %v6920_v16  ;;  %v694_v22 = vsel %vm545_vm1, %v691_v51, %v693_v61  ;;  %v6928_v23 = vpack.i.bf16 %v698_v24, %v696_v60  ;;  %v6944_v61 = vld [vmem:[%s6075_s19 + $0x40] sm:$0xff]  ;;  %v6955_v60 = vld [vmem:[%s6075_s19 + $0x28] sm:$0xff]  ;;  %v6958_v24 = vld [vmem:[%s6075_s19 + $0x30] sm:$0xff] }
  0x94   : > { %v6900_v43 = vpop.permute.xlu1 %4605  ;;  %12754 = vst [vmem:[#allocation48_spill] sm:$0xff] %v6902_v9  ;;  %v692_v63 = vsel %vm545_vm1, %v690_v50, %v691_v51  ;;  %v6941_v51 = vld [vmem:[%s6075_s19 + $0x38] sm:$0xff] }
  0x95   : > { %v6908_v17 = vpop.permute.xlu0 %4600  ;;  %12758 = vst [vmem:[#allocation60_spill] sm:$0xff] %v6928_v23  ;;  %v6934_v55 = vpack.i.bf16 %v694_v22, %v692_v63  ;;  %v6948_v30 = vpack.i.bf16 %v6944_v61, %v6941_v51  ;;  %v6962_v63 = vpack.i.bf16 %v6958_v24, %v6955_v60  ;;  %v6984_v54 = vld [vmem:[%s6075_s19 + $0x58] sm:$0xff] }
  0x96   : > { %4895 = vrot.lane.b32.xlu1 %v6891_v6, %s6024_s21  ;;  %v6969_v6 = vld [vmem:[%s6075_s19 + $0x60] sm:$0xff] }
  0x97   : > { %4890 = vrot.lane.b32.xlu0 %v6902_v9, %s6024_s21  ;;  %12759 = vst [vmem:[#allocation62_spill] sm:$0xff] %v6934_v55  ;;  %12761 = vst [vmem:[#allocation91_spill] sm:$0xff] %v6948_v30 }
  0x98   : > { %v6918_v25 = vpop.permute.xlu1 %4615  ;;  %12763 = vst [vmem:[#allocation93_spill] sm:$0xff] %v6962_v63 }
  0x99   : > { %v6924_v8 = vpop.permute.xlu0 %4610 }
  0x9a   : > { %12757 = vst [vmem:[#allocation58_spill] sm:$0xff] %v6924_v8  ;;  %4905 = vrot.lane.b32.xlu1 %v6912_v21, %s6024_s21  ;;  %v6981_v21 = vld [vmem:[%s6075_s19 + $0x50] sm:$0xff]  ;;  %v4939_v8 = vpack.i.bf16 %v6167_v47, %v6164_v46  ;;  %v4964_v46 = vpack.i.bf16 %v6207_v11, %v6204_v10  ;;  %v4969_v10 = vpack.i.bf16 %v6258_v57, %v6255_v56 }
  0x9b   : > { %4900 = vrot.lane.b32.xlu0 %v6920_v16, %s6024_s21  ;;  %v4929_v16 = vpack.i.bf16 %v6984_v54, %v6981_v21  ;;  %v4994_v56 = vpack.i.bf16 %v12696_v3, %v6296_v48  ;;  %v4999_v48 = vpack.i.bf16 %v12707_v49, %v12706_v35  ;;  %v5024_v49 = vpack.i.bf16 %v12717_v7, %v12716_v42  ;;  %v12775_v42 = vld [vmem:[#allocation44_spill] sm:$0xff] }
  0x9c   : > { %v6932_v19 = vpop.permute.xlu1 %4625 }
  0x9d   : > { %v6936_v50 = vpop.permute.xlu0 %4620 }
  0x9e   : > { %12760 = vst [vmem:[#allocation64_spill] sm:$0xff] %v6936_v50  ;;  %4915 = vrot.lane.b32.xlu1 %v6928_v23, %s6024_s21  ;;  %v6972_v23 = vld [vmem:[%s6075_s19 + $0x68] sm:$0xff] }
  0x9f   : > { %4910 = vrot.lane.b32.xlu0 %v6934_v55, %s6024_s21  ;;  %v4934_v9 = vpack.i.bf16 %v6972_v23, %v6969_v6 }
  0xa0   : > { %v6952_v44 = vpop.permute.xlu1 %4635 }
  0xa1   : > { %12762 = vst [vmem:[#allocation92_spill] sm:$0xff] %v6952_v44  ;;  %v6964_v22 = vpop.permute.xlu0 %4630  ;;  %v6995_v44 = vld [vmem:[%s6075_s19 + $0x90] sm:$0xff] }
  0xa2   : > { %12764 = vst [vmem:[#allocation94_spill] sm:$0xff] %v6964_v22  ;;  %4925 = vrot.lane.b32.xlu1 %v6948_v30, %s6025_s22  ;;  %v6992_v22 = vld [vmem:[%s6075_s19 + $0x88] sm:$0xff] }
  0xa3   : > { %4920 = vrot.lane.b32.xlu0 %v6962_v63, %s6025_s22  ;;  %12767 = vst [vmem:[#allocation97_spill] sm:$0xff] %v6992_v22  ;;  %v6999_v63 = vpack.i.bf16 %v6995_v44, %v6992_v22 }
  0xa4   : > { %v6978_v55 = vpop.permute.xlu1 %4645 }
  0xa5   : > { %12765 = vst [vmem:[#allocation95_spill] sm:$0xff] %v6978_v55  ;;  %v6988_v30 = vpop.permute.xlu0 %4640 }
  0xa6   : > { %12766 = vst [vmem:[#allocation96_spill] sm:$0xff] %v6988_v30  ;;  %4935 = vrot.lane.b32.xlu1 %v4934_v9, %s6025_s22  ;;  %v4954_v9 = vpack.i.bf16 %v6176_v53, %v6173_v52  ;;  %v4959_v52 = vpack.i.bf16 %v6224_v28, %v6221_v27  ;;  %v4984_v27 = vpack.i.bf16 %v6271_v5, %v6268_v4 }
  0xa7   : > { %4930 = vrot.lane.b32.xlu0 %v4929_v16, %s6025_s22  ;;  %v4949_v16 = vpack.i.bf16 %v6191_v59, %v6188_v58  ;;  %v4974_v58 = vpack.i.bf16 %v6234_v39, %v6231_v38  ;;  %v4979_v38 = vpack.i.bf16 %v6289_v41, %v6286_v36  ;;  %v4989_v4 = vpack.i.bf16 %v12700_v14, %v12699_v13 }
  0xa8   : > { %v7002_v55 = vpop.permute.xlu1 %4655  ;;  %v5004_v36 = vpack.i.bf16 %v12703_v20, %v12702_v37  ;;  %v5014_v13 = vpack.i.bf16 %v12710_v33, %v12709_v40  ;;  %v5009_v37 = vpack.i.bf16 %v12714_v12, %v12713_v1  ;;  %v5019_v33 = vpack.i.bf16 %v12721_v0, %v12720_v2  ;;  %v12772_v12 = vld [vmem:[#allocation40_spill] sm:$0xff]  ;;  %v12778_v0 = vld [vmem:[#allocation46_spill] sm:$0xff] }
  0xa9   : > { %v7006_v50 = vpop.permute.xlu0 %4650 }
  0xaa   : > { %4945 = vrot.lane.b32.xlu1 %v6999_v63, %s6025_s22 }
  0xab   : > { %4940 = vrot.lane.b32.xlu0 %v4939_v8, %s6025_s22  ;;  %v12771_v8 = vld [vmem:[#allocation39_spill] sm:$0xff] }
  0xac   : > { %v7013_v30 = vpop.permute.xlu1 %4665  ;;  %v5034_v1 = vpack.i.bf16 %v12772_v12, %v12771_v8 }
  0xad   : > { %v7017_v22 = vpop.permute.xlu0 %4660 }
  0xae   : > { %4955 = vrot.lane.b32.xlu1 %v4954_v9, %s6025_s22 }
  0xaf   : > { %4950 = vrot.lane.b32.xlu0 %v4949_v16, %s6025_s22  ;;  %v12774_v16 = vld [vmem:[#allocation43_spill] sm:$0xff] }
  0xb0   : > { %v7023_v47 = vpop.permute.xlu1 %4675  ;;  %v5029_v7 = vpack.i.bf16 %v12775_v42, %v12774_v16 }
  0xb1   : > { %v7027_v53 = vpop.permute.xlu0 %4670 }
  0xb2   : > { %4965 = vrot.lane.b32.xlu1 %v4964_v46, %s6025_s22 }
  0xb3   : > { %4960 = vrot.lane.b32.xlu0 %v4959_v52, %s6025_s22  ;;  %v12777_v52 = vld [vmem:[#allocation45_spill] sm:$0xff] }
  0xb4   : > { %v7033_v59 = vpop.permute.xlu1 %4685  ;;  %v5044_v2 = vpack.i.bf16 %v12778_v0, %v12777_v52  ;;  %v12795_v52 = vld [vmem:[#allocation5_spill] sm:$0xff] }
  0xb5   : > { %v7037_v11 = vpop.permute.xlu0 %4680 }
  0xb6   : > { %4975 = vrot.lane.b32.xlu1 %v4974_v58, %s6025_s22 }
  0xb7   : > { %4970 = vrot.lane.b32.xlu0 %v4969_v10, %s6025_s22  ;;  %v12780_v10 = vld [vmem:[#allocation50_spill] sm:$0xff] }
  0xb8   : > { %v7043_v28 = vpop.permute.xlu1 %4695 }
  0xb9   : > { %v7047_v39 = vpop.permute.xlu0 %4690 }
  0xba   : > { %4985 = vrot.lane.b32.xlu1 %v4984_v27, %s6025_s22  ;;  %v12781_v27 = vld [vmem:[#allocation51_spill] sm:$0xff] }
  0xbb   : > { %4980 = vrot.lane.b32.xlu0 %v4979_v38, %s6025_s22  ;;  %v5039_v38 = vpack.i.bf16 %v12781_v27, %v12780_v10  ;;  %v12796_v10 = vld [vmem:[#allocation6_spill] sm:$0xff]  ;;  %v12797_v27 = vld [vmem:[#allocation7_spill] sm:$0xff] }
  0xbc   : > { %v7053_v57 = vpop.permute.xlu1 %4705 }
  0xbd   : > { %v7057_v5 = vpop.permute.xlu0 %4700 }
  0xbe   : > { %4995 = vrot.lane.b32.xlu1 %v4994_v56, %s6025_s22 }
  0xbf   : > { %4990 = vrot.lane.b32.xlu0 %v4989_v4, %s6025_s22  ;;  %v12783_v4 = vld [vmem:[#allocation53_spill] sm:$0xff] }
  0xc0   : > { %v7063_v41 = vpop.permute.xlu1 %4715 }
  0xc1   : > { %v7067_v3 = vpop.permute.xlu0 %4710 }
  0xc2   : > { %12768 = vst [vmem:[#allocation98_spill] sm:$0xff] %v7067_v3  ;;  %5005 = vrot.lane.b32.xlu1 %v5004_v36, %s6025_s22  ;;  %v12784_v36 = vld [vmem:[#allocation54_spill] sm:$0xff] }
  0xc3   : > { %5000 = vrot.lane.b32.xlu0 %v4999_v48, %s6025_s22  ;;  %v5054_v48 = vpack.i.bf16 %v12784_v36, %v12783_v4  ;;  %v12800_v36 = vld [vmem:[#allocation8_spill] sm:$0xff] }
  0xc4   : > { %v7073_v14 = vpop.permute.xlu1 %4725 }
  0xc5   : > { %v7077_v20 = vpop.permute.xlu0 %4720 }
  0xc6   : > { %5015 = vrot.lane.b32.xlu1 %v5014_v13, %s6025_s22 }
  0xc7   : > { %5010 = vrot.lane.b32.xlu0 %v5009_v37, %s6025_s22  ;;  %v5049_v37 = vpack.i.bf16 %v12743_v45, %v12742_v18  ;;  %v5074_v18 = vpack.i.bf16 %v6559_v29, %v6556_v26  ;;  %v12790_v29 = vld [vmem:[#allocation3_spill] sm:$0xff]  ;;  %v12791_v26 = vld [vmem:[#allocation2_spill] sm:$0xff] }
  0xc8   : > { %v7083_v35 = vpop.permute.xlu1 %4735 }
  0xc9   : > { %12769 = vst [vmem:[#allocation99_spill] sm:$0xff] %v7083_v35  ;;  %v7087_v40 = vpop.permute.xlu0 %4730 }
  0xca   : > { %12770 = vst [vmem:[#allocation100_spill] sm:$0xff] %v7087_v40  ;;  %5025 = vrot.lane.b32.xlu1 %v5024_v49, %s6025_s22  ;;  %v4603_v40 = vunpack.i.h.bf16 %v6908_v17 }
  0xcb   : > { %5020 = vrot.lane.b32.xlu0 %v5019_v33, %s6025_s22  ;;  %v12787_v33 = vld [vmem:[#allocation59_spill] sm:$0xff] }
  0xcc   : > { %v7093_v9 = vpop.permute.xlu1 %4745  ;;  %v5064_v8 = vpack.i.bf16 %v12747_v31, %v12787_v33  ;;  %v5069_v31 = vpack.i.bf16 %v6583_v34, %v6580_v15  ;;  %v12794_v15 = vld [vmem:[#allocation4_spill] sm:$0xff] }
  0xcd   : > { %12773 = vst [vmem:[#allocation39_spill] sm:$0xff] %v7093_v9  ;;  %v7097_v46 = vpop.permute.xlu0 %4740  ;;  %v12834_v9 = vld [vmem:[#allocation63_spill] sm:$0xff] }
  0xce   : > { %12776 = vst [vmem:[#allocation40_spill] sm:$0xff] %v7097_v46  ;;  %5035 = vrot.lane.b32.xlu1 %v5034_v1, %s6025_s22  ;;  %v5059_v1 = vpack.i.bf16 %v12751_v32, %v6543_v62 }
  0xcf   : > { %5030 = vrot.lane.b32.xlu0 %v5029_v7, %s6025_s22 }
  0xd0   : > { %v7103_v58 = vpop.permute.xlu1 %4755 }
  0xd1   : > { %12779 = vst [vmem:[#allocation43_spill] sm:$0xff] %v7103_v58  ;;  %v7107_v56 = vpop.permute.xlu0 %4750 }
  0xd2   : > { %12782 = vst [vmem:[#allocation44_spill] sm:$0xff] %v7107_v56  ;;  %5045 = vrot.lane.b32.xlu1 %v5044_v2, %s6025_s22  ;;  %v12831_v56 = vld [vmem:[#allocation31_spill] sm:$0xff] }
  0xd3   : > { %5040 = vrot.lane.b32.xlu0 %v5039_v38, %s6025_s22  ;;  %v4583_v58 = vunpack.i.h.bf16 %v12831_v56 }
  0xd4   : > { %v7113_v13 = vpop.permute.xlu1 %4765 }
  0xd5   : > { %12785 = vst [vmem:[#allocation45_spill] sm:$0xff] %v7113_v13  ;;  %v7117_v49 = vpop.permute.xlu0 %4760 }
  0xd6   : > { %12786 = vst [vmem:[#allocation46_spill] sm:$0xff] %v7117_v49  ;;  %5055 = vrot.lane.b32.xlu1 %v5054_v48, %s6025_s22  ;;  %v12801_v48 = vld [vmem:[#allocation9_spill] sm:$0xff] }
  0xd7   : > { %5050 = vrot.lane.b32.xlu0 %v5049_v37, %s6025_s22  ;;  %v12823_v49 = vld [vmem:[#allocation49_spill] sm:$0xff] }
  0xd8   : > { %v7123_v12 = vpop.permute.xlu1 %4775 }
  0xd9   : > { %v7127_v16 = vpop.permute.xlu0 %4770 }
  0xda   : > { %5065 = vrot.lane.b32.xlu1 %v5064_v8, %s6025_s22  ;;  %v12804_v8 = vld [vmem:[#allocation10_spill] sm:$0xff] }
  0xdb   : > { %5060 = vrot.lane.b32.xlu0 %v5059_v1, %s6025_s22  ;;  %v12805_v1 = vld [vmem:[#allocation11_spill] sm:$0xff] }
  0xdc   : > { %v7133_v45 = vpop.permute.xlu1 %4785 }
  0xdd   : > { %12788 = vst [vmem:[#allocation50_spill] sm:$0xff] %v7133_v45  ;;  %v7137_v42 = vpop.permute.xlu0 %4780 }
  0xde   : > { %12789 = vst [vmem:[#allocation51_spill] sm:$0xff] %v7137_v42  ;;  %5075 = vrot.lane.b32.xlu1 %v5074_v18, %s6025_s22 }
  0xdf   : > { %5070 = vrot.lane.b32.xlu0 %v5069_v31, %s6025_s22 }
  0xe0   : > { %v7141_v62 = vpop.permute.xlu1 %4795 }
  0xe1   : > { %v7143_v32 = vpop.permute.xlu0 %4790 }
  0xe2   : > { %5085 = vrot.lane.b32.xlu1 %v12790_v29, %s6026_s23 }
  0xe3   : > { %5080 = vrot.lane.b32.xlu0 %v12791_v26, %s6026_s23 }
  0xe4   : > { %v7149_v7 = vpop.permute.xlu1 %4805 }
  0xe5   : > { %12792 = vst [vmem:[#allocation53_spill] sm:$0xff] %v7149_v7  ;;  %v7151_v34 = vpop.permute.xlu0 %4800  ;;  %v12817_v7 = vld [vmem:[#allocation38_spill] sm:$0xff] }
  0xe6   : > { %12793 = vst [vmem:[#allocation54_spill] sm:$0xff] %v7151_v34  ;;  %5095 = vrot.lane.b32.xlu1 %v12794_v15, %s6026_s23  ;;  %v12808_v15 = vld [vmem:[#allocation14_spill] sm:$0xff] }
  0xe7   : > { %5090 = vrot.lane.b32.xlu0 %v12795_v52, %s6026_s23 }
  0xe8   : > { %v7157_v0 = vpop.permute.xlu1 %4815 }
  0xe9   : > { %v7159_v2 = vpop.permute.xlu0 %4810 }
  0xea   : > { %5105 = vrot.lane.b32.xlu1 %v12796_v10, %s6026_s23 }
  0xeb   : > { %5100 = vrot.lane.b32.xlu0 %v12797_v27, %s6026_s23 }
  0xec   : > { %v7165_v38 = vpop.permute.xlu1 %4825 }
  0xed   : > { %12798 = vst [vmem:[#allocation59_spill] sm:$0xff] %v7165_v38  ;;  %v7167_v4 = vpop.permute.xlu0 %4820 }
  0xee   : > { %12799 = vst [vmem:[#allocation3_spill] sm:$0xff] %v7167_v4  ;;  %5115 = vrot.lane.b32.xlu1 %v12800_v36, %s6026_s23  ;;  %v12809_v36 = vld [vmem:[#allocation19_spill] sm:$0xff]  ;;  %v12811_v4 = vld [vmem:[#allocation24_spill] sm:$0xff] }
  0xef   : > { %5110 = vrot.lane.b32.xlu0 %v12801_v48, %s6026_s23  ;;  %v12816_v48 = vld [vmem:[#allocation35_spill] sm:$0xff] }
  0xf0   : > { %v7173_v37 = vpop.permute.xlu1 %4835 }
  0xf1   : > { %12802 = vst [vmem:[#allocation2_spill] sm:$0xff] %v7173_v37  ;;  %v7175_v33 = vpop.permute.xlu0 %4830 }
  0xf2   : > { %12803 = vst [vmem:[#allocation6_spill] sm:$0xff] %v7175_v33  ;;  %5125 = vrot.lane.b32.xlu1 %v12804_v8, %s6026_s23  ;;  %v12810_v33 = vld [vmem:[#allocation21_spill] sm:$0xff] }
  0xf3   : > { %5120 = vrot.lane.b32.xlu0 %v12805_v1, %s6026_s23 }
  0xf4   : > { %v7181_v18 = vpop.permute.xlu1 %4845 }
  0xf5   : > { %12806 = vst [vmem:[#allocation7_spill] sm:$0xff] %v7181_v18  ;;  %v7183_v31 = vpop.permute.xlu0 %4840 }
  0xf6   : > { %12807 = vst [vmem:[#allocation11_spill] sm:$0xff] %v7183_v31  ;;  %5135 = vrot.lane.b32.xlu1 %v12808_v15, %s6026_s23  ;;  %v12814_v31 = vld [vmem:[#allocation28_spill] sm:$0xff]  ;;  %v12815_v15 = vld [vmem:[#allocation33_spill] sm:$0xff] }
  0xf7   : > { %5130 = vrot.lane.b32.xlu0 %v12809_v36, %s6026_s23 }
  0xf8   : > { %v7189_v52 = vpop.permute.xlu1 %4855 }
  0xf9   : > { %v7191_v37 = vpop.permute.xlu0 %4850 }
  0xfa   : > { %5145 = vrot.lane.b32.xlu1 %v12810_v33, %s6026_s23  ;;  %v4608_v33 = vunpack.i.h.bf16 %v6900_v43 }
  0xfb   : > { %5140 = vrot.lane.b32.xlu0 %v12811_v4, %s6026_s23 }
  0xfc   : > { %v7197_v38 = vpop.permute.xlu1 %4865 }
  0xfd   : > { %12812 = vst [vmem:[#allocation24_spill] sm:$0xff] %v7197_v38  ;;  %v7199_v18 = vpop.permute.xlu0 %4860 }
  0xfe   : > { %12813 = vst [vmem:[#allocation101_spill] sm:$0xff] %v7199_v18  ;;  %5155 = vrot.lane.b32.xlu1 %v12814_v31, %s6026_s23  ;;  %v12820_v18 = vld [vmem:[#allocation42_spill] sm:$0xff]  ;;  %v12821_v31 = vld [vmem:[#allocation47_spill] sm:$0xff] }
  0xff   : > { %5150 = vrot.lane.b32.xlu0 %v12815_v15, %s6026_s23 }
 0x100   : > { %v7205_v36 = vpop.permute.xlu1 %4875 }
 0x101   : > { %v7207_v34 = vpop.permute.xlu0 %4870 }
 0x102   : > { %5165 = vrot.lane.b32.xlu1 %v12816_v48, %s6026_s23  ;;  %v12824_v48 = vld [vmem:[#allocation52_spill] sm:$0xff] }
 0x103   : > { %5160 = vrot.lane.b32.xlu0 %v12817_v7, %s6026_s23 }
 0x104   : > { %v7213_v42 = vpop.permute.xlu1 %4885 }
 0x105   : > { %12818 = vst [vmem:[#allocation102_spill] sm:$0xff] %v7213_v42  ;;  %v7215_v38 = vpop.permute.xlu0 %4880 }
 0x106   : > { %12819 = vst [vmem:[#allocation103_spill] sm:$0xff] %v7215_v38  ;;  %5175 = vrot.lane.b32.xlu1 %v12820_v18, %s6026_s23  ;;  %v12827_v38 = vld [vmem:[#allocation56_spill] sm:$0xff]  ;;  %v12828_v18 = vld [vmem:[#allocation29_spill] sm:$0xff] }
 0x107   : > { %5170 = vrot.lane.b32.xlu0 %v12821_v31, %s6026_s23  ;;  %v4593_v8 = vunpack.i.h.bf16 %v12828_v18  ;;  %v12829_v31 = vld [vmem:[#allocation61_spill] sm:$0xff] }
 0x108   : > { %v7221_v15 = vpop.permute.xlu1 %4895 }
 0x109   : > { %v7223_v45 = vpop.permute.xlu0 %4890 }
 0x10a   : > { %12822 = vst [vmem:[#allocation104_spill] sm:$0xff] %v7223_v45  ;;  %5185 = vrot.lane.b32.xlu1 %v12823_v49, %s6026_s23  ;;  %v4592_v49 = vunpack.i.l.bf16 %v12828_v18  ;;  %v12836_v18 = vld [vmem:[#allocation37_spill] sm:$0xff] }
 0x10b   : > { %5180 = vrot.lane.b32.xlu0 %v12824_v48, %s6026_s23  ;;  %v4582_v48 = vunpack.i.l.bf16 %v12831_v56  ;;  %v4607_v56 = vunpack.i.l.bf16 %v6900_v43  ;;  %v5919_v43 = vld [vmem:[%s6075_s19 + $0x8] sm:$0xff] }
 0x10c   : > { %v7229_v7 = vpop.permute.xlu1 %4905  ;;  %v7266_v35 = vsel %vm2318_vm2, %v6955_v60, %v4592_v49  ;;  %v7270_v45 = vsel %vm2318_vm2, %v5919_v43, %v4583_v58  ;;  %v4777_v60 = vunpack.i.l.bf16 %v7123_v12  ;;  %v12843_v58 = vld [vmem:[#allocation85_spill] sm:$0xff]  ;;  %v7294_v43 = vld [vmem:[%s6075_s19 + $0x80] sm:$0xff] }
 0x10d   : > { %12825 = vst [vmem:[#allocation105_spill] sm:$0xff] %v7229_v7  ;;  %v7231_v42 = vpop.permute.xlu0 %4900  ;;  %v12832_v7 = vld [vmem:[#allocation34_spill] sm:$0xff] }
 0x10e   : > { %12826 = vst [vmem:[#allocation106_spill] sm:$0xff] %v7231_v42  ;;  %5195 = vrot.lane.b32.xlu1 %v12827_v38, %s6026_s23  ;;  %v4598_v42 = vunpack.i.h.bf16 %v12832_v7  ;;  %v4597_v46 = vunpack.i.l.bf16 %v12832_v7  ;;  %v4602_v7 = vunpack.i.l.bf16 %v6908_v17  ;;  %v5920_v17 = vld [vmem:[%s6075_s19] sm:$0xff] }
 0x10f   : > { %5190 = vrot.lane.b32.xlu0 %v12829_v31, %s6026_s23  ;;  %v7251_v31 = vsel %vm2318_vm2, %v6958_v24, %v4593_v8  ;;  %v12839_v24 = vld [vmem:[#allocation66_spill] sm:$0xff]  ;;  %v12840_v8 = vld [vmem:[#allocation72_spill] sm:$0xff]  ;;  %v7274_v3 = vsel %vm2318_vm2, %v5920_v17, %v4582_v48  ;;  %v7291_v48 = vld [vmem:[%s6075_s19 + $0x78] sm:$0xff]  ;;  %v2329_v17 = vsel %vm2318_vm2, %v6969_v6, %v4607_v56  ;;  %v4618_v6 = vunpack.i.h.bf16 %v6918_v25 }
 0x110   : > { %v7238_v13 = vpop.permute.xlu1 %4915  ;;  %12835 = vst [vmem:[#allocation34_spill] sm:$0xff] %v7251_v31  ;;  %v5209_v31 = vpack.i.bf16 %v12840_v8, %v12839_v24  ;;  %12841 = vst [vmem:[#allocation66_spill] sm:$0xff] %v7266_v35  ;;  %v7282_v24 = vsel %vm2318_vm2, %v6941_v51, %v4597_v46  ;;  %v4778_v8 = vunpack.i.h.bf16 %v7123_v12  ;;  %v4587_v46 = vunpack.i.l.bf16 %v12836_v18 }
 0x111   : > { %12830 = vst [vmem:[#allocation29_spill] sm:$0xff] %v7238_v13  ;;  %v7245_v38 = vpop.permute.xlu0 %4910  ;;  %v4588_v13 = vunpack.i.h.bf16 %v12836_v18  ;;  %v2330_v12 = vsel %vm2318_vm2, %v6972_v23, %v4608_v33  ;;  %v4772_v18 = vunpack.i.l.bf16 %v7127_v16 }
 0x112   : > { %12833 = vst [vmem:[#allocation31_spill] sm:$0xff] %v7245_v38  ;;  %5205 = vrot.lane.b32.xlu1 %v12834_v9, %s6026_s23  ;;  %v12837_v38 = vld [vmem:[#allocation65_spill] sm:$0xff]  ;;  %v7320_v56 = vsel %vm2387_vm3, %v2330_v12, %v4778_v8  ;;  %v4627_v8 = vunpack.i.l.bf16 %v6932_v19  ;;  %v12852_v12 = vld [vmem:[#allocation64_spill] sm:$0xff] }
 0x113   : > { %5200 = vrot.lane.b32.xlu0 %v12837_v38, %s6026_s23  ;;  %v7278_v38 = vsel %vm2318_vm2, %v6944_v61, %v4598_v42  ;;  %v5224_v61 = vpack.i.bf16 %v7294_v43, %v7291_v48  ;;  %v5923_v42 = vld [vmem:[%s6075_s19 + $0x18] sm:$0xff]  ;;  %12845 = vst [vmem:[#allocation107_spill] sm:$0xff] %v7320_v56 }
 0x114   : > { %v7260_v9 = vpop.permute.xlu1 %4925  ;;  %v7300_v51 = vsel %vm2318_vm2, %v5923_v42, %v4588_v13  ;;  %v4773_v13 = vunpack.i.h.bf16 %v7127_v16  ;;  %v4628_v16 = vunpack.i.h.bf16 %v6932_v19  ;;  %v4798_v19 = vunpack.i.h.bf16 %v7141_v62 }
 0x115   : > { %12838 = vst [vmem:[#allocation37_spill] sm:$0xff] %v7260_v9  ;;  %v7286_v49 = vpop.permute.xlu0 %4920  ;;  %v2327_v9 = vsel %vm2318_vm2, %v6981_v21, %v4602_v7 }
 0x116   : > { %12842 = vst [vmem:[#allocation72_spill] sm:$0xff] %v7286_v49  ;;  %5215 = vrot.lane.b32.xlu1 %v12843_v58, %s6027_s24  ;;  %v2328_v49 = vsel %vm2318_vm2, %v6984_v54, %v4603_v40  ;;  %v7323_v54 = vsel %vm2387_vm3, %v2329_v17, %v4777_v60  ;;  %v4617_v40 = vunpack.i.l.bf16 %v6918_v25  ;;  %v4623_v17 = vunpack.i.h.bf16 %v12852_v12 }
 0x117   : > { %5210 = vrot.lane.b32.xlu0 %v5209_v31, %s6026_s23  ;;  %12846 = vst [vmem:[#allocation108_spill] sm:$0xff] %v7323_v54  ;;  %v4797_v60 = vunpack.i.l.bf16 %v7141_v62 }
 0x118   : > { %v7312_v35 = vpop.permute.xlu1 %4935 }
 0x119   : > { %12844 = vst [vmem:[#allocation85_spill] sm:$0xff] %v7312_v35  ;;  %v12252_v23 = vunpack.i.h.bf16 %v7312_v35  ;;  %v12251_v33 = vunpack.i.l.bf16 %v7312_v35  ;;  %v7325_v21 = vpop.permute.xlu0 %4930 }
 0x11a   : > { %12847 = vst [vmem:[#allocation109_spill] sm:$0xff] %v7325_v21  ;;  %5225 = vrot.lane.b32.xlu1 %v5224_v61, %s6028_s25  ;;  %v12253_v25 = vunpack.i.l.bf16 %v7325_v21  ;;  %v12850_v61 = vld [vmem:[#allocation81_spill] sm:$0xff] }
 0x11b   : > { %v7334_v31 = vsel %vm2456_vm4, %v7323_v54, %v12251_v33  ;;  %v7340_v7 = vsel %vm2456_vm4, %v7320_v56, %v12252_v23  ;;  %5220 = vrot.lane.b32.xlu0 %v12850_v61, %s6027_s24  ;;  %v7351_v33 = vsel %vm2387_vm3, %v2327_v9, %v4772_v18  ;;  %v7354_v23 = vsel %vm2387_vm3, %v2328_v49, %v4773_v13  ;;  %v5924_v49 = vld [vmem:[%s6075_s19 + $0x10] sm:$0xff] }
 0x11c   : > { %12848 = vst [vmem:[#allocation110_spill] sm:$0xff] %v7334_v31  ;;  %12849 = vst [vmem:[#allocation111_spill] sm:$0xff] %v7340_v7  ;;  %v7347_v42 = vpop.permute.xlu1 %4945  ;;  %v7362_v7 = vsel %vm2456_vm4, %v7351_v33, %v12253_v25  ;;  %v12856_v31 = vunpack.i.h.bf16 %v7325_v21  ;;  %v7376_v62 = vsel %vm2318_vm2, %v5924_v49, %v4587_v46  ;;  %v7380_v13 = vsel %vm2318_vm2, %v6995_v44, %v4618_v6  ;;  %v12859_v25 = vld [vmem:[#allocation97_spill] sm:$0xff]  ;;  %v7395_v49 = vld [vmem:[%s6075_s19 + $0xb0] sm:$0xff] }
 0x11d   : > { %12851 = vst [vmem:[#allocation81_spill] sm:$0xff] %v7347_v42  ;;  %12853 = vst [vmem:[#allocation64_spill] sm:$0xff] %v7351_v33  ;;  %v7370_v18 = vpop.permute.xlu0 %4940  ;;  %v2337_v44 = vsel %vm2318_vm2, %v7395_v49, %v4627_v8  ;;  %v12863_v6 = vld [vmem:[#allocation93_spill] sm:$0xff] }
 0x11e   : > { %12854 = vst [vmem:[#allocation112_spill] sm:$0xff] %v7354_v23  ;;  %12855 = vst [vmem:[#allocation113_spill] sm:$0xff] %v7362_v7  ;;  %v7368_v9 = vsel %vm2456_vm4, %v7354_v23, %v12856_v31  ;;  %5235 = vrot.lane.b32.xlu1 %v12797_v27, %s6029_s26  ;;  %v7384_v7 = vsel %vm2318_vm2, %v12859_v25, %v4617_v40  ;;  %v4622_v31 = vunpack.i.l.bf16 %v12852_v12  ;;  %v7390_v27 = vld [vmem:[%s6075_s19 + $0xb8] sm:$0xff]  ;;  %v4793_v25 = vunpack.i.h.bf16 %v7143_v32 }
 0x11f   : > { %12857 = vst [vmem:[#allocation114_spill] sm:$0xff] %v7368_v9  ;;  %12858 = vst [vmem:[#allocation115_spill] sm:$0xff] %v7370_v18  ;;  %v12860_v9 = vld [vmem:[#allocation58_spill] sm:$0xff]  ;;  %v2338_v46 = vsel %vm2318_vm2, %v7390_v27, %v4628_v16  ;;  %5230 = vrot.lane.b32.xlu0 %v12863_v6, %s6028_s25  ;;  %v4792_v12 = vunpack.i.l.bf16 %v7143_v32  ;;  %v7408_v16 = vld [vmem:[%s6075_s19 + $0xa8] sm:$0xff]  ;;  %v7416_v6 = vsel %vm2387_vm3, %v2337_v44, %v4797_v60 }
 0x120   : > { %12861 = vst [vmem:[#allocation97_spill] sm:$0xff] %v7390_v27  ;;  %12862 = vst [vmem:[#allocation58_spill] sm:$0xff] %v7395_v49  ;;  %v7401_v40 = vpop.permute.xlu1 %4955  ;;  %v2336_v56 = vsel %vm2318_vm2, %v7408_v16, %v4623_v17  ;;  %v7413_v8 = vsel %vm2387_vm3, %v2338_v46, %v4798_v19  ;;  %v7423_v32 = vld [vmem:[%s6075_s19 + $0xa0] sm:$0xff]  ;;  %v12868_v17 = vld [vmem:[#allocation95_spill] sm:$0xff] }
 0x121   : > { %12864 = vst [vmem:[#allocation93_spill] sm:$0xff] %v7401_v40  ;;  %12865 = vst [vmem:[#allocation116_spill] sm:$0xff] %v7413_v8  ;;  %v7418_v54 = vpop.permute.xlu0 %4950  ;;  %v2335_v33 = vsel %vm2318_vm2, %v7423_v32, %v4622_v31  ;;  %v4648_v23 = vunpack.i.h.bf16 %v12868_v17  ;;  %v12869_v19 = vunpack.i.l.bf16 %v7401_v40  ;;  %v12871_v46 = vunpack.i.h.bf16 %v7401_v40  ;;  %v12874_v18 = vld [vmem:[#allocation96_spill] sm:$0xff]  ;;  %v7504_v27 = vld [vmem:[%s6075_s19 + $0xf8] sm:$0xff] }
 0x122   : > { %12866 = vst [vmem:[#allocation117_spill] sm:$0xff] %v7416_v6  ;;  %12867 = vst [vmem:[#allocation118_spill] sm:$0xff] %v7418_v54  ;;  %5245 = vrot.lane.b32.xlu1 %v12843_v58, %s6030_s27  ;;  %v4647_v58 = vunpack.i.l.bf16 %v12868_v17  ;;  %v7458_v17 = vld [vmem:[%s6075_s19 + $0x120] sm:$0xff]  ;;  %v4817_v31 = vunpack.i.l.bf16 %v7157_v0  ;;  %v12896_v49 = vld [vmem:[#allocation89_spill] sm:$0xff] }
 0x123   : > { %v7432_v60 = vsel %vm2456_vm4, %v7416_v6, %v12869_v19  ;;  %v7438_v44 = vsel %vm2456_vm4, %v7413_v8, %v12871_v46  ;;  %5240 = vrot.lane.b32.xlu0 %v12791_v26, %s6029_s26  ;;  %v4643_v19 = vunpack.i.h.bf16 %v12874_v18  ;;  %v7452_v46 = vsel %vm2387_vm3, %v2336_v56, %v4793_v25  ;;  %v12882_v6 = vld [vmem:[#allocation92_spill] sm:$0xff]  ;;  %12888 = vst [vmem:[#allocation125_spill] sm:$0xff] %v7504_v27 }
 0x124   : > { %12870 = vst [vmem:[#allocation95_spill] sm:$0xff] %v7432_v60  ;;  %12872 = vst [vmem:[#allocation119_spill] sm:$0xff] %v7438_v44  ;;  %v7445_v35 = vpop.permute.xlu1 %4965  ;;  %v7449_v60 = vsel %vm2387_vm3, %v2335_v33, %v4792_v12  ;;  %v7455_v44 = vld [vmem:[%s6075_s19 + $0x118] sm:$0xff]  ;;  %v4818_v26 = vunpack.i.h.bf16 %v7157_v0  ;;  %v12877_v8 = vunpack.i.l.bf16 %v7418_v54  ;;  %v12879_v56 = vunpack.i.h.bf16 %v7418_v54 }
 0x125   : > { %12873 = vst [vmem:[#allocation120_spill] sm:$0xff] %v7445_v35  ;;  %12875 = vst [vmem:[#allocation96_spill] sm:$0xff] %v7449_v60  ;;  %v5264_v21 = vpack.i.bf16 %v7458_v17, %v7455_v44  ;;  %v7476_v12 = vpop.permute.xlu0 %4960  ;;  %v4638_v0 = vunpack.i.h.bf16 %v12882_v6  ;;  %v4637_v40 = vunpack.i.l.bf16 %v12882_v6  ;;  %v12883_v35 = vld [vmem:[#allocation94_spill] sm:$0xff] }
 0x126   : > { %12876 = vst [vmem:[#allocation121_spill] sm:$0xff] %v7452_v46  ;;  %v7468_v33 = vsel %vm2456_vm4, %v7449_v60, %v12877_v8  ;;  %v7474_v25 = vsel %vm2456_vm4, %v7452_v46, %v12879_v56  ;;  %12881 = vst [vmem:[#allocation124_spill] sm:$0xff] %v7476_v12  ;;  %5255 = vrot.lane.b32.xlu1 %v12850_v61, %s6030_s27  ;;  %v4633_v42 = vunpack.i.h.bf16 %v12883_v35  ;;  %v4642_v8 = vunpack.i.l.bf16 %v12874_v18  ;;  %v7486_v60 = vld [vmem:[%s6075_s19 + $0x108] sm:$0xff] }
 0x127   : > { %12878 = vst [vmem:[#allocation122_spill] sm:$0xff] %v7468_v33  ;;  %12880 = vst [vmem:[#allocation123_spill] sm:$0xff] %v7474_v25  ;;  %v4632_v33 = vunpack.i.l.bf16 %v12883_v35  ;;  %v2346_v56 = vsel %vm2318_vm2, %v7486_v60, %v4648_v23  ;;  %v7491_v25 = vld [vmem:[%s6075_s19 + $0x100] sm:$0xff]  ;;  %v12886_v46 = vld [vmem:[#allocation15_spill] sm:$0xff]  ;;  %v4813_v18 = vunpack.i.h.bf16 %v7159_v2  ;;  %v4812_v35 = vunpack.i.l.bf16 %v7159_v2 }
 0x128   : > { %12884 = vst [vmem:[#allocation92_spill] sm:$0xff] %v7486_v60  ;;  %12885 = vst [vmem:[#allocation94_spill] sm:$0xff] %v7491_v25  ;;  %v2345_v61 = vsel %vm2318_vm2, %v7491_v25, %v4647_v58  ;;  %5250 = vrot.lane.b32.xlu0 %v12886_v46, %s6027_s24  ;;  %v7497_v6 = vpop.permute.xlu1 %4975  ;;  %v2344_v23 = vsel %vm2318_vm2, %v7504_v27, %v4643_v19  ;;  %v7509_v58 = vsel %vm2387_vm3, %v2346_v56, %v4818_v26  ;;  %v7518_v2 = vld [vmem:[%s6075_s19 + $0xf0] sm:$0xff] }
 0x129   : > { %12887 = vst [vmem:[#allocation15_spill] sm:$0xff] %v7497_v6  ;;  %12889 = vst [vmem:[#allocation126_spill] sm:$0xff] %v7509_v58  ;;  %v7512_v60 = vsel %vm2387_vm3, %v2345_v61, %v4817_v31  ;;  %v7514_v25 = vpop.permute.xlu0 %4970  ;;  %v2343_v54 = vsel %vm2318_vm2, %v7518_v2, %v4642_v8  ;;  %v4658_v12 = vunpack.i.h.bf16 %v7002_v55  ;;  %v12892_v19 = vunpack.i.l.bf16 %v7497_v6 }
 0x12a   : > { %12890 = vst [vmem:[#allocation127_spill] sm:$0xff] %v7512_v60  ;;  %12891 = vst [vmem:[#allocation128_spill] sm:$0xff] %v7514_v25  ;;  %5265 = vrot.lane.b32.xlu1 %v5264_v21, %s6028_s25  ;;  %v12894_v31 = vunpack.i.h.bf16 %v7497_v6  ;;  %v4657_v21 = vunpack.i.l.bf16 %v7002_v55  ;;  %v12898_v6 = vunpack.i.h.bf16 %v12860_v9  ;;  %v4653_v55 = vunpack.i.h.bf16 %v7006_v50 }
 0x12b   : > { %v7527_v26 = vsel %vm2456_vm4, %v7512_v60, %v12892_v19  ;;  %v5935_v19 = vld [vmem:[%s6075_s19 + $0xc8] sm:$0xff]  ;;  %v7552_v61 = vsel %vm2387_vm3, %v2343_v54, %v4812_v35  ;;  %v7555_v8 = vsel %vm2387_vm3, %v2344_v23, %v4813_v18  ;;  %v12906_v18 = vunpack.i.l.bf16 %v12860_v9  ;;  %v7581_v35 = vld [vmem:[%s6075_s19 + $0xe0] sm:$0xff] }
 0x12c   : > { %12893 = vst [vmem:[#allocation129_spill] sm:$0xff] %v7527_v26  ;;  %v7533_v56 = vsel %vm2456_vm4, %v7509_v58, %v12894_v31  ;;  %5260 = vrot.lane.b32.xlu0 %v12896_v49, %s6027_s24  ;;  %v7540_v27 = vpop.permute.xlu1 %4985  ;;  %v5936_v26 = vld [vmem:[%s6075_s19 + $0xd0] sm:$0xff]  ;;  %v7548_v31 = vsel %vm2318_vm2, %v7294_v43, %v12898_v6  ;;  %12899 = vst [vmem:[#allocation131_spill] sm:$0xff] %v7552_v61  ;;  %v12901_v58 = vunpack.i.l.bf16 %v7514_v25  ;;  %v12903_v43 = vunpack.i.h.bf16 %v7514_v25 }
 0x12d   : > { %12895 = vst [vmem:[#allocation130_spill] sm:$0xff] %v7533_v56  ;;  %12897 = vst [vmem:[#allocation89_spill] sm:$0xff] %v7540_v27  ;;  %v5269_v60 = vpack.i.bf16 %v5936_v26, %v5935_v19  ;;  %v4652_v56 = vunpack.i.l.bf16 %v7006_v50  ;;  %v7570_v54 = vpop.permute.xlu0 %4980  ;;  %v7578_v50 = vsel %vm2318_vm2, %v7291_v48, %v12906_v18  ;;  %v7585_v23 = vsel %vm2318_vm2, %v7581_v35, %v4638_v0  ;;  %v7601_v48 = vld [vmem:[%s6075_s19 + $0x130] sm:$0xff]  ;;  %v7608_v0 = vld [vmem:[%s6075_s19 + $0x128] sm:$0xff] }
 0x12e   : > { %12900 = vst [vmem:[#allocation132_spill] sm:$0xff] %v7555_v8  ;;  %v7562_v27 = vsel %vm2456_vm4, %v7552_v61, %v12901_v58  ;;  %v7568_v6 = vsel %vm2456_vm4, %v7555_v8, %v12903_v43  ;;  %12905 = vst [vmem:[#allocation135_spill] sm:$0xff] %v7570_v54  ;;  %5275 = vrot.lane.b32.xlu1 %v12811_v4, %s6029_s26  ;;  %v7588_v58 = vld [vmem:[%s6075_s19 + $0xd8] sm:$0xff]  ;;  %v7595_v4 = vsel %vm2318_vm2, %v5936_v26, %v4633_v42  ;;  %v7653_v61 = vld [vmem:[%s6075_s19 + $0x150] sm:$0xff] }
 0x12f   : > { %12902 = vst [vmem:[#allocation133_spill] sm:$0xff] %v7562_v27  ;;  %12904 = vst [vmem:[#allocation134_spill] sm:$0xff] %v7568_v6  ;;  %v7592_v43 = vsel %vm2318_vm2, %v7588_v58, %v4637_v40  ;;  %v7598_v9 = vsel %vm2318_vm2, %v5935_v19, %v4632_v33  ;;  %v7605_v18 = vsel %vm2318_vm2, %v7601_v48, %v4658_v12  ;;  %v4668_v42 = vunpack.i.h.bf16 %v7013_v30  ;;  %v7687_v54 = vld [vmem:[%s6075_s19 + $0x178] sm:$0xff] }
 0x130   : > { %v7612_v6 = vsel %vm2318_vm2, %v7608_v0, %v4657_v21  ;;  %5270 = vrot.lane.b32.xlu0 %v5269_v60, %s6028_s25  ;;  %v7615_v40 = vpop.permute.xlu1 %4995  ;;  %v4667_v33 = vunpack.i.l.bf16 %v7013_v30  ;;  %v4663_v26 = vunpack.i.h.bf16 %v7017_v22  ;;  %v4662_v12 = vunpack.i.l.bf16 %v7017_v22  ;;  %12911 = vst [vmem:[#allocation140_spill] sm:$0xff] %v7653_v61  ;;  %12916 = vst [vmem:[#allocation145_spill] sm:$0xff] %v7687_v54 }
 0x131   : > { %12907 = vst [vmem:[#allocation136_spill] sm:$0xff] %v7615_v40  ;;  %v7623_v19 = vsel %vm2318_vm2, %v7458_v17, %v4653_v55  ;;  %v7627_v21 = vsel %vm2318_vm2, %v7455_v44, %v4652_v56  ;;  %v4678_v60 = vunpack.i.h.bf16 %v7023_v47  ;;  %v7630_v27 = vpop.permute.xlu0 %4990  ;;  %v4677_v30 = vunpack.i.l.bf16 %v7023_v47  ;;  %v7646_v47 = vld [vmem:[%s6075_s19 + $0x158] sm:$0xff] }
 0x132   : > { %12908 = vst [vmem:[#allocation137_spill] sm:$0xff] %v7630_v27  ;;  %5285 = vrot.lane.b32.xlu1 %v12886_v46, %s6030_s27  ;;  %v4673_v22 = vunpack.i.h.bf16 %v7027_v53  ;;  %v4672_v17 = vunpack.i.l.bf16 %v7027_v53  ;;  %v4688_v55 = vunpack.i.h.bf16 %v7033_v59  ;;  %v4687_v44 = vunpack.i.l.bf16 %v7033_v59  ;;  %12910 = vst [vmem:[#allocation139_spill] sm:$0xff] %v7646_v47  ;;  %v7674_v27 = vld [vmem:[%s6075_s19 + $0x180] sm:$0xff] }
 0x133   : > { %v4683_v56 = vunpack.i.h.bf16 %v7037_v11  ;;  %v4682_v8 = vunpack.i.l.bf16 %v7037_v11  ;;  %v7650_v53 = vsel %vm2318_vm2, %v7646_v47, %v4668_v42  ;;  %v7657_v59 = vsel %vm2318_vm2, %v7653_v61, %v4667_v33  ;;  %v7660_v11 = vld [vmem:[%s6075_s19 + $0x148] sm:$0xff]  ;;  %12913 = vst [vmem:[#allocation142_spill] sm:$0xff] %v7674_v27  ;;  %v7694_v47 = vld [vmem:[%s6075_s19 + $0x170] sm:$0xff]  ;;  %v5950_v61 = vld [vmem:[%s6075_s19 + $0x1a0] sm:$0xff] }
 0x134   : > { %5280 = vrot.lane.b32.xlu0 %v12805_v1, %s6029_s26  ;;  %v7643_v46 = vpop.permute.xlu1 %5005  ;;  %v7664_v1 = vsel %vm2318_vm2, %v7660_v11, %v4663_v26  ;;  %v7678_v33 = vsel %vm2318_vm2, %v7674_v27, %v4678_v60  ;;  %v4858_v40 = vunpack.i.h.bf16 %v7189_v52  ;;  %v4857_v26 = vunpack.i.l.bf16 %v7189_v52  ;;  %12918 = vst [vmem:[#allocation147_spill] sm:$0xff] %v7694_v47  ;;  %v7701_v27 = vld [vmem:[%s6075_s19 + $0x168] sm:$0xff] }
 0x135   : > { %12909 = vst [vmem:[#allocation138_spill] sm:$0xff] %v7643_v46  ;;  %12912 = vst [vmem:[#allocation141_spill] sm:$0xff] %v7664_v1  ;;  %v7667_v46 = vld [vmem:[%s6075_s19 + $0x140] sm:$0xff]  ;;  %v7682_v25 = vpop.permute.xlu0 %5000  ;;  %v7698_v60 = vsel %vm2318_vm2, %v7694_v47, %v4673_v22  ;;  %v7705_v52 = vsel %vm2318_vm2, %v7701_v27, %v4672_v17  ;;  %v12920_v22 = vld [vmem:[#allocation84_spill] sm:$0xff]  ;;  %v4853_v17 = vunpack.i.h.bf16 %v7191_v37 }
 0x136   : > { %v7671_v42 = vsel %vm2318_vm2, %v7667_v46, %v4662_v12  ;;  %12914 = vst [vmem:[#allocation143_spill] sm:$0xff] %v7678_v33  ;;  %12915 = vst [vmem:[#allocation144_spill] sm:$0xff] %v7682_v25  ;;  %5295 = vrot.lane.b32.xlu1 %v12896_v49, %s6030_s27  ;;  %v7691_v12 = vsel %vm2318_vm2, %v7687_v54, %v4677_v30  ;;  %v5949_v25 = vld [vmem:[%s6075_s19 + $0x1a8] sm:$0xff]  ;;  %v2361_v33 = vsel %vm2318_vm2, %v5950_v61, %v4687_v44  ;;  %v5951_v30 = vld [vmem:[%s6075_s19 + $0x198] sm:$0xff] }
 0x137   : > { %12917 = vst [vmem:[#allocation146_spill] sm:$0xff] %v7691_v12  ;;  %12919 = vst [vmem:[#allocation148_spill] sm:$0xff] %v7701_v27  ;;  %v2362_v49 = vsel %vm2318_vm2, %v5949_v25, %v4688_v55  ;;  %v2360_v54 = vsel %vm2318_vm2, %v5951_v30, %v4683_v56  ;;  %v5952_v12 = vld [vmem:[%s6075_s19 + $0x190] sm:$0xff]  ;;  %v4852_v27 = vunpack.i.l.bf16 %v7191_v37  ;;  %v4698_v61 = vunpack.i.h.bf16 %v7043_v28 }
 0x138   : > { %v2359_v1 = vsel %vm2318_vm2, %v5952_v12, %v4682_v8  ;;  %5290 = vrot.lane.b32.xlu0 %v12920_v22, %s6027_s24  ;;  %v7717_v47 = vpop.permute.xlu1 %5015  ;;  %v7725_v44 = vsel %vm2387_vm3, %v2362_v49, %v4858_v40  ;;  %v7728_v8 = vsel %vm2387_vm3, %v2361_v33, %v4857_v26  ;;  %v4697_v12 = vunpack.i.l.bf16 %v7043_v28  ;;  %v12927_v26 = vld [vmem:[#allocation80_spill] sm:$0xff] }
 0x139   : > { %12921 = vst [vmem:[#allocation84_spill] sm:$0xff] %v7717_v47  ;;  %v12308_v25 = vunpack.i.h.bf16 %v7717_v47  ;;  %v12307_v55 = vunpack.i.l.bf16 %v7717_v47  ;;  %12922 = vst [vmem:[#allocation149_spill] sm:$0xff] %v7725_v44  ;;  %v7730_v56 = vpop.permute.xlu0 %5010  ;;  %v4708_v37 = vunpack.i.h.bf16 %v7053_v57  ;;  %v4707_v33 = vunpack.i.l.bf16 %v7053_v57  ;;  %v12988_v47 = vld [vmem:[#allocation44_spill] sm:$0xff] }
 0x13a   : > { %12923 = vst [vmem:[#allocation150_spill] sm:$0xff] %v7728_v8  ;;  %12924 = vst [vmem:[#allocation151_spill] sm:$0xff] %v7730_v56  ;;  %5305 = vrot.lane.b32.xlu1 %v6999_v63, %s6028_s25  ;;  %v12310_v28 = vunpack.i.l.bf16 %v7730_v56  ;;  %v4878_v57 = vunpack.i.h.bf16 %v7205_v36  ;;  %v4877_v63 = vunpack.i.l.bf16 %v7205_v36 }
 0x13b   : > { %v7740_v30 = vsel %vm2456_vm4, %v7728_v8, %v12307_v55  ;;  %v7746_v40 = vsel %vm2456_vm4, %v7725_v44, %v12308_v25  ;;  %v4703_v55 = vunpack.i.h.bf16 %v7057_v5  ;;  %v7760_v25 = vsel %vm2387_vm3, %v2360_v54, %v4853_v17  ;;  %v7781_v54 = vld [vmem:[%s6075_s19 + $0x1d0] sm:$0xff]  ;;  %v7788_v17 = vld [vmem:[%s6075_s19 + $0x1c8] sm:$0xff] }
 0x13c   : > { %12925 = vst [vmem:[#allocation152_spill] sm:$0xff] %v7740_v30  ;;  %12926 = vst [vmem:[#allocation153_spill] sm:$0xff] %v7746_v40  ;;  %5300 = vrot.lane.b32.xlu0 %v12927_v26, %s6027_s24  ;;  %v7753_v49 = vpop.permute.xlu1 %5025  ;;  %v7757_v30 = vsel %vm2387_vm3, %v2359_v1, %v4852_v27  ;;  %v12932_v44 = vunpack.i.h.bf16 %v7730_v56  ;;  %v7785_v36 = vsel %vm2318_vm2, %v7781_v54, %v4698_v61  ;;  %v5957_v8 = vld [vmem:[%s6075_s19 + $0x1e8] sm:$0xff] }
 0x13d   : > { %12928 = vst [vmem:[#allocation80_spill] sm:$0xff] %v7753_v49  ;;  %12929 = vst [vmem:[#allocation154_spill] sm:$0xff] %v7757_v30  ;;  %v7768_v40 = vsel %vm2456_vm4, %v7757_v30, %v12310_v28  ;;  %v7776_v1 = vpop.permute.xlu0 %5020  ;;  %v7792_v28 = vsel %vm2318_vm2, %v7788_v17, %v4697_v12  ;;  %v4873_v12 = vunpack.i.h.bf16 %v7207_v34 }
 0x13e   : > { %12930 = vst [vmem:[#allocation155_spill] sm:$0xff] %v7760_v25  ;;  %12931 = vst [vmem:[#allocation156_spill] sm:$0xff] %v7768_v40  ;;  %v7774_v27 = vsel %vm2456_vm4, %v7760_v25, %v12932_v44  ;;  %5315 = vrot.lane.b32.xlu1 %v12796_v10, %s6029_s26  ;;  %v4693_v44 = vunpack.i.h.bf16 %v7047_v39  ;;  %v5955_v10 = vld [vmem:[%s6075_s19 + $0x1f8] sm:$0xff]  ;;  %v5956_v25 = vld [vmem:[%s6075_s19 + $0x1f0] sm:$0xff] }
 0x13f   : > { %12933 = vst [vmem:[#allocation157_spill] sm:$0xff] %v7774_v27  ;;  %12934 = vst [vmem:[#allocation158_spill] sm:$0xff] %v7776_v1  ;;  %v4702_v27 = vunpack.i.l.bf16 %v7057_v5  ;;  %v2370_v56 = vsel %vm2318_vm2, %v5955_v10, %v4708_v37  ;;  %v2369_v61 = vsel %vm2318_vm2, %v5956_v25, %v4707_v33  ;;  %v2368_v37 = vsel %vm2318_vm2, %v5957_v8, %v4703_v55 }
 0x140   : > { %12935 = vst [vmem:[#allocation159_spill] sm:$0xff] %v7781_v54  ;;  %12936 = vst [vmem:[#allocation160_spill] sm:$0xff] %v7788_v17  ;;  %v12937_v54 = vld [vmem:[#allocation91_spill] sm:$0xff]  ;;  %v7803_v30 = vpop.permute.xlu1 %5035  ;;  %v4872_v17 = vunpack.i.l.bf16 %v7207_v34  ;;  %v7812_v10 = vsel %vm2387_vm3, %v2370_v56, %v4878_v57  ;;  %v7815_v25 = vsel %vm2387_vm3, %v2369_v61, %v4877_v63  ;;  %v5958_v34 = vld [vmem:[%s6075_s19 + $0x1e0] sm:$0xff]  ;;  %v4728_v5 = vunpack.i.h.bf16 %v7073_v14 }
 0x141   : > { %5310 = vrot.lane.b32.xlu0 %v12937_v54, %s6028_s25  ;;  %12938 = vst [vmem:[#allocation91_spill] sm:$0xff] %v7803_v30  ;;  %v12320_v40 = vunpack.i.l.bf16 %v7803_v30  ;;  %12939 = vst [vmem:[#allocation161_spill] sm:$0xff] %v7812_v10  ;;  %v7817_v33 = vpop.permute.xlu0 %5030  ;;  %v2367_v54 = vsel %vm2318_vm2, %v5958_v34, %v4702_v27  ;;  %v12943_v8 = vunpack.i.h.bf16 %v7803_v30  ;;  %v4727_v63 = vunpack.i.l.bf16 %v7073_v14  ;;  %v7844_v61 = vld [vmem:[%s6075_s19 + $0x1c0] sm:$0xff] }
 0x142   : > { %12940 = vst [vmem:[#allocation162_spill] sm:$0xff] %v7815_v25  ;;  %12941 = vst [vmem:[#allocation163_spill] sm:$0xff] %v7817_v33  ;;  %5325 = vrot.lane.b32.xlu1 %v12920_v22, %s6030_s27  ;;  %v12321_v57 = vunpack.i.l.bf16 %v7817_v33  ;;  %v7848_v34 = vsel %vm2318_vm2, %v7844_v61, %v4693_v44  ;;  %v7854_v14 = vsel %vm2387_vm3, %v2368_v37, %v4873_v12  ;;  %v4897_v22 = vunpack.i.l.bf16 %v7221_v15 }
 0x143   : > { %v7828_v55 = vsel %vm2456_vm4, %v7815_v25, %v12320_v40  ;;  %v7834_v56 = vsel %vm2456_vm4, %v7812_v10, %v12943_v8  ;;  %v7851_v8 = vsel %vm2387_vm3, %v2367_v54, %v4872_v17  ;;  %12947 = vst [vmem:[#allocation168_spill] sm:$0xff] %v7854_v14  ;;  %v5344_v40 = vpack.i.bf16 %v7601_v48, %v7608_v0  ;;  %v5974_v25 = vld [vmem:[%s6075_s19 + $0x290] sm:$0xff] }
 0x144   : > { %12942 = vst [vmem:[#allocation164_spill] sm:$0xff] %v7828_v55  ;;  %12944 = vst [vmem:[#allocation165_spill] sm:$0xff] %v7834_v56  ;;  %v7841_v27 = vpop.permute.xlu1 %5045  ;;  %v7864_v44 = vsel %vm2456_vm4, %v7851_v8, %v12321_v57  ;;  %v12949_v17 = vunpack.i.h.bf16 %v7817_v33  ;;  %v4718_v48 = vunpack.i.h.bf16 %v7063_v41  ;;  %v4723_v0 = vunpack.i.h.bf16 %v7077_v20  ;;  %v12952_v57 = vld [vmem:[#allocation98_spill] sm:$0xff]  ;;  %v5960_v56 = vld [vmem:[%s6075_s19 + $0x248] sm:$0xff] }
 0x145   : > { %5320 = vrot.lane.b32.xlu0 %v12790_v29, %s6029_s26  ;;  %12945 = vst [vmem:[#allocation166_spill] sm:$0xff] %v7841_v27  ;;  %12946 = vst [vmem:[#allocation167_spill] sm:$0xff] %v7851_v8  ;;  %v4898_v29 = vunpack.i.h.bf16 %v7221_v15  ;;  %v7872_v12 = vpop.permute.xlu0 %5040  ;;  %v4717_v15 = vunpack.i.l.bf16 %v7063_v41  ;;  %v4722_v37 = vunpack.i.l.bf16 %v7077_v20  ;;  %v12955_v41 = vld [vmem:[#allocation104_spill] sm:$0xff]  ;;  %v4712_v8 = vunpack.i.l.bf16 %v12952_v57 }
 0x146   : > { %12948 = vst [vmem:[#allocation169_spill] sm:$0xff] %v7864_v44  ;;  %v7870_v54 = vsel %vm2456_vm4, %v7854_v14, %v12949_v17  ;;  %12951 = vst [vmem:[#allocation171_spill] sm:$0xff] %v7872_v12  ;;  %5335 = vrot.lane.b32.xlu1 %v12927_v26, %s6030_s27  ;;  %v4713_v44 = vunpack.i.h.bf16 %v12952_v57  ;;  %v2378_v17 = vsel %vm2318_vm2, %v5960_v56, %v4728_v5  ;;  %v12953_v26 = vld [vmem:[#allocation13_spill] sm:$0xff]  ;;  %v4893_v30 = vunpack.i.h.bf16 %v12955_v41 }
 0x147   : > { %12950 = vst [vmem:[#allocation170_spill] sm:$0xff] %v7870_v54  ;;  %v5961_v54 = vld [vmem:[%s6075_s19 + $0x240] sm:$0xff]  ;;  %v4892_v10 = vunpack.i.l.bf16 %v12955_v41  ;;  %v7895_v5 = vsel %vm2387_vm3, %v2378_v17, %v4898_v29  ;;  %v5963_v41 = vld [vmem:[%s6075_s19 + $0x230] sm:$0xff] }
 0x148   : > { %v2377_v55 = vsel %vm2318_vm2, %v5961_v54, %v4727_v63  ;;  %v7887_v33 = vpop.permute.xlu1 %5055  ;;  %12956 = vst [vmem:[#allocation13_spill] sm:$0xff] %v7895_v5  ;;  %v5962_v54 = vld [vmem:[%s6075_s19 + $0x238] sm:$0xff]  ;;  %v2375_v20 = vsel %vm2318_vm2, %v5963_v41, %v4722_v37  ;;  %v12963_v17 = vld [vmem:[#allocation88_spill] sm:$0xff]  ;;  %v5349_v41 = vpack.i.bf16 %v7581_v35, %v7588_v58 }
 0x149   : > { %5330 = vrot.lane.b32.xlu0 %v12953_v26, %s6027_s24  ;;  %12954 = vst [vmem:[#allocation98_spill] sm:$0xff] %v7887_v33  ;;  %v12330_v14 = vunpack.i.l.bf16 %v7887_v33  ;;  %v7898_v56 = vsel %vm2387_vm3, %v2377_v55, %v4897_v22  ;;  %v7900_v63 = vpop.permute.xlu0 %5050  ;;  %v2376_v12 = vsel %vm2318_vm2, %v5962_v54, %v4723_v0  ;;  %v12960_v29 = vunpack.i.h.bf16 %v7887_v33  ;;  %v12962_v22 = vld [vmem:[#allocation99_spill] sm:$0xff] }
 0x14a   : > { %12957 = vst [vmem:[#allocation104_spill] sm:$0xff] %v7898_v56  ;;  %12958 = vst [vmem:[#allocation172_spill] sm:$0xff] %v7900_v63  ;;  %5345 = vrot.lane.b32.xlu1 %v5344_v40, %s6028_s25  ;;  %v4738_v40 = vunpack.i.h.bf16 %v12962_v22  ;;  %v7934_v0 = vsel %vm2387_vm3, %v2376_v12, %v4893_v30  ;;  %v12968_v33 = vunpack.i.l.bf16 %v7900_v63  ;;  %v12970_v58 = vunpack.i.h.bf16 %v7900_v63  ;;  %v12973_v30 = vld [vmem:[#allocation21_spill] sm:$0xff] }
 0x14b   : > { %v7911_v57 = vsel %vm2456_vm4, %v7898_v56, %v12330_v14  ;;  %v7917_v55 = vsel %vm2456_vm4, %v7895_v5, %v12960_v29  ;;  %v4737_v29 = vunpack.i.l.bf16 %v12962_v22  ;;  %v12965_v14 = vld [vmem:[#allocation100_spill] sm:$0xff]  ;;  %v7954_v12 = vld [vmem:[%s6075_s19 + $0x1b8] sm:$0xff] }
 0x14c   : > { %12959 = vst [vmem:[#allocation173_spill] sm:$0xff] %v7911_v57  ;;  %12961 = vst [vmem:[#allocation174_spill] sm:$0xff] %v7917_v55  ;;  %v7924_v54 = vpop.permute.xlu1 %5065  ;;  %v4733_v57 = vunpack.i.h.bf16 %v12965_v14  ;;  %v7931_v55 = vsel %vm2387_vm3, %v2375_v20, %v4892_v10  ;;  %v4732_v37 = vunpack.i.l.bf16 %v12965_v14  ;;  %v7947_v22 = vsel %vm2456_vm4, %v7934_v0, %v12970_v58  ;;  %v7963_v20 = vld [vmem:[%s6075_s19 + $0x220] sm:$0xff]  ;;  %v7972_v63 = vld [vmem:[%s6075_s19 + $0x218] sm:$0xff] }
 0x14d   : > { %5340 = vrot.lane.b32.xlu0 %v12963_v17, %s6027_s24  ;;  %12964 = vst [vmem:[#allocation99_spill] sm:$0xff] %v7924_v54  ;;  %12966 = vst [vmem:[#allocation88_spill] sm:$0xff] %v7931_v55  ;;  %v7941_v35 = vsel %vm2456_vm4, %v7931_v55, %v12968_v33  ;;  %v7949_v10 = vpop.permute.xlu0 %5060  ;;  %v12974_v14 = vunpack.i.l.bf16 %v7047_v39  ;;  %v7967_v58 = vsel %vm2318_vm2, %v7963_v20, %v4718_v48  ;;  %v7986_v48 = vld [vmem:[%s6075_s19 + $0x208] sm:$0xff]  ;;  %v7996_v54 = vld [vmem:[%s6075_s19 + $0x270] sm:$0xff] }
 0x14e   : > { %12967 = vst [vmem:[#allocation100_spill] sm:$0xff] %v7934_v0  ;;  %12969 = vst [vmem:[#allocation175_spill] sm:$0xff] %v7941_v35  ;;  %5355 = vrot.lane.b32.xlu1 %v12973_v30, %s6029_s26  ;;  %v7976_v39 = vsel %vm2318_vm2, %v7972_v63, %v4717_v15  ;;  %v7990_v56 = vsel %vm2318_vm2, %v7986_v48, %v4712_v8  ;;  %v8000_v15 = vsel %vm2318_vm2, %v7996_v54, %v4738_v40  ;;  %v12983_v8 = vld [vmem:[#allocation40_spill] sm:$0xff]  ;;  %v8012_v0 = vld [vmem:[%s6075_s19 + $0x260] sm:$0xff] }
 0x14f   : > { %12971 = vst [vmem:[#allocation176_spill] sm:$0xff] %v7947_v22  ;;  %12972 = vst [vmem:[#allocation177_spill] sm:$0xff] %v7949_v10  ;;  %v7960_v33 = vsel %vm2318_vm2, %v7954_v12, %v12974_v14  ;;  %v12976_v22 = vld [vmem:[#allocation39_spill] sm:$0xff]  ;;  %v7979_v14 = vld [vmem:[%s6075_s19 + $0x210] sm:$0xff] }
 0x150   : > { %12975 = vst [vmem:[#allocation21_spill] sm:$0xff] %v7963_v20  ;;  %v4748_v35 = vunpack.i.h.bf16 %v12976_v22  ;;  %v4747_v30 = vunpack.i.l.bf16 %v12976_v22  ;;  %12977 = vst [vmem:[#allocation39_spill] sm:$0xff] %v7972_v63  ;;  %v7983_v5 = vsel %vm2318_vm2, %v7979_v14, %v4713_v44  ;;  %v7993_v22 = vpop.permute.xlu1 %5075  ;;  %v8003_v44 = vld [vmem:[%s6075_s19 + $0x268] sm:$0xff]  ;;  %v4743_v63 = vunpack.i.h.bf16 %v12983_v8  ;;  %v8019_v55 = vld [vmem:[%s6075_s19 + $0x258] sm:$0xff] }
 0x151   : > { %12978 = vst [vmem:[#allocation178_spill] sm:$0xff] %v7979_v14  ;;  %12979 = vst [vmem:[#allocation179_spill] sm:$0xff] %v7986_v48  ;;  %5350 = vrot.lane.b32.xlu0 %v5349_v41, %s6028_s25  ;;  %v8007_v20 = vsel %vm2318_vm2, %v8003_v44, %v4737_v29  ;;  %v4742_v41 = vunpack.i.l.bf16 %v12983_v8  ;;  %v8023_v40 = vsel %vm2318_vm2, %v8019_v55, %v4732_v37  ;;  %v4752_v14 = vunpack.i.l.bf16 %v12988_v47  ;;  %v12989_v48 = vld [vmem:[#allocation45_spill] sm:$0xff] }
 0x152   : > { %12980 = vst [vmem:[#allocation180_spill] sm:$0xff] %v7993_v22  ;;  %12981 = vst [vmem:[#allocation181_spill] sm:$0xff] %v7996_v54  ;;  %v8016_v22 = vsel %vm2318_vm2, %v8012_v0, %v4733_v57  ;;  %v12986_v54 = vld [vmem:[#allocation43_spill] sm:$0xff]  ;;  %5365 = vrot.lane.b32.xlu1 %v12953_v26, %s6030_s27  ;;  %v5374_v8 = vpack.i.bf16 %v7408_v16, %v7423_v32  ;;  %v5973_v57 = vld [vmem:[%s6075_s19 + $0x298] sm:$0xff]  ;;  %v8038_v37 = vsel %vm2318_vm2, %v5974_v25, %v4747_v30 }
 0x153   : > { %12982 = vst [vmem:[#allocation182_spill] sm:$0xff] %v8003_v44  ;;  %12984 = vst [vmem:[#allocation40_spill] sm:$0xff] %v8012_v0  ;;  %v4757_v29 = vunpack.i.l.bf16 %v12986_v54  ;;  %v8026_v44 = vpop.permute.xlu0 %5070  ;;  %v8034_v10 = vsel %vm2318_vm2, %v5973_v57, %v4748_v35  ;;  %v4758_v27 = vunpack.i.h.bf16 %v12986_v54  ;;  %v4768_v1 = vunpack.i.h.bf16 %v12989_v48  ;;  %v12990_v16 = vld [vmem:[#allocation10_spill] sm:$0xff]  ;;  %v5975_v35 = vld [vmem:[%s6075_s19 + $0x288] sm:$0xff] }
 0x154   : > { %12985 = vst [vmem:[#allocation183_spill] sm:$0xff] %v8019_v55  ;;  %12987 = vst [vmem:[#allocation43_spill] sm:$0xff] %v8026_v44  ;;  %v4753_v44 = vunpack.i.h.bf16 %v12988_v47  ;;  %v4767_v26 = vunpack.i.l.bf16 %v12989_v48  ;;  %v8047_v32 = vpop.permute.xlu1 %5085  ;;  %v8051_v57 = vsel %vm2318_vm2, %v5975_v35, %v4743_v63  ;;  %v5976_v25 = vld [vmem:[%s6075_s19 + $0x280] sm:$0xff]  ;;  %v8074_v35 = vsel %vm2387_vm3, %v7274_v3, %v4752_v14  ;;  %v5978_v14 = vld [vmem:[%s6075_s19 + $0x58] sm:$0xff] }
 0x155   : > { %5360 = vrot.lane.b32.xlu0 %v12990_v16, %s6029_s26  ;;  %12991 = vst [vmem:[#allocation44_spill] sm:$0xff] %v8047_v32  ;;  %v8055_v54 = vsel %vm2318_vm2, %v5976_v25, %v4742_v41  ;;  %v12992_v30 = vld [vmem:[#allocation46_spill] sm:$0xff]  ;;  %v8061_v48 = vsel %vm2387_vm3, %v7376_v62, %v4757_v29  ;;  %v8070_v41 = vsel %vm2387_vm3, %v7300_v51, %v4758_v27  ;;  %v12995_v25 = vld [vmem:[#allocation51_spill] sm:$0xff]  ;;  %v5977_v27 = vld [vmem:[%s6075_s19 + $0x50] sm:$0xff] }
 0x156   : > { %v4763_v49 = vunpack.i.h.bf16 %v12992_v30  ;;  %v4762_v47 = vunpack.i.l.bf16 %v12992_v30  ;;  %v12993_v16 = vld [vmem:[#allocation50_spill] sm:$0xff]  ;;  %5375 = vrot.lane.b32.xlu1 %v5374_v8, %s6028_s25  ;;  %v4783_v30 = vunpack.i.h.bf16 %v12995_v25  ;;  %v4782_v62 = vunpack.i.l.bf16 %v12995_v25 }
 0x157   : > { %v4788_v32 = vunpack.i.h.bf16 %v12993_v16  ;;  %v4787_v0 = vunpack.i.l.bf16 %v12993_v16  ;;  %v8065_v63 = vpop.permute.xlu0 %5080  ;;  %v8080_v29 = vsel %vm2387_vm3, %v7270_v45, %v4753_v44  ;;  %v8084_v16 = vsel %vm2387_vm3, %v7278_v38, %v4768_v1  ;;  %v12997_v25 = vld [vmem:[#allocation34_spill] sm:$0xff]  ;;  %v12999_v1 = vld [vmem:[#allocation53_spill] sm:$0xff] }
 0x158   : > { %12994 = vst [vmem:[#allocation45_spill] sm:$0xff] %v8065_v63  ;;  %v8088_v51 = vsel %vm2387_vm3, %v7282_v24, %v4767_v26  ;;  %v8092_v3 = vpop.permute.xlu1 %5095  ;;  %v5379_v8 = vpack.i.bf16 %v5978_v14, %v5977_v27  ;;  %v8098_v45 = vsel %vm2387_vm3, %v12997_v25, %v4763_v49  ;;  %v12998_v44 = vld [vmem:[#allocation66_spill] sm:$0xff]  ;;  %v4808_v63 = vunpack.i.h.bf16 %v12999_v1  ;;  %v13001_v49 = vld [vmem:[#allocation9_spill] sm:$0xff] }
 0x159   : > { %5370 = vrot.lane.b32.xlu0 %v12963_v17, %s6030_s27  ;;  %12996 = vst [vmem:[#allocation10_spill] sm:$0xff] %v8092_v3  ;;  %v8102_v38 = vsel %vm2387_vm3, %v12998_v44, %v4762_v47  ;;  %v4807_v24 = vunpack.i.l.bf16 %v12999_v1  ;;  %v8108_v17 = vsel %vm2387_vm3, %v7380_v13, %v4788_v32  ;;  %v8112_v26 = vsel %vm2387_vm3, %v7384_v7, %v4787_v0  ;;  %v13002_v25 = vld [vmem:[#allocation54_spill] sm:$0xff]  ;;  %v13003_v44 = vld [vmem:[#allocation59_spill] sm:$0xff] }
 0x15a   : > { %5385 = vrot.lane.b32.xlu1 %v13001_v49, %s6029_s26  ;;  %v8120_v47 = vsel %vm2387_vm3, %v7578_v50, %v4782_v62  ;;  %v8124_v14 = vsel %vm2387_vm3, %v7548_v31, %v4783_v30  ;;  %v4803_v13 = vunpack.i.h.bf16 %v13002_v25  ;;  %v4802_v32 = vunpack.i.l.bf16 %v13002_v25  ;;  %v13005_v30 = vld [vmem:[#allocation125_spill] sm:$0xff]  ;;  %v13006_v25 = vld [vmem:[#allocation3_spill] sm:$0xff]  ;;  %v13027_v55 = vld [vmem:[#allocation146_spill] sm:$0xff] }
 0x15b   : > { %v8114_v27 = vpop.permute.xlu0 %5090  ;;  %v4828_v7 = vunpack.i.h.bf16 %v13003_v44  ;;  %v4827_v0 = vunpack.i.l.bf16 %v13003_v44  ;;  %v5404_v50 = vpack.i.bf16 %v7660_v11, %v7667_v46  ;;  %v8137_v62 = vsel %vm2387_vm3, %v7585_v23, %v4808_v63  ;;  %v13009_v23 = vld [vmem:[#allocation87_spill] sm:$0xff] }
 0x15c   : > { %13000 = vst [vmem:[#allocation46_spill] sm:$0xff] %v8114_v27  ;;  %v8131_v1 = vpop.permute.xlu1 %5105  ;;  %v8141_v31 = vsel %vm2387_vm3, %v7592_v43, %v4807_v24  ;;  %v5409_v49 = vpack.i.bf16 %v13005_v30, %v7518_v2  ;;  %v4823_v44 = vunpack.i.h.bf16 %v13006_v25  ;;  %v13007_v27 = vld [vmem:[#allocation2_spill] sm:$0xff]  ;;  %v8155_v43 = vsel %vm2387_vm3, %v7598_v9, %v4802_v32  ;;  %v13011_v9 = vld [vmem:[#allocation5_spill] sm:$0xff] }
 0x15d   : > { %5380 = vrot.lane.b32.xlu0 %v5379_v8, %s6028_s25  ;;  %13004 = vst [vmem:[#allocation50_spill] sm:$0xff] %v8131_v1  ;;  %v4822_v8 = vunpack.i.l.bf16 %v13006_v25  ;;  %v4838_v1 = vunpack.i.h.bf16 %v13007_v27  ;;  %v4837_v3 = vunpack.i.l.bf16 %v13007_v27  ;;  %v8159_v2 = vsel %vm2387_vm3, %v7595_v4, %v4803_v13  ;;  %v13010_v24 = vld [vmem:[#allocation6_spill] sm:$0xff]  ;;  %v13013_v4 = vld [vmem:[#allocation7_spill] sm:$0xff]  ;;  %v13015_v25 = vld [vmem:[#allocation97_spill] sm:$0xff] }
 0x15e   : > { %5395 = vrot.lane.b32.xlu1 %v13009_v23, %s6030_s27  ;;  %v8163_v11 = vsel %vm2387_vm3, %v7605_v18, %v4828_v7  ;;  %v8167_v63 = vsel %vm2387_vm3, %v7612_v6, %v4827_v0  ;;  %v4833_v27 = vunpack.i.h.bf16 %v13010_v24  ;;  %v4832_v30 = vunpack.i.l.bf16 %v13010_v24  ;;  %v13014_v7 = vld [vmem:[#allocation58_spill] sm:$0xff]  ;;  %v13025_v23 = vld [vmem:[#allocation143_spill] sm:$0xff] }
 0x15f   : > { %v8149_v46 = vpop.permute.xlu0 %5100  ;;  %v4848_v13 = vunpack.i.h.bf16 %v13013_v4  ;;  %v4847_v18 = vunpack.i.l.bf16 %v13013_v4  ;;  %v8181_v6 = vsel %vm2387_vm3, %v7627_v21, %v4822_v8  ;;  %v8185_v0 = vsel %vm2387_vm3, %v7623_v19, %v4823_v44  ;;  %v8201_v8 = vld [vmem:[%s6075_s19 + $0x60] sm:$0xff]  ;;  %v8204_v19 = vld [vmem:[%s6075_s19 + $0x68] sm:$0xff] }
 0x160   : > { %13008 = vst [vmem:[#allocation51_spill] sm:$0xff] %v8149_v46  ;;  %v8173_v32 = vpop.permute.xlu1 %5115  ;;  %v5434_v46 = vpack.i.bf16 %v13015_v25, %v13014_v7  ;;  %v8189_v24 = vsel %vm2387_vm3, %v7650_v53, %v4838_v1  ;;  %v13018_v7 = vld [vmem:[#allocation11_spill] sm:$0xff]  ;;  %v8210_v1 = vsel %vm2387_vm3, %v7671_v42, %v4832_v30  ;;  %v13028_v30 = vld [vmem:[#allocation101_spill] sm:$0xff] }
 0x161   : > { %5390 = vrot.lane.b32.xlu0 %v13011_v9, %s6029_s26  ;;  %13012 = vst [vmem:[#allocation34_spill] sm:$0xff] %v8173_v32  ;;  %13016 = vst [vmem:[#allocation66_spill] sm:$0xff] %v8189_v24  ;;  %v8193_v9 = vsel %vm2387_vm3, %v7657_v59, %v4837_v3  ;;  %v4843_v25 = vunpack.i.h.bf16 %v13018_v7  ;;  %v4842_v21 = vunpack.i.l.bf16 %v13018_v7  ;;  %v13020_v59 = vld [vmem:[#allocation141_spill] sm:$0xff]  ;;  %v13023_v7 = vld [vmem:[#allocation83_spill] sm:$0xff]  ;;  %v8224_v53 = vsel %vm2387_vm3, %v13025_v23, %v4848_v13 }
 0x162   : > { %5405 = vrot.lane.b32.xlu1 %v5404_v50, %s6028_s25  ;;  %13019 = vst [vmem:[#allocation9_spill] sm:$0xff] %v8210_v1  ;;  %v8214_v3 = vsel %vm2387_vm3, %v13020_v59, %v4833_v27  ;;  %v13022_v50 = vld [vmem:[#allocation24_spill] sm:$0xff]  ;;  %13026 = vst [vmem:[#allocation125_spill] sm:$0xff] %v8224_v53  ;;  %v8228_v42 = vsel %vm2387_vm3, %v13027_v55, %v4847_v18  ;;  %v4863_v27 = vunpack.i.h.bf16 %v13028_v30  ;;  %v4862_v59 = vunpack.i.l.bf16 %v13028_v30  ;;  %v13035_v18 = vld [vmem:[#allocation139_spill] sm:$0xff] }
 0x163   : > { %v8195_v4 = vpop.permute.xlu0 %5110  ;;  %13021 = vst [vmem:[#allocation54_spill] sm:$0xff] %v8214_v3  ;;  %v4868_v44 = vunpack.i.h.bf16 %v13022_v50  ;;  %v13029_v3 = vld [vmem:[#allocation102_spill] sm:$0xff]  ;;  %v8240_v23 = vsel %vm2387_vm3, %v7705_v52, %v4842_v21  ;;  %v8244_v55 = vsel %vm2387_vm3, %v7698_v60, %v4843_v25  ;;  %v13034_v13 = vld [vmem:[#allocation140_spill] sm:$0xff] }
 0x164   : > { %13017 = vst [vmem:[#allocation53_spill] sm:$0xff] %v8195_v4  ;;  %v4867_v4 = vunpack.i.l.bf16 %v13022_v50  ;;  %v8220_v32 = vpop.permute.xlu1 %5125  ;;  %v4888_v1 = vunpack.i.h.bf16 %v13029_v3  ;;  %v4887_v50 = vunpack.i.l.bf16 %v13029_v3  ;;  %13032 = vst [vmem:[#allocation2_spill] sm:$0xff] %v8240_v23  ;;  %v8263_v60 = vsel %vm2387_vm3, %v7960_v33, %v4862_v59  ;;  %v13042_v25 = vld [vmem:[#allocation94_spill] sm:$0xff]  ;;  %v13047_v33 = vld [vmem:[#allocation17_spill] sm:$0xff] }
 0x165   : > { %5400 = vrot.lane.b32.xlu0 %v13023_v7, %s6030_s27  ;;  %13024 = vst [vmem:[#allocation59_spill] sm:$0xff] %v8220_v32  ;;  %v13031_v32 = vld [vmem:[#allocation33_spill] sm:$0xff]  ;;  %13033 = vst [vmem:[#allocation6_spill] sm:$0xff] %v8244_v55  ;;  %v8250_v7 = vsel %vm2387_vm3, %v7785_v36, %v4868_v44  ;;  %v8267_v36 = vsel %vm2387_vm3, %v7848_v34, %v4863_v27  ;;  %v13043_v44 = vld [vmem:[#allocation92_spill] sm:$0xff] }
 0x166   : > { %5415 = vrot.lane.b32.xlu1 %v13031_v32, %s6029_s26  ;;  %13036 = vst [vmem:[#allocation5_spill] sm:$0xff] %v8250_v7  ;;  %v8254_v3 = vsel %vm2387_vm3, %v7792_v28, %v4867_v4  ;;  %v13038_v32 = vld [vmem:[#allocation103_spill] sm:$0xff]  ;;  %13040 = vst [vmem:[#allocation97_spill] sm:$0xff] %v8263_v60  ;;  %v8273_v4 = vsel %vm2387_vm3, %v7967_v58, %v4888_v1  ;;  %v13048_v59 = vld [vmem:[#allocation105_spill] sm:$0xff] }
 0x167   : > { %v8234_v24 = vpop.permute.xlu0 %5120  ;;  %13037 = vst [vmem:[#allocation7_spill] sm:$0xff] %v8254_v3  ;;  %v4882_v52 = vunpack.i.l.bf16 %v13038_v32  ;;  %13041 = vst [vmem:[#allocation11_spill] sm:$0xff] %v8267_v36  ;;  %v4908_v30 = vunpack.i.h.bf16 %v13048_v59  ;;  %v4907_v34 = vunpack.i.l.bf16 %v13048_v59  ;;  %v13051_v1 = vld [vmem:[#allocation106_spill] sm:$0xff]  ;;  %v13052_v28 = vld [vmem:[#allocation19_spill] sm:$0xff] }
 0x168   : > { %13030 = vst [vmem:[#allocation3_spill] sm:$0xff] %v8234_v24  ;;  %v4883_v24 = vunpack.i.h.bf16 %v13038_v32  ;;  %v8259_v21 = vpop.permute.xlu1 %5135  ;;  %13044 = vst [vmem:[#allocation141_spill] sm:$0xff] %v8273_v4  ;;  %v13055_v60 = vld [vmem:[#allocation31_spill] sm:$0xff]  ;;  %v13062_v3 = vld [vmem:[#allocation12_spill] sm:$0xff] }
 0x169   : > { %5410 = vrot.lane.b32.xlu0 %v5409_v49, %s6028_s25  ;;  %13039 = vst [vmem:[#allocation58_spill] sm:$0xff] %v8259_v21  ;;  %v8277_v49 = vsel %vm2387_vm3, %v7976_v39, %v4887_v50  ;;  %v8287_v27 = vsel %vm2387_vm3, %v7990_v56, %v4882_v52  ;;  %v4903_v39 = vunpack.i.h.bf16 %v13051_v1  ;;  %v4902_v50 = vunpack.i.l.bf16 %v13051_v1 }
 0x16a   : > { %13045 = vst [vmem:[#allocation24_spill] sm:$0xff] %v8277_v49  ;;  %5425 = vrot.lane.b32.xlu1 %v13047_v33, %s6030_s27  ;;  %13049 = vst [vmem:[#allocation146_spill] sm:$0xff] %v8287_v27  ;;  %v8291_v58 = vsel %vm2387_vm3, %v7983_v5, %v4883_v24  ;;  %v13054_v49 = vld [vmem:[#allocation29_spill] sm:$0xff]  ;;  %v4913_v56 = vunpack.i.h.bf16 %v13055_v60  ;;  %v4912_v52 = vunpack.i.l.bf16 %v13055_v60  ;;  %v8314_v1 = vsel %vm2387_vm3, %v8007_v20, %v4907_v34 }
 0x16b   : > { %v8279_v32 = vpop.permute.xlu0 %5130  ;;  %13050 = vst [vmem:[#allocation101_spill] sm:$0xff] %v8291_v58  ;;  %v4918_v36 = vunpack.i.h.bf16 %v13054_v49  ;;  %v4917_v59 = vunpack.i.l.bf16 %v13054_v49  ;;  %v13056_v27 = vld [vmem:[#allocation37_spill] sm:$0xff]  ;;  %13058 = vst [vmem:[#allocation140_spill] sm:$0xff] %v8314_v1  ;;  %v8318_v49 = vsel %vm2387_vm3, %v8023_v40, %v4902_v50  ;;  %v8322_v60 = vsel %vm2387_vm3, %v8016_v22, %v4903_v39 }
 0x16c   : > { %13046 = vst [vmem:[#allocation143_spill] sm:$0xff] %v8279_v32  ;;  %v8297_v4 = vpop.permute.xlu1 %5145  ;;  %v4928_v5 = vunpack.i.h.bf16 %v13056_v27  ;;  %v4927_v24 = vunpack.i.l.bf16 %v13056_v27  ;;  %13059 = vst [vmem:[#allocation139_spill] sm:$0xff] %v8318_v49  ;;  %v13061_v27 = vld [vmem:[#allocation72_spill] sm:$0xff]  ;;  %v8340_v22 = vsel %vm2387_vm3, %v8055_v54, %v4912_v52  ;;  %v13070_v39 = vld [vmem:[#allocation81_spill] sm:$0xff] }
 0x16d   : > { %5420 = vrot.lane.b32.xlu0 %v13052_v28, %s6029_s26  ;;  %13053 = vst [vmem:[#allocation102_spill] sm:$0xff] %v8297_v4  ;;  %v8310_v28 = vsel %vm2387_vm3, %v8000_v15, %v4908_v30  ;;  %13060 = vst [vmem:[#allocation103_spill] sm:$0xff] %v8322_v60  ;;  %v4923_v7 = vunpack.i.h.bf16 %v13061_v27  ;;  %v8332_v20 = vsel %vm2387_vm3, %v8034_v10, %v4918_v36  ;;  %v4947_v50 = vunpack.i.l.bf16 %v13070_v39  ;;  %v13090_v49 = vld [vmem:[#allocation112_spill] sm:$0xff] }
 0x16e   : > { %5435 = vrot.lane.b32.xlu1 %v5434_v46, %s6028_s25  ;;  %13057 = vst [vmem:[#allocation33_spill] sm:$0xff] %v8310_v28  ;;  %v4922_v46 = vunpack.i.l.bf16 %v13061_v27  ;;  %13064 = vst [vmem:[#allocation92_spill] sm:$0xff] %v8332_v20  ;;  %v8336_v40 = vsel %vm2387_vm3, %v8038_v37, %v4917_v59  ;;  %v8344_v30 = vsel %vm2387_vm3, %v8051_v57, %v4913_v56  ;;  %v13069_v37 = vld [vmem:[#allocation8_spill] sm:$0xff]  ;;  %v13076_v20 = vld [vmem:[#allocation85_spill] sm:$0xff] }
 0x16f   : > { %v8305_v58 = vpop.permute.xlu0 %5140  ;;  %13065 = vst [vmem:[#allocation17_spill] sm:$0xff] %v8336_v40  ;;  %13066 = vst [vmem:[#allocation105_spill] sm:$0xff] %v8340_v22  ;;  %v8348_v34 = vsel %vm2456_vm4, %v8061_v48, %v4927_v24  ;;  %v8352_v10 = vsel %vm2456_vm4, %v8070_v41, %v4928_v5  ;;  %v8360_v54 = vsel %vm2456_vm4, %v8088_v51, %v4927_v24  ;;  %v4948_v48 = vunpack.i.h.bf16 %v13070_v39  ;;  %v13074_v24 = vld [vmem:[#allocation147_spill] sm:$0xff]  ;;  %v13081_v40 = vld [vmem:[#allocation109_spill] sm:$0xff] }
 0x170   : > { %v8328_v15 = vpop.permute.xlu1 %5155  ;;  %13067 = vst [vmem:[#allocation106_spill] sm:$0xff] %v8344_v30  ;;  %v8364_v57 = vsel %vm2456_vm4, %v8084_v16, %v4928_v5  ;;  %v8370_v41 = vsel %vm2456_vm4, %v8074_v35, %v4922_v46  ;;  %v8374_v59 = vsel %vm2456_vm4, %v8080_v29, %v4923_v7  ;;  %v13071_v56 = vpack.i.bf16 %v8204_v19, %v8201_v8  ;;  %v13073_v5 = vld [vmem:[#allocation148_spill] sm:$0xff]  ;;  %v13075_v29 = vld [vmem:[#allocation115_spill] sm:$0xff] }
 0x171   : > { %5430 = vrot.lane.b32.xlu0 %v13062_v3, %s6030_s27  ;;  %13063 = vst [vmem:[#allocation94_spill] sm:$0xff] %v8328_v15  ;;  %v8390_v35 = vsel %vm2456_vm4, %v8098_v45, %v4923_v7  ;;  %v4943_v39 = vunpack.i.h.bf16 %v13075_v29  ;;  %v4942_v30 = vunpack.i.l.bf16 %v13075_v29  ;;  %v13077_v8 = vunpack.i.l.bf16 %v13076_v20  ;;  %v13080_v7 = vld [vmem:[#allocation86_spill] sm:$0xff]  ;;  %v13089_v22 = vld [vmem:[#allocation64_spill] sm:$0xff] }
 0x172   : > { %5445 = vrot.lane.b32.xlu1 %v13069_v37, %s6029_s26  ;;  %v8386_v37 = vsel %vm2456_vm4, %v8102_v38, %v4922_v46  ;;  %v13082_v28 = vunpack.i.l.bf16 %v13081_v40  ;;  %v8432_v60 = vsel %vm2456_vm4, %v8112_v26, %v4947_v50 }
 0x173   : > { %v8354_v36 = vpop.permute.xlu0 %5150  ;;  %v8398_v19 = vsel %vm2456_vm4, %v8088_v51, %v13077_v8  ;;  %v13083_v51 = vunpack.i.h.bf16 %v13081_v40  ;;  %v13084_v8 = vld [vmem:[#allocation108_spill] sm:$0xff] }
 0x174   : > { %13068 = vst [vmem:[#allocation19_spill] sm:$0xff] %v8354_v36  ;;  %v8380_v52 = vpop.permute.xlu1 %5165  ;;  %v8414_v29 = vsel %vm2456_vm4, %v8102_v38, %v13082_v28  ;;  %v8436_v38 = vsel %vm2456_vm4, %v8108_v17, %v4948_v48  ;;  %v13086_v28 = vld [vmem:[#allocation120_spill] sm:$0xff]  ;;  %v8456_v36 = vsel %vm2456_vm4, %v8120_v47, %v4942_v30 }
 0x175   : > { %5440 = vrot.lane.b32.xlu0 %v13071_v56, %s6028_s25  ;;  %13072 = vst [vmem:[#allocation29_spill] sm:$0xff] %v8380_v52  ;;  %v13078_v56 = vunpack.i.h.bf16 %v13076_v20  ;;  %v8420_v20 = vsel %vm2456_vm4, %v8098_v45, %v13083_v51  ;;  %v4968_v40 = vunpack.i.h.bf16 %v13086_v28  ;;  %v4967_v45 = vunpack.i.l.bf16 %v13086_v28  ;;  %v13087_v51 = vld [vmem:[#allocation4_spill] sm:$0xff]  ;;  %v13091_v52 = vld [vmem:[#allocation145_spill] sm:$0xff] }
 0x176   : > { %5455 = vrot.lane.b32.xlu1 %v13080_v7, %s6030_s27  ;;  %v8460_v28 = vsel %vm2456_vm4, %v8124_v14, %v4943_v39 }
 0x177   : > { %v8404_v46 = vsel %vm2456_vm4, %v8084_v16, %v13078_v56  ;;  %v8406_v27 = vpop.permute.xlu0 %5160  ;;  %v8424_v16 = vsel %vm2456_vm4, %v13084_v8, %v4947_v50  ;;  %v13085_v56 = vld [vmem:[#allocation107_spill] sm:$0xff]  ;;  %v8450_v50 = vsel %vm2456_vm4, %v13090_v49, %v4943_v39  ;;  %v13095_v49 = vpack.i.bf16 %v13035_v18, %v13034_v13 }
 0x178   : > { %13079 = vst [vmem:[#allocation31_spill] sm:$0xff] %v8406_v27  ;;  %v8428_v1 = vsel %vm2456_vm4, %v13085_v56, %v4948_v48  ;;  %v8442_v8 = vpop.permute.xlu1 %5175  ;;  %v8446_v56 = vsel %vm2456_vm4, %v13089_v22, %v4942_v30  ;;  %v13092_v48 = vld [vmem:[#allocation142_spill] sm:$0xff]  ;;  %v13096_v27 = vld [vmem:[#allocation93_spill] sm:$0xff] }
 0x179   : > { %5450 = vrot.lane.b32.xlu0 %v13087_v51, %s6029_s26  ;;  %13088 = vst [vmem:[#allocation37_spill] sm:$0xff] %v8442_v8  ;;  %v13093_v51 = vld [vmem:[#allocation124_spill] sm:$0xff]  ;;  %v13097_v32 = vunpack.i.l.bf16 %v13096_v27  ;;  %v13098_v39 = vunpack.i.h.bf16 %v13096_v27 }
 0x17a   : > { %v4963_v8 = vunpack.i.h.bf16 %v13093_v51  ;;  %v4962_v22 = vunpack.i.l.bf16 %v13093_v51  ;;  %5465 = vrot.lane.b32.xlu1 %v13095_v49, %s6028_s25  ;;  %v13100_v51 = vld [vmem:[#allocation118_spill] sm:$0xff]  ;;  %v13107_v27 = vld [vmem:[#allocation116_spill] sm:$0xff] }
 0x17b   : > { %v8464_v15 = vpop.permute.xlu0 %5170  ;;  %v8474_v30 = vsel %vm2456_vm4, %v8112_v26, %v13097_v32  ;;  %v8480_v4 = vsel %vm2456_vm4, %v8108_v17, %v13098_v39  ;;  %v13101_v21 = vunpack.i.l.bf16 %v13100_v51  ;;  %v13103_v13 = vunpack.i.h.bf16 %v13100_v51  ;;  %v13105_v26 = vld [vmem:[#allocation117_spill] sm:$0xff]  ;;  %v13109_v49 = vld [vmem:[#allocation82_spill] sm:$0xff]  ;;  %v13113_v51 = vld [vmem:[#allocation96_spill] sm:$0xff] }
 0x17c   : > { %13094 = vst [vmem:[#allocation72_spill] sm:$0xff] %v8464_v15  ;;  %13099 = vst [vmem:[#allocation12_spill] sm:$0xff] %v8480_v4  ;;  %v8496_v32 = vsel %vm2456_vm4, %v13105_v26, %v4967_v45  ;;  %v8500_v17 = vsel %vm2456_vm4, %v13107_v27, %v4968_v40  ;;  %v8504_v39 = vpop.permute.xlu1 %5185  ;;  %v13114_v26 = vld [vmem:[#allocation121_spill] sm:$0xff] }
 0x17d   : > { %v8486_v15 = vsel %vm2456_vm4, %v8120_v47, %v13101_v21  ;;  %v8492_v18 = vsel %vm2456_vm4, %v8124_v14, %v13103_v13  ;;  %13106 = vst [vmem:[#allocation148_spill] sm:$0xff] %v8496_v32  ;;  %13108 = vst [vmem:[#allocation147_spill] sm:$0xff] %v8500_v17  ;;  %5460 = vrot.lane.b32.xlu0 %v13109_v49, %s6030_s27  ;;  %v8508_v47 = vsel %vm2456_vm4, %v8141_v31, %v4967_v45 }
 0x17e   : > { %13102 = vst [vmem:[#allocation8_spill] sm:$0xff] %v8486_v15  ;;  %13104 = vst [vmem:[#allocation81_spill] sm:$0xff] %v8492_v18  ;;  %v8512_v14 = vsel %vm2456_vm4, %v8137_v62, %v4968_v40  ;;  %v8518_v13 = vsel %vm2456_vm4, %v13113_v51, %v4962_v22  ;;  %v8522_v27 = vsel %vm2456_vm4, %v13114_v26, %v4963_v8  ;;  %v13117_v40 = vld [vmem:[#allocation28_spill] sm:$0xff] }
 0x17f   : > { %13110 = vst [vmem:[#allocation115_spill] sm:$0xff] %v8504_v39  ;;  %13111 = vst [vmem:[#allocation85_spill] sm:$0xff] %v8508_v47  ;;  %v13115_v39 = vld [vmem:[#allocation89_spill] sm:$0xff]  ;;  %v8526_v47 = vpop.permute.xlu0 %5180  ;;  %5475 = vrot.lane.b32.xlu1 %v13117_v40, %s6029_s26  ;;  %v8532_v21 = vsel %vm2456_vm4, %v8155_v43, %v4962_v22  ;;  %v8536_v51 = vsel %vm2456_vm4, %v8159_v2, %v4963_v8  ;;  %v13125_v40 = vld [vmem:[#allocation135_spill] sm:$0xff]  ;;  %v13126_v8 = vpack.i.bf16 %v13043_v44, %v13042_v25 }
 0x180   : > { %13112 = vst [vmem:[#allocation86_spill] sm:$0xff] %v8512_v14  ;;  %v4988_v17 = vunpack.i.h.bf16 %v13115_v39  ;;  %v4987_v45 = vunpack.i.l.bf16 %v13115_v39  ;;  %13116 = vst [vmem:[#allocation109_spill] sm:$0xff] %v8526_v47  ;;  %v13120_v14 = vld [vmem:[#allocation15_spill] sm:$0xff]  ;;  %v4983_v18 = vunpack.i.h.bf16 %v13125_v40  ;;  %v4982_v22 = vunpack.i.l.bf16 %v13125_v40 }
 0x181   : > { %13118 = vst [vmem:[#allocation108_spill] sm:$0xff] %v8532_v21  ;;  %13119 = vst [vmem:[#allocation107_spill] sm:$0xff] %v8536_v51  ;;  %v13121_v26 = vunpack.i.l.bf16 %v13120_v14  ;;  %v13123_v39 = vunpack.i.h.bf16 %v13120_v14  ;;  %5470 = vrot.lane.b32.xlu0 %v13126_v8, %s6028_s25  ;;  %v8556_v51 = vpop.permute.xlu1 %5195  ;;  %v13128_v21 = vld [vmem:[#allocation73_spill] sm:$0xff]  ;;  %v13136_v8 = vld [vmem:[#allocation127_spill] sm:$0xff] }
 0x182   : > { %13127 = vst [vmem:[#allocation64_spill] sm:$0xff] %v8556_v51  ;;  %v8576_v51 = vsel %vm2456_vm4, %v13136_v8, %v4987_v45 }
 0x183   : > { %v8542_v32 = vsel %vm2456_vm4, %v8141_v31, %v13121_v26  ;;  %v8548_v47 = vsel %vm2456_vm4, %v8137_v62, %v13123_v39  ;;  %v13129_v31 = vld [vmem:[#allocation69_spill] sm:$0xff]  ;;  %13137 = vst [vmem:[#allocation142_spill] sm:$0xff] %v8576_v51  ;;  %v13138_v26 = vld [vmem:[#allocation126_spill] sm:$0xff] }
 0x184   : > { %13122 = vst [vmem:[#allocation120_spill] sm:$0xff] %v8542_v32  ;;  %13124 = vst [vmem:[#allocation4_spill] sm:$0xff] %v8548_v47  ;;  %v13130_v32 = vld [vmem:[#allocation128_spill] sm:$0xff]  ;;  %v8580_v15 = vsel %vm2456_vm4, %v13138_v26, %v4988_v17  ;;  %v13166_v51 = vld [vmem:[#allocation54_spill] sm:$0xff] }
 0x185   : > { %v13131_v14 = vunpack.i.l.bf16 %v13130_v32  ;;  %v13133_v39 = vunpack.i.h.bf16 %v13130_v32  ;;  %v13135_v47 = vld [vmem:[#allocation136_spill] sm:$0xff]  ;;  %13139 = vst [vmem:[#allocation124_spill] sm:$0xff] %v8580_v15  ;;  %v8590_v32 = vpop.permute.xlu0 %5190  ;;  %v8608_v15 = vpop.permute.xlu1 %5205 }
 0x186   : > { %v4998_v25 = vunpack.i.h.bf16 %v13135_v47  ;;  %v4997_v44 = vunpack.i.l.bf16 %v13135_v47  ;;  %13142 = vst [vmem:[#allocation117_spill] sm:$0xff] %v8590_v32  ;;  %v13143_v47 = vld [vmem:[#allocation16_spill] sm:$0xff]  ;;  %v13148_v32 = vld [vmem:[#allocation14_spill] sm:$0xff]  ;;  %13149 = vst [vmem:[#allocation116_spill] sm:$0xff] %v8608_v15 }
 0x187   : > { %v8564_v62 = vsel %vm2456_vm4, %v8155_v43, %v13131_v14  ;;  %v8570_v40 = vsel %vm2456_vm4, %v8159_v2, %v13133_v39  ;;  %v8584_v43 = vsel %vm2456_vm4, %v8167_v63, %v4987_v45  ;;  %v8588_v2 = vsel %vm2456_vm4, %v8163_v11, %v4988_v17  ;;  %5485 = vrot.lane.b32.xlu1 %v13143_v47, %s6030_s27  ;;  %v13144_v14 = vld [vmem:[#allocation137_spill] sm:$0xff]  ;;  %v13155_v15 = vld [vmem:[#allocation66_spill] sm:$0xff] }
 0x188   : > { %13132 = vst [vmem:[#allocation112_spill] sm:$0xff] %v8564_v62  ;;  %13134 = vst [vmem:[#allocation145_spill] sm:$0xff] %v8570_v40  ;;  %v4993_v39 = vunpack.i.h.bf16 %v13144_v14  ;;  %v4992_v8 = vunpack.i.l.bf16 %v13144_v14  ;;  %v13145_v40 = vld [vmem:[#allocation131_spill] sm:$0xff]  ;;  %v13146_v62 = vld [vmem:[#allocation132_spill] sm:$0xff]  ;;  %5480 = vrot.lane.b32.xlu0 %v13148_v32, %s6029_s26  ;;  %v8612_v14 = vsel %vm2456_vm4, %v8181_v6, %v4982_v22  ;;  %v8628_v32 = vsel %vm2456_vm4, %v8193_v9, %v4997_v44 }
 0x189   : > { %13140 = vst [vmem:[#allocation93_spill] sm:$0xff] %v8584_v43  ;;  %13141 = vst [vmem:[#allocation118_spill] sm:$0xff] %v8588_v2  ;;  %v8598_v26 = vsel %vm2456_vm4, %v13145_v40, %v4982_v22  ;;  %v8602_v45 = vsel %vm2456_vm4, %v13146_v62, %v4983_v18  ;;  %v13147_v43 = vld [vmem:[#allocation138_spill] sm:$0xff]  ;;  %v8616_v40 = vsel %vm2456_vm4, %v8185_v0, %v4983_v18 }
 0x18a   : > { %v5008_v17 = vunpack.i.h.bf16 %v13147_v43  ;;  %v5007_v2 = vunpack.i.l.bf16 %v13147_v43  ;;  %13150 = vst [vmem:[#allocation82_spill] sm:$0xff] %v8612_v14  ;;  %13151 = vst [vmem:[#allocation96_spill] sm:$0xff] %v8616_v40  ;;  %v8620_v62 = vsel %vm2456_vm4, %v8167_v63, %v4997_v44  ;;  %v8624_v43 = vsel %vm2456_vm4, %v8163_v11, %v4998_v25  ;;  %v8634_v14 = vpop.permute.xlu0 %5200  ;;  %v13158_v18 = vld [vmem:[#allocation90_spill] sm:$0xff]  ;;  %v13159_v40 = vld [vmem:[#allocation183_spill] sm:$0xff] }
 0x18b   : > { %13152 = vst [vmem:[#allocation121_spill] sm:$0xff] %v8620_v62  ;;  %13153 = vst [vmem:[#allocation89_spill] sm:$0xff] %v8624_v43  ;;  %v8632_v22 = vsel %vm2456_vm4, %v13155_v15, %v4998_v25  ;;  %5495 = vrot.lane.b32.xlu1 %v13158_v18, %s6030_s27  ;;  %v13160_v63 = vld [vmem:[#allocation40_spill] sm:$0xff]  ;;  %v8642_v11 = vsel %vm2456_vm4, %v8181_v6, %v4992_v8  ;;  %v8646_v44 = vsel %vm2456_vm4, %v8185_v0, %v4993_v39  ;;  %v13170_v62 = vld [vmem:[#allocation87_spill] sm:$0xff] }
 0x18c   : > { %13154 = vst [vmem:[#allocation28_spill] sm:$0xff] %v8628_v32  ;;  %13156 = vst [vmem:[#allocation15_spill] sm:$0xff] %v8632_v22  ;;  %v13163_v32 = vld [vmem:[#allocation144_spill] sm:$0xff]  ;;  %v13164_v22 = vld [vmem:[#allocation9_spill] sm:$0xff]  ;;  %v8656_v4 = vsel %vm2456_vm4, %v13166_v51, %v4993_v39  ;;  %v8660_v6 = vsel %vm2456_vm4, %v8193_v9, %v5007_v2  ;;  %v8664_v0 = vsel %vm2456_vm4, %v13155_v15, %v5008_v17  ;;  %5490 = vrot.lane.b32.xlu0 %v13170_v62, %s6027_s24 }
 0x18d   : > { %13157 = vst [vmem:[#allocation135_spill] sm:$0xff] %v8634_v14  ;;  %13161 = vst [vmem:[#allocation73_spill] sm:$0xff] %v8642_v11  ;;  %v5003_v43 = vunpack.i.h.bf16 %v13163_v32  ;;  %v5002_v25 = vunpack.i.l.bf16 %v13163_v32  ;;  %v8652_v14 = vsel %vm2456_vm4, %v13164_v22, %v4992_v8  ;;  %v8668_v32 = vpop.permute.xlu1 %5215  ;;  %v8672_v8 = vsel %vm2456_vm4, %v8228_v42, %v5007_v2  ;;  %v13174_v9 = vld [vmem:[#allocation80_spill] sm:$0xff]  ;;  %v13175_v15 = vld [vmem:[#allocation158_spill] sm:$0xff] }
 0x18e   : > { %13162 = vst [vmem:[#allocation69_spill] sm:$0xff] %v8646_v44  ;;  %13165 = vst [vmem:[#allocation128_spill] sm:$0xff] %v8652_v14  ;;  %v8676_v39 = vsel %vm2456_vm4, %v8224_v53, %v5008_v17  ;;  %v8682_v14 = vpop.permute.xlu0 %5210  ;;  %v13177_v2 = vld [vmem:[#allocation179_spill] sm:$0xff] }
 0x18f   : > { %13167 = vst [vmem:[#allocation136_spill] sm:$0xff] %v8656_v4  ;;  %13168 = vst [vmem:[#allocation127_spill] sm:$0xff] %v8660_v6  ;;  %5505 = vrot.lane.b32.xlu1 %v13047_v33, %s6027_s24  ;;  %v8690_v17 = vsel %vm2456_vm4, %v13164_v22, %v5002_v25  ;;  %v8694_v6 = vsel %vm2456_vm4, %v13166_v51, %v5003_v43  ;;  %v8702_v62 = vsel %vm2456_vm4, %v8244_v55, %v5003_v43  ;;  %v13183_v33 = vld [vmem:[#allocation84_spill] sm:$0xff]  ;;  %v13186_v22 = vld [vmem:[#allocation166_spill] sm:$0xff] }
 0x190   : > { %13169 = vst [vmem:[#allocation126_spill] sm:$0xff] %v8664_v0  ;;  %13171 = vst [vmem:[#allocation16_spill] sm:$0xff] %v8668_v32  ;;  %v8698_v0 = vsel %vm2456_vm4, %v8240_v23, %v5002_v25  ;;  %v13184_v4 = vunpack.i.l.bf16 %v13183_v33  ;;  %v13187_v51 = vld [vmem:[#allocation83_spill] sm:$0xff]  ;;  %v13189_v25 = vunpack.i.l.bf16 %v13174_v9  ;;  %v13190_v43 = vld [vmem:[#allocation150_spill] sm:$0xff] }
 0x191   : > { %13172 = vst [vmem:[#allocation137_spill] sm:$0xff] %v8672_v8  ;;  %13173 = vst [vmem:[#allocation131_spill] sm:$0xff] %v8676_v39  ;;  %v13178_v8 = vld [vmem:[#allocation178_spill] sm:$0xff]  ;;  %5500 = vrot.lane.b32.xlu0 %v13187_v51, %s6027_s24  ;;  %v8713_v53 = vpop.permute.xlu1 %5225  ;;  %v13193_v55 = vld [vmem:[#allocation149_spill] sm:$0xff] }
 0x192   : > { %13176 = vst [vmem:[#allocation132_spill] sm:$0xff] %v8682_v14  ;;  %13179 = vst [vmem:[#allocation138_spill] sm:$0xff] %v8690_v17  ;;  %v8708_v44 = vsel %vm2456_vm4, %v8228_v42, %v13184_v4  ;;  %v13195_v4 = vunpack.i.l.bf16 %v13175_v15  ;;  %v13196_v39 = vld [vmem:[#allocation154_spill] sm:$0xff]  ;;  %v13199_v23 = vld [vmem:[#allocation155_spill] sm:$0xff] }
 0x193   : > { %13180 = vst [vmem:[#allocation14_spill] sm:$0xff] %v8694_v6  ;;  %13181 = vst [vmem:[#allocation66_spill] sm:$0xff] %v8698_v0  ;;  %v13192_v0 = vunpack.i.h.bf16 %v13174_v9  ;;  %5515 = vrot.lane.b32.xlu1 %v13080_v7, %s6027_s24  ;;  %v13215_v6 = vunpack.i.l.bf16 %v8668_v32 }
 0x194   : > { %13182 = vst [vmem:[#allocation90_spill] sm:$0xff] %v8702_v62  ;;  %13185 = vst [vmem:[#allocation183_spill] sm:$0xff] %v8708_v44  ;;  %v8719_v62 = vsel %vm2456_vm4, %v13190_v43, %v13189_v25  ;;  %v8731_v51 = vsel %vm2456_vm4, %v13196_v39, %v13195_v4  ;;  %v13198_v44 = vunpack.i.h.bf16 %v13175_v15  ;;  %v13201_v25 = vld [vmem:[#allocation51_spill] sm:$0xff]  ;;  %v13202_v39 = vld [vmem:[#allocation160_spill] sm:$0xff] }
 0x195   : > { %13188 = vst [vmem:[#allocation40_spill] sm:$0xff] %v8713_v53  ;;  %13191 = vst [vmem:[#allocation144_spill] sm:$0xff] %v8719_v62  ;;  %v8725_v42 = vsel %vm2456_vm4, %v13193_v55, %v13192_v0  ;;  %v8741_v62 = vpop.permute.xlu0 %5220  ;;  %v13203_v4 = vld [vmem:[#allocation159_spill] sm:$0xff]  ;;  %5510 = vrot.lane.b32.xlu0 %v13062_v3, %s6027_s24  ;;  %v8760_v7 = vpop.permute.xlu1 %5235  ;;  %v13209_v15 = vld [vmem:[#allocation45_spill] sm:$0xff]  ;;  %v13212_v9 = vunpack.i.l.bf16 %v13201_v25  ;;  %v13219_v55 = vunpack.i.h.bf16 %v8713_v53 }
 0x196   : > { %13194 = vst [vmem:[#allocation9_spill] sm:$0xff] %v8725_v42  ;;  %13197 = vst [vmem:[#allocation54_spill] sm:$0xff] %v8731_v51  ;;  %v8737_v33 = vsel %vm2456_vm4, %v13199_v23, %v13198_v44  ;;  %v13204_v42 = vunpack.i.l.bf16 %v13186_v22  ;;  %v13205_v23 = vld [vmem:[#allocation162_spill] sm:$0xff]  ;;  %v13207_v43 = vld [vmem:[#allocation171_spill] sm:$0xff] }
 0x197   : > { %13200 = vst [vmem:[#allocation87_spill] sm:$0xff] %v8737_v33  ;;  %13208 = vst [vmem:[#allocation178_spill] sm:$0xff] %v8760_v7  ;;  %v13210_v51 = vld [vmem:[#allocation70_spill] sm:$0xff]  ;;  %v2602_v14 = vsel %vm2585_vm6, %v8446_v56, %v13212_v9  ;;  %v13213_v33 = vunpack.i.h.bf16 %v13201_v25  ;;  %5525 = vrot.lane.b32.xlu1 %v13143_v47, %s6027_s24  ;;  %v13214_v22 = vld [vmem:[#allocation177_spill] sm:$0xff]  ;;  %v13216_v56 = vunpack.i.h.bf16 %v8668_v32  ;;  %v13218_v47 = vunpack.i.l.bf16 %v8713_v53 }
 0x198   : > { %v8753_v44 = vsel %vm2456_vm4, %v13205_v23, %v13204_v42  ;;  %v13211_v42 = vld [vmem:[#allocation76_spill] sm:$0xff]  ;;  %v2731_v17 = vsel %vm2714_vm5, %v2602_v14, %v13215_v6 }
 0x199   : > { %13206 = vst [vmem:[#allocation179_spill] sm:$0xff] %v8753_v44  ;;  %v2603_v3 = vsel %vm2585_vm6, %v8450_v50, %v13213_v33  ;;  %v5231_v0 = vpop.permute.xlu0 %5230  ;;  %5520 = vrot.lane.b32.xlu0 %v13109_v49, %s6027_s24  ;;  %v8790_v44 = vpop.permute.xlu1 %5245  ;;  %v2860_v23 = vsel %vm2843_vm7, %v2731_v17, %v13218_v47  ;;  %v13220_v50 = vunpack.i.l.bf16 %v13209_v15  ;;  %v13221_v33 = vunpack.i.h.bf16 %v13209_v15 }
 0x19a   : > { %v2732_v9 = vsel %vm2714_vm5, %v2603_v3, %v13216_v56  ;;  %13217 = vst [vmem:[#allocation83_spill] sm:$0xff] %v8790_v44  ;;  %v5233_v6 = vunpack.i.h.bf16 %v5231_v0  ;;  %v5232_v11 = vunpack.i.l.bf16 %v5231_v0  ;;  %v13223_v0 = vunpack.i.l.bf16 %v8760_v7 }
 0x19b   : > { %v2861_v14 = vsel %vm2843_vm7, %v2732_v9, %v13219_v55  ;;  %v2586_v49 = vsel %vm2585_vm6, %v8370_v41, %v13220_v50  ;;  %v2587_v17 = vsel %vm2585_vm6, %v8374_v59, %v13221_v33  ;;  %v13222_v55 = vpack.i.bf16 %v13074_v24, %v13073_v5 }
 0x19c   : > { %v2989_v9 = vsel %vm2972_vm8, %v2860_v23, %v13223_v0  ;;  %v13224_v3 = vunpack.i.h.bf16 %v8760_v7  ;;  %v13225_v53 = vunpack.i.l.bf16 %v8790_v44  ;;  %v13226_v33 = vunpack.i.h.bf16 %v8790_v44  ;;  %v13232_v44 = vld [vmem:[#allocation167_spill] sm:$0xff] }
 0x19d   : > { %v5241_v47 = vpop.permute.xlu0 %5240  ;;  %5535 = vrot.lane.b32.xlu1 %v13222_v55, %s6028_s25  ;;  %v13229_v23 = vunpack.i.l.bf16 %v8741_v62  ;;  %5530 = vrot.lane.b32.xlu0 %v13158_v18, %s6027_s24  ;;  %v13231_v24 = vunpack.i.l.bf16 %v13207_v43 }
 0x19e   : > { %v2990_v56 = vsel %vm2972_vm8, %v2861_v14, %v13224_v3  ;;  %v5243_v41 = vunpack.i.h.bf16 %v5241_v47  ;;  %v5242_v50 = vunpack.i.l.bf16 %v5241_v47  ;;  %v3118_v59 = vsel %vm3101_vm9, %v2989_v9, %v13225_v53 }
 0x19f   : > { %v3119_v32 = vsel %vm3101_vm9, %v2990_v56, %v13226_v33  ;;  %v2715_v14 = vsel %vm2714_vm5, %v2586_v49, %v13229_v23  ;;  %v13230_v3 = vunpack.i.h.bf16 %v8741_v62  ;;  %v5256_v56 = vpop.permute.xlu1 %5255  ;;  %v8845_v49 = vsel %vm2456_vm4, %v13232_v44, %v13231_v24 }
 0x1a0   : > { %v4354_v47 = vpack.c.bf16 %v3119_v32, %v3118_v59  ;;  %v2844_v55 = vsel %vm2843_vm7, %v2715_v14, %v5232_v11  ;;  %v5258_v9 = vunpack.i.h.bf16 %v5256_v56  ;;  %v5257_v33 = vunpack.i.l.bf16 %v5256_v56  ;;  %v13234_v32 = vld [vmem:[#allocation44_spill] sm:$0xff]  ;;  %v13238_v56 = vld [vmem:[#allocation38_spill] sm:$0xff] }
 0x1a1   : > { %v2716_v53 = vsel %vm2714_vm5, %v2587_v17, %v13230_v3  ;;  %v8847_v23 = vpop.permute.xlu0 %5250  ;;  %v13233_v17 = vld [vmem:[#allocation20_spill] sm:$0xff]  ;;  %v2973_v18 = vsel %vm2972_vm8, %v2844_v55, %v5242_v50  ;;  %v5087_v59 = vunpack.i.l.bf16 %v13234_v32  ;;  %v13235_v24 = vunpack.i.h.bf16 %v13207_v43  ;;  %5540 = vrot.lane.b32.xlu0 %v13238_v56, %s6029_s26  ;;  %v13259_v56 = vld [vmem:[#allocation10_spill] sm:$0xff] }
 0x1a2   : > { %v2845_v0 = vsel %vm2843_vm7, %v2716_v53, %v5233_v6  ;;  %5545 = vrot.lane.b32.xlu1 %v13233_v17, %s6030_s27  ;;  %4356 = vmatprep.subr.msk.bf16.mxu0 %vm8826_vm11, %v4354_v47  ;;  %v5088_v6 = vunpack.i.h.bf16 %v13234_v32  ;;  %v3102_v14 = vsel %vm3101_vm9, %v2973_v18, %v5257_v33  ;;  %v13236_v3 = vld [vmem:[#allocation168_spill] sm:$0xff]  ;;  %v13240_v47 = vunpack.i.l.bf16 %v13214_v22  ;;  %v13247_v32 = vld [vmem:[#allocation181_spill] sm:$0xff] }
 0x1a3   : > { %v2974_v11 = vsel %vm2972_vm8, %v2845_v0, %v5243_v41  ;;  %v8863_v53 = vsel %vm2456_vm4, %v13236_v3, %v13235_v24  ;;  %v8867_v50 = vpop.permute.xlu1 %5265  ;;  %v13241_v55 = vld [vmem:[#allocation88_spill] sm:$0xff]  ;;  %v13255_v3 = vld [vmem:[#allocation3_spill] sm:$0xff]  ;;  %v5097_v43 = vunpack.i.l.bf16 %v13259_v56 }
 0x1a4   : > { %v3103_v44 = vsel %vm3101_vm9, %v2974_v11, %v5258_v9  ;;  %13237 = vst [vmem:[#allocation150_spill] sm:$0xff] %v8863_v53  ;;  %13239 = vst [vmem:[#allocation149_spill] sm:$0xff] %v8867_v50  ;;  %v8873_v0 = vsel %vm2456_vm4, %v13241_v55, %v13240_v47  ;;  %v13243_v9 = vunpack.i.h.bf16 %v13214_v22  ;;  %v13244_v33 = vld [vmem:[#allocation100_spill] sm:$0xff]  ;;  %v13246_v11 = vld [vmem:[#allocation182_spill] sm:$0xff]  ;;  %v13267_v53 = vunpack.i.h.bf16 %v13255_v3 }
 0x1a5   : > { %v4357_v41 = vpack.c.bf16 %v3103_v44, %v3102_v14  ;;  %13242 = vst [vmem:[#allocation154_spill] sm:$0xff] %v8873_v0  ;;  %v8885_v14 = vpop.permute.xlu0 %5260  ;;  %v13248_v44 = vld [vmem:[#allocation35_spill] sm:$0xff]  ;;  %v13250_v55 = vld [vmem:[#allocation21_spill] sm:$0xff] }
 0x1a6   : > { %v8879_v18 = vsel %vm2456_vm4, %v13244_v33, %v13243_v9  ;;  %5555 = vrot.lane.b32.xlu1 %v13248_v44, %s6029_s26  ;;  %v13249_v47 = vld [vmem:[#allocation39_spill] sm:$0xff]  ;;  %v8895_v9 = vsel %vm2585_vm6, %v8348_v34, %v5087_v59  ;;  %v8899_v33 = vsel %vm2585_vm6, %v8352_v10, %v5088_v6  ;;  %v8905_v44 = vsel %vm2585_vm6, %v8360_v54, %v5087_v59 }
 0x1a7   : > { %13245 = vst [vmem:[#allocation155_spill] sm:$0xff] %v8879_v18  ;;  %4359 = vmatpush3.bf16.xpose.msk.msra.mxu0 %vm8826_vm11, %v4357_v41  ;;  %13251 = vst [vmem:[#allocation51_spill] sm:$0xff] %v8905_v44  ;;  %v8909_v41 = vsel %vm2585_vm6, %v8364_v57, %v5088_v6  ;;  %v13253_v10 = vpack.i.bf16 %v13092_v48, %v13091_v52  ;;  %v8917_v24 = vpop.permute.xlu1 %5275  ;;  %v13256_v59 = vunpack.i.l.bf16 %v8305_v58  ;;  %v13257_v6 = vunpack.i.h.bf16 %v8305_v58  ;;  %v13262_v52 = vld [vmem:[#allocation18_spill] sm:$0xff] }
 0x1a8   : > { %13252 = vst [vmem:[#allocation160_spill] sm:$0xff] %v8909_v41  ;;  %13254 = vst [vmem:[#allocation159_spill] sm:$0xff] %v8917_v24  ;;  %v5098_v54 = vunpack.i.h.bf16 %v13259_v56  ;;  %v13261_v18 = vunpack.i.h.bf16 %v8847_v23  ;;  %v13264_v44 = vunpack.i.l.bf16 %v8867_v50  ;;  %v13265_v41 = vunpack.i.h.bf16 %v8867_v50 }
 0x1a9   : > { %5550 = vrot.lane.b32.xlu0 %v13253_v10, %s6028_s25  ;;  %v2634_v57 = vsel %vm2585_vm6, %v8598_v26, %v13256_v59  ;;  %v2635_v22 = vsel %vm2585_vm6, %v8602_v45, %v13257_v6  ;;  %v8931_v48 = vpop.permute.xlu0 %5270  ;;  %v13258_v10 = vld [vmem:[#allocation26_spill] sm:$0xff]  ;;  %v13260_v26 = vunpack.i.l.bf16 %v8847_v23  ;;  %v13266_v34 = vunpack.i.l.bf16 %v13255_v3 }
 0x1aa   : > { %5565 = vrot.lane.b32.xlu1 %v13258_v10, %s6027_s24  ;;  %v2764_v45 = vsel %vm2714_vm5, %v2635_v22, %v13261_v18  ;;  %v13270_v22 = vunpack.i.h.bf16 %v8917_v24 }
 0x1ab   : > { %v2763_v59 = vsel %vm2714_vm5, %v2634_v57, %v13260_v26  ;;  %v8947_v7 = vpop.permute.xlu1 %5285  ;;  %v2893_v57 = vsel %vm2843_vm7, %v2764_v45, %v13265_v41  ;;  %v2618_v0 = vsel %vm2585_vm6, %v8518_v13, %v13266_v34  ;;  %v13268_v41 = vpack.i.bf16 %v7844_v61, %v7954_v12  ;;  %v13278_v34 = vld [vmem:[#allocation46_spill] sm:$0xff] }
 0x1ac   : > { %13263 = vst [vmem:[#allocation162_spill] sm:$0xff] %v8947_v7  ;;  %v2892_v56 = vsel %vm2843_vm7, %v2763_v59, %v13264_v44  ;;  %v12422_v6 = vunpack.i.l.bf16 %v8947_v7  ;;  %v2619_v44 = vsel %vm2585_vm6, %v8522_v27, %v13267_v53  ;;  %v13269_v45 = vunpack.i.l.bf16 %v8917_v24 }
 0x1ad   : > { %5560 = vrot.lane.b32.xlu0 %v13262_v52, %s6030_s27  ;;  %v8967_v59 = vpop.permute.xlu0 %5280  ;;  %v3022_v13 = vsel %vm2972_vm8, %v2893_v57, %v13270_v22  ;;  %v13271_v53 = vunpack.i.h.bf16 %v8947_v7  ;;  %v13272_v12 = vunpack.i.l.bf16 %v13209_v15  ;;  %v13273_v57 = vunpack.i.l.bf16 %v8885_v14 }
 0x1ae   : > { %5575 = vrot.lane.b32.xlu1 %v13268_v41, %s6028_s25  ;;  %v3021_v26 = vsel %vm2972_vm8, %v2892_v56, %v13269_v45  ;;  %v12425_v18 = vunpack.i.l.bf16 %v8967_v59  ;;  %v13274_v41 = vunpack.i.h.bf16 %v8885_v14  ;;  %v13300_v7 = vunpack.i.h.bf16 %v13201_v25 }
 0x1af   : > { %v3150_v27 = vsel %vm3101_vm9, %v3021_v26, %v12422_v6  ;;  %v3151_v61 = vsel %vm3101_vm9, %v3022_v13, %v13271_v53  ;;  %v8991_v56 = vsel %vm2585_vm6, %v8386_v37, %v13272_v12  ;;  %v2747_v22 = vsel %vm2714_vm5, %v2618_v0, %v13273_v57  ;;  %v9001_v26 = vpop.permute.xlu1 %5295 }
 0x1b0   : > { %v2748_v45 = vsel %vm2714_vm5, %v2619_v44, %v13274_v41  ;;  %13275 = vst [vmem:[#allocation45_spill] sm:$0xff] %v9001_v26  ;;  %v4402_v13 = vpack.c.bf16 %v3151_v61, %v3150_v27  ;;  %v13276_v53 = vunpack.i.l.bf16 %v8931_v48  ;;  %v13277_v37 = vunpack.i.h.bf16 %v8931_v48 }
 0x1b1   : > { %5570 = vrot.lane.b32.xlu0 %v13233_v17, %s6027_s24  ;;  %v12423_v0 = vunpack.i.h.bf16 %v9001_v26  ;;  %v12424_v57 = vunpack.i.l.bf16 %v9001_v26  ;;  %v5093_v44 = vunpack.i.h.bf16 %v13278_v34  ;;  %v5092_v41 = vunpack.i.l.bf16 %v13278_v34  ;;  %v9013_v17 = vpop.permute.xlu0 %5290 }
 0x1b2   : > { %v2876_v6 = vsel %vm2843_vm7, %v2747_v22, %v13276_v53  ;;  %v2877_v12 = vsel %vm2843_vm7, %v2748_v45, %v13277_v37  ;;  %v13279_v27 = vpack.i.bf16 %v13129_v31, %v13128_v21  ;;  %4404 = vmatprep.subr.msk.bf16.mxu1 %vm8826_vm11, %v4402_v13  ;;  %v13280_v22 = vunpack.i.h.bf16 %v8967_v59 }
 0x1b3   : > { %v3005_v61 = vsel %vm2972_vm8, %v2876_v6, %v12425_v18  ;;  %v13281_v45 = vunpack.i.h.bf16 %v13209_v15  ;;  %v9035_v21 = vsel %vm2585_vm6, %v8398_v19, %v5097_v43  ;;  %v9045_v13 = vsel %vm2585_vm6, %v8404_v46, %v5098_v54  ;;  %v13284_v15 = vld [vmem:[#allocation50_spill] sm:$0xff]  ;;  %v9051_v19 = vpop.permute.xlu1 %5305 }
 0x1b4   : > { %5585 = vrot.lane.b32.xlu1 %v13279_v27, %s6026_s23  ;;  %v3006_v34 = vsel %vm2972_vm8, %v2877_v12, %v13280_v22  ;;  %13282 = vst [vmem:[#allocation70_spill] sm:$0xff] %v9035_v21  ;;  %v3134_v31 = vsel %vm3101_vm9, %v3005_v61, %v12424_v57  ;;  %13283 = vst [vmem:[#allocation76_spill] sm:$0xff] %v9045_v13  ;;  %v5108_v37 = vunpack.i.h.bf16 %v13284_v15  ;;  %v13285_v12 = vld [vmem:[#allocation52_spill] sm:$0xff]  ;;  %v13287_v22 = vld [vmem:[#allocation110_spill] sm:$0xff]  ;;  %v13304_v24 = vunpack.i.l.bf16 %v9013_v17 }
 0x1b5   : > { %v9031_v53 = vsel %vm2585_vm6, %v8390_v35, %v13281_v45  ;;  %v3135_v6 = vsel %vm3101_vm9, %v3006_v34, %v12423_v0  ;;  %v5107_v35 = vunpack.i.l.bf16 %v13284_v15  ;;  %5580 = vrot.lane.b32.xlu0 %v13285_v12, %s6029_s26  ;;  %13286 = vst [vmem:[#allocation167_spill] sm:$0xff] %v9051_v19  ;;  %v9055_v61 = vsel %vm2585_vm6, %v13287_v22, %v5097_v43  ;;  %v13289_v45 = vld [vmem:[#allocation111_spill] sm:$0xff]  ;;  %v9062_v46 = vld [vmem:[%s6075_s19 + $0x1e0] sm:$0xff]  ;;  %v13291_v43 = vld [vmem:[#allocation113_spill] sm:$0xff] }
 0x1b6   : > { %v4405_v27 = vpack.c.bf16 %v3135_v6, %v3134_v31  ;;  %13288 = vst [vmem:[#allocation20_spill] sm:$0xff] %v9055_v61  ;;  %v9059_v34 = vsel %vm2585_vm6, %v13289_v45, %v5098_v54  ;;  %v9065_v0 = vld [vmem:[%s6075_s19 + $0x1e8] sm:$0xff]  ;;  %v9071_v12 = vsel %vm2585_vm6, %v8414_v29, %v5092_v41  ;;  %v9075_v31 = vsel %vm2585_vm6, %v8420_v20, %v5093_v44  ;;  %v9081_v54 = vpop.permute.xlu0 %5300  ;;  %v13293_v22 = vld [vmem:[#allocation57_spill] sm:$0xff]  ;;  %v13294_v29 = vld [vmem:[#allocation114_spill] sm:$0xff] }
 0x1b7   : > { %13290 = vst [vmem:[#allocation44_spill] sm:$0xff] %v9059_v34  ;;  %v9079_v6 = vsel %vm2585_vm6, %v13291_v43, %v5092_v41  ;;  %v9089_v45 = vsel %vm2585_vm6, %v13294_v29, %v5093_v44  ;;  %v13296_v20 = vld [vmem:[#allocation34_spill] sm:$0xff]  ;;  %v2604_v43 = vsel %vm2585_vm6, %v8424_v16, %v5107_v35  ;;  %v2605_v15 = vsel %vm2585_vm6, %v8428_v1, %v5108_v37  ;;  %v9102_v44 = vpop.permute.xlu1 %5315  ;;  %v9113_v16 = vld [vmem:[%s6075_s19 + $0x190] sm:$0xff]  ;;  %v9116_v1 = vld [vmem:[%s6075_s19 + $0x198] sm:$0xff] }
 0x1b8   : > { %13292 = vst [vmem:[#allocation168_spill] sm:$0xff] %v9079_v6  ;;  %5595 = vrot.lane.b32.xlu1 %v13293_v22, %s6027_s24  ;;  %4407 = vmatpush3.bf16.xpose.msk.msra.mxu1 %vm8826_vm11, %v4405_v27  ;;  %13295 = vst [vmem:[#allocation38_spill] sm:$0xff] %v9089_v45  ;;  %v9106_v29 = vsel %vm2585_vm6, %v8432_v60, %v5107_v35  ;;  %v9110_v41 = vsel %vm2585_vm6, %v8436_v38, %v5108_v37  ;;  %v13298_v27 = vunpack.i.l.bf16 %v13201_v25 }
 0x1b9   : > { %5590 = vrot.lane.b32.xlu0 %v13258_v10, %s6030_s27  ;;  %13297 = vst [vmem:[#allocation88_spill] sm:$0xff] %v9102_v44  ;;  %v5118_v60 = vunpack.i.h.bf16 %v13296_v20  ;;  %v13299_v18 = vpack.i.bf16 %v13160_v63, %v13159_v40  ;;  %v9137_v57 = vsel %vm2585_vm6, %v8460_v28, %v13300_v7  ;;  %v13303_v35 = vunpack.i.h.bf16 %v9013_v17 }
 0x1ba   : > { %v9124_v10 = vsel %vm2585_vm6, %v8456_v36, %v13298_v27  ;;  %v5311_v37 = vpop.permute.xlu0 %5310  ;;  %v13301_v36 = vunpack.i.l.bf16 %v13296_v20  ;;  %v2733_v40 = vsel %vm2714_vm5, %v2604_v43, %v13304_v24  ;;  %v13305_v63 = vunpack.i.l.bf16 %v9051_v19  ;;  %v13314_v43 = vld [vmem:[#allocation75_spill] sm:$0xff] }
 0x1bb   : > { %v2734_v38 = vsel %vm2714_vm5, %v2605_v15, %v13303_v35  ;;  %v13306_v28 = vunpack.i.h.bf16 %v9051_v19  ;;  %v9161_v15 = vpop.permute.xlu1 %5325  ;;  %v5313_v35 = vunpack.i.h.bf16 %v5311_v37  ;;  %v5312_v61 = vunpack.i.l.bf16 %v5311_v37 }
 0x1bc   : > { %5605 = vrot.lane.b32.xlu1 %v13299_v18, %s6028_s25  ;;  %v9143_v27 = vsel %vm2585_vm6, %v8474_v30, %v13301_v36  ;;  %v2862_v25 = vsel %vm2843_vm7, %v2733_v40, %v13305_v63  ;;  %v13307_v36 = vld [vmem:[#allocation36_spill] sm:$0xff]  ;;  %13308 = vst [vmem:[#allocation182_spill] sm:$0xff] %v9161_v15  ;;  %v3230_v40 = vld [vmem:[%s11999_s1] sm:$0xff]  ;;  %v13312_v30 = vunpack.i.l.bf16 %v9102_v44  ;;  %v13313_v37 = vunpack.i.h.bf16 %v9102_v44  ;;  %v13320_v44 = vld [vmem:[#allocation59_spill] sm:$0xff] }
 0x1bd   : > { %13302 = vst [vmem:[#allocation100_spill] sm:$0xff] %v9143_v27  ;;  %v2863_v7 = vsel %vm2843_vm7, %v2734_v38, %v13306_v28  ;;  %5600 = vrot.lane.b32.xlu0 %v13307_v36, %s6027_s24  ;;  %v13309_v38 = vld [vmem:[#allocation12_spill] sm:$0xff]  ;;  %v13311_v28 = vld [vmem:[#allocation53_spill] sm:$0xff]  ;;  %4250 = vmatprep.mubr.msk.f32.mxu0 %vm3231_vm10, %v3230_v40  ;;  %v13315_v26 = vunpack.i.l.bf16 %v9161_v15  ;;  %v13316_v21 = vunpack.i.h.bf16 %v9161_v15 }
 0x1be   : > { %v9170_v63 = vsel %vm2585_vm6, %v13309_v38, %v5118_v60  ;;  %v5113_v18 = vunpack.i.h.bf16 %v13311_v28  ;;  %v2991_v19 = vsel %vm2972_vm8, %v2862_v25, %v13312_v30  ;;  %v2992_v24 = vsel %vm2972_vm8, %v2863_v7, %v13313_v37  ;;  %v5321_v34 = vpop.permute.xlu0 %5320  ;;  %4284 = vmatprep.mubr.msk.f32.mxu1 %vm3231_vm10, %v3230_v40  ;;  %v13348_v27 = vld [vmem:[#allocation129_spill] sm:$0xff] }
 0x1bf   : > { %13310 = vst [vmem:[#allocation181_spill] sm:$0xff] %v9170_v63  ;;  %v3120_v38 = vsel %vm3101_vm9, %v2991_v19, %v13315_v26  ;;  %v3121_v13 = vsel %vm3101_vm9, %v2992_v24, %v13316_v21  ;;  %v5323_v50 = vunpack.i.h.bf16 %v5321_v34  ;;  %v5322_v25 = vunpack.i.l.bf16 %v5321_v34  ;;  %v5336_v19 = vpop.permute.xlu1 %5335 }
 0x1c0   : > { %5615 = vrot.lane.b32.xlu1 %v13314_v43, %s6029_s26  ;;  %v5112_v7 = vunpack.i.l.bf16 %v13311_v28  ;;  %v13317_v30 = vunpack.i.l.bf16 %v9081_v54  ;;  %v13318_v37 = vunpack.i.h.bf16 %v9081_v54  ;;  %v13319_v21 = vpack.i.bf16 %v13178_v8, %v13177_v2  ;;  %v13322_v2 = vld [vmem:[#allocation95_spill] sm:$0xff] }
 0x1c1   : > { %v4360_v34 = vpack.c.bf16 %v3121_v13, %v3120_v38  ;;  %v5338_v28 = vunpack.i.h.bf16 %v5336_v19  ;;  %v5337_v15 = vunpack.i.l.bf16 %v5336_v19  ;;  %v13321_v8 = vunpack.i.l.bf16 %v13296_v20  ;;  %v13326_v38 = vld [vmem:[#allocation8_spill] sm:$0xff] }
 0x1c2   : > { %v2717_v43 = vsel %vm2714_vm5, %v8895_v9, %v13317_v30  ;;  %v2718_v26 = vsel %vm2714_vm5, %v8899_v33, %v13318_v37  ;;  %5610 = vrot.lane.b32.xlu0 %v13319_v21, %s6028_s25  ;;  %v5128_v9 = vunpack.i.h.bf16 %v13320_v44  ;;  %v5127_v30 = vunpack.i.l.bf16 %v13320_v44  ;;  %v9208_v37 = vpop.permute.xlu0 %5330  ;;  %v13330_v21 = vld [vmem:[#allocation122_spill] sm:$0xff] }
 0x1c3   : > { %v2846_v24 = vsel %vm2843_vm7, %v2717_v43, %v5312_v61  ;;  %v2847_v40 = vsel %vm2843_vm7, %v2718_v26, %v5313_v35  ;;  %4362 = vmatprep.subr.msk.bf16.mxu0 %vm8826_vm11, %v4360_v34  ;;  %v9218_v13 = vsel %vm2585_vm6, %v13322_v2, %v13321_v8  ;;  %v13324_v61 = vld [vmem:[#allocation119_spill] sm:$0xff]  ;;  %v9232_v20 = vpop.permute.xlu1 %5345  ;;  %v13329_v26 = vld [vmem:[#allocation81_spill] sm:$0xff]  ;;  %v13332_v34 = vld [vmem:[#allocation58_spill] sm:$0xff]  ;;  %v13357_v6 = vunpack.i.h.bf16 %v9208_v37 }
 0x1c4   : > { %v2975_v63 = vsel %vm2972_vm8, %v2846_v24, %v5322_v25  ;;  %v2976_v33 = vsel %vm2972_vm8, %v2847_v40, %v5323_v50  ;;  %5625 = vrot.lane.b32.xlu1 %v13293_v22, %s6030_s27  ;;  %13323 = vst [vmem:[#allocation35_spill] sm:$0xff] %v9218_v13  ;;  %v9222_v44 = vsel %vm2585_vm6, %v13324_v61, %v5118_v60  ;;  %v13327_v25 = vld [vmem:[#allocation65_spill] sm:$0xff]  ;;  %13328 = vst [vmem:[#allocation21_spill] sm:$0xff] %v9232_v20  ;;  %v13333_v40 = vld [vmem:[#allocation148_spill] sm:$0xff] }
 0x1c5   : > { %13325 = vst [vmem:[#allocation39_spill] sm:$0xff] %v9222_v44  ;;  %v3104_v50 = vsel %vm3101_vm9, %v2975_v63, %v5337_v15  ;;  %v3105_v35 = vsel %vm3101_vm9, %v2976_v33, %v5338_v28  ;;  %v9228_v22 = vsel %vm2585_vm6, %v13326_v38, %v5112_v7  ;;  %v9236_v60 = vsel %vm2585_vm6, %v13329_v26, %v5113_v18  ;;  %v13331_v63 = vld [vmem:[#allocation123_spill] sm:$0xff]  ;;  %v13335_v2 = vld [vmem:[#allocation85_spill] sm:$0xff]  ;;  %v13337_v38 = vld [vmem:[#allocation102_spill] sm:$0xff] }
 0x1c6   : > { %5620 = vrot.lane.b32.xlu0 %v13327_v25, %s6029_s26  ;;  %v4363_v43 = vpack.c.bf16 %v3105_v35, %v3104_v50  ;;  %v9240_v15 = vsel %vm2585_vm6, %v13330_v21, %v5112_v7  ;;  %v9244_v19 = vsel %vm2585_vm6, %v13331_v63, %v5113_v18  ;;  %v5137_v24 = vunpack.i.l.bf16 %v13332_v34  ;;  %v13334_v33 = vld [vmem:[#allocation147_spill] sm:$0xff]  ;;  %v9260_v50 = vpop.permute.xlu0 %5340  ;;  %v13336_v18 = vld [vmem:[#allocation86_spill] sm:$0xff]  ;;  %v13344_v44 = vld [vmem:[#allocation120_spill] sm:$0xff] }
 0x1c7   : > { %v9249_v28 = vsel %vm2585_vm6, %v13333_v40, %v5127_v30  ;;  %v9253_v8 = vsel %vm2585_vm6, %v13334_v33, %v5128_v9  ;;  %v9257_v61 = vsel %vm2585_vm6, %v13335_v2, %v5127_v30  ;;  %v5138_v7 = vunpack.i.h.bf16 %v13332_v34  ;;  %v9273_v30 = vld [vmem:[%s6075_s19 + $0x280] sm:$0xff]  ;;  %v9276_v21 = vld [vmem:[%s6075_s19 + $0x288] sm:$0xff]  ;;  %v13339_v34 = vld [vmem:[#allocation108_spill] sm:$0xff]  ;;  %v9290_v2 = vpop.permute.xlu1 %5355 }
 0x1c8   : > { %5635 = vrot.lane.b32.xlu1 %v13307_v36, %s6030_s27  ;;  %4365 = vmatpush3.bf16.xpose.msk.msra.mxu0 %vm8826_vm11, %v4363_v43  ;;  %v9268_v35 = vsel %vm2585_vm6, %v13336_v18, %v5128_v9  ;;  %v5147_v26 = vunpack.i.l.bf16 %v13337_v38  ;;  %v13338_v36 = vunpack.i.l.bf16 %v13255_v3  ;;  %v13340_v33 = vld [vmem:[#allocation25_spill] sm:$0xff]  ;;  %13341 = vst [vmem:[#allocation3_spill] sm:$0xff] %v9290_v2  ;;  %v13342_v18 = vunpack.i.h.bf16 %v13255_v3  ;;  %v13343_v25 = vld [vmem:[#allocation107_spill] sm:$0xff]  ;;  %v13346_v40 = vld [vmem:[#allocation4_spill] sm:$0xff] }
 0x1c9   : > { %v9300_v13 = vsel %vm2585_vm6, %v13344_v44, %v5137_v24  ;;  %v9306_v9 = vsel %vm2585_vm6, %v13346_v40, %v5138_v7  ;;  %v9310_v45 = vsel %vm2585_vm6, %v13348_v27, %v5137_v24  ;;  %v13350_v44 = vpack.i.bf16 %v13203_v4, %v13202_v39  ;;  %v13353_v40 = vld [vmem:[#allocation143_spill] sm:$0xff]  ;;  %v13356_v3 = vld [vmem:[#allocation124_spill] sm:$0xff] }
 0x1ca   : > { %v9284_v43 = vsel %vm2585_vm6, %v13339_v34, %v13338_v36  ;;  %5630 = vrot.lane.b32.xlu0 %v13340_v33, %s6027_s24  ;;  %v9296_v63 = vsel %vm2585_vm6, %v13343_v25, %v13342_v18  ;;  %13345 = vst [vmem:[#allocation26_spill] sm:$0xff] %v9300_v13  ;;  %13347 = vst [vmem:[#allocation10_spill] sm:$0xff] %v9306_v9  ;;  %v9314_v18 = vpop.permute.xlu0 %5350  ;;  %v13351_v36 = vld [vmem:[#allocation130_spill] sm:$0xff]  ;;  %v5133_v13 = vunpack.i.h.bf16 %v13353_v40  ;;  %v13355_v24 = vunpack.i.h.bf16 %v13337_v38 }
 0x1cb   : > { %13349 = vst [vmem:[#allocation18_spill] sm:$0xff] %v9310_v45  ;;  %v9322_v34 = vsel %vm2585_vm6, %v13351_v36, %v5138_v7  ;;  %v13354_v9 = vld [vmem:[#allocation142_spill] sm:$0xff]  ;;  %v5132_v45 = vunpack.i.l.bf16 %v13353_v40  ;;  %v13358_v4 = vunpack.i.l.bf16 %v9208_v37  ;;  %v9340_v36 = vpop.permute.xlu1 %5365 }
 0x1cc   : > { %5645 = vrot.lane.b32.xlu1 %v13350_v44, %s6028_s25  ;;  %13352 = vst [vmem:[#allocation46_spill] sm:$0xff] %v9322_v34  ;;  %v2636_v27 = vsel %vm2585_vm6, %v13354_v9, %v5147_v26  ;;  %v2637_v25 = vsel %vm2585_vm6, %v13356_v3, %v13355_v24  ;;  %13359 = vst [vmem:[#allocation50_spill] sm:$0xff] %v9340_v36  ;;  %v13360_v9 = vunpack.i.l.bf16 %v9232_v20  ;;  %v13361_v3 = vunpack.i.h.bf16 %v9232_v20 }
 0x1cd   : > { %v2766_v39 = vsel %vm2714_vm5, %v2637_v25, %v13357_v6  ;;  %v2765_v7 = vsel %vm2714_vm5, %v2636_v27, %v13358_v4  ;;  %v12443_v24 = vunpack.i.h.bf16 %v9340_v36  ;;  %v12442_v6 = vunpack.i.l.bf16 %v9340_v36  ;;  %v13374_v25 = vld [vmem:[#allocation93_spill] sm:$0xff] }
 0x1ce   : > { %5640 = vrot.lane.b32.xlu0 %v13262_v52, %s6027_s24  ;;  %v2894_v44 = vsel %vm2843_vm7, %v2765_v7, %v13360_v9  ;;  %v2895_v40 = vsel %vm2843_vm7, %v2766_v39, %v13361_v3  ;;  %v13362_v27 = vunpack.i.l.bf16 %v9290_v2  ;;  %v13363_v7 = vunpack.i.h.bf16 %v9290_v2  ;;  %v9358_v20 = vpop.permute.xlu0 %5360  ;;  %v9382_v3 = vld [vmem:[%s6075_s19 + $0x238] sm:$0xff] }
 0x1cf   : > { %13364 = vst [vmem:[#allocation52_spill] sm:$0xff] %v9358_v20  ;;  %v13365_v39 = vpack.i.bf16 %v13211_v42, %v13210_v51  ;;  %v9376_v51 = vpop.permute.xlu1 %5375  ;;  %v9404_v36 = vsel %vm2585_vm6, %v13374_v25, %v5147_v26  ;;  %v13377_v34 = vunpack.i.l.bf16 %v9260_v50  ;;  %v13380_v26 = vunpack.i.l.bf16 %v9314_v18 }
 0x1d0   : > { %v3023_v4 = vsel %vm2972_vm8, %v2894_v44, %v13362_v27  ;;  %v3024_v9 = vsel %vm2972_vm8, %v2895_v40, %v13363_v7  ;;  %v13366_v7 = vld [vmem:[#allocation49_spill] sm:$0xff] }
 0x1d1   : > { %5655 = vrot.lane.b32.xlu1 %v13365_v39, %s6026_s23  ;;  %v3152_v52 = vsel %vm3101_vm9, %v3023_v4, %v12442_v6  ;;  %v3153_v44 = vsel %vm3101_vm9, %v3024_v9, %v12443_v24  ;;  %v9379_v39 = vld [vmem:[%s6075_s19 + $0x230] sm:$0xff]  ;;  %v13368_v24 = vld [vmem:[#allocation145_spill] sm:$0xff]  ;;  %v13375_v4 = vld [vmem:[#allocation94_spill] sm:$0xff] }
 0x1d2   : > { %5650 = vrot.lane.b32.xlu0 %v13366_v7, %s6029_s26  ;;  %v4408_v42 = vpack.c.bf16 %v3153_v44, %v3152_v52  ;;  %v13367_v6 = vld [vmem:[#allocation112_spill] sm:$0xff]  ;;  %v9392_v40 = vsel %vm2585_vm6, %v13368_v24, %v5133_v13  ;;  %v13370_v27 = vld [vmem:[#allocation133_spill] sm:$0xff]  ;;  %v13372_v52 = vld [vmem:[#allocation134_spill] sm:$0xff]  ;;  %v5157_v2 = vunpack.i.l.bf16 %v13375_v4 }
 0x1d3   : > { %v9388_v9 = vsel %vm2585_vm6, %v13367_v6, %v5132_v45  ;;  %13369 = vst [vmem:[#allocation110_spill] sm:$0xff] %v9392_v40  ;;  %v9396_v7 = vsel %vm2585_vm6, %v13370_v27, %v5132_v45  ;;  %v9400_v44 = vsel %vm2585_vm6, %v13372_v52, %v5133_v13  ;;  %v13376_v6 = vunpack.i.h.bf16 %v9260_v50  ;;  %v9415_v27 = vpop.permute.xlu0 %5370  ;;  %v13379_v13 = vld [vmem:[#allocation55_spill] sm:$0xff] }
 0x1d4   : > { %13371 = vst [vmem:[#allocation111_spill] sm:$0xff] %v9396_v7  ;;  %13373 = vst [vmem:[#allocation113_spill] sm:$0xff] %v9400_v44  ;;  %v2749_v45 = vsel %vm2714_vm5, %v9249_v28, %v13377_v34  ;;  %4410 = vmatprep.subr.msk.bf16.mxu1 %vm8826_vm11, %v4408_v42  ;;  %v13381_v52 = vunpack.i.h.bf16 %v9314_v18  ;;  %v12448_v28 = vunpack.i.l.bf16 %v9415_v27  ;;  %v13382_v34 = vunpack.i.h.bf16 %v13337_v38  ;;  %v13383_v44 = vld [vmem:[#allocation118_spill] sm:$0xff] }
 0x1d5   : > { %v2750_v24 = vsel %vm2714_vm5, %v9253_v8, %v13376_v6  ;;  %13378 = vst [vmem:[#allocation57_spill] sm:$0xff] %v9415_v27  ;;  %5665 = vrot.lane.b32.xlu1 %v13379_v13, %s6027_s24  ;;  %v2878_v25 = vsel %vm2843_vm7, %v2749_v45, %v13380_v26  ;;  %v12449_v6 = vunpack.i.h.bf16 %v9415_v27  ;;  %v13384_v42 = vunpack.i.l.bf16 %v9358_v20  ;;  %v13393_v27 = vld [vmem:[#allocation19_spill] sm:$0xff] }
 0x1d6   : > { %v2879_v8 = vsel %vm2843_vm7, %v2750_v24, %v13381_v52  ;;  %v9433_v7 = vsel %vm2585_vm6, %v13383_v44, %v13382_v34  ;;  %v13385_v45 = vunpack.i.h.bf16 %v9358_v20  ;;  %5660 = vrot.lane.b32.xlu0 %v13340_v33, %s6030_s27  ;;  %v9443_v24 = vpop.permute.xlu1 %5385  ;;  %v5158_v34 = vunpack.i.h.bf16 %v13375_v4  ;;  %v13402_v20 = vld [vmem:[#allocation28_spill] sm:$0xff] }
 0x1d7   : > { %v3007_v40 = vsel %vm2972_vm8, %v2878_v25, %v13384_v42  ;;  %v9456_v42 = vpop.permute.xlu0 %5380  ;;  %v13389_v4 = vunpack.i.h.bf16 %v8305_v58 }
 0x1d8   : > { %v3008_v26 = vsel %vm2972_vm8, %v2879_v8, %v13385_v45  ;;  %v3136_v44 = vsel %vm3101_vm9, %v3007_v40, %v12448_v28  ;;  %v13386_v45 = vpack.i.bf16 %v13247_v32, %v13246_v11  ;;  %v13387_v40 = vunpack.i.l.bf16 %v8305_v58  ;;  %v13388_v28 = vld [vmem:[#allocation82_spill] sm:$0xff]  ;;  %v13391_v8 = vld [vmem:[#allocation121_spill] sm:$0xff] }
 0x1d9   : > { %v3137_v25 = vsel %vm3101_vm9, %v3008_v26, %v12449_v6  ;;  %v13390_v26 = vld [vmem:[#allocation96_spill] sm:$0xff]  ;;  %v9476_v33 = vsel %vm2585_vm6, %v13391_v8, %v5157_v2  ;;  %v5153_v11 = vunpack.i.h.bf16 %v13393_v27  ;;  %v5152_v32 = vunpack.i.l.bf16 %v13393_v27 }
 0x1da   : > { %5675 = vrot.lane.b32.xlu1 %v13386_v45, %s6028_s25  ;;  %v4411_v52 = vpack.c.bf16 %v3137_v25, %v3136_v44  ;;  %v9466_v38 = vsel %vm2585_vm6, %v13388_v28, %v13387_v40  ;;  %v9472_v6 = vsel %vm2585_vm6, %v13390_v26, %v13389_v4  ;;  %13392 = vst [vmem:[#allocation114_spill] sm:$0xff] %v9476_v33  ;;  %v13394_v44 = vld [vmem:[#allocation16_spill] sm:$0xff]  ;;  %v9492_v8 = vpop.permute.xlu1 %5395  ;;  %v13398_v27 = vunpack.i.l.bf16 %v9376_v51 }
 0x1db   : > { %v13395_v25 = vunpack.i.l.bf16 %v13394_v44  ;;  %v13396_v45 = vunpack.i.h.bf16 %v13394_v44  ;;  %v13397_v40 = vld [vmem:[#allocation32_spill] sm:$0xff]  ;;  %v13399_v26 = vunpack.i.h.bf16 %v9376_v51  ;;  %v13404_v33 = vunpack.i.l.bf16 %v9443_v24  ;;  %v13407_v44 = vld [vmem:[#allocation74_spill] sm:$0xff] }
 0x1dc   : > { %5670 = vrot.lane.b32.xlu0 %v13397_v40, %s6027_s24  ;;  %4413 = vmatpush3.bf16.xpose.msk.msra.mxu1 %vm8826_vm11, %v4411_v52  ;;  %v9508_v52 = vsel %vm2585_vm6, %v13402_v20, %v5157_v2 }
 0x1dd   : > { %v2735_v28 = vsel %vm2714_vm5, %v9124_v10, %v13395_v25  ;;  %v2736_v58 = vsel %vm2714_vm5, %v9137_v57, %v13396_v45  ;;  %v12454_v57 = vunpack.i.l.bf16 %v9492_v8  ;;  %v13400_v25 = vld [vmem:[#allocation89_spill] sm:$0xff]  ;;  %13403 = vst [vmem:[#allocation36_spill] sm:$0xff] %v9508_v52  ;;  %v13409_v52 = vld [vmem:[#allocation15_spill] sm:$0xff] }
 0x1de   : > { %v2864_v4 = vsel %vm2843_vm7, %v2735_v28, %v13398_v27  ;;  %v2865_v10 = vsel %vm2843_vm7, %v2736_v58, %v13399_v26  ;;  %v9504_v45 = vsel %vm2585_vm6, %v13400_v25, %v5158_v34  ;;  %v13405_v27 = vunpack.i.h.bf16 %v9443_v24  ;;  %v9516_v26 = vpop.permute.xlu0 %5390  ;;  %5685 = vrot.lane.b32.xlu1 %v13407_v44, %s6029_s26  ;;  %v9538_v20 = vpop.permute.xlu1 %5405 }
 0x1df   : > { %13401 = vst [vmem:[#allocation34_spill] sm:$0xff] %v9504_v45  ;;  %v2993_v28 = vsel %vm2972_vm8, %v2864_v4, %v13404_v33  ;;  %13406 = vst [vmem:[#allocation12_spill] sm:$0xff] %v9516_v26  ;;  %v13408_v33 = vunpack.i.h.bf16 %v9492_v8  ;;  %v13411_v25 = vpack.i.bf16 %v13250_v55, %v13249_v47  ;;  %v13414_v47 = vld [vmem:[#allocation31_spill] sm:$0xff] }
 0x1e0   : > { %v2994_v58 = vsel %vm2972_vm8, %v2865_v10, %v13405_v27  ;;  %v3122_v2 = vsel %vm3101_vm9, %v2993_v28, %v12454_v57  ;;  %v9530_v10 = vsel %vm2585_vm6, %v13409_v52, %v5158_v34  ;;  %v13412_v57 = vld [vmem:[#allocation73_spill] sm:$0xff]  ;;  %v9549_v52 = vld [vmem:[%s6075_s19 + $0x1f0] sm:$0xff]  ;;  %v13417_v27 = vunpack.i.l.bf16 %v9456_v42 }
 0x1e1   : > { %v3123_v4 = vsel %vm3101_vm9, %v2994_v58, %v13408_v33  ;;  %13410 = vst [vmem:[#allocation53_spill] sm:$0xff] %v9530_v10  ;;  %5680 = vrot.lane.b32.xlu0 %v13411_v25, %s6028_s25  ;;  %v9542_v45 = vsel %vm2585_vm6, %v13412_v57, %v5152_v32  ;;  %v13413_v58 = vld [vmem:[#allocation69_spill] sm:$0xff]  ;;  %v13418_v25 = vunpack.i.h.bf16 %v9456_v42 }
 0x1e2   : > { %v4366_v28 = vpack.c.bf16 %v3123_v4, %v3122_v2  ;;  %v9546_v34 = vsel %vm2585_vm6, %v13413_v58, %v5153_v11  ;;  %v9552_v33 = vld [vmem:[%s6075_s19 + $0x1f8] sm:$0xff]  ;;  %v13415_v2 = vunpack.i.l.bf16 %v8741_v62  ;;  %v13416_v4 = vunpack.i.h.bf16 %v8741_v62  ;;  %v9566_v44 = vpop.permute.xlu0 %5400  ;;  %5695 = vrot.lane.b32.xlu1 %v13379_v13, %s6030_s27  ;;  %v13420_v13 = vld [vmem:[#allocation136_spill] sm:$0xff]  ;;  %v9596_v62 = vpop.permute.xlu1 %5415 }
 0x1e3   : > { %v9586_v10 = vsel %vm2585_vm6, %v13420_v13, %v5153_v11  ;;  %v13426_v11 = vunpack.i.l.bf16 %v13414_v47 }
 0x1e4   : > { %v2719_v57 = vsel %vm2714_vm5, %v8991_v56, %v13415_v2  ;;  %v2720_v58 = vsel %vm2714_vm5, %v9031_v53, %v13416_v4  ;;  %4368 = vmatprep.subr.msk.bf16.mxu0 %vm8826_vm11, %v4366_v28  ;;  %v12457_v53 = vunpack.i.l.bf16 %v9566_v44  ;;  %v13419_v2 = vld [vmem:[#allocation128_spill] sm:$0xff]  ;;  %v13421_v28 = vunpack.i.l.bf16 %v9516_v26 }
 0x1e5   : > { %v2848_v55 = vsel %vm2843_vm7, %v2719_v57, %v13417_v27  ;;  %v2849_v56 = vsel %vm2843_vm7, %v2720_v58, %v13418_v25  ;;  %v9582_v4 = vsel %vm2585_vm6, %v13419_v2, %v5152_v32  ;;  %v13422_v57 = vunpack.i.h.bf16 %v9516_v26  ;;  %v13423_v58 = vld [vmem:[#allocation63_spill] sm:$0xff]  ;;  %v13427_v26 = vld [vmem:[#allocation138_spill] sm:$0xff] }
 0x1e6   : > { %v2977_v27 = vsel %vm2972_vm8, %v2848_v55, %v13421_v28  ;;  %5690 = vrot.lane.b32.xlu0 %v13423_v58, %s6029_s26  ;;  %v13424_v55 = vunpack.i.h.bf16 %v9566_v44  ;;  %v13425_v58 = vpack.i.bf16 %v9065_v0, %v9062_v46  ;;  %v9627_v28 = vld [vmem:[%s6075_s19 + $0x1a0] sm:$0xff]  ;;  %v13432_v46 = vld [vmem:[#allocation109_spill] sm:$0xff]  ;;  %v13435_v0 = vunpack.i.l.bf16 %v9538_v20 }
 0x1e7   : > { %v2978_v25 = vsel %vm2972_vm8, %v2849_v56, %v13422_v57  ;;  %v3106_v2 = vsel %vm3101_vm9, %v2977_v27, %v12457_v53  ;;  %v9608_v57 = vpop.permute.xlu0 %5410  ;;  %v9618_v27 = vsel %vm2585_vm6, %v13427_v26, %v13426_v11  ;;  %v9630_v56 = vld [vmem:[%s6075_s19 + $0x1a8] sm:$0xff]  ;;  %v13433_v26 = vunpack.i.l.bf16 %v8847_v23 }
 0x1e8   : > { %v3107_v13 = vsel %vm3101_vm9, %v2978_v25, %v13424_v55  ;;  %5705 = vrot.lane.b32.xlu1 %v13425_v58, %s6028_s25  ;;  %13428 = vst [vmem:[#allocation75_spill] sm:$0xff] %v9618_v27  ;;  %v13429_v25 = vunpack.i.h.bf16 %v13414_v47  ;;  %v13430_v55 = vld [vmem:[#allocation14_spill] sm:$0xff]  ;;  %v13434_v58 = vunpack.i.h.bf16 %v8847_v23  ;;  %v13439_v47 = vunpack.i.h.bf16 %v9596_v62 }
 0x1e9   : > { %v4369_v32 = vpack.c.bf16 %v3107_v13, %v3106_v2  ;;  %v2767_v11 = vsel %vm2714_vm5, %v9466_v38, %v13433_v26  ;;  %v13436_v13 = vunpack.i.h.bf16 %v9538_v20  ;;  %v13437_v26 = vld [vmem:[#allocation135_spill] sm:$0xff] }
 0x1ea   : > { %v9624_v53 = vsel %vm2585_vm6, %v13430_v55, %v13429_v25  ;;  %v2768_v25 = vsel %vm2714_vm5, %v9472_v6, %v13434_v58  ;;  %5700 = vrot.lane.b32.xlu0 %v13397_v40, %s6030_s27  ;;  %v9648_v55 = vpop.permute.xlu1 %5425  ;;  %v2896_v2 = vsel %vm2843_vm7, %v2767_v11, %v13435_v0  ;;  %v13438_v40 = vunpack.i.l.bf16 %v9596_v62 }
 0x1eb   : > { %13431 = vst [vmem:[#allocation59_spill] sm:$0xff] %v9624_v53  ;;  %4371 = vmatpush3.bf16.xpose.msk.msra.mxu0 %vm8826_vm11, %v4369_v32  ;;  %v2897_v38 = vsel %vm2843_vm7, %v2768_v25, %v13436_v13  ;;  %v12460_v23 = vunpack.i.h.bf16 %v9648_v55  ;;  %v12459_v6 = vunpack.i.l.bf16 %v9648_v55  ;;  %v9665_v0 = vpop.permute.xlu0 %5420  ;;  %v13441_v13 = vld [vmem:[#allocation61_spill] sm:$0xff] }
 0x1ec   : > { %v3025_v32 = vsel %vm2972_vm8, %v2896_v2, %v13438_v40  ;;  %v3026_v53 = vsel %vm2972_vm8, %v2897_v38, %v13439_v47  ;;  %13440 = vst [vmem:[#allocation95_spill] sm:$0xff] %v9665_v0  ;;  %5715 = vrot.lane.b32.xlu1 %v13441_v13, %s6029_s26  ;;  %v13442_v13 = vpack.i.bf16 %v9116_v1, %v9113_v16  ;;  %v9699_v40 = vld [vmem:[%s6075_s19 + $0x290] sm:$0xff]  ;;  %v9702_v47 = vld [vmem:[%s6075_s19 + $0x298] sm:$0xff]  ;;  %v13449_v1 = vunpack.i.l.bf16 %v13437_v26  ;;  %v13455_v16 = vld [vmem:[#allocation30_spill] sm:$0xff] }
 0x1ed   : > { %v3154_v58 = vsel %vm3101_vm9, %v3025_v32, %v12459_v6  ;;  %v3155_v2 = vsel %vm3101_vm9, %v3026_v53, %v12460_v23  ;;  %v13443_v32 = vunpack.i.l.bf16 %v13432_v46  ;;  %v13444_v6 = vld [vmem:[#allocation54_spill] sm:$0xff]  ;;  %v13446_v53 = vunpack.i.h.bf16 %v13432_v46  ;;  %v13447_v23 = vld [vmem:[#allocation87_spill] sm:$0xff] }
 0x1ee   : > { %5710 = vrot.lane.b32.xlu0 %v13442_v13, %s6028_s25  ;;  %v9684_v11 = vpop.permute.xlu1 %5435  ;;  %v4414_v25 = vpack.c.bf16 %v3155_v2, %v3154_v58  ;;  %v9710_v58 = vsel %vm2585_vm6, %v8845_v49, %v13449_v1  ;;  %v13452_v13 = vunpack.i.l.bf16 %v8885_v14  ;;  %v13456_v49 = vunpack.i.l.bf16 %v9608_v57 }
 0x1ef   : > { %v9690_v27 = vsel %vm2585_vm6, %v13444_v6, %v13443_v32  ;;  %v9696_v38 = vsel %vm2585_vm6, %v13447_v23, %v13446_v53  ;;  %13450 = vst [vmem:[#allocation65_spill] sm:$0xff] %v9710_v58  ;;  %v13451_v6 = vld [vmem:[#allocation132_spill] sm:$0xff]  ;;  %v13453_v32 = vunpack.i.h.bf16 %v8885_v14  ;;  %v9721_v46 = vpop.permute.xlu0 %5430  ;;  %v13457_v2 = vunpack.i.h.bf16 %v9608_v57 }
 0x1f0   : > { %13445 = vst [vmem:[#allocation119_spill] sm:$0xff] %v9690_v27  ;;  %13448 = vst [vmem:[#allocation8_spill] sm:$0xff] %v9696_v38  ;;  %v2751_v23 = vsel %vm2714_vm5, %v9284_v43, %v13452_v13  ;;  %5725 = vrot.lane.b32.xlu1 %v13455_v16, %s6030_s27  ;;  %4416 = vmatprep.subr.msk.bf16.mxu1 %vm8826_vm11, %v4414_v25  ;;  %v13458_v13 = vunpack.i.h.bf16 %v13437_v26  ;;  %v13461_v25 = vunpack.i.l.bf16 %v9665_v0  ;;  %v9768_v26 = vld [vmem:[%s6075_s19 + $0x240] sm:$0xff]  ;;  %v9771_v38 = vld [vmem:[%s6075_s19 + $0x248] sm:$0xff] }
 0x1f1   : > { %v2752_v53 = vsel %vm2714_vm5, %v9296_v63, %v13453_v32  ;;  %13454 = vst [vmem:[#allocation81_spill] sm:$0xff] %v9721_v46  ;;  %v2880_v1 = vsel %vm2843_vm7, %v2751_v23, %v13456_v49  ;;  %v13459_v32 = vld [vmem:[#allocation150_spill] sm:$0xff]  ;;  %v13462_v49 = vunpack.i.h.bf16 %v9665_v0  ;;  %v13468_v63 = vpack.i.bf16 %v9276_v21, %v9273_v30 }
 0x1f2   : > { %v2881_v43 = vsel %vm2843_vm7, %v2752_v53, %v13457_v2  ;;  %v9739_v58 = vsel %vm2585_vm6, %v13459_v32, %v13458_v13  ;;  %v3009_v23 = vsel %vm2972_vm8, %v2880_v1, %v13461_v25  ;;  %v13463_v53 = vld [vmem:[#allocation47_spill] sm:$0xff]  ;;  %v9749_v14 = vpop.permute.xlu1 %5445  ;;  %v13465_v13 = vunpack.i.l.bf16 %v9721_v46 }
 0x1f3   : > { %13460 = vst [vmem:[#allocation122_spill] sm:$0xff] %v9739_v58  ;;  %v3010_v2 = vsel %vm2972_vm8, %v2881_v43, %v13462_v49  ;;  %5720 = vrot.lane.b32.xlu0 %v13463_v53, %s6029_s26  ;;  %13464 = vst [vmem:[#allocation123_spill] sm:$0xff] %v9749_v14  ;;  %v13466_v58 = vunpack.i.h.bf16 %v9721_v46  ;;  %v9761_v53 = vpop.permute.xlu0 %5440  ;;  %v13473_v43 = vunpack.i.h.bf16 %v9013_v17  ;;  %v13474_v21 = vunpack.i.l.bf16 %v9013_v17 }
 0x1f4   : > { %v3138_v32 = vsel %vm3101_vm9, %v3009_v23, %v13465_v13  ;;  %13467 = vst [vmem:[#allocation58_spill] sm:$0xff] %v9761_v53  ;;  %5735 = vrot.lane.b32.xlu1 %v13468_v63, %s6028_s25  ;;  %v13475_v23 = vld [vmem:[#allocation23_spill] sm:$0xff]  ;;  %v13478_v49 = vunpack.i.h.bf16 %v9684_v11  ;;  %v13502_v0 = vpack.i.bf16 %v9552_v33, %v9549_v52 }
 0x1f5   : > { %v3139_v1 = vsel %vm3101_vm9, %v3010_v2, %v13466_v58  ;;  %v13469_v58 = vunpack.i.h.bf16 %v13451_v6  ;;  %v13470_v2 = vld [vmem:[#allocation154_spill] sm:$0xff]  ;;  %v2738_v30 = vsel %vm2714_vm5, %v9110_v41, %v13473_v43  ;;  %v2737_v63 = vsel %vm2714_vm5, %v9106_v29, %v13474_v21 }
 0x1f6   : > { %v4417_v25 = vpack.c.bf16 %v3139_v1, %v3138_v32  ;;  %v2867_v41 = vsel %vm2843_vm7, %v2738_v30, %v13478_v49  ;;  %v13479_v43 = vunpack.i.l.bf16 %v9749_v14  ;;  %v13486_v49 = vpack.i.bf16 %v9382_v3, %v9379_v39  ;;  %v13494_v3 = vld [vmem:[#allocation62_spill] sm:$0xff] }
 0x1f7   : > { %v9779_v13 = vsel %vm2585_vm6, %v13470_v2, %v13469_v58  ;;  %5730 = vrot.lane.b32.xlu0 %v13475_v23, %s6030_s27  ;;  %v9794_v58 = vpop.permute.xlu1 %5455  ;;  %v13477_v2 = vunpack.i.l.bf16 %v9684_v11  ;;  %v9810_v32 = vpop.permute.xlu0 %5450  ;;  %v13495_v39 = vunpack.i.l.bf16 %v9761_v53 }
 0x1f8   : > { %13471 = vst [vmem:[#allocation148_spill] sm:$0xff] %v9779_v13  ;;  %4419 = vmatpush3.bf16.xpose.msk.msra.mxu1 %vm8826_vm11, %v4417_v25  ;;  %13476 = vst [vmem:[#allocation147_spill] sm:$0xff] %v9794_v58  ;;  %v12466_v29 = vunpack.i.l.bf16 %v9794_v58  ;;  %v13480_v25 = vunpack.i.h.bf16 %v9749_v14  ;;  %v13484_v13 = vld [vmem:[#allocation67_spill] sm:$0xff] }
 0x1f9   : > { %v2866_v1 = vsel %vm2843_vm7, %v2737_v63, %v13477_v2  ;;  %13481 = vst [vmem:[#allocation85_spill] sm:$0xff] %v9810_v32  ;;  %v13482_v63 = vld [vmem:[#allocation79_spill] sm:$0xff]  ;;  %v13483_v2 = vld [vmem:[#allocation77_spill] sm:$0xff] }
 0x1fa   : > { %v2995_v21 = vsel %vm2972_vm8, %v2866_v1, %v13479_v43  ;;  %v2996_v6 = vsel %vm2972_vm8, %v2867_v41, %v13480_v25  ;;  %5745 = vrot.lane.b32.xlu1 %v13482_v63, %s6029_s26  ;;  %v13485_v43 = vunpack.i.h.bf16 %v9794_v58  ;;  %v12467_v63 = vunpack.i.l.bf16 %v9810_v32 }
 0x1fb   : > { %v3124_v1 = vsel %vm3101_vm9, %v2995_v21, %v12466_v29  ;;  %5740 = vrot.lane.b32.xlu0 %v13486_v49, %s6028_s25  ;;  %v9830_v30 = vpop.permute.xlu1 %5465  ;;  %v13489_v21 = vunpack.i.h.bf16 %v9081_v54  ;;  %v13490_v29 = vld [vmem:[#allocation160_spill] sm:$0xff]  ;;  %v9841_v27 = vpop.permute.xlu0 %5460 }
 0x1fc   : > { %v3125_v41 = vsel %vm3101_vm9, %v2996_v6, %v13485_v43  ;;  %13487 = vst [vmem:[#allocation86_spill] sm:$0xff] %v9830_v30  ;;  %v13492_v43 = vld [vmem:[#allocation51_spill] sm:$0xff]  ;;  %13493 = vst [vmem:[#allocation102_spill] sm:$0xff] %v9841_v27  ;;  %v13506_v33 = vunpack.i.h.bf16 %v9830_v30 }
 0x1fd   : > { %v4372_v25 = vpack.c.bf16 %v3125_v41, %v3124_v1  ;;  %v2722_v6 = vsel %vm2714_vm5, %v13490_v29, %v13489_v21  ;;  %v13491_v1 = vunpack.i.l.bf16 %v9081_v54  ;;  %v13496_v54 = vunpack.i.h.bf16 %v9761_v53  ;;  %v9871_v21 = vld [vmem:[%s6075_s19 + $0x2b0] sm:$0xff] }
 0x1fe   : > { %5755 = vrot.lane.b32.xlu1 %v13494_v3, %s6030_s27  ;;  %v13500_v3 = vunpack.i.l.bf16 %v9841_v27  ;;  %v13512_v53 = vld [vmem:[#allocation56_spill] sm:$0xff] }
 0x1ff   : > { %v2721_v41 = vsel %vm2714_vm5, %v13492_v43, %v13491_v1  ;;  %4374 = vmatprep.subr.msk.bf16.mxu0 %vm8826_vm11, %v4372_v25  ;;  %v2851_v49 = vsel %vm2843_vm7, %v2722_v6, %v13496_v54  ;;  %v9856_v43 = vld [vmem:[%s6075_s19 + $0x2a8] sm:$0xff]  ;;  %v13497_v25 = vunpack.i.h.bf16 %v9810_v32  ;;  %v9868_v54 = vpop.permute.xlu1 %5475  ;;  %v9874_v1 = vld [vmem:[%s6075_s19 + $0x2b8] sm:$0xff]  ;;  %v9887_v32 = vpop.permute.xlu0 %5470 }
 0x200   : > { %v2850_v29 = vsel %vm2843_vm7, %v2721_v41, %v13495_v39  ;;  %v13498_v6 = vld [vmem:[#allocation71_spill] sm:$0xff]  ;;  %13499 = vst [vmem:[#allocation108_spill] sm:$0xff] %v9868_v54  ;;  %v707_v39 = vrot.slane %v9874_v1, 1 }
 0x201   : > { %v2979_v46 = vsel %vm2972_vm8, %v2850_v29, %v12467_v63  ;;  %v2980_v17 = vsel %vm2972_vm8, %v2851_v49, %v13497_v25  ;;  %5750 = vrot.lane.b32.xlu0 %v13498_v6, %s6029_s26  ;;  %v13501_v63 = vunpack.i.h.bf16 %v9841_v27  ;;  %v9883_v25 = vld [vmem:[%s6075_s19 + $0x2c0] sm:$0xff]  ;;  %v13505_v6 = vunpack.i.l.bf16 %v9830_v30  ;;  %v13507_v27 = vld [vmem:[#allocation48_spill] sm:$0xff] }
 0x202   : > { %v3108_v29 = vsel %vm3101_vm9, %v2979_v46, %v13500_v3  ;;  %5765 = vrot.lane.b32.xlu1 %v13502_v0, %s6028_s25  ;;  %v704_v46 = vrot.slane %v9856_v43, 1  ;;  %v13503_v3 = vunpack.i.h.bf16 %v9208_v37  ;;  %v13515_v30 = vunpack.i.l.bf16 %v9260_v50 }
 0x203   : > { %v3109_v49 = vsel %vm3101_vm9, %v2980_v17, %v13501_v63  ;;  %v13504_v63 = vunpack.i.l.bf16 %v9208_v37  ;;  %v9914_v37 = vpop.permute.xlu1 %5485 }
 0x204   : > { %v4375_v41 = vpack.c.bf16 %v3109_v49, %v3108_v29  ;;  %v2770_v17 = vsel %vm2714_vm5, %v9433_v7, %v13503_v3  ;;  %v705_v49 = vrot.slane %v9871_v21, 1  ;;  %13508 = vst [vmem:[#allocation25_spill] sm:$0xff] %v9914_v37  ;;  %v718_v7 = vrot.slane %v9883_v25, 2 }
 0x205   : > { %v2769_v29 = vsel %vm2714_vm5, %v9404_v36, %v13504_v63  ;;  %v2899_v0 = vsel %vm2843_vm7, %v2770_v17, %v13506_v33  ;;  %5760 = vrot.lane.b32.xlu0 %v13507_v27, %s6030_s27  ;;  %v709_v36 = vrot.slane %v9883_v25, 1  ;;  %v12484_v17 = vunpack.i.l.bf16 %v9914_v37  ;;  %v9928_v27 = vpop.permute.xlu0 %5480 }
 0x206   : > { %v2898_v52 = vsel %vm2843_vm7, %v2769_v29, %v13505_v6  ;;  %4377 = vmatpush3.bf16.xpose.msk.msra.mxu0 %vm8826_vm11, %v4375_v41  ;;  %v13509_v29 = vunpack.i.l.bf16 %v9868_v54  ;;  %v13510_v41 = vunpack.i.h.bf16 %v9868_v54  ;;  %13511 = vst [vmem:[#allocation107_spill] sm:$0xff] %v9928_v27  ;;  %5775 = vrot.lane.b32.xlu1 %v13512_v53, %s6029_s26  ;;  %v713_v3 = vrot.slane %v9856_v43, 2 }
 0x207   : > { %v714_v6 = vrot.slane %v9871_v21, 2  ;;  %v13513_v14 = vunpack.i.h.bf16 %v9914_v37  ;;  %v13514_v54 = vunpack.i.h.bf16 %v9260_v50  ;;  %v2753_v23 = vsel %vm2714_vm5, %v9257_v61, %v13515_v30 }
 0x208   : > { %v3027_v33 = vsel %vm2972_vm8, %v2898_v52, %v13509_v29  ;;  %v3028_v58 = vsel %vm2972_vm8, %v2899_v0, %v13510_v41  ;;  %v305_v41 = vld [vmem:[%s6075_s19 + $0x2c8] sm:$0x3]  ;;  %v13517_v29 = vunpack.i.l.bf16 %v9887_v32  ;;  %v9985_v37 = vsel %vm391_vm0, %v704_v46, %v705_v49 }
 0x209   : > { %v3156_v63 = vsel %vm3101_vm9, %v3027_v33, %v12484_v17  ;;  %v3157_v52 = vsel %vm3101_vm9, %v3028_v58, %v13513_v14  ;;  %v2754_v53 = vsel %vm2714_vm5, %v9268_v35, %v13514_v54  ;;  %v13516_v14 = vpack.i.bf16 %v9630_v56, %v9627_v28  ;;  %v9955_v58 = vpop.permute.xlu1 %5495 }
 0x20a   : > { %v4420_v33 = vpack.c.bf16 %v3157_v52, %v3156_v63  ;;  %v716_v17 = vrot.slane %v9874_v1, 2  ;;  %v2882_v0 = vsel %vm2843_vm7, %v2753_v23, %v13517_v29  ;;  %v13518_v35 = vunpack.i.h.bf16 %v9887_v32  ;;  %v5491_v52 = vpop.permute.xlu0 %5490 }
 0x20b   : > { %5770 = vrot.lane.b32.xlu0 %v13516_v14, %s6028_s25  ;;  %v12489_v61 = vunpack.i.h.bf16 %v9955_v58  ;;  %v12490_v30 = vunpack.i.l.bf16 %v9955_v58  ;;  %v13519_v54 = vunpack.i.l.bf16 %v9928_v27  ;;  %v13520_v56 = vunpack.i.h.bf16 %v9928_v27  ;;  %v13521_v14 = vld [vmem:[#allocation27_spill] sm:$0xff] }
 0x20c   : > { %v2883_v50 = vsel %vm2843_vm7, %v2754_v53, %v13518_v35  ;;  %5785 = vrot.lane.b32.xlu1 %v13521_v14, %s6030_s27  ;;  %4422 = vmatprep.subr.msk.bf16.mxu1 %vm8826_vm11, %v4420_v33  ;;  %v711_v23 = vrot.slane %v305_v41, 1  ;;  %v720_v29 = vrot.slane %v305_v41, 2  ;;  %v5493_v35 = vunpack.i.h.bf16 %v5491_v52 }
 0x20d   : > { %v3011_v28 = vsel %vm2972_vm8, %v2882_v0, %v13519_v54  ;;  %v3012_v63 = vsel %vm2972_vm8, %v2883_v50, %v13520_v56  ;;  %v5492_v54 = vunpack.i.l.bf16 %v5491_v52  ;;  %v13522_v56 = vld [vmem:[#allocation42_spill] sm:$0xff]  ;;  %v5506_v27 = vpop.permute.xlu1 %5505  ;;  %v9988_v41 = vsel %vm391_vm0, %v705_v49, %v707_v39 }
 0x20e   : > { %v3140_v53 = vsel %vm3101_vm9, %v3011_v28, %v12490_v30  ;;  %v3141_v0 = vsel %vm3101_vm9, %v3012_v63, %v12489_v61  ;;  %v9991_v33 = vsel %vm391_vm0, %v707_v39, %v709_v36  ;;  %v2740_v63 = vsel %vm2714_vm5, %v9236_v60, %v5493_v35  ;;  %v5501_v46 = vpop.permute.xlu0 %5500 }
 0x20f   : > { %v4423_v50 = vpack.c.bf16 %v3141_v0, %v3140_v53  ;;  %5780 = vrot.lane.b32.xlu0 %v13522_v56, %s6029_s26  ;;  %v2739_v28 = vsel %vm2714_vm5, %v9228_v22, %v5492_v54  ;;  %v2743_v52 = vsel %vm2714_vm5, %v9240_v15, %v5492_v54  ;;  %v2744_v53 = vsel %vm2714_vm5, %v9244_v19, %v5493_v35 }
 0x210   : > { %v13523_v49 = vpack.i.bf16 %v9702_v47, %v9699_v40  ;;  %v10006_v39 = vsel %vm545_vm1, %v713_v3, %v714_v6  ;;  %v10009_v22 = vsel %vm545_vm1, %v714_v6, %v716_v17  ;;  %v10012_v60 = vsel %vm391_vm0, %v709_v36, %v711_v23 }
 0x211   : > { %v10015_v15 = vsel %vm545_vm1, %v716_v17, %v718_v7  ;;  %v13525_v19 = vunpack.i.l.bf16 %v9376_v51  ;;  %v13526_v35 = vunpack.i.h.bf16 %v9376_v51  ;;  %v5507_v40 = vunpack.i.l.bf16 %v5506_v27  ;;  %4425 = vmatpush3.bf16.xpose.msk.msra.mxu1 %vm8826_vm11, %v4423_v50  ;;  %v13529_v51 = vld [vmem:[#allocation22_spill] sm:$0xff] }
 0x212   : > { %5795 = vrot.lane.b32.xlu1 %v13523_v49, %s6028_s25  ;;  %13524 = vst [vmem:[#allocation120_spill] sm:$0xff] %v10015_v15  ;;  %v10026_v3 = vsel %vm545_vm1, %v718_v7, %v720_v29  ;;  %v13527_v36 = vunpack.i.l.bf16 %v8931_v48  ;;  %v13528_v17 = vunpack.i.h.bf16 %v8931_v48  ;;  %v5508_v54 = vunpack.i.h.bf16 %v5506_v27 }
 0x213   : > { %v2868_v0 = vsel %vm2843_vm7, %v2739_v28, %v13525_v19  ;;  %v2869_v47 = vsel %vm2843_vm7, %v2740_v63, %v13526_v35  ;;  %v5502_v56 = vunpack.i.l.bf16 %v5501_v46  ;;  %5790 = vrot.lane.b32.xlu0 %v13529_v51, %s6030_s27  ;;  %v5516_v28 = vpop.permute.xlu1 %5515  ;;  %v5503_v63 = vunpack.i.h.bf16 %v5501_v46 }
 0x214   : > { %v2872_v6 = vsel %vm2843_vm7, %v2743_v52, %v13527_v36  ;;  %v2873_v23 = vsel %vm2843_vm7, %v2744_v53, %v13528_v17  ;;  %v5511_v52 = vpop.permute.xlu0 %5510  ;;  %v13530_v48 = vunpack.i.l.bf16 %v9443_v24  ;;  %v13531_v53 = vld [vmem:[#allocation78_spill] sm:$0xff]  ;;  %v2771_v35 = vsel %vm2714_vm5, %v9542_v45, %v5507_v40 }
 0x215   : > { %v13532_v36 = vunpack.i.h.bf16 %v9443_v24  ;;  %v13534_v46 = vunpack.i.h.bf16 %v8967_v59  ;;  %v2772_v19 = vsel %vm2714_vm5, %v9546_v34, %v5508_v54  ;;  %v10072_v45 = vsel %vm2714_vm5, %v9582_v4, %v5507_v40 }
 0x216   : > { %v2997_v27 = vsel %vm2972_vm8, %v2868_v0, %v13530_v48  ;;  %5805 = vrot.lane.b32.xlu1 %v13531_v53, %s6029_s26  ;;  %v13533_v0 = vunpack.i.l.bf16 %v8967_v59  ;;  %v2723_v24 = vsel %vm2714_vm5, %v9071_v12, %v5502_v56  ;;  %v5518_v40 = vunpack.i.h.bf16 %v5516_v28 }
 0x217   : > { %v2998_v17 = vsel %vm2972_vm8, %v2869_v47, %v13532_v36  ;;  %v10066_v29 = vsel %vm2972_vm8, %v2873_v23, %v13534_v46  ;;  %v5517_v47 = vunpack.i.l.bf16 %v5516_v28  ;;  %v10080_v59 = vpop.permute.xlu1 %5525  ;;  %v2724_v23 = vsel %vm2714_vm5, %v9075_v31, %v5503_v63  ;;  %v13536_v46 = vld [vmem:[#allocation168_spill] sm:$0xff]  ;;  %v13537_v36 = vld [vmem:[#allocation38_spill] sm:$0xff] }
 0x218   : > { %v10061_v48 = vsel %vm2972_vm8, %v2872_v6, %v13533_v0  ;;  %v13535_v6 = vpack.i.bf16 %v9771_v38, %v9768_v26  ;;  %v2727_v34 = vsel %vm2714_vm5, %v13536_v46, %v5502_v56  ;;  %v2728_v4 = vsel %vm2714_vm5, %v13537_v36, %v5503_v63  ;;  %v13539_v38 = vld [vmem:[#allocation100_spill] sm:$0xff]  ;;  %v10097_v31 = vpop.permute.xlu0 %5520 }
 0x219   : > { %v10090_v12 = vsel %vm2714_vm5, %v9586_v10, %v5508_v54  ;;  %v13538_v0 = vunpack.i.l.bf16 %v9538_v20  ;;  %v5512_v49 = vunpack.i.l.bf16 %v5511_v52  ;;  %v13540_v56 = vld [vmem:[#allocation60_spill] sm:$0xff]  ;;  %v13541_v63 = vunpack.i.h.bf16 %v9538_v20 }
 0x21a   : > { %5800 = vrot.lane.b32.xlu0 %v13535_v6, %s6028_s25  ;;  %v2741_v6 = vsel %vm2714_vm5, %v13539_v38, %v5517_v47  ;;  %5815 = vrot.lane.b32.xlu1 %v13540_v56, %s6030_s27  ;;  %v5513_v46 = vunpack.i.h.bf16 %v5511_v52  ;;  %v13542_v10 = vunpack.i.l.bf16 %v9492_v8  ;;  %v13545_v7 = vunpack.i.h.bf16 %v9456_v42  ;;  %v13546_v20 = vld [vmem:[#allocation40_spill] sm:$0xff] }
 0x21b   : > { %v2900_v26 = vsel %vm2843_vm7, %v2771_v35, %v13538_v0  ;;  %v2901_v28 = vsel %vm2843_vm7, %v2772_v19, %v13541_v63  ;;  %v13543_v35 = vunpack.i.h.bf16 %v9492_v8  ;;  %v13544_v0 = vunpack.i.l.bf16 %v9456_v42  ;;  %v13549_v8 = vld [vmem:[#allocation68_spill] sm:$0xff]  ;;  %v13551_v63 = vld [vmem:[#allocation35_spill] sm:$0xff] }
 0x21c   : > { %v3126_v54 = vsel %vm3101_vm9, %v2997_v27, %v13542_v10  ;;  %v2853_v50 = vsel %vm2843_vm7, %v2724_v23, %v13545_v7  ;;  %v13547_v61 = vunpack.i.l.bf16 %v13546_v20  ;;  %v13548_v19 = vunpack.i.h.bf16 %v13546_v20  ;;  %v13552_v23 = vld [vmem:[#allocation39_spill] sm:$0xff] }
 0x21d   : > { %v3127_v36 = vsel %vm3101_vm9, %v2998_v17, %v13543_v35  ;;  %v2852_v38 = vsel %vm2843_vm7, %v2723_v24, %v13544_v0  ;;  %v10128_v17 = vpop.permute.xlu1 %5535  ;;  %v13550_v24 = vld [vmem:[#allocation181_spill] sm:$0xff]  ;;  %v2745_v7 = vsel %vm2714_vm5, %v13551_v63, %v5517_v47  ;;  %v12491_v20 = vunpack.i.l.bf16 %v10080_v59  ;;  %v13555_v47 = vld [vmem:[#allocation110_spill] sm:$0xff]  ;;  %v13556_v63 = vld [vmem:[#allocation111_spill] sm:$0xff] }
 0x21e   : > { %v10119_v52 = vsel %vm2843_vm7, %v2727_v34, %v13547_v61  ;;  %v10124_v27 = vsel %vm2843_vm7, %v2728_v4, %v13548_v19  ;;  %5810 = vrot.lane.b32.xlu0 %v13549_v8, %s6029_s26  ;;  %v2742_v42 = vsel %vm2714_vm5, %v13550_v24, %v5518_v40  ;;  %v2746_v61 = vsel %vm2714_vm5, %v13552_v23, %v5518_v40  ;;  %v10143_v19 = vpop.permute.xlu0 %5530  ;;  %v13554_v24 = vld [vmem:[#allocation41_spill] sm:$0xff] }
 0x21f   : > { %v13553_v34 = vunpack.i.l.bf16 %v9684_v11  ;;  %v2755_v4 = vsel %vm2714_vm5, %v9388_v9, %v5512_v49  ;;  %v4378_v35 = vpack.c.bf16 %v3127_v36, %v3126_v54  ;;  %5825 = vrot.lane.b32.xlu1 %v13554_v24, %s6030_s27  ;;  %v2756_v40 = vsel %vm2714_vm5, %v13555_v47, %v5513_v46  ;;  %v13559_v47 = vld [vmem:[#allocation12_spill] sm:$0xff] }
 0x220   : > { %v2759_v23 = vsel %vm2714_vm5, %v13556_v63, %v5512_v49  ;;  %v13557_v54 = vunpack.i.h.bf16 %v9684_v11  ;;  %v13560_v0 = vunpack.i.l.bf16 %v13559_v47  ;;  %v13561_v63 = vunpack.i.h.bf16 %v13559_v47 }
 0x221   : > { %v2870_v10 = vsel %vm2843_vm7, %v2741_v6, %v13553_v34  ;;  %v13558_v34 = vunpack.i.l.bf16 %v9314_v18  ;;  %4380 = vmatprep.subr.msk.bf16.mxu0 %vm8826_vm11, %v4378_v35  ;;  %v10169_v6 = vpop.permute.xlu1 %5545  ;;  %v13562_v11 = vunpack.i.h.bf16 %v9314_v18  ;;  %v13564_v35 = vunpack.i.l.bf16 %v9608_v57 }
 0x222   : > { %v2871_v36 = vsel %vm2843_vm7, %v2742_v42, %v13557_v54  ;;  %v2981_v49 = vsel %vm2972_vm8, %v2852_v38, %v13560_v0  ;;  %v2982_v9 = vsel %vm2972_vm8, %v2853_v50, %v13561_v63  ;;  %v13565_v38 = vunpack.i.l.bf16 %v9596_v62  ;;  %5820 = vrot.lane.b32.xlu0 %v13455_v16, %s6027_s24  ;;  %v13569_v63 = vld [vmem:[#allocation114_spill] sm:$0xff]  ;;  %v10204_v16 = vpop.permute.xlu0 %5540 }
 0x223   : > { %v10159_v30 = vsel %vm2843_vm7, %v2745_v7, %v13558_v34  ;;  %v10174_v42 = vsel %vm2843_vm7, %v2746_v61, %v13562_v11  ;;  %v13563_v7 = vld [vmem:[#allocation113_spill] sm:$0xff]  ;;  %v2884_v34 = vsel %vm2843_vm7, %v2755_v4, %v13564_v35  ;;  %v13566_v18 = vunpack.i.h.bf16 %v9608_v57 }
 0x224   : > { %v10178_v54 = vsel %vm2714_vm5, %v13563_v7, %v5513_v46  ;;  %v3029_v0 = vsel %vm2972_vm8, %v2900_v26, %v13565_v38  ;;  %v13567_v61 = vld [vmem:[#allocation149_spill] sm:$0xff]  ;;  %v2773_v4 = vsel %vm2714_vm5, %v13569_v63, %v12491_v20  ;;  %v13570_v11 = vunpack.i.h.bf16 %v10080_v59  ;;  %v13571_v26 = vld [vmem:[#allocation34_spill] sm:$0xff] }
 0x225   : > { %v2885_v50 = vsel %vm2843_vm7, %v2756_v40, %v13566_v18  ;;  %v13568_v47 = vunpack.i.l.bf16 %v13567_v61  ;;  %v13572_v57 = vpack.i.bf16 %v13484_v13, %v13483_v2  ;;  %v13573_v40 = vunpack.i.h.bf16 %v10097_v31  ;;  %v13576_v18 = vld [vmem:[#allocation70_spill] sm:$0xff] }
 0x226   : > { %v2774_v7 = vsel %vm2714_vm5, %v13571_v26, %v13570_v11  ;;  %v13575_v38 = vunpack.i.l.bf16 %v10097_v31  ;;  %v13577_v63 = vunpack.i.l.bf16 %v9566_v44  ;;  %v13578_v26 = vunpack.i.h.bf16 %v9566_v44  ;;  %v13589_v44 = vld [vmem:[#allocation58_spill] sm:$0xff] }
 0x227   : > { %v10194_v46 = vsel %vm2843_vm7, %v2759_v23, %v13568_v47  ;;  %5835 = vrot.lane.b32.xlu1 %v13572_v57, %s6026_s23  ;;  %v13574_v23 = vld [vmem:[#allocation76_spill] sm:$0xff]  ;;  %v13579_v2 = vunpack.i.h.bf16 %v9596_v62  ;;  %v5532_v62 = vunpack.i.l.bf16 %v10143_v19 }
 0x228   : > { %v2726_v35 = vsel %vm2714_vm5, %v13574_v23, %v13573_v40  ;;  %v2725_v47 = vsel %vm2714_vm5, %v13576_v18, %v13575_v38  ;;  %v3110_v11 = vsel %vm3101_vm9, %v2981_v49, %v13577_v63  ;;  %v3111_v20 = vsel %vm3101_vm9, %v2982_v9, %v13578_v26  ;;  %v10231_v38 = vpop.permute.xlu1 %5555  ;;  %v13583_v9 = vld [vmem:[#allocation86_spill] sm:$0xff] }
 0x229   : > { %v4381_v13 = vpack.c.bf16 %v3111_v20, %v3110_v11  ;;  %v3030_v57 = vsel %vm2972_vm8, %v2901_v28, %v13579_v2  ;;  %v13580_v40 = vunpack.i.l.bf16 %v9648_v55  ;;  %v13581_v18 = vunpack.i.h.bf16 %v9648_v55  ;;  %v13582_v28 = vld [vmem:[#allocation23_spill] sm:$0xff] }
 0x22a   : > { %v12493_v20 = vunpack.i.h.bf16 %v10143_v19  ;;  %5830 = vrot.lane.b32.xlu0 %v13582_v28, %s6027_s24  ;;  %v13584_v63 = vunpack.i.l.bf16 %v13583_v9  ;;  %v13585_v55 = vld [vmem:[#allocation123_spill] sm:$0xff]  ;;  %v13588_v28 = vunpack.i.h.bf16 %v13583_v9  ;;  %v13594_v9 = vunpack.i.l.bf16 %v13589_v44 }
 0x22b   : > { %v3158_v23 = vsel %vm3101_vm9, %v3029_v0, %v13580_v40  ;;  %v3159_v49 = vsel %vm3101_vm9, %v3030_v57, %v13581_v18  ;;  %4383 = vmatpush3.bf16.xpose.msk.msra.mxu0 %vm8826_vm11, %v4381_v13  ;;  %v13586_v26 = vunpack.i.l.bf16 %v13585_v55  ;;  %v13587_v57 = vunpack.i.h.bf16 %v13585_v55  ;;  %v10252_v18 = vpop.permute.xlu0 %5550  ;;  %v13591_v13 = vld [vmem:[#allocation10_spill] sm:$0xff] }
 0x22c   : > { %v2902_v0 = vsel %vm2843_vm7, %v2773_v4, %v13584_v63  ;;  %v4426_v11 = vpack.c.bf16 %v3159_v49, %v3158_v23  ;;  %v2903_v15 = vsel %vm2843_vm7, %v2774_v7, %v13588_v28  ;;  %v13590_v4 = vunpack.i.h.bf16 %v13589_v44  ;;  %v13593_v49 = vld [vmem:[#allocation48_spill] sm:$0xff]  ;;  %v10286_v44 = vpop.permute.xlu1 %5565 }
 0x22d   : > { %v2999_v2 = vsel %vm2972_vm8, %v2870_v10, %v13586_v26  ;;  %v3000_v40 = vsel %vm2972_vm8, %v2871_v36, %v13587_v57  ;;  %v2758_v23 = vsel %vm2714_vm5, %v13591_v13, %v12493_v20  ;;  %v13592_v10 = vld [vmem:[#allocation26_spill] sm:$0xff]  ;;  %5845 = vrot.lane.b32.xlu1 %v13593_v49, %s6027_s24  ;;  %v2854_v7 = vsel %vm2843_vm7, %v2725_v47, %v13594_v9  ;;  %v13599_v13 = vld [vmem:[#allocation147_spill] sm:$0xff] }
 0x22e   : > { %v2855_v63 = vsel %vm2843_vm7, %v2726_v35, %v13590_v4  ;;  %v2757_v36 = vsel %vm2714_vm5, %v13592_v10, %v5532_v62  ;;  %4428 = vmatprep.subr.msk.bf16.mxu1 %vm8826_vm11, %v4426_v11  ;;  %v13595_v35 = vunpack.i.l.bf16 %v10128_v17  ;;  %v13596_v26 = vunpack.i.h.bf16 %v10128_v17 }
 0x22f   : > { %v13597_v28 = vunpack.i.l.bf16 %v9887_v32  ;;  %v13598_v47 = vunpack.i.h.bf16 %v9887_v32  ;;  %v13600_v10 = vunpack.i.l.bf16 %v13599_v13 }
 0x230   : > { %v2904_v55 = vsel %vm2843_vm7, %v10072_v45, %v13595_v35  ;;  %v2905_v57 = vsel %vm2843_vm7, %v10090_v12, %v13596_v26  ;;  %v13601_v45 = vunpack.i.h.bf16 %v13599_v13  ;;  %v13602_v35 = vld [vmem:[#allocation95_spill] sm:$0xff]  ;;  %v5548_v13 = vunpack.i.h.bf16 %v10169_v6 }
 0x231   : > { %v2886_v4 = vsel %vm2843_vm7, %v2757_v36, %v13597_v28  ;;  %v2887_v11 = vsel %vm2843_vm7, %v2758_v23, %v13598_v47  ;;  %v3128_v49 = vsel %vm3101_vm9, %v2999_v2, %v13600_v10  ;;  %v13603_v12 = vunpack.i.l.bf16 %v13602_v35  ;;  %v13604_v36 = vld [vmem:[#allocation62_spill] sm:$0xff]  ;;  %v13606_v47 = vld [vmem:[#allocation81_spill] sm:$0xff]  ;;  %v10309_v10 = vpop.permute.xlu0 %5560  ;;  %5855 = vrot.lane.b32.xlu1 %v13529_v51, %s6027_s24 }
 0x232   : > { %v3129_v9 = vsel %vm3101_vm9, %v3000_v40, %v13601_v45  ;;  %5840 = vrot.lane.b32.xlu0 %v13604_v36, %s6027_s24  ;;  %v13605_v32 = vunpack.i.h.bf16 %v13602_v35  ;;  %v13607_v20 = vunpack.i.l.bf16 %v13606_v47  ;;  %v13608_v40 = vunpack.i.h.bf16 %v13606_v47 }
 0x233   : > { %v3013_v26 = vsel %vm2972_vm8, %v2884_v34, %v13603_v12  ;;  %v4384_v28 = vpack.c.bf16 %v3129_v9, %v3128_v49  ;;  %v5547_v45 = vunpack.i.l.bf16 %v10169_v6  ;;  %v5543_v49 = vunpack.i.h.bf16 %v10204_v16  ;;  %v13697_v6 = vld [vmem:[#allocation122_spill] sm:$0xff] }
 0x234   : > { %v3014_v23 = vsel %vm2972_vm8, %v2885_v50, %v13605_v32  ;;  %v3142_v2 = vsel %vm3101_vm9, %v3013_v26, %v13607_v20  ;;  %v5542_v9 = vunpack.i.l.bf16 %v10204_v16  ;;  %v13609_v20 = vld [vmem:[#allocation85_spill] sm:$0xff]  ;;  %v13612_v32 = vld [vmem:[#allocation108_spill] sm:$0xff] }
 0x235   : > { %v3143_v34 = vsel %vm3101_vm9, %v3014_v23, %v13608_v40  ;;  %4386 = vmatprep.subr.msk.bf16.mxu0 %vm8826_vm11, %v4384_v28  ;;  %v13610_v35 = vunpack.i.l.bf16 %v13609_v20  ;;  %v13611_v26 = vunpack.i.h.bf16 %v13609_v20  ;;  %v13613_v23 = vunpack.i.l.bf16 %v13612_v32  ;;  %v10330_v40 = vpop.permute.xlu1 %5575  ;;  %5865 = vrot.lane.b32.xlu1 %v13549_v8, %s6026_s23 }
 0x236   : > { %v4429_v50 = vpack.c.bf16 %v3143_v34, %v3142_v2  ;;  %v3033_v51 = vsel %vm2972_vm8, %v2904_v55, %v5542_v9  ;;  %v3034_v28 = vsel %vm2972_vm8, %v2905_v57, %v5543_v49  ;;  %v13614_v2 = vld [vmem:[#allocation102_spill] sm:$0xff]  ;;  %5850 = vrot.lane.b32.xlu0 %v13521_v14, %s6027_s24  ;;  %v13617_v55 = vunpack.i.h.bf16 %v13612_v32  ;;  %v13618_v57 = vld [vmem:[#allocation25_spill] sm:$0xff] }
 0x237   : > { %v2983_v12 = vsel %vm2972_vm8, %v2854_v7, %v13610_v35  ;;  %v2984_v36 = vsel %vm2972_vm8, %v2855_v63, %v13611_v26  ;;  %v3031_v47 = vsel %vm2972_vm8, %v2902_v0, %v13613_v23  ;;  %v13615_v7 = vunpack.i.l.bf16 %v13614_v2 }
 0x238   : > { %v13616_v63 = vunpack.i.h.bf16 %v13614_v2  ;;  %4431 = vmatpush3.bf16.xpose.msk.msra.mxu1 %vm8826_vm11, %v4429_v50  ;;  %v3032_v35 = vsel %vm2972_vm8, %v2903_v15, %v13617_v55  ;;  %v13619_v26 = vunpack.i.l.bf16 %v13618_v57  ;;  %v10358_v2 = vpop.permute.xlu0 %5570  ;;  %v13622_v14 = vunpack.i.h.bf16 %v13567_v61  ;;  %v13624_v15 = vld [vmem:[#allocation44_spill] sm:$0xff] }
 0x239   : > { %v3112_v34 = vsel %vm3101_vm9, %v2983_v12, %v13615_v7  ;;  %v13620_v12 = vld [vmem:[#allocation45_spill] sm:$0xff]  ;;  %v13623_v32 = vunpack.i.h.bf16 %v10097_v31  ;;  %v5553_v55 = vunpack.i.h.bf16 %v10252_v18  ;;  %v3162_v8 = vsel %vm3101_vm9, %v3033_v51, %v5547_v45  ;;  %5875 = vrot.lane.b32.xlu1 %v13554_v24, %s6027_s24 }
 0x23a   : > { %v3113_v20 = vsel %vm3101_vm9, %v2984_v36, %v13616_v63  ;;  %v3160_v23 = vsel %vm3101_vm9, %v3031_v47, %v13619_v26  ;;  %v13621_v7 = vunpack.i.l.bf16 %v13620_v12  ;;  %v10364_v50 = vsel %vm2843_vm7, %v10178_v54, %v13622_v14  ;;  %5860 = vrot.lane.b32.xlu0 %v13531_v53, %s6026_s23 }
 0x23b   : > { %v4387_v0 = vpack.c.bf16 %v3113_v20, %v3112_v34  ;;  %v2730_v34 = vsel %vm2714_vm5, %v13624_v15, %v13623_v32  ;;  %v13625_v47 = vunpack.i.h.bf16 %v13618_v57  ;;  %v13626_v20 = vunpack.i.h.bf16 %v13620_v12  ;;  %v10383_v57 = vpop.permute.xlu1 %5585 }
 0x23c   : > { %v3130_v36 = vsel %vm3101_vm9, %v10061_v48, %v13621_v7  ;;  %v5552_v26 = vunpack.i.l.bf16 %v10252_v18  ;;  %v13631_v32 = vunpack.i.l.bf16 %v10080_v59  ;;  %v13635_v53 = vunpack.i.l.bf16 %v9955_v58 }
 0x23d   : > { %v3161_v63 = vsel %vm3101_vm9, %v3032_v35, %v13625_v47  ;;  %v3131_v48 = vsel %vm3101_vm9, %v10066_v29, %v13626_v20  ;;  %4389 = vmatpush3.bf16.xpose.msk.msra.mxu0 %vm8826_vm11, %v4387_v0  ;;  %v13627_v35 = vld [vmem:[#allocation107_spill] sm:$0xff]  ;;  %v3163_v0 = vsel %vm3101_vm9, %v3034_v28, %v5548_v13  ;;  %v13634_v47 = vld [vmem:[#allocation53_spill] sm:$0xff]  ;;  %v10415_v28 = vpop.permute.xlu0 %5580  ;;  %v12552_v24 = vunpack.i.h.bf16 %v10286_v44 }
 0x23e   : > { %v4432_v54 = vpack.c.bf16 %v3161_v63, %v3160_v23  ;;  %v4390_v61 = vpack.c.bf16 %v3131_v48, %v3130_v36  ;;  %v13628_v7 = vunpack.i.l.bf16 %v13627_v35  ;;  %v13629_v29 = vunpack.i.h.bf16 %v13627_v35  ;;  %v13630_v23 = vld [vmem:[#allocation29_spill] sm:$0xff]  ;;  %v13636_v20 = vld [vmem:[#allocation167_spill] sm:$0xff]  ;;  %5870 = vrot.lane.b32.xlu0 %v13540_v56, %s6027_s24 }
 0x23f   : > { %v12513_v36 = vunpack.i.h.bf16 %v13630_v23  ;;  %v13637_v48 = vunpack.i.h.bf16 %v13636_v20 }
 0x240   : > { %v3015_v12 = vsel %vm2972_vm8, %v2886_v4, %v13628_v7  ;;  %v3016_v14 = vsel %vm2972_vm8, %v2887_v11, %v13629_v29  ;;  %v13632_v4 = vld [vmem:[#allocation36_spill] sm:$0xff]  ;;  %v13633_v11 = vunpack.i.h.bf16 %v10080_v59  ;;  %4434 = vmatprep.subr.msk.bf16.mxu1 %vm8826_vm11, %v4432_v54  ;;  %4392 = vmatprep.subr.msk.bf16.mxu0 %vm8826_vm11, %v4390_v61  ;;  %v5557_v59 = vunpack.i.l.bf16 %v10231_v38 }
 0x241   : > { %v2777_v15 = vsel %vm2714_vm5, %v13632_v4, %v13631_v32  ;;  %v3144_v51 = vsel %vm3101_vm9, %v3015_v12, %v13635_v53  ;;  %v10420_v35 = vsel %vm2843_vm7, %v2730_v34, %v13637_v48  ;;  %v13638_v7 = vunpack.i.h.bf16 %v9955_v58  ;;  %v13640_v12 = vld [vmem:[#allocation20_spill] sm:$0xff]  ;;  %v13641_v58 = vld [vmem:[#allocation18_spill] sm:$0xff] }
 0x242   : > { %v2778_v63 = vsel %vm2714_vm5, %v13634_v47, %v13633_v11  ;;  %v4438_v29 = vpack.c.bf16 %v3163_v0, %v3162_v8  ;;  %v13639_v61 = vunpack.i.l.bf16 %v10097_v31  ;;  %v5558_v4 = vunpack.i.h.bf16 %v10231_v38  ;;  %v10436_v47 = vpop.permute.xlu1 %5595  ;;  %v13642_v53 = vld [vmem:[#allocation178_spill] sm:$0xff] }
 0x243   : > { %v3145_v54 = vsel %vm3101_vm9, %v3016_v14, %v13638_v7  ;;  %v2906_v34 = vsel %vm2843_vm7, %v2777_v15, %v5552_v26  ;;  %v2761_v14 = vsel %vm2714_vm5, %v13641_v58, %v5532_v62  ;;  %v2907_v31 = vsel %vm2843_vm7, %v2778_v63, %v5553_v55  ;;  %v10461_v7 = vpop.permute.xlu0 %5590  ;;  %v13649_v58 = vld [vmem:[#allocation52_spill] sm:$0xff] }
 0x244   : > { %v2729_v32 = vsel %vm2714_vm5, %v13640_v12, %v13639_v61  ;;  %v4435_v11 = vpack.c.bf16 %v3145_v54, %v3144_v51  ;;  %v5562_v8 = vunpack.i.l.bf16 %v10309_v10  ;;  %v12554_v0 = vunpack.i.l.bf16 %v10286_v44  ;;  %13645 = vst [vmem:[#allocation4_spill] sm:$0xff] %v10461_v7  ;;  %v13646_v54 = vld [vmem:[#allocation83_spill] sm:$0xff] }
 0x245   : > { %v5563_v15 = vunpack.i.h.bf16 %v10309_v10  ;;  %v13643_v62 = vunpack.i.l.bf16 %v13642_v53  ;;  %v13644_v63 = vunpack.i.h.bf16 %v13642_v53  ;;  %v3035_v56 = vsel %vm2972_vm8, %v2906_v34, %v5557_v59 }
 0x246   : > { %4437 = vmatpush3.bf16.xpose.msk.msra.mxu1 %vm8826_vm11, %v4435_v11  ;;  %v13647_v61 = vunpack.i.l.bf16 %v13646_v54  ;;  %v13650_v53 = vunpack.i.l.bf16 %v13649_v58  ;;  %v13651_v34 = vunpack.i.h.bf16 %v13649_v58  ;;  %v13656_v58 = vpack.i.bf16 %v9871_v21, %v9856_v43 }
 0x247   : > { %v2985_v51 = vsel %vm2972_vm8, %v10119_v52, %v13643_v62  ;;  %v2986_v48 = vsel %vm2972_vm8, %v10124_v27, %v13644_v63  ;;  %4440 = vmatprep.subr.msk.bf16.mxu1 %vm8826_vm11, %v4438_v29  ;;  %v13648_v52 = vunpack.i.h.bf16 %v13646_v54  ;;  %v3036_v29 = vsel %vm2972_vm8, %v2907_v31, %v5558_v4  ;;  %v10519_v21 = vpop.permute.xlu0 %5600 }
 0x248   : > { %v3114_v12 = vsel %vm3101_vm9, %v2985_v51, %v13647_v61  ;;  %v3003_v27 = vsel %vm2972_vm8, %v10159_v30, %v13650_v53  ;;  %v3004_v63 = vsel %vm2972_vm8, %v10174_v42, %v13651_v34  ;;  %v13652_v51 = vld [vmem:[#allocation57_spill] sm:$0xff]  ;;  %v10492_v30 = vpop.permute.xlu1 %5605  ;;  %v3164_v31 = vsel %vm3101_vm9, %v3035_v56, %v5562_v8  ;;  %5880 = vrot.lane.b32.xlu0 %v13656_v58, %s6028_s25  ;;  %v13657_v56 = vld [vmem:[#allocation159_spill] sm:$0xff]  ;;  %v13667_v58 = vld [vmem:[#allocation162_spill] sm:$0xff] }
 0x249   : > { %v3115_v11 = vsel %vm3101_vm9, %v2986_v48, %v13648_v52  ;;  %v13653_v61 = vunpack.i.l.bf16 %v13652_v51  ;;  %v13654_v48 = vpack.i.bf16 %v9988_v41, %v9985_v37  ;;  %v12543_v42 = vunpack.i.h.bf16 %v10358_v2 }
 0x24a   : > { %v4393_v62 = vpack.c.bf16 %v3115_v11, %v3114_v12  ;;  %v13655_v12 = vunpack.i.h.bf16 %v13652_v51  ;;  %v12544_v11 = vunpack.i.l.bf16 %v10358_v2  ;;  %v3165_v37 = vsel %vm3101_vm9, %v3036_v29, %v5563_v15 }
 0x24b   : > { %v3132_v54 = vsel %vm3101_vm9, %v3003_v27, %v13653_v61  ;;  %5885 = vrot.lane.b32.xlu1 %v13654_v48, %s6029_s26  ;;  %v13658_v53 = vunpack.i.l.bf16 %v13657_v56  ;;  %v13659_v34 = vunpack.i.h.bf16 %v13657_v56  ;;  %v13660_v43 = vunpack.i.l.bf16 %v13636_v20  ;;  %v13664_v48 = vld [vmem:[#allocation59_spill] sm:$0xff] }
 0x24c   : > { %v3133_v52 = vsel %vm3101_vm9, %v3004_v63, %v13655_v12  ;;  %4395 = vmatpush3.bf16.xpose.msk.msra.mxu0 %vm8826_vm11, %v4393_v62  ;;  %v13661_v51 = vunpack.i.h.bf16 %v10143_v19  ;;  %v13662_v62 = vld [vmem:[#allocation46_spill] sm:$0xff]  ;;  %v13665_v12 = vld [vmem:[#allocation21_spill] sm:$0xff]  ;;  %v12508_v19 = vunpack.i.h.bf16 %v10330_v40  ;;  %v13668_v56 = vunpack.i.l.bf16 %v13667_v58 }
 0x24d   : > { %v4396_v41 = vpack.c.bf16 %v3133_v52, %v3132_v54  ;;  %v3017_v27 = vsel %vm2972_vm8, %v10194_v46, %v13658_v53  ;;  %v3018_v63 = vsel %vm2972_vm8, %v10364_v50, %v13659_v34  ;;  %v2858_v29 = vsel %vm2843_vm7, %v2729_v32, %v13660_v43  ;;  %v13663_v54 = vld [vmem:[#allocation75_spill] sm:$0xff]  ;;  %v10546_v34 = vpop.permute.xlu1 %5615 }
 0x24e   : > { %v2762_v61 = vsel %vm2714_vm5, %v13662_v62, %v13661_v51  ;;  %v2779_v46 = vsel %vm2714_vm5, %v13663_v54, %v12544_v11  ;;  %v2780_v50 = vsel %vm2714_vm5, %v13664_v48, %v12543_v42  ;;  %v13666_v52 = vunpack.i.l.bf16 %v13665_v12  ;;  %v13736_v11 = vld [vmem:[#allocation7_spill] sm:$0xff] }
 0x24f   : > { %4398 = vmatprep.subr.msk.bf16.mxu0 %vm8826_vm11, %v4396_v41  ;;  %v12509_v32 = vunpack.i.l.bf16 %v10330_v40  ;;  %v3146_v53 = vsel %vm3101_vm9, %v3017_v27, %v13668_v56  ;;  %v12514_v43 = vunpack.i.l.bf16 %v13630_v23  ;;  %v4444_v51 = vpack.c.bf16 %v3165_v37, %v3164_v31  ;;  %v13673_v31 = vld [vmem:[#allocation119_spill] sm:$0xff]  ;;  %v13676_v56 = vld [vmem:[#allocation88_spill] sm:$0xff] }
 0x250   : > { %v2890_v20 = vsel %vm2843_vm7, %v2761_v14, %v13666_v52  ;;  %v13669_v62 = vunpack.i.l.bf16 %v10128_v17  ;;  %v13670_v54 = vunpack.i.h.bf16 %v13667_v58  ;;  %v13671_v48 = vpack.i.bf16 %v9883_v25, %v9874_v1  ;;  %v10574_v58 = vpop.permute.xlu0 %5610 }
 0x251   : > { %v13672_v27 = vpack.i.bf16 %v10009_v22, %v10006_v39  ;;  %v2795_v37 = vsel %vm2714_vm5, %v13673_v31, %v12554_v0  ;;  %v13675_v52 = vunpack.i.h.bf16 %v10128_v17  ;;  %v12505_v39 = vunpack.i.h.bf16 %v10415_v28  ;;  %v13681_v31 = vld [vmem:[#allocation182_spill] sm:$0xff] }
 0x252   : > { %v2908_v14 = vsel %vm2843_vm7, %v2779_v46, %v13669_v62  ;;  %v3147_v41 = vsel %vm3101_vm9, %v3018_v63, %v13670_v54  ;;  %5895 = vrot.lane.b32.xlu1 %v13671_v48, %s6028_s25  ;;  %v13674_v46 = vld [vmem:[#allocation8_spill] sm:$0xff]  ;;  %v12506_v22 = vunpack.i.l.bf16 %v10415_v28  ;;  %v13677_v62 = vunpack.i.l.bf16 %v13676_v56 }
 0x253   : > { %5890 = vrot.lane.b32.xlu0 %v13672_v27, %s6030_s27  ;;  %v2796_v63 = vsel %vm2714_vm5, %v13674_v46, %v12552_v24  ;;  %v2909_v1 = vsel %vm2843_vm7, %v2780_v50, %v13675_v52  ;;  %v4441_v25 = vpack.c.bf16 %v3147_v41, %v3146_v53  ;;  %v13678_v48 = vunpack.i.h.bf16 %v13676_v56  ;;  %v13685_v52 = vld [vmem:[#allocation3_spill] sm:$0xff]  ;;  %v13687_v56 = vld [vmem:[#allocation120_spill] sm:$0xff] }
 0x254   : > { %v2987_v54 = vsel %vm2972_vm8, %v2858_v29, %v13677_v62  ;;  %v13679_v17 = vunpack.i.h.bf16 %v13665_v12  ;;  %v2924_v53 = vsel %vm2843_vm7, %v2795_v37, %v12509_v32  ;;  %v2925_v41 = vsel %vm2843_vm7, %v2796_v63, %v12508_v19  ;;  %v13707_v32 = vld [vmem:[#allocation127_spill] sm:$0xff] }
 0x255   : > { %v2988_v27 = vsel %vm2972_vm8, %v10420_v35, %v13678_v48  ;;  %v3037_v29 = vsel %vm2972_vm8, %v2908_v14, %v5542_v9  ;;  %4443 = vmatpush3.bf16.xpose.msk.msra.mxu1 %vm8826_vm11, %v4441_v25  ;;  %v10599_v35 = vpop.permute.xlu1 %5625  ;;  %v12539_v12 = vunpack.i.l.bf16 %v10383_v57  ;;  %v13682_v37 = vunpack.i.l.bf16 %v13681_v31 }
 0x256   : > { %v2891_v50 = vsel %vm2843_vm7, %v2762_v61, %v13679_v17  ;;  %13680 = vst [vmem:[#allocation129_spill] sm:$0xff] %v10599_v35  ;;  %v3038_v61 = vsel %vm2972_vm8, %v2909_v1, %v5543_v49  ;;  %4446 = vmatprep.subr.msk.bf16.mxu1 %vm8826_vm11, %v4444_v51  ;;  %v13683_v9 = vunpack.i.h.bf16 %v13681_v31  ;;  %v13684_v63 = vpack.i.bf16 %v10012_v60, %v9991_v33 }
 0x257   : > { %v3116_v46 = vsel %vm3101_vm9, %v2987_v54, %v13682_v37  ;;  %v12494_v49 = vunpack.i.h.bf16 %v10461_v7  ;;  %v12495_v51 = vunpack.i.l.bf16 %v10461_v7  ;;  %v13686_v1 = vunpack.i.l.bf16 %v13685_v52  ;;  %v10626_v54 = vpop.permute.xlu0 %5620  ;;  %v13770_v7 = vld [vmem:[#allocation98_spill] sm:$0xff] }
 0x258   : > { %v3117_v14 = vsel %vm3101_vm9, %v2988_v27, %v13683_v9  ;;  %5900 = vrot.lane.b32.xlu0 %v13684_v63, %s6029_s26  ;;  %v13688_v62 = vpack.i.bf16 %v10026_v3, %v13687_v56  ;;  %13689 = vst [vmem:[#allocation130_spill] sm:$0xff] %v10626_v54  ;;  %v3053_v33 = vsel %vm2972_vm8, %v2924_v53, %v12506_v22  ;;  %v12536_v48 = vunpack.i.h.bf16 %v10436_v47 }
 0x259   : > { %v4399_v16 = vpack.c.bf16 %v3117_v14, %v3116_v46  ;;  %v3019_v25 = vsel %vm2972_vm8, %v2890_v20, %v13686_v1  ;;  %v3054_v60 = vsel %vm2972_vm8, %v2925_v41, %v12505_v39  ;;  %v12537_v27 = vunpack.i.l.bf16 %v10436_v47  ;;  %v13691_v41 = vld [vmem:[#allocation50_spill] sm:$0xff]  ;;  %v10650_v46 = vpop.permute.xlu1 %5635  ;;  %v13705_v39 = vld [vmem:[#allocation139_spill] sm:$0xff] }
 0x25a   : > { %5905 = vrot.lane.b32.xlu1 %v13688_v62, %s6030_s27  ;;  %v3182_v3 = vsel %vm3101_vm9, %v3053_v33, %v12495_v51  ;;  %v3183_v20 = vsel %vm3101_vm9, %v3054_v60, %v12494_v49  ;;  %v13690_v17 = vunpack.i.h.bf16 %v13685_v52  ;;  %v13692_v31 = vunpack.i.l.bf16 %v13691_v41  ;;  %13693 = vst [vmem:[#allocation143_spill] sm:$0xff] %v10650_v46  ;;  %v13695_v52 = vld [vmem:[#allocation155_spill] sm:$0xff]  ;;  %v13696_v60 = vld [vmem:[#allocation148_spill] sm:$0xff] }
 0x25b   : > { %4401 = vmatpush3.bf16.xpose.msk.msra.mxu0 %vm8826_vm11, %v4399_v16  ;;  %v4450_v9 = vpack.c.bf16 %v3183_v20, %v3182_v3  ;;  %v13694_v14 = vunpack.i.h.bf16 %v13691_v41  ;;  %v12503_v16 = vunpack.i.h.bf16 %v10492_v30  ;;  %v12504_v1 = vunpack.i.l.bf16 %v10492_v30  ;;  %v10665_v33 = vpop.permute.xlu0 %5630 }
 0x25c   : > { %v3020_v53 = vsel %vm2972_vm8, %v2891_v50, %v13690_v17  ;;  %v3148_v37 = vsel %vm3101_vm9, %v3019_v25, %v13692_v31  ;;  %v2699_v50 = vsel %vm2585_vm6, %v13695_v52, %v12539_v12  ;;  %v12512_v62 = vunpack.i.h.bf16 %v10519_v21  ;;  %v13727_v12 = vld [vmem:[#allocation125_spill] sm:$0xff] }
 0x25d   : > { %v3149_v63 = vsel %vm3101_vm9, %v3020_v53, %v13694_v14  ;;  %v3166_v25 = vsel %vm3101_vm9, %v3037_v29, %v5547_v45  ;;  %v2827_v3 = vsel %vm2714_vm5, %v13696_v60, %v12537_v27  ;;  %v2828_v20 = vsel %vm2714_vm5, %v2699_v50, %v12536_v48  ;;  %4452 = vmatprep.subr.msk.bf16.mxu0 %vm8826_vm11, %v4450_v9  ;;  %v13725_v27 = vld [vmem:[#allocation84_spill] sm:$0xff] }
 0x25e   : > { %v4447_v56 = vpack.c.bf16 %v3149_v63, %v3148_v37  ;;  %v3167_v17 = vsel %vm3101_vm9, %v3038_v61, %v5548_v13  ;;  %v12496_v45 = vunpack.i.h.bf16 %v10546_v34  ;;  %v2956_v29 = vsel %vm2843_vm7, %v2827_v3, %v12504_v1  ;;  %v10693_v61 = vpop.permute.xlu1 %5645 }
 0x25f   : > { %v2957_v53 = vsel %vm2843_vm7, %v2828_v20, %v12503_v16  ;;  %v12527_v41 = vunpack.i.l.bf16 %v10519_v21  ;;  %v2812_v13 = vsel %vm2714_vm5, %v13697_v6, %v12512_v62  ;;  %13698 = vst [vmem:[#allocation142_spill] sm:$0xff] %v10693_v61  ;;  %v4453_v31 = vpack.c.bf16 %v3167_v17, %v3166_v25  ;;  %v10704_v60 = vpop.permute.xlu0 %5640  ;;  %v5997_v25 = vld [vmem:[%s11999_s1] sm:$0xff]  ;;  %v13699_v6 = vld [vmem:[#allocation65_spill] sm:$0xff]  ;;  %v13703_v16 = vld [vmem:[#allocation43_spill] sm:$0xff] }
 0x260   : > { %4449 = vmatpush3.bf16.xpose.msk.msra.mxu1 %vm8826_vm11, %v4447_v56  ;;  %v12497_v37 = vunpack.i.l.bf16 %v10546_v34  ;;  %v3086_v9 = vsel %vm2972_vm8, %v2957_v53, %v12496_v45  ;;  %v12510_v14 = vunpack.i.h.bf16 %v10574_v58  ;;  %v12511_v63 = vunpack.i.l.bf16 %v10574_v58 }
 0x261   : > { %v12498_v52 = vunpack.i.h.bf16 %v10599_v35  ;;  %v12499_v50 = vunpack.i.l.bf16 %v10599_v35  ;;  %v12500_v56 = vunpack.i.h.bf16 %v10626_v54  ;;  %v12502_v17 = vunpack.i.l.bf16 %v10626_v54 }
 0x262   : > { %4251 = vmatmul.mubr.msk.f32.vlgmr.msra.gmra.mrb[0].mxu0 %vm3231_vm10, %v5997_v25  ;;  %v3085_v3 = vsel %vm2972_vm8, %v2956_v29, %v12497_v37  ;;  %v2941_v20 = vsel %vm2843_vm7, %v2812_v13, %v12510_v14  ;;  %v12501_v53 = vunpack.i.h.bf16 %v10650_v46  ;;  %v2811_v49 = vsel %vm2714_vm5, %v13699_v6, %v12527_v41  ;;  %v10733_v45 = vpop.permute.xlu1 %5655 }
 0x263   : > { %4455 = vmatpush3.bf16.xpose.msk.msra.mxu0 %vm8826_vm11, %v4453_v31  ;;  %v3214_v29 = vsel %vm3101_vm9, %v3085_v3, %v12499_v50  ;;  %v3215_v13 = vsel %vm3101_vm9, %v3086_v9, %v12498_v52  ;;  %v3070_v51 = vsel %vm2972_vm8, %v2941_v20, %v12500_v56  ;;  %v2940_v6 = vsel %vm2843_vm7, %v2811_v49, %v12511_v63  ;;  %v13700_v9 = vld [vmem:[#allocation115_spill] sm:$0xff]  ;;  %v10749_v49 = vpop.permute.xlu0 %5650 }
 0x264   : > { %v4498_v37 = vpack.c.bf16 %v3215_v13, %v3214_v29  ;;  %v12507_v31 = vunpack.i.l.bf16 %v10650_v46  ;;  %v3199_v3 = vsel %vm3101_vm9, %v3070_v51, %v12501_v53  ;;  %4318 = vmatprep.mubr.msk.f32.mxu0 %vm3231_vm10, %v5997_v25  ;;  %v12517_v52 = vunpack.i.h.bf16 %v13700_v9  ;;  %13701 = vst [vmem:[#allocation124_spill] sm:$0xff] %v10749_v49 }
 0x265   : > { %v12518_v50 = vunpack.i.l.bf16 %v13700_v9  ;;  %v3069_v20 = vsel %vm2972_vm8, %v2940_v6, %v12502_v17  ;;  %v12525_v56 = vunpack.i.l.bf16 %v10665_v33  ;;  %v12515_v51 = vunpack.i.h.bf16 %v10704_v60  ;;  %v13702_v6 = vld [vmem:[#allocation99_spill] sm:$0xff] }
 0x266   : > { %v3198_v29 = vsel %vm3101_vm9, %v3069_v20, %v12507_v31  ;;  %4500 = vmatprep.subr.msk.bf16.mxu1 %vm8826_vm11, %v4498_v37  ;;  %v12516_v13 = vunpack.i.l.bf16 %v10704_v60  ;;  %v5658_v53 = vunpack.i.h.bf16 %v10733_v45  ;;  %v12538_v17 = vunpack.i.h.bf16 %v13702_v6  ;;  %v13706_v20 = vld [vmem:[#allocation126_spill] sm:$0xff]  ;;  %v10769_v19 = vpop.permute.xlu1 %5665 }
 0x267   : > { %4285 = vmatmul.mubr.msk.f32.vlgmr.msra.gmra.mrb[0].mxu1 %vm3231_vm10, %v5997_v25  ;;  %v13704_v1 = vunpack.i.l.bf16 %v13703_v16  ;;  %v2653_v37 = vsel %vm2585_vm6, %v13706_v20, %v12513_v36  ;;  %v4501_v31 = vpack.c.bf16 %v3199_v3, %v3198_v29  ;;  %v2652_v14 = vsel %vm2585_vm6, %v13707_v32, %v12514_v43  ;;  %v13709_v3 = vld [vmem:[#allocation105_spill] sm:$0xff] }
 0x268   : > { %4352 = vmatprep.mubr.msk.f32.mxu1 %vm3231_vm10, %v5997_v25  ;;  %v12526_v63 = vunpack.i.h.bf16 %v10665_v33  ;;  %v12520_v62 = vunpack.i.l.bf16 %v10693_v61  ;;  %v13708_v20 = vunpack.i.l.bf16 %v13703_v16  ;;  %v13710_v25 = vld [vmem:[#allocation144_spill] sm:$0xff]  ;;  %v12519_v32 = vunpack.i.h.bf16 %v10693_v61 }
 0x269   : > { %v2577_v22 = vsel %vm2456_vm4, %v13705_v39, %v13704_v1  ;;  %v2782_v1 = vsel %vm2714_vm5, %v2653_v37, %v12515_v51  ;;  %v2668_v36 = vsel %vm2585_vm6, %v13710_v25, %v12518_v50  ;;  %v2781_v43 = vsel %vm2714_vm5, %v2652_v14, %v12516_v13  ;;  %4503 = vmatpush3.bf16.xpose.msk.msra.mxu1 %vm8826_vm11, %v4501_v31  ;;  %v10795_v37 = vpop.permute.xlu0 %5660  ;;  %v13712_v51 = vld [vmem:[#allocation9_spill] sm:$0xff] }
 0x26a   : > { %v2581_v29 = vsel %vm2456_vm4, %v13709_v3, %v13708_v20  ;;  %13711 = vst [vmem:[#allocation49_spill] sm:$0xff] %v10795_v37  ;;  %v2669_v20 = vsel %vm2585_vm6, %v13712_v51, %v12517_v52  ;;  %v2797_v3 = vsel %vm2714_vm5, %v2668_v36, %v12525_v56  ;;  %v2910_v25 = vsel %vm2843_vm7, %v2781_v43, %v5552_v26  ;;  %v10818_v50 = vpop.permute.xlu1 %5675  ;;  %v13719_v56 = vld [vmem:[#allocation116_spill] sm:$0xff] }
 0x26b   : > { %v10808_v14 = vsel %vm2585_vm6, %v2577_v22, %v5658_v53  ;;  %v2911_v31 = vsel %vm2843_vm7, %v2782_v1, %v5553_v55  ;;  %v10814_v13 = vsel %vm2585_vm6, %v2581_v29, %v5658_v53  ;;  %v12522_v51 = vunpack.i.h.bf16 %v10749_v49  ;;  %13714 = vst [vmem:[#allocation145_spill] sm:$0xff] %v10818_v50 }
 0x26c   : > { %13713 = vst [vmem:[#allocation112_spill] sm:$0xff] %v10814_v13  ;;  %v12521_v52 = vunpack.i.l.bf16 %v10749_v49  ;;  %v12542_v36 = vunpack.i.l.bf16 %v13702_v6  ;;  %v12535_v26 = vunpack.i.h.bf16 %v10383_v57  ;;  %v2798_v43 = vsel %vm2714_vm5, %v2669_v20, %v12526_v63 }
 0x26d   : > { %v2926_v18 = vsel %vm2843_vm7, %v2797_v3, %v12520_v62  ;;  %v2927_v55 = vsel %vm2843_vm7, %v2798_v43, %v12519_v32  ;;  %v3039_v22 = vsel %vm2972_vm8, %v2910_v25, %v5557_v59  ;;  %v12524_v53 = vunpack.i.h.bf16 %v10795_v37  ;;  %v10836_v29 = vpop.permute.xlu0 %5670 }
 0x26e   : > { %v12523_v1 = vunpack.i.l.bf16 %v10795_v37  ;;  %v3040_v20 = vsel %vm2972_vm8, %v2911_v31, %v5558_v4  ;;  %v12533_v3 = vunpack.i.l.bf16 %v10733_v45  ;;  %v3055_v43 = vsel %vm2972_vm8, %v2926_v18, %v12521_v52  ;;  %v10856_v31 = vpop.permute.xlu1 %5685  ;;  %v13765_v37 = vld [vmem:[#allocation171_spill] sm:$0xff] }
 0x26f   : > { %v3056_v59 = vsel %vm2972_vm8, %v2927_v55, %v12522_v51  ;;  %v12531_v25 = vunpack.i.h.bf16 %v10769_v19  ;;  %v12528_v32 = vunpack.i.l.bf16 %v10769_v19  ;;  %13715 = vst [vmem:[#allocation133_spill] sm:$0xff] %v10856_v31  ;;  %v12530_v18 = vunpack.i.h.bf16 %v10818_v50  ;;  %v13716_v51 = vld [vmem:[#allocation104_spill] sm:$0xff] }
 0x270   : > { %v3184_v38 = vsel %vm3101_vm9, %v3055_v43, %v12523_v1  ;;  %v3185_v4 = vsel %vm3101_vm9, %v3056_v59, %v12524_v53  ;;  %v12529_v52 = vunpack.i.l.bf16 %v10818_v50  ;;  %v3168_v55 = vsel %vm3101_vm9, %v3039_v22, %v5562_v8  ;;  %v13717_v1 = vld [vmem:[#allocation13_spill] sm:$0xff] }
 0x271   : > { %v4456_v62 = vpack.c.bf16 %v3185_v4, %v3184_v38  ;;  %v2571_v43 = vsel %vm2456_vm4, %v13716_v51, %v12542_v36  ;;  %v2572_v59 = vsel %vm2456_vm4, %v13717_v1, %v12538_v17  ;;  %v3169_v38 = vsel %vm3101_vm9, %v3040_v20, %v5563_v15  ;;  %v10875_v53 = vpop.permute.xlu0 %5680 }
 0x272   : > { %v12534_v4 = vunpack.i.h.bf16 %v10856_v31  ;;  %13718 = vst [vmem:[#allocation134_spill] sm:$0xff] %v10875_v53  ;;  %v12547_v8 = vunpack.i.h.bf16 %v13719_v56  ;;  %v12548_v22 = vunpack.i.l.bf16 %v13719_v56  ;;  %v2700_v51 = vsel %vm2585_vm6, %v2571_v43, %v12535_v26  ;;  %v10894_v41 = vpop.permute.xlu1 %5695 }
 0x273   : > { %v2701_v1 = vsel %vm2585_vm6, %v2572_v59, %v12533_v3  ;;  %4458 = vmatprep.subr.msk.bf16.mxu0 %vm8826_vm11, %v4456_v62  ;;  %v2829_v10 = vsel %vm2714_vm5, %v2700_v51, %v12528_v32  ;;  %v4459_v20 = vpack.c.bf16 %v3169_v38, %v3168_v55  ;;  %v12532_v63 = vunpack.i.l.bf16 %v10856_v31  ;;  %13720 = vst [vmem:[#allocation93_spill] sm:$0xff] %v10894_v41  ;;  %v13780_v31 = vld [vmem:[#allocation172_spill] sm:$0xff] }
 0x274   : > { %v2830_v15 = vsel %vm2714_vm5, %v2701_v1, %v12531_v25  ;;  %v2958_v43 = vsel %vm2843_vm7, %v2829_v10, %v12529_v52  ;;  %v12541_v59 = vunpack.i.h.bf16 %v10894_v41  ;;  %v12540_v51 = vunpack.i.l.bf16 %v10894_v41  ;;  %v13722_v25 = vld [vmem:[#allocation166_spill] sm:$0xff] }
 0x275   : > { %v2959_v62 = vsel %vm2843_vm7, %v2830_v15, %v12530_v18  ;;  %v12546_v32 = vunpack.i.h.bf16 %v10836_v29  ;;  %v12545_v55 = vunpack.i.l.bf16 %v10836_v29  ;;  %4461 = vmatpush3.bf16.xpose.msk.msra.mxu0 %vm8826_vm11, %v4459_v20  ;;  %v3087_v38 = vsel %vm2972_vm8, %v2958_v43, %v12532_v63  ;;  %v10914_v10 = vpop.permute.xlu0 %5690  ;;  %v13724_v63 = vld [vmem:[#allocation161_spill] sm:$0xff] }
 0x276   : > { %v3088_v1 = vsel %vm2972_vm8, %v2959_v62, %v12534_v4  ;;  %13721 = vst [vmem:[#allocation94_spill] sm:$0xff] %v10914_v10  ;;  %v12550_v15 = vunpack.i.h.bf16 %v10875_v53  ;;  %v12549_v52 = vunpack.i.l.bf16 %v10875_v53  ;;  %v3216_v18 = vsel %vm3101_vm9, %v3087_v38, %v12540_v51  ;;  %v10930_v48 = vpop.permute.xlu1 %5705  ;;  %v13728_v51 = vld [vmem:[#allocation151_spill] sm:$0xff] }
 0x277   : > { %v3217_v20 = vsel %vm3101_vm9, %v3088_v1, %v12541_v59  ;;  %v13723_v43 = vunpack.i.h.bf16 %v13722_v25  ;;  %v12553_v4 = vunpack.i.h.bf16 %v10914_v10  ;;  %v12551_v26 = vunpack.i.l.bf16 %v10914_v10  ;;  %v13730_v59 = vld [vmem:[#allocation2_spill] sm:$0xff] }
 0x278   : > { %v4504_v62 = vpack.c.bf16 %v3217_v20, %v3216_v18  ;;  %v13726_v17 = vunpack.i.h.bf16 %v13725_v27  ;;  %v13729_v1 = vunpack.i.l.bf16 %v13728_v51  ;;  %v13732_v27 = vunpack.i.h.bf16 %v13728_v51 }
 0x279   : > { %v2556_v3 = vsel %vm2456_vm4, %v13724_v63, %v13723_v43  ;;  %v13731_v63 = vld [vmem:[#allocation179_spill] sm:$0xff]  ;;  %v13733_v43 = vld [vmem:[#allocation6_spill] sm:$0xff]  ;;  %v13768_v10 = vunpack.i.h.bf16 %v13765_v37  ;;  %v13781_v50 = vunpack.i.l.bf16 %v13780_v31  ;;  %v13803_v61 = vunpack.i.l.bf16 %v10436_v47 }
 0x27a   : > { %v10936_v38 = vsel %vm2456_vm4, %v13727_v12, %v13726_v17  ;;  %v10942_v36 = vsel %vm2456_vm4, %v13730_v59, %v13729_v1  ;;  %v2684_v18 = vsel %vm2585_vm6, %v13731_v63, %v12548_v22  ;;  %v2685_v20 = vsel %vm2585_vm6, %v2556_v3, %v12547_v8  ;;  %v13734_v17 = vld [vmem:[#allocation80_spill] sm:$0xff]  ;;  %v10969_v63 = vpop.permute.xlu0 %5700  ;;  %4506 = vmatprep.subr.msk.bf16.mxu1 %vm8826_vm11, %v4504_v62  ;;  %v13742_v8 = vld [vmem:[#allocation97_spill] sm:$0xff] }
 0x27b   : > { %v10955_v12 = vsel %vm2456_vm4, %v13733_v43, %v13732_v27  ;;  %v13735_v42 = vunpack.i.l.bf16 %v13734_v17  ;;  %v2814_v1 = vsel %vm2714_vm5, %v2685_v20, %v12546_v32  ;;  %v2813_v3 = vsel %vm2714_vm5, %v2684_v18, %v12545_v55  ;;  %13737 = vst [vmem:[#allocation55_spill] sm:$0xff] %v10969_v63  ;;  %v13739_v18 = vld [vmem:[#allocation5_spill] sm:$0xff]  ;;  %v13740_v32 = vld [vmem:[#allocation158_spill] sm:$0xff] }
 0x27c   : > { %v2942_v51 = vsel %vm2843_vm7, %v2813_v3, %v12549_v52  ;;  %v12557_v27 = vunpack.i.h.bf16 %v10969_v63  ;;  %v12558_v20 = vunpack.i.l.bf16 %v10969_v63  ;;  %v13738_v43 = vunpack.i.h.bf16 %v13734_v17  ;;  %v10997_v52 = vpop.permute.xlu1 %5715 }
 0x27d   : > { %v10961_v59 = vsel %vm2456_vm4, %v13736_v11, %v13735_v42  ;;  %v2943_v42 = vsel %vm2843_vm7, %v2814_v1, %v12550_v15  ;;  %v13741_v62 = vunpack.i.l.bf16 %v13740_v32  ;;  %v3071_v3 = vsel %vm2972_vm8, %v2942_v51, %v12551_v26  ;;  %v13744_v26 = vld [vmem:[#allocation11_spill] sm:$0xff] }
 0x27e   : > { %v10985_v55 = vsel %vm2456_vm4, %v13739_v18, %v13738_v43  ;;  %v3072_v1 = vsel %vm2972_vm8, %v2943_v42, %v12553_v4  ;;  %v3200_v15 = vsel %vm3101_vm9, %v3071_v3, %v12558_v20  ;;  %v13743_v51 = vunpack.i.h.bf16 %v13740_v32  ;;  %v11013_v0 = vpop.permute.xlu0 %5710  ;;  %v13745_v43 = vld [vmem:[#allocation91_spill] sm:$0xff] }
 0x27f   : > { %v2541_v22 = vsel %vm2456_vm4, %v13742_v8, %v13741_v62  ;;  %v3201_v62 = vsel %vm3101_vm9, %v3072_v1, %v12557_v27  ;;  %v13746_v41 = vunpack.i.l.bf16 %v13745_v43  ;;  %v13747_v1 = vunpack.i.h.bf16 %v13745_v43  ;;  %v13751_v4 = vld [vmem:[#allocation163_spill] sm:$0xff] }
 0x280   : > { %v2542_v24 = vsel %vm2456_vm4, %v13744_v26, %v13743_v51  ;;  %v4507_v42 = vpack.c.bf16 %v3201_v62, %v3200_v15  ;;  %v13748_v51 = vld [vmem:[#allocation109_spill] sm:$0xff]  ;;  %v13752_v17 = vunpack.i.l.bf16 %v13751_v4  ;;  %v13754_v43 = vunpack.i.l.bf16 %v10286_v44 }
 0x281   : > { %v11019_v3 = vsel %vm2456_vm4, %v13736_v11, %v13746_v41  ;;  %v11025_v32 = vsel %vm2456_vm4, %v13739_v18, %v13747_v1  ;;  %v13749_v15 = vunpack.i.l.bf16 %v13748_v51  ;;  %v13750_v27 = vunpack.i.h.bf16 %v13748_v51  ;;  %v13777_v51 = vld [vmem:[#allocation90_spill] sm:$0xff] }
 0x282   : > { %v11037_v11 = vsel %vm2456_vm4, %v13742_v8, %v13752_v17  ;;  %v13753_v41 = vunpack.i.h.bf16 %v13751_v4  ;;  %v13755_v1 = vunpack.i.h.bf16 %v10286_v44  ;;  %4509 = vmatpush3.bf16.xpose.msk.msra.mxu1 %vm8826_vm11, %v4507_v42  ;;  %v13756_v8 = vunpack.i.l.bf16 %v10930_v48 }
 0x283   : > { %v2670_v62 = vsel %vm2585_vm6, %v2541_v22, %v13749_v15  ;;  %v2671_v20 = vsel %vm2585_vm6, %v2542_v24, %v13750_v27  ;;  %v11053_v27 = vpop.permute.xlu1 %5725  ;;  %v13758_v44 = vunpack.i.l.bf16 %v13722_v25  ;;  %v13760_v42 = vunpack.i.h.bf16 %v13722_v25 }
 0x284   : > { %v11043_v18 = vsel %vm2456_vm4, %v13744_v26, %v13753_v41  ;;  %v2799_v22 = vsel %vm2714_vm5, %v2670_v62, %v13754_v43  ;;  %v2800_v24 = vsel %vm2714_vm5, %v2671_v20, %v13755_v1  ;;  %v13757_v26 = vunpack.i.h.bf16 %v10930_v48  ;;  %v13759_v20 = vld [vmem:[#allocation24_spill] sm:$0xff]  ;;  %v13761_v41 = vld [vmem:[#allocation141_spill] sm:$0xff] }
 0x285   : > { %v2928_v4 = vsel %vm2843_vm7, %v2799_v22, %v13756_v8  ;;  %v12567_v15 = vunpack.i.l.bf16 %v11053_v27  ;;  %v11067_v62 = vsel %vm2456_vm4, %v13759_v20, %v13758_v44  ;;  %v11073_v43 = vsel %vm2456_vm4, %v13761_v41, %v13760_v42 }
 0x286   : > { %v2929_v17 = vsel %vm2843_vm7, %v2800_v24, %v13757_v26  ;;  %v13762_v22 = vunpack.i.l.bf16 %v10997_v52  ;;  %v13763_v24 = vunpack.i.h.bf16 %v10997_v52  ;;  %v11081_v26 = vpop.permute.xlu0 %5720  ;;  %v13764_v42 = vunpack.i.h.bf16 %v11053_v27 }
 0x287   : > { %v11099_v44 = vpop.permute.xlu1 %5735  ;;  %v13804_v13 = vunpack.i.h.bf16 %v10436_v47 }
 0x288   : > { %v3057_v1 = vsel %vm2972_vm8, %v2928_v4, %v13762_v22  ;;  %v3058_v8 = vsel %vm2972_vm8, %v2929_v17, %v13763_v24  ;;  %v13766_v4 = vunpack.i.l.bf16 %v13765_v37  ;;  %v13767_v22 = vld [vmem:[#allocation146_spill] sm:$0xff]  ;;  %v13778_v37 = vunpack.i.h.bf16 %v13770_v7 }
 0x289   : > { %v3186_v25 = vsel %vm3101_vm9, %v3057_v1, %v12567_v15  ;;  %v3187_v35 = vsel %vm3101_vm9, %v3058_v8, %v13764_v42  ;;  %v13769_v1 = vld [vmem:[#allocation101_spill] sm:$0xff]  ;;  %v13771_v8 = vunpack.i.l.bf16 %v13770_v7  ;;  %v13784_v7 = vunpack.i.l.bf16 %v11013_v0 }
 0x28a   : > { %v11095_v63 = vsel %vm2456_vm4, %v13767_v22, %v13766_v4  ;;  %v4462_v17 = vpack.c.bf16 %v3187_v35, %v3186_v25  ;;  %v2558_v15 = vsel %vm2456_vm4, %v13769_v1, %v13768_v10  ;;  %v13773_v4 = vld [vmem:[#allocation31_spill] sm:$0xff]  ;;  %v13775_v35 = vld [vmem:[#allocation66_spill] sm:$0xff]  ;;  %v11123_v10 = vsel %vm2456_vm4, %v13761_v41, %v13778_v37 }
 0x28b   : > { %v11109_v42 = vsel %vm2456_vm4, %v13759_v20, %v13771_v8  ;;  %v13774_v46 = vunpack.i.l.bf16 %v13773_v4  ;;  %v13776_v24 = vunpack.i.h.bf16 %v13773_v4  ;;  %13779 = vst [vmem:[#allocation82_spill] sm:$0xff] %v11123_v10  ;;  %v11129_v20 = vsel %vm2456_vm4, %v13767_v22, %v13781_v50 }
 0x28c   : > { %13772 = vst [vmem:[#allocation118_spill] sm:$0xff] %v11109_v42  ;;  %v13782_v8 = vunpack.i.l.bf16 %v10358_v2  ;;  %v13783_v4 = vunpack.i.h.bf16 %v10358_v2  ;;  %4464 = vmatprep.subr.msk.bf16.mxu0 %vm8826_vm11, %v4462_v17  ;;  %v13785_v50 = vunpack.i.h.bf16 %v11013_v0  ;;  %v13786_v2 = vld [vmem:[#allocation177_spill] sm:$0xff]  ;;  %v13789_v17 = vunpack.i.l.bf16 %v11081_v26 }
 0x28d   : > { %v2654_v25 = vsel %vm2585_vm6, %v13775_v35, %v13774_v46  ;;  %v2655_v54 = vsel %vm2585_vm6, %v13777_v51, %v13776_v24  ;;  %v11137_v24 = vpop.permute.xlu0 %5730  ;;  %v13787_v37 = vunpack.i.l.bf16 %v13786_v2  ;;  %v13795_v35 = vunpack.i.h.bf16 %v13780_v31 }
 0x28e   : > { %v2783_v46 = vsel %vm2714_vm5, %v2654_v25, %v13782_v8  ;;  %v2784_v51 = vsel %vm2714_vm5, %v2655_v54, %v13783_v4  ;;  %v12582_v25 = vunpack.i.l.bf16 %v11137_v24  ;;  %v13788_v8 = vld [vmem:[#allocation180_spill] sm:$0xff]  ;;  %v13801_v31 = vunpack.i.h.bf16 %v13702_v6 }
 0x28f   : > { %v2912_v41 = vsel %vm2843_vm7, %v2783_v46, %v13784_v7  ;;  %v2913_v22 = vsel %vm2843_vm7, %v2784_v51, %v13785_v50  ;;  %v2573_v54 = vsel %vm2456_vm4, %v13705_v39, %v13787_v37  ;;  %v5077_v4 = vunpack.i.l.bf16 %v13788_v8  ;;  %v11160_v51 = vpop.permute.xlu1 %5745  ;;  %v13802_v50 = vld [vmem:[#allocation33_spill] sm:$0xff] }
 0x290   : > { %v3041_v42 = vsel %vm2972_vm8, %v2912_v41, %v13789_v17  ;;  %v13790_v46 = vunpack.i.h.bf16 %v11081_v26  ;;  %13791 = vst [vmem:[#allocation96_spill] sm:$0xff] %v11160_v51  ;;  %v13792_v37 = vunpack.i.h.bf16 %v11137_v24  ;;  %v13793_v41 = vunpack.i.h.bf16 %v13786_v2  ;;  %v13794_v17 = vld [vmem:[#allocation103_spill] sm:$0xff] }
 0x291   : > { %v3170_v39 = vsel %vm3101_vm9, %v3041_v42, %v12582_v25  ;;  %v11176_v49 = vpop.permute.xlu0 %5740  ;;  %v11182_v42 = vsel %vm2456_vm4, %v13769_v1, %v13795_v35  ;;  %v13800_v25 = vunpack.i.l.bf16 %v10383_v57  ;;  %v11200_v1 = vsel %vm2456_vm4, %v13802_v50, %v13801_v31 }
 0x292   : > { %v3042_v7 = vsel %vm2972_vm8, %v2913_v22, %v13790_v46  ;;  %v2574_v53 = vsel %vm2456_vm4, %v13794_v17, %v13793_v41  ;;  %v13798_v41 = vld [vmem:[#allocation132_spill] sm:$0xff]  ;;  %v5078_v35 = vunpack.i.h.bf16 %v13788_v8 }
 0x293   : > { %v3171_v10 = vsel %vm3101_vm9, %v3042_v7, %v13792_v37  ;;  %v13796_v7 = vunpack.i.l.bf16 %v13702_v6  ;;  %v13797_v37 = vld [vmem:[#allocation140_spill] sm:$0xff]  ;;  %v2703_v46 = vsel %vm2585_vm6, %v2574_v53, %v13800_v25  ;;  %v11211_v53 = vpop.permute.xlu1 %5755  ;;  %v13806_v6 = vunpack.i.l.bf16 %v11099_v44 }
 0x294   : > { %v4465_v22 = vpack.c.bf16 %v3171_v10, %v3170_v39  ;;  %v13799_v10 = vunpack.i.h.bf16 %v13798_v41  ;;  %13805 = vst [vmem:[#allocation121_spill] sm:$0xff] %v11211_v53  ;;  %v12586_v31 = vunpack.i.h.bf16 %v11211_v53  ;;  %v11223_v47 = vsel %vm2456_vm4, %v13797_v37, %v5077_v4 }
 0x295   : > { %v11188_v2 = vsel %vm2456_vm4, %v13797_v37, %v13796_v7  ;;  %13808 = vst [vmem:[#allocation19_spill] sm:$0xff] %v11223_v47 }
 0x296   : > { %v2702_v39 = vsel %vm2585_vm6, %v2573_v54, %v13799_v10  ;;  %v2832_v54 = vsel %vm2714_vm5, %v2703_v46, %v13804_v13  ;;  %4467 = vmatpush3.bf16.xpose.msk.msra.mxu0 %vm8826_vm11, %v4465_v22  ;;  %v13807_v10 = vunpack.i.h.bf16 %v11099_v44  ;;  %v5073_v13 = vunpack.i.h.bf16 %v13703_v16 }
 0x297   : > { %v2831_v7 = vsel %vm2714_vm5, %v2702_v39, %v13803_v61  ;;  %v12585_v61 = vunpack.i.l.bf16 %v11211_v53  ;;  %v13809_v22 = vunpack.i.l.bf16 %v11160_v51  ;;  %v13810_v39 = vunpack.i.h.bf16 %v11160_v51  ;;  %v13833_v51 = vld [vmem:[#allocation183_spill] sm:$0xff] }
 0x298   : > { %v2960_v25 = vsel %vm2843_vm7, %v2831_v7, %v13806_v6  ;;  %v2961_v8 = vsel %vm2843_vm7, %v2832_v54, %v13807_v10  ;;  %v11232_v6 = vpop.permute.xlu0 %5750  ;;  %v11248_v54 = vpop.permute.xlu1 %5765  ;;  %v13812_v10 = vld [vmem:[#allocation17_spill] sm:$0xff] }
 0x299   : > { %v3089_v46 = vsel %vm2972_vm8, %v2960_v25, %v13809_v22  ;;  %v3090_v7 = vsel %vm2972_vm8, %v2961_v8, %v13810_v39  ;;  %v11244_v25 = vsel %vm2456_vm4, %v13802_v50, %v5078_v35  ;;  %v11252_v47 = vsel %vm2456_vm4, %v13812_v10, %v5077_v4  ;;  %v13819_v39 = vld [vmem:[#allocation37_spill] sm:$0xff] }
 0x29a   : > { %v3218_v37 = vsel %vm3101_vm9, %v3089_v46, %v12585_v61  ;;  %v3219_v16 = vsel %vm3101_vm9, %v3090_v7, %v12586_v31  ;;  %13811 = vst [vmem:[#allocation16_spill] sm:$0xff] %v11244_v25  ;;  %13813 = vst [vmem:[#allocation32_spill] sm:$0xff] %v11252_v47  ;;  %v13814_v46 = vld [vmem:[#allocation92_spill] sm:$0xff]  ;;  %v13816_v7 = vld [vmem:[#allocation135_spill] sm:$0xff]  ;;  %v11267_v8 = vsel %vm2456_vm4, %v13794_v17, %v5073_v13  ;;  %v5177_v4 = vunpack.i.l.bf16 %v13819_v39 }
 0x29b   : > { %v4510_v22 = vpack.c.bf16 %v3219_v16, %v3218_v37  ;;  %v11256_v61 = vsel %vm2456_vm4, %v13814_v46, %v5078_v35  ;;  %v13817_v31 = vunpack.i.l.bf16 %v13816_v7  ;;  %v13818_v37 = vunpack.i.h.bf16 %v13816_v7 }
 0x29c   : > { %13815 = vst [vmem:[#allocation89_spill] sm:$0xff] %v11256_v61  ;;  %v13820_v10 = vunpack.i.l.bf16 %v10519_v21  ;;  %v13821_v46 = vunpack.i.h.bf16 %v10519_v21  ;;  %v11276_v47 = vpop.permute.xlu0 %5760  ;;  %v13823_v17 = vunpack.i.h.bf16 %v11176_v49  ;;  %v13824_v21 = vld [vmem:[#allocation106_spill] sm:$0xff]  ;;  %v13831_v7 = vunpack.i.h.bf16 %v13630_v23 }
 0x29d   : > { %v2686_v50 = vsel %vm2585_vm6, %v11095_v63, %v13817_v31  ;;  %v2687_v16 = vsel %vm2585_vm6, %v2558_v15, %v13818_v37  ;;  %4512 = vmatprep.subr.msk.bf16.mxu1 %vm8826_vm11, %v4510_v22  ;;  %v13822_v63 = vunpack.i.l.bf16 %v11176_v49  ;;  %v11290_v37 = vsel %vm2456_vm4, %v13824_v21, %v5073_v13  ;;  %v13832_v13 = vld [vmem:[#allocation131_spill] sm:$0xff] }
 0x29e   : > { %v2815_v35 = vsel %vm2714_vm5, %v2686_v50, %v13820_v10  ;;  %v2816_v53 = vsel %vm2714_vm5, %v2687_v16, %v13821_v46  ;;  %v12591_v50 = vunpack.i.l.bf16 %v11276_v47  ;;  %v13825_v16 = vunpack.i.l.bf16 %v13630_v23  ;;  %v13826_v10 = vld [vmem:[#allocation137_spill] sm:$0xff] }
 0x29f   : > { %v2944_v15 = vsel %vm2843_vm7, %v2815_v35, %v13822_v63  ;;  %v2945_v31 = vsel %vm2843_vm7, %v2816_v53, %v13823_v17  ;;  %v13827_v46 = vunpack.i.l.bf16 %v11232_v6  ;;  %v13828_v63 = vunpack.i.h.bf16 %v11232_v6  ;;  %v11302_v17 = vpop.permute.xlu1 %5775 }
 0x2a0   : > { %v2656_v22 = vsel %vm2585_vm6, %v13826_v10, %v13825_v16  ;;  %13829 = vst [vmem:[#allocation28_spill] sm:$0xff] %v11302_v17  ;;  %v13830_v16 = vunpack.i.h.bf16 %v11276_v47  ;;  %v2657_v25 = vsel %vm2585_vm6, %v13832_v13, %v13831_v7  ;;  %v13837_v7 = vunpack.i.h.bf16 %v10665_v33 }
 0x2a1   : > { %v3073_v35 = vsel %vm2972_vm8, %v2944_v15, %v13827_v46  ;;  %v3074_v53 = vsel %vm2972_vm8, %v2945_v31, %v13828_v63  ;;  %v5178_v15 = vunpack.i.h.bf16 %v13819_v39  ;;  %v12592_v31 = vunpack.i.l.bf16 %v11302_v17  ;;  %v11315_v63 = vpop.permute.xlu0 %5770 }
 0x2a2   : > { %v3202_v21 = vsel %vm3101_vm9, %v3073_v35, %v12591_v50  ;;  %v3203_v10 = vsel %vm3101_vm9, %v3074_v53, %v13830_v16  ;;  %v11323_v35 = vsel %vm2585_vm6, %v13833_v51, %v5177_v4  ;;  %v13834_v53 = vunpack.i.l.bf16 %v13700_v9 }
 0x2a3   : > { %v4513_v46 = vpack.c.bf16 %v3203_v10, %v3202_v21  ;;  %v13835_v21 = vunpack.i.h.bf16 %v13700_v9  ;;  %v13836_v10 = vld [vmem:[#allocation72_spill] sm:$0xff]  ;;  %v13838_v51 = vunpack.i.l.bf16 %v10665_v33  ;;  %v13840_v9 = vunpack.i.l.bf16 %v11248_v54 }
 0x2a4   : > { %v2672_v39 = vsel %vm2585_vm6, %v10961_v59, %v13834_v53  ;;  %v5173_v50 = vunpack.i.h.bf16 %v13836_v10  ;;  %v5172_v23 = vunpack.i.l.bf16 %v13836_v10  ;;  %v11343_v59 = vpop.permute.xlu1 %5785  ;;  %v13841_v53 = vunpack.i.h.bf16 %v11248_v54 }
 0x2a5   : > { %v2673_v16 = vsel %vm2585_vm6, %v10985_v55, %v13835_v21  ;;  %v2801_v61 = vsel %vm2714_vm5, %v2672_v39, %v13838_v51  ;;  %4515 = vmatpush3.bf16.xpose.msk.msra.mxu1 %vm8826_vm11, %v4513_v46  ;;  %13839 = vst [vmem:[#allocation74_spill] sm:$0xff] %v11343_v59  ;;  %v12593_v10 = vunpack.i.h.bf16 %v11343_v59  ;;  %v11355_v33 = vsel %vm2585_vm6, %v10936_v38, %v5178_v15  ;;  %v13842_v39 = vld [vmem:[#allocation152_spill] sm:$0xff]  ;;  %v11367_v51 = vpop.permute.xlu0 %5780 }
 0x2a6   : > { %v2802_v13 = vsel %vm2714_vm5, %v2673_v16, %v13837_v7  ;;  %v2930_v55 = vsel %vm2843_vm7, %v2801_v61, %v13840_v9  ;;  %v12594_v16 = vunpack.i.l.bf16 %v11343_v59  ;;  %v11359_v46 = vsel %vm2585_vm6, %v13842_v39, %v5177_v4  ;;  %v13844_v39 = vld [vmem:[#allocation153_spill] sm:$0xff] }
 0x2a7   : > { %v2931_v21 = vsel %vm2843_vm7, %v2802_v13, %v13841_v53  ;;  %v3059_v61 = vsel %vm2972_vm8, %v2930_v55, %v12592_v31  ;;  %v13843_v7 = vunpack.i.h.bf16 %v11302_v17  ;;  %v11379_v55 = vsel %vm2585_vm6, %v13844_v39, %v5178_v15  ;;  %v13846_v15 = vld [vmem:[#allocation64_spill] sm:$0xff] }
 0x2a8   : > { %v3188_v38 = vsel %vm3101_vm9, %v3059_v61, %v12594_v16  ;;  %v11383_v9 = vpop.permute.xlu1 %5795  ;;  %v11387_v53 = vsel %vm2585_vm6, %v10942_v36, %v5172_v23  ;;  %v11391_v61 = vsel %vm2585_vm6, %v10955_v12, %v5173_v50  ;;  %v5198_v16 = vunpack.i.h.bf16 %v13846_v15 }
 0x2a9   : > { %v3060_v13 = vsel %vm2972_vm8, %v2931_v21, %v13843_v7  ;;  %v13848_v21 = vunpack.i.h.bf16 %v10704_v60  ;;  %v13849_v7 = vunpack.i.l.bf16 %v10704_v60  ;;  %v11409_v59 = vpop.permute.xlu0 %5790  ;;  %v13852_v60 = vunpack.i.l.bf16 %v11367_v51 }
 0x2aa   : > { %v3189_v4 = vsel %vm3101_vm9, %v3060_v13, %v12593_v10  ;;  %v13845_v13 = vld [vmem:[#allocation156_spill] sm:$0xff] }
 0x2ab   : > { %v4468_v31 = vpack.c.bf16 %v3189_v4, %v3188_v38  ;;  %v11395_v10 = vsel %vm2585_vm6, %v13845_v13, %v5172_v23  ;;  %v5197_v38 = vunpack.i.l.bf16 %v13846_v15  ;;  %v13847_v4 = vld [vmem:[#allocation157_spill] sm:$0xff]  ;;  %v2786_v36 = vsel %vm2714_vm5, %v2657_v25, %v13848_v21 }
 0x2ac   : > { %v11400_v39 = vsel %vm2585_vm6, %v13847_v4, %v5173_v50  ;;  %v2785_v12 = vsel %vm2714_vm5, %v2656_v22, %v13849_v7  ;;  %v13850_v23 = vunpack.i.l.bf16 %v11315_v63  ;;  %v13851_v13 = vunpack.i.h.bf16 %v11315_v63 }
 0x2ad   : > { %4470 = vmatprep.subr.msk.bf16.mxu0 %vm8826_vm11, %v4468_v31  ;;  %v12599_v25 = vunpack.i.l.bf16 %v11409_v59  ;;  %v13853_v21 = vunpack.i.h.bf16 %v11367_v51  ;;  %v11451_v17 = vpop.permute.xlu0 %5800 }
 0x2ae   : > { %v2914_v50 = vsel %vm2843_vm7, %v2785_v12, %v13850_v23  ;;  %v2915_v15 = vsel %vm2843_vm7, %v2786_v36, %v13851_v13  ;;  %v11429_v23 = vpop.permute.xlu1 %5805  ;;  %v11433_v36 = vsel %vm2585_vm6, %v11019_v3, %v5197_v38  ;;  %v13854_v13 = vunpack.i.h.bf16 %v10383_v57 }
 0x2af   : > { %v3043_v22 = vsel %vm2972_vm8, %v2914_v50, %v13852_v60  ;;  %v3044_v31 = vsel %vm2972_vm8, %v2915_v15, %v13853_v21  ;;  %v13855_v15 = vunpack.i.h.bf16 %v11409_v59  ;;  %v13856_v21 = vunpack.i.l.bf16 %v10733_v45 }
 0x2b0   : > { %v2704_v4 = vsel %vm2585_vm6, %v11188_v2, %v13854_v13  ;;  %v3172_v50 = vsel %vm3101_vm9, %v3043_v22, %v12599_v25  ;;  %v12600_v57 = vunpack.i.l.bf16 %v11429_v23  ;;  %v11455_v2 = vsel %vm2585_vm6, %v11025_v32, %v5198_v16  ;;  %v13857_v22 = vld [vmem:[#allocation164_spill] sm:$0xff] }
 0x2b1   : > { %v3173_v60 = vsel %vm3101_vm9, %v3044_v31, %v13855_v15  ;;  %v2705_v7 = vsel %vm2585_vm6, %v11200_v1, %v13856_v21  ;;  %v11459_v13 = vsel %vm2585_vm6, %v13857_v22, %v5197_v38  ;;  %v13858_v45 = vunpack.i.l.bf16 %v10769_v19  ;;  %v13860_v15 = vld [vmem:[#allocation117_spill] sm:$0xff] }
 0x2b2   : > { %v4471_v3 = vpack.c.bf16 %v3173_v60, %v3172_v50  ;;  %v13859_v1 = vunpack.i.h.bf16 %v10769_v19  ;;  %v5193_v60 = vunpack.i.h.bf16 %v13860_v15  ;;  %v5192_v21 = vunpack.i.l.bf16 %v13860_v15  ;;  %v11497_v19 = vpop.permute.xlu0 %5810 }
 0x2b3   : > { %v2833_v31 = vsel %vm2714_vm5, %v2704_v4, %v13858_v45  ;;  %v13861_v25 = vunpack.i.l.bf16 %v11383_v9  ;;  %v13862_v12 = vunpack.i.h.bf16 %v11383_v9  ;;  %v11477_v4 = vpop.permute.xlu1 %5815 }
 0x2b4   : > { %v2834_v50 = vsel %vm2714_vm5, %v2705_v7, %v13859_v1  ;;  %4473 = vmatpush3.bf16.xpose.msk.msra.mxu0 %vm8826_vm11, %v4471_v3  ;;  %13863 = vst [vmem:[#allocation15_spill] sm:$0xff] %v11477_v4  ;;  %v12602_v22 = vunpack.i.h.bf16 %v11477_v4  ;;  %v12601_v45 = vunpack.i.l.bf16 %v11477_v4  ;;  %v13864_v1 = vunpack.i.l.bf16 %v13719_v56 }
 0x2b5   : > { %v2962_v32 = vsel %vm2843_vm7, %v2833_v31, %v13861_v25  ;;  %v2963_v38 = vsel %vm2843_vm7, %v2834_v50, %v13862_v12  ;;  %v13865_v12 = vunpack.i.h.bf16 %v13719_v56  ;;  %v13866_v50 = vunpack.i.h.bf16 %v11429_v23 }
 0x2b6   : > { %v2688_v25 = vsel %vm2585_vm6, %v11067_v62, %v13864_v1  ;;  %v3091_v31 = vsel %vm2972_vm8, %v2962_v32, %v12600_v57  ;;  %v5212_v32 = vunpack.i.l.bf16 %v13798_v41  ;;  %v13867_v1 = vunpack.i.h.bf16 %v10836_v29 }
 0x2b7   : > { %v2689_v3 = vsel %vm2585_vm6, %v11073_v43, %v13865_v12  ;;  %v3092_v15 = vsel %vm2972_vm8, %v2963_v38, %v13866_v50  ;;  %v3220_v7 = vsel %vm3101_vm9, %v3091_v31, %v12601_v45  ;;  %v13868_v12 = vunpack.i.l.bf16 %v10836_v29  ;;  %v11514_v31 = vpop.permute.xlu1 %5825 }
 0x2b8   : > { %v3221_v56 = vsel %vm3101_vm9, %v3092_v15, %v12602_v22  ;;  %v2818_v38 = vsel %vm2714_vm5, %v2689_v3, %v13867_v1  ;;  %v13869_v45 = vunpack.i.l.bf16 %v11451_v17  ;;  %v13870_v22 = vunpack.i.h.bf16 %v11451_v17  ;;  %v13871_v3 = vld [vmem:[#allocation165_spill] sm:$0xff] }
 0x2b9   : > { %v2817_v50 = vsel %vm2714_vm5, %v2688_v25, %v13868_v12  ;;  %v4516_v57 = vpack.c.bf16 %v3221_v56, %v3220_v7  ;;  %v12606_v41 = vunpack.i.h.bf16 %v11514_v31  ;;  %v12605_v43 = vunpack.i.l.bf16 %v11514_v31 }
 0x2ba   : > { %v2946_v15 = vsel %vm2843_vm7, %v2817_v50, %v13869_v45  ;;  %v2947_v62 = vsel %vm2843_vm7, %v2818_v38, %v13870_v22  ;;  %v11526_v29 = vsel %vm2585_vm6, %v13871_v3, %v5198_v16  ;;  %v2674_v7 = vsel %vm2585_vm6, %v11037_v11, %v5192_v21  ;;  %v13874_v38 = vld [vmem:[#allocation169_spill] sm:$0xff]  ;;  %v5821_v50 = vpop.permute.xlu0 %5820 }
 0x2bb   : > { %v13872_v25 = vunpack.i.l.bf16 %v11497_v19  ;;  %v13873_v45 = vunpack.i.h.bf16 %v11497_v19  ;;  %4518 = vmatprep.subr.msk.bf16.mxu1 %vm8826_vm11, %v4516_v57  ;;  %v2675_v22 = vsel %vm2585_vm6, %v11043_v18, %v5193_v60  ;;  %v2678_v16 = vsel %vm2585_vm6, %v13874_v38, %v5192_v21  ;;  %v13876_v21 = vld [vmem:[#allocation175_spill] sm:$0xff] }
 0x2bc   : > { %v5823_v57 = vunpack.i.h.bf16 %v5821_v50  ;;  %v2690_v18 = vsel %vm2585_vm6, %v11129_v20, %v5212_v32  ;;  %v2694_v38 = vsel %vm2585_vm6, %v13876_v21, %v5212_v32 }
 0x2bd   : > { %v3075_v56 = vsel %vm2972_vm8, %v2946_v15, %v13872_v25  ;;  %v3076_v1 = vsel %vm2972_vm8, %v2947_v62, %v13873_v45  ;;  %v13875_v15 = vld [vmem:[#allocation170_spill] sm:$0xff]  ;;  %v5822_v25 = vunpack.i.l.bf16 %v5821_v50  ;;  %v5836_v45 = vpop.permute.xlu1 %5835  ;;  %v13879_v50 = vunpack.i.l.bf16 %v10574_v58 }
 0x2be   : > { %v3204_v11 = vsel %vm3101_vm9, %v3075_v56, %v12605_v43  ;;  %v3205_v12 = vsel %vm3101_vm9, %v3076_v1, %v12606_v41  ;;  %v2679_v62 = vsel %vm2585_vm6, %v13875_v15, %v5193_v60  ;;  %v5838_v4 = vunpack.i.h.bf16 %v5836_v45  ;;  %v5831_v15 = vpop.permute.xlu0 %5830 }
 0x2bf   : > { %v4519_v3 = vpack.c.bf16 %v3205_v12, %v3204_v11  ;;  %v5837_v56 = vunpack.i.l.bf16 %v5836_v45  ;;  %v2803_v43 = vsel %vm2714_vm5, %v2674_v7, %v5822_v25  ;;  %v2804_v1 = vsel %vm2714_vm5, %v2675_v22, %v5823_v57 }
 0x2c0   : > { %v2807_v41 = vsel %vm2714_vm5, %v2678_v16, %v5822_v25  ;;  %v2808_v60 = vsel %vm2714_vm5, %v2679_v62, %v5823_v57  ;;  %v13877_v11 = vunpack.i.l.bf16 %v10930_v48  ;;  %v13878_v12 = vunpack.i.h.bf16 %v10930_v48 }
 0x2c1   : > { %4521 = vmatpush3.bf16.xpose.msk.msra.mxu1 %vm8826_vm11, %v4519_v3  ;;  %v11569_v7 = vsel %vm2843_vm7, %v2807_v41, %v13879_v50  ;;  %v13880_v22 = vunpack.i.h.bf16 %v10574_v58  ;;  %v2691_v62 = vsel %vm2585_vm6, %v11182_v42, %v5838_v4  ;;  %v13881_v3 = vld [vmem:[#allocation176_spill] sm:$0xff]  ;;  %v2707_v48 = vsel %vm2585_vm6, %v11267_v8, %v5837_v56  ;;  %v5846_v45 = vpop.permute.xlu1 %5845 }
 0x2c2   : > { %v2932_v20 = vsel %vm2843_vm7, %v2803_v43, %v13877_v11  ;;  %v2933_v32 = vsel %vm2843_vm7, %v2804_v1, %v13878_v12  ;;  %v2695_v43 = vsel %vm2585_vm6, %v13881_v3, %v5838_v4  ;;  %v2711_v57 = vsel %vm2585_vm6, %v11290_v37, %v5837_v56  ;;  %v5841_v50 = vpop.permute.xlu0 %5840 }
 0x2c3   : > { %v11574_v16 = vsel %vm2843_vm7, %v2808_v60, %v13880_v22  ;;  %v5833_v41 = vunpack.i.h.bf16 %v5831_v15  ;;  %v5832_v25 = vunpack.i.l.bf16 %v5831_v15  ;;  %v13882_v58 = vunpack.i.l.bf16 %v10997_v52 }
 0x2c4   : > { %v13883_v1 = vunpack.i.h.bf16 %v10997_v52  ;;  %v5848_v60 = vunpack.i.h.bf16 %v5846_v45  ;;  %v5847_v11 = vunpack.i.l.bf16 %v5846_v45  ;;  %v13884_v4 = vunpack.i.l.bf16 %v11053_v27 }
 0x2c5   : > { %v3061_v21 = vsel %vm2972_vm8, %v2932_v20, %v13882_v58  ;;  %v13885_v12 = vunpack.i.h.bf16 %v11053_v27  ;;  %v2787_v56 = vsel %vm2714_vm5, %v11387_v53, %v5832_v25  ;;  %v2788_v20 = vsel %vm2714_vm5, %v11391_v61, %v5833_v41 }
 0x2c6   : > { %v3062_v42 = vsel %vm2972_vm8, %v2933_v32, %v13883_v1  ;;  %v3190_v8 = vsel %vm3101_vm9, %v3061_v21, %v13884_v4  ;;  %v2791_v52 = vsel %vm2714_vm5, %v11395_v10, %v5832_v25  ;;  %v2792_v32 = vsel %vm2714_vm5, %v11400_v39, %v5833_v41 }
 0x2c7   : > { %v3191_v37 = vsel %vm3101_vm9, %v3062_v42, %v13885_v12  ;;  %v13886_v22 = vunpack.i.l.bf16 %v11013_v0  ;;  %v13887_v27 = vunpack.i.h.bf16 %v11013_v0  ;;  %v13888_v53 = vunpack.i.l.bf16 %v10330_v40 }
 0x2c8   : > { %v13889_v61 = vunpack.i.h.bf16 %v10330_v40  ;;  %v13890_v25 = vunpack.i.l.bf16 %v11081_v26  ;;  %v13891_v41 = vunpack.i.h.bf16 %v11081_v26  ;;  %v13892_v0 = vunpack.i.l.bf16 %v10415_v28  ;;  %v5856_v40 = vpop.permute.xlu1 %5855 }
 0x2c9   : > { %v2916_v15 = vsel %vm2843_vm7, %v2787_v56, %v13886_v22  ;;  %v2917_v3 = vsel %vm2843_vm7, %v2788_v20, %v13887_v27  ;;  %v2920_v45 = vsel %vm2843_vm7, %v2791_v52, %v13888_v53  ;;  %v13893_v1 = vunpack.i.h.bf16 %v10415_v28  ;;  %v5851_v27 = vpop.permute.xlu0 %5850 }
 0x2ca   : > { %v2921_v10 = vsel %vm2843_vm7, %v2792_v32, %v13889_v61  ;;  %v3045_v39 = vsel %vm2972_vm8, %v2916_v15, %v13890_v25  ;;  %v3046_v58 = vsel %vm2972_vm8, %v2917_v3, %v13891_v41  ;;  %v11625_v21 = vsel %vm2972_vm8, %v2920_v45, %v13892_v0 }
 0x2cb   : > { %v11630_v42 = vsel %vm2972_vm8, %v2921_v10, %v13893_v1  ;;  %v2819_v4 = vsel %vm2714_vm5, %v2690_v18, %v5847_v11  ;;  %v2820_v12 = vsel %vm2714_vm5, %v2691_v62, %v5848_v60  ;;  %v2823_v56 = vsel %vm2714_vm5, %v2694_v38, %v5847_v11 }
 0x2cc   : > { %v2824_v26 = vsel %vm2714_vm5, %v2695_v43, %v5848_v60  ;;  %v13894_v20 = vunpack.i.l.bf16 %v11176_v49  ;;  %v13895_v32 = vunpack.i.h.bf16 %v11176_v49  ;;  %v13896_v22 = vunpack.i.l.bf16 %v10492_v30 }
 0x2cd   : > { %v13897_v18 = vunpack.i.h.bf16 %v10492_v30  ;;  %v13898_v38 = vunpack.i.l.bf16 %v11232_v6  ;;  %v13899_v60 = vunpack.i.h.bf16 %v11232_v6  ;;  %v13900_v11 = vunpack.i.l.bf16 %v10546_v34 }
 0x2ce   : > { %v2948_v52 = vsel %vm2843_vm7, %v2819_v4, %v13894_v20  ;;  %v2949_v28 = vsel %vm2843_vm7, %v2820_v12, %v13895_v32  ;;  %v2952_v15 = vsel %vm2843_vm7, %v2823_v56, %v13896_v22  ;;  %v13901_v30 = vunpack.i.h.bf16 %v10546_v34  ;;  %v13903_v34 = vld [vmem:[#allocation112_spill] sm:$0xff] }
 0x2cf   : > { %v2953_v62 = vsel %vm2843_vm7, %v2824_v26, %v13897_v18  ;;  %v11651_v43 = vsel %vm2972_vm8, %v2948_v52, %v13898_v38  ;;  %v11656_v49 = vsel %vm2972_vm8, %v2949_v28, %v13899_v60  ;;  %v11661_v3 = vsel %vm2972_vm8, %v2952_v15, %v13900_v11  ;;  %v13908_v18 = vld [vmem:[#allocation142_spill] sm:$0xff] }
 0x2d0   : > { %v11666_v53 = vsel %vm2972_vm8, %v2953_v62, %v13901_v30  ;;  %v5843_v45 = vunpack.i.h.bf16 %v5841_v50  ;;  %v5842_v61 = vunpack.i.l.bf16 %v5841_v50  ;;  %v4474_v10 = vpack.c.bf16 %v3191_v37, %v3190_v8  ;;  %v5866_v8 = vpop.permute.xlu1 %5865 }
 0x2d1   : > { %v5858_v25 = vunpack.i.h.bf16 %v5856_v40  ;;  %v5857_v41 = vunpack.i.l.bf16 %v5856_v40  ;;  %v5853_v0 = vunpack.i.h.bf16 %v5851_v27  ;;  %v5852_v6 = vunpack.i.l.bf16 %v5851_v27 }
 0x2d2   : > { %v13902_v1 = vunpack.i.l.bf16 %v11137_v24  ;;  %v2835_v12 = vsel %vm2714_vm5, %v10808_v14, %v5842_v61  ;;  %v2836_v56 = vsel %vm2714_vm5, %v2707_v48, %v5843_v45  ;;  %v11676_v26 = vsel %vm2714_vm5, %v13903_v34, %v5842_v61  ;;  %4476 = vmatprep.subr.msk.bf16.mxu0 %vm8826_vm11, %v4474_v10 }
 0x2d3   : > { %v11679_v50 = vsel %vm2714_vm5, %v2711_v57, %v5843_v45  ;;  %v13904_v37 = vunpack.i.l.bf16 %v11099_v44  ;;  %v13905_v40 = vunpack.i.h.bf16 %v11099_v44  ;;  %v2789_v48 = vsel %vm2714_vm5, %v11323_v35, %v5857_v41  ;;  %v5861_v57 = vpop.permute.xlu0 %5860 }
 0x2d4   : > { %v3174_v4 = vsel %vm3101_vm9, %v3045_v39, %v13902_v1  ;;  %v2790_v20 = vsel %vm2714_vm5, %v11355_v33, %v5858_v25  ;;  %v2793_v52 = vsel %vm2714_vm5, %v11359_v46, %v5857_v41  ;;  %v2794_v32 = vsel %vm2714_vm5, %v11379_v55, %v5858_v25 }
 0x2d5   : > { %v2964_v39 = vsel %vm2843_vm7, %v2835_v12, %v13904_v37  ;;  %v2965_v14 = vsel %vm2843_vm7, %v2836_v56, %v13905_v40  ;;  %v13906_v28 = vunpack.i.l.bf16 %v11315_v63  ;;  %v13907_v44 = vunpack.i.h.bf16 %v11315_v63  ;;  %v13913_v63 = vld [vmem:[#allocation124_spill] sm:$0xff]  ;;  %v13917_v56 = vld [vmem:[#allocation134_spill] sm:$0xff] }
 0x2d6   : > { %v13909_v35 = vunpack.i.l.bf16 %v13908_v18  ;;  %v13910_v33 = vunpack.i.h.bf16 %v13908_v18  ;;  %v13911_v46 = vunpack.i.l.bf16 %v11367_v51  ;;  %v13912_v38 = vunpack.i.h.bf16 %v11367_v51 }
 0x2d7   : > { %v2918_v22 = vsel %vm2843_vm7, %v2789_v48, %v13906_v28  ;;  %v2919_v15 = vsel %vm2843_vm7, %v2790_v20, %v13907_v44  ;;  %v13914_v11 = vunpack.i.l.bf16 %v13913_v63  ;;  %v13915_v45 = vunpack.i.h.bf16 %v13913_v63  ;;  %v13922_v44 = vld [vmem:[#allocation82_spill] sm:$0xff]  ;;  %v13930_v63 = vld [vmem:[#allocation89_spill] sm:$0xff] }
 0x2d8   : > { %v2922_v62 = vsel %vm2843_vm7, %v2793_v52, %v13909_v35  ;;  %v2923_v27 = vsel %vm2843_vm7, %v2794_v32, %v13910_v33  ;;  %v11712_v55 = vsel %vm2972_vm8, %v2918_v22, %v13911_v46  ;;  %v11717_v60 = vsel %vm2972_vm8, %v2919_v15, %v13912_v38  ;;  %v5871_v22 = vpop.permute.xlu0 %5870  ;;  %v13923_v15 = vld [vmem:[#allocation174_spill] sm:$0xff]  ;;  %v13924_v35 = vld [vmem:[#allocation96_spill] sm:$0xff] }
 0x2d9   : > { %v11722_v30 = vsel %vm2972_vm8, %v2922_v62, %v13914_v11  ;;  %v11727_v61 = vsel %vm2972_vm8, %v2923_v27, %v13915_v45  ;;  %v2806_v10 = vsel %vm2714_vm5, %v11455_v2, %v5853_v0  ;;  %v2810_v25 = vsel %vm2714_vm5, %v11526_v29, %v5853_v0  ;;  %v13929_v46 = vld [vmem:[#allocation16_spill] sm:$0xff] }
 0x2da   : > { %v13916_v51 = vunpack.i.h.bf16 %v11248_v54  ;;  %v2805_v1 = vsel %vm2714_vm5, %v11433_v36, %v5852_v6  ;;  %v2809_v12 = vsel %vm2714_vm5, %v11459_v13, %v5852_v6  ;;  %v13918_v34 = vunpack.i.h.bf16 %v13917_v56  ;;  %v5876_v13 = vpop.permute.xlu1 %5875 }
 0x2db   : > { %v13919_v2 = vunpack.i.l.bf16 %v11248_v54  ;;  %v13920_v29 = vunpack.i.l.bf16 %v13917_v56  ;;  %v13921_v48 = vunpack.i.h.bf16 %v11137_v24  ;;  %v5868_v20 = vunpack.i.h.bf16 %v5866_v8 }
 0x2dc   : > { %v2935_v41 = vsel %vm2843_vm7, %v2806_v10, %v13916_v51  ;;  %v11743_v37 = vsel %vm2843_vm7, %v2810_v25, %v13918_v34  ;;  %v5867_v52 = vunpack.i.l.bf16 %v5866_v8  ;;  %v5863_v32 = vunpack.i.h.bf16 %v5861_v57  ;;  %v13932_v10 = vld [vmem:[#allocation32_spill] sm:$0xff]  ;;  %v13933_v25 = vld [vmem:[#allocation121_spill] sm:$0xff] }
 0x2dd   : > { %v2934_v40 = vsel %vm2843_vm7, %v2805_v1, %v13919_v2  ;;  %v11751_v0 = vsel %vm2843_vm7, %v2809_v12, %v13920_v29  ;;  %v3175_v36 = vsel %vm3101_vm9, %v3046_v58, %v13921_v48  ;;  %v5862_v28 = vunpack.i.l.bf16 %v5861_v57  ;;  %v13928_v57 = vld [vmem:[#allocation173_spill] sm:$0xff] }
 0x2de   : > { %v4477_v6 = vpack.c.bf16 %v3175_v36, %v3174_v4  ;;  %v2693_v54 = vsel %vm2585_vm6, %v13922_v44, %v5868_v20  ;;  %v2697_v18 = vsel %vm2585_vm6, %v13923_v15, %v5868_v20  ;;  %v13925_v62 = vunpack.i.l.bf16 %v13924_v35  ;;  %v13927_v4 = vld [vmem:[#allocation118_spill] sm:$0xff]  ;;  %v5886_v44 = vpop.permute.xlu1 %5885 }
 0x2df   : > { %v13926_v24 = vunpack.i.h.bf16 %v13924_v35  ;;  %v2692_v8 = vsel %vm2585_vm6, %v13927_v4, %v5867_v52  ;;  %v2696_v27 = vsel %vm2585_vm6, %v13928_v57, %v5867_v52  ;;  %v2709_v38 = vsel %vm2585_vm6, %v13929_v46, %v5863_v32 }
 0x2e0   : > { %v3093_v33 = vsel %vm2972_vm8, %v2964_v39, %v13925_v62  ;;  %4479 = vmatpush3.bf16.xpose.msk.msra.mxu0 %vm8826_vm11, %v4477_v6  ;;  %v2713_v11 = vsel %vm2585_vm6, %v13930_v63, %v5863_v32  ;;  %v13931_v39 = vld [vmem:[#allocation19_spill] sm:$0xff]  ;;  %v13934_v51 = vunpack.i.l.bf16 %v13933_v25  ;;  %v13935_v12 = vunpack.i.h.bf16 %v13933_v25  ;;  %v13938_v62 = vld [vmem:[#allocation28_spill] sm:$0xff] }
 0x2e1   : > { %v3094_v58 = vsel %vm2972_vm8, %v2965_v14, %v13926_v24  ;;  %v2708_v45 = vsel %vm2585_vm6, %v13931_v39, %v5862_v28  ;;  %v2712_v14 = vsel %vm2585_vm6, %v13932_v10, %v5862_v28  ;;  %v13936_v2 = vunpack.i.l.bf16 %v11276_v47  ;;  %v5881_v24 = vpop.permute.xlu0 %5880  ;;  %v13947_v39 = vld [vmem:[#allocation133_spill] sm:$0xff] }
 0x2e2   : > { %v3222_v1 = vsel %vm3101_vm9, %v3093_v33, %v13934_v51  ;;  %v3223_v56 = vsel %vm3101_vm9, %v3094_v58, %v13935_v12  ;;  %v13937_v48 = vunpack.i.h.bf16 %v11276_v47  ;;  %v5878_v20 = vunpack.i.h.bf16 %v5876_v13  ;;  %v13942_v58 = vld [vmem:[#allocation145_spill] sm:$0xff] }
 0x2e3   : > { %v4522_v34 = vpack.c.bf16 %v3223_v56, %v3222_v1  ;;  %v3206_v29 = vsel %vm3101_vm9, %v11651_v43, %v13936_v2  ;;  %v5877_v52 = vunpack.i.l.bf16 %v5876_v13  ;;  %v5873_v32 = vunpack.i.h.bf16 %v5871_v22 }
 0x2e4   : > { %v3207_v36 = vsel %vm3101_vm9, %v11656_v49, %v13937_v48  ;;  %v5872_v28 = vunpack.i.l.bf16 %v5871_v22  ;;  %v2822_v15 = vsel %vm2714_vm5, %v2693_v54, %v5878_v20  ;;  %v2826_v35 = vsel %vm2714_vm5, %v2697_v18, %v5878_v20 }
 0x2e5   : > { %v4525_v6 = vpack.c.bf16 %v3207_v36, %v3206_v29  ;;  %4524 = vmatprep.subr.msk.bf16.mxu1 %vm8826_vm11, %v4522_v34  ;;  %v13939_v43 = vunpack.i.l.bf16 %v13938_v62  ;;  %v13940_v33 = vunpack.i.h.bf16 %v13938_v62  ;;  %v2821_v13 = vsel %vm2714_vm5, %v2692_v8, %v5877_v52 }
 0x2e6   : > { %v2825_v22 = vsel %vm2714_vm5, %v2696_v27, %v5877_v52  ;;  %v13941_v54 = vunpack.i.h.bf16 %v11451_v17  ;;  %v13943_v4 = vunpack.i.h.bf16 %v13942_v58  ;;  %v13944_v57 = vunpack.i.l.bf16 %v11451_v17 }
 0x2e7   : > { %v3063_v47 = vsel %vm2972_vm8, %v2934_v40, %v13939_v43  ;;  %v3064_v49 = vsel %vm2972_vm8, %v2935_v41, %v13940_v33  ;;  %4527 = vmatpush3.bf16.xpose.msk.msra.mxu1 %vm8826_vm11, %v4525_v6  ;;  %v13945_v46 = vunpack.i.l.bf16 %v13942_v58  ;;  %v13946_v8 = vunpack.i.h.bf16 %v11497_v19  ;;  %v13953_v6 = vld [vmem:[#allocation74_spill] sm:$0xff] }
 0x2e8   : > { %v2951_v18 = vsel %vm2843_vm7, %v2822_v15, %v13941_v54  ;;  %v2955_v40 = vsel %vm2843_vm7, %v2826_v35, %v13943_v4  ;;  %v2950_v41 = vsel %vm2843_vm7, %v2821_v13, %v13944_v57  ;;  %v13948_v10 = vunpack.i.h.bf16 %v13947_v39  ;;  %v13958_v43 = vld [vmem:[#allocation130_spill] sm:$0xff] }
 0x2e9   : > { %v2954_v63 = vsel %vm2843_vm7, %v2825_v22, %v13945_v46  ;;  %v3080_v27 = vsel %vm2972_vm8, %v2951_v18, %v13946_v8  ;;  %v13949_v51 = vunpack.i.l.bf16 %v11497_v19  ;;  %v13950_v17 = vunpack.i.l.bf16 %v13947_v39  ;;  %v5891_v22 = vpop.permute.xlu0 %5890 }
 0x2ea   : > { %v11826_v25 = vsel %vm2972_vm8, %v2955_v40, %v13948_v10  ;;  %v2837_v56 = vsel %vm2714_vm5, %v2708_v45, %v5872_v28  ;;  %v2838_v34 = vsel %vm2714_vm5, %v2709_v38, %v5873_v32  ;;  %v2841_v2 = vsel %vm2714_vm5, %v2712_v14, %v5872_v28  ;;  %v5896_v28 = vpop.permute.xlu1 %5895 }
 0x2eb   : > { %v3079_v1 = vsel %vm2972_vm8, %v2950_v41, %v13949_v51  ;;  %v11834_v12 = vsel %vm2972_vm8, %v2954_v63, %v13950_v17  ;;  %v2842_v29 = vsel %vm2714_vm5, %v2713_v11, %v5873_v32  ;;  %v13951_v48 = vunpack.i.l.bf16 %v11383_v9 }
 0x2ec   : > { %v13952_v19 = vunpack.i.h.bf16 %v11383_v9  ;;  %v13954_v52 = vunpack.i.l.bf16 %v13953_v6  ;;  %v13955_v45 = vunpack.i.h.bf16 %v13953_v6  ;;  %v13956_v14 = vunpack.i.l.bf16 %v11409_v59 }
 0x2ed   : > { %v2966_v36 = vsel %vm2843_vm7, %v2837_v56, %v13951_v48  ;;  %v13957_v32 = vunpack.i.h.bf16 %v11409_v59  ;;  %v13959_v33 = vunpack.i.l.bf16 %v13958_v43  ;;  %v5888_v58 = vunpack.i.h.bf16 %v5886_v44 }
 0x2ee   : > { %v2967_v20 = vsel %vm2843_vm7, %v2838_v34, %v13952_v19  ;;  %v3192_v15 = vsel %vm3101_vm9, %v3063_v47, %v13954_v52  ;;  %v3193_v38 = vsel %vm3101_vm9, %v3064_v49, %v13955_v45  ;;  %v3176_v11 = vsel %vm3101_vm9, %v11712_v55, %v13956_v14  ;;  %v13961_v55 = vld [vmem:[#allocation143_spill] sm:$0xff]  ;;  %v13969_v52 = vld [vmem:[#allocation4_spill] sm:$0xff] }
 0x2ef   : > { %v3177_v9 = vsel %vm3101_vm9, %v11717_v60, %v13957_v32  ;;  %v4480_v35 = vpack.c.bf16 %v3193_v38, %v3192_v15  ;;  %v3065_v47 = vsel %vm2972_vm8, %v11569_v7, %v13959_v33  ;;  %v13960_v49 = vunpack.i.h.bf16 %v13958_v43  ;;  %v5901_v15 = vpop.permute.xlu0 %5900  ;;  %v13974_v33 = vld [vmem:[#allocation94_spill] sm:$0xff] }
 0x2f0   : > { %v4483_v62 = vpack.c.bf16 %v3177_v9, %v3176_v11  ;;  %v13962_v54 = vunpack.i.l.bf16 %v13961_v55  ;;  %v13963_v60 = vunpack.i.h.bf16 %v13961_v55  ;;  %v5887_v4 = vunpack.i.l.bf16 %v5886_v44 }
 0x2f1   : > { %v3066_v13 = vsel %vm2972_vm8, %v11574_v16, %v13960_v49  ;;  %4482 = vmatprep.subr.msk.bf16.mxu0 %vm8826_vm11, %v4480_v35  ;;  %v5883_v40 = vunpack.i.h.bf16 %v5881_v24  ;;  %v5882_v57 = vunpack.i.l.bf16 %v5881_v24  ;;  %v5898_v41 = vunpack.i.h.bf16 %v5896_v28 }
 0x2f2   : > { %v3194_v59 = vsel %vm3101_vm9, %v3065_v47, %v13962_v54  ;;  %v3195_v18 = vsel %vm3101_vm9, %v3066_v13, %v13963_v60  ;;  %4485 = vmatpush3.bf16.xpose.msk.msra.mxu0 %vm8826_vm11, %v4483_v62  ;;  %v5897_v16 = vunpack.i.l.bf16 %v5896_v28  ;;  %v5893_v46 = vunpack.i.h.bf16 %v5891_v22  ;;  %v5906_v28 = vpop.permute.xlu1 %5905  ;;  %v13977_v13 = vld [vmem:[#allocation55_spill] sm:$0xff] }
 0x2f3   : > { %v4486_v7 = vpack.c.bf16 %v3195_v18, %v3194_v59  ;;  %v5892_v63 = vunpack.i.l.bf16 %v5891_v22  ;;  %v13964_v8 = vunpack.i.l.bf16 %v11429_v23  ;;  %v2968_v44 = vsel %vm2843_vm7, %v11676_v26, %v5882_v57 }
 0x2f4   : > { %v2969_v24 = vsel %vm2843_vm7, %v11679_v50, %v5883_v40  ;;  %v2971_v10 = vsel %vm2843_vm7, %v2842_v29, %v5898_v41  ;;  %v13965_v51 = vunpack.i.h.bf16 %v11429_v23  ;;  %v2970_v56 = vsel %vm2843_vm7, %v2841_v2, %v5897_v16 }
 0x2f5   : > { %v3095_v39 = vsel %vm2972_vm8, %v2966_v36, %v13964_v8  ;;  %4488 = vmatprep.subr.msk.bf16.mxu0 %vm8826_vm11, %v4486_v7  ;;  %v3097_v34 = vsel %vm2972_vm8, %v2968_v44, %v5887_v4  ;;  %v3098_v48 = vsel %vm2972_vm8, %v2969_v24, %v5888_v58  ;;  %v13966_v36 = vld [vmem:[#allocation15_spill] sm:$0xff]  ;;  %v13971_v14 = vunpack.i.h.bf16 %v13969_v52  ;;  %v13980_v58 = vld [vmem:[#allocation49_spill] sm:$0xff] }
 0x2f6   : > { %v3096_v17 = vsel %vm2972_vm8, %v2967_v20, %v13965_v51  ;;  %v13967_v19 = vunpack.i.l.bf16 %v13966_v36  ;;  %v3226_v26 = vsel %vm3101_vm9, %v3097_v34, %v5892_v63  ;;  %v3227_v50 = vsel %vm3101_vm9, %v3098_v48, %v5893_v46  ;;  %v13986_v24 = vld [vmem:[#allocation93_spill] sm:$0xff] }
 0x2f7   : > { %v13968_v29 = vunpack.i.h.bf16 %v13966_v36  ;;  %v13970_v20 = vunpack.i.l.bf16 %v13969_v52  ;;  %v4534_v45 = vpack.c.bf16 %v3227_v50, %v3226_v26  ;;  %v3179_v11 = vsel %vm3101_vm9, %v11630_v42, %v13971_v14 }
 0x2f8   : > { %v3224_v6 = vsel %vm3101_vm9, %v3095_v39, %v13967_v19  ;;  %v13972_v32 = vunpack.i.l.bf16 %v11514_v31  ;;  %v13973_v62 = vunpack.i.h.bf16 %v11514_v31  ;;  %v13976_v49 = vunpack.i.h.bf16 %v13974_v33 }
 0x2f9   : > { %v3225_v23 = vsel %vm3101_vm9, %v3096_v17, %v13968_v29  ;;  %v3178_v2 = vsel %vm3101_vm9, %v11625_v21, %v13970_v20  ;;  %v13975_v21 = vunpack.i.l.bf16 %v13974_v33  ;;  %v13978_v22 = vunpack.i.l.bf16 %v13977_v13 }
 0x2fa   : > { %v4528_v38 = vpack.c.bf16 %v3225_v23, %v3224_v6  ;;  %v3208_v9 = vsel %vm3101_vm9, %v3079_v1, %v13972_v32  ;;  %v4489_v35 = vpack.c.bf16 %v3179_v11, %v3178_v2  ;;  %v3209_v43 = vsel %vm3101_vm9, %v3080_v27, %v13973_v62 }
 0x2fb   : > { %v3067_v47 = vsel %vm2972_vm8, %v11751_v0, %v13975_v21  ;;  %v3068_v42 = vsel %vm2972_vm8, %v11743_v37, %v13976_v49  ;;  %v4531_v1 = vpack.c.bf16 %v3209_v43, %v3208_v9  ;;  %v13979_v27 = vunpack.i.h.bf16 %v13977_v13 }
 0x2fc   : > { %4530 = vmatprep.subr.msk.bf16.mxu1 %vm8826_vm11, %v4528_v38  ;;  %v3196_v31 = vsel %vm3101_vm9, %v3067_v47, %v13978_v22  ;;  %v5903_v54 = vunpack.i.h.bf16 %v5901_v15  ;;  %v5902_v0 = vunpack.i.l.bf16 %v5901_v15  ;;  %v5908_v60 = vunpack.i.h.bf16 %v5906_v28  ;;  %4491 = vmatpush3.bf16.xpose.msk.msra.mxu0 %vm8826_vm11, %v4489_v35 }
 0x2fd   : > { %v3197_v55 = vsel %vm3101_vm9, %v3068_v42, %v13979_v27  ;;  %v5907_v18 = vunpack.i.l.bf16 %v5906_v28  ;;  %4533 = vmatpush3.bf16.xpose.msk.msra.mxu1 %vm8826_vm11, %v4531_v1  ;;  %v13981_v4 = vunpack.i.l.bf16 %v13980_v58  ;;  %v13982_v40 = vunpack.i.h.bf16 %v13980_v58 }
 0x2fe   : > { %v4492_v59 = vpack.c.bf16 %v3197_v55, %v3196_v31  ;;  %v3100_v37 = vsel %vm2972_vm8, %v2971_v10, %v5903_v54  ;;  %v3099_v41 = vsel %vm2972_vm8, %v2970_v56, %v5902_v0  ;;  %4536 = vmatprep.subr.msk.bf16.mxu1 %vm8826_vm11, %v4534_v45  ;;  %v13987_v10 = vunpack.i.l.bf16 %v13986_v24 }
 0x2ff   : > { %v3180_v7 = vsel %vm3101_vm9, %v11722_v30, %v13981_v4  ;;  %v3181_v57 = vsel %vm3101_vm9, %v11727_v61, %v13982_v40  ;;  %v3229_v16 = vsel %vm3101_vm9, %v3100_v37, %v5908_v60  ;;  %v3228_v63 = vsel %vm3101_vm9, %v3099_v41, %v5907_v18  ;;  %v13983_v30 = vld [vmem:[#allocation129_spill] sm:$0xff] }
 0x300   : > { %4494 = vmatprep.subr.msk.bf16.mxu0 %vm8826_vm11, %v4492_v59  ;;  %v4495_v46 = vpack.c.bf16 %v3181_v57, %v3180_v7  ;;  %v13984_v8 = vunpack.i.l.bf16 %v13983_v30  ;;  %v13985_v61 = vunpack.i.h.bf16 %v13983_v30  ;;  %v3212_v51 = vsel %vm3101_vm9, %v11834_v12, %v13987_v10 }
 0x301   : > { %v13988_v56 = vunpack.i.h.bf16 %v13986_v24  ;;  %v4540_v36 = vpack.c.bf16 %v3229_v16, %v3228_v63 }
 0x302   : > { %v3210_v39 = vsel %vm3101_vm9, %v11661_v3, %v13984_v8  ;;  %v3211_v44 = vsel %vm3101_vm9, %v11666_v53, %v13985_v61  ;;  %v5998_v3 = vld [vmem:[%s11999_s1] sm:$0xff] }
 0x303   : > { %v4537_v17 = vpack.c.bf16 %v3211_v44, %v3210_v39  ;;  %v3213_v34 = vsel %vm3101_vm9, %v11826_v25, %v13988_v56 }
 0x304   : > { %v4543_v48 = vpack.c.bf16 %v3213_v34, %v3212_v51  ;;  %4497 = vmatpush3.bf16.xpose.msk.msra.mxu0 %vm8826_vm11, %v4495_v46 }
 0x305   : > { %4539 = vmatpush3.bf16.xpose.msk.msra.mxu1 %vm8826_vm11, %v4537_v17 }
 0x306   : > { %4542 = vmatprep.subr.msk.bf16.mxu1 %vm8826_vm11, %v4540_v36 }
 0x30b   : > { %4319 = vmatmul.mubr.msk.f32.vlgmr.msra.gmra.mrb[2].mxu0 %vm3231_vm10, %v5998_v3 }
 0x30d   : > { %4545 = vmatpush3.bf16.xpose.msk.msra.mxu1 %vm8826_vm11, %v4543_v48 }
 0x314   : > { %4353 = vmatmul.mubr.msk.f32.vlgmr.msra.gmra.mrb[2].mxu1 %vm3231_vm10, %v5998_v3 }
 0x335   : > { %v3685_v53 = vpop.f32.mrb[0].mxu0 }
 0x336   : > { %3903 = vst [vmem:[%s204_s10] sm:$0xff] %v3685_v53  ;;  %v3687_v25 = vpop.f32.mrb[1].mxu0 }
 0x337   : > { %3904 = vst [vmem:[%s204_s10 + $0x8] sm:$0xff] %v3687_v25  ;;  %v3911_v12 = vadd.f32 %v3687_v25, %v3685_v53 }
 0x33a   : > { %v3756_v19 = vpop.f32.mrb[0].mxu1 }
 0x33b   : > { %3905 = vst [vmem:[%s204_s10 + $0x10] sm:$0xff] %v3756_v19  ;;  %v3912_v6 = vadd.f32 %v3911_v12, %v3756_v19  ;;  %v3758_v26 = vpop.f32.mrb[1].mxu1 }
 0x33c   : > { %3906 = vst [vmem:[%s204_s10 + $0x18] sm:$0xff] %v3758_v26 }
 0x33d   : > { %v3913_v50 = vadd.f32 %v3912_v6, %v3758_v26 }
 0x3de   : > { %v3827_v5 = vpop.f32.mrb[2].mxu0 }
 0x3df   : > { %3907 = vst [vmem:[%s204_s10 + $0x20] sm:$0xff] %v3827_v5  ;;  %v3914_v29 = vadd.f32 %v3913_v50, %v3827_v5  ;;  %v3829_v23 = vpop.f32.mrb[3].mxu0 }
 0x3e0   : > { %3908 = vst [vmem:[%s204_s10 + $0x28] sm:$0xff] %v3829_v23 }
 0x3e1   : > { %v3915_v52 = vadd.f32 %v3914_v29, %v3829_v23 }
 0x3e7   : > { %v3898_v20 = vpop.f32.mrb[2].mxu1 }
 0x3e8   : > { %3909 = vst [vmem:[%s204_s10 + $0x30] sm:$0xff] %v3898_v20  ;;  %v3916_v2 = vadd.f32 %v3915_v52, %v3898_v20  ;;  %v3900_v15 = vpop.f32.mrb[3].mxu1 }
 0x3e9   : > { %3910 = vst [vmem:[%s204_s10 + $0x38] sm:$0xff] %v3900_v15 }
 0x3ea   : > { %v3917_v45 = vadd.f32 %v3916_v2, %v3900_v15 }
 0x3ec   : > { %3918 = vadd.xlane.f32.xlu0 %v3917_v45 }
 0x479   : > { %v3919_v38 = vpop.xlane.xlu0 %3918 }
 0x47a   : > { %v3920_v14 = vmul.f32 0.0009765625, %v3919_v38 }
 0x47c   : > { %v3921_v11 = vsub.f32 %v3685_v53, %v3920_v14  ;;  %v3922_v32 = vsub.f32 %v3687_v25, %v3920_v14  ;;  %v3923_v9 = vsub.f32 %v3756_v19, %v3920_v14  ;;  %v3924_v28 = vsub.f32 %v3758_v26, %v3920_v14 }
 0x47d   : > { %v3925_v43 = vsub.f32 %v3827_v5, %v3920_v14  ;;  %v3926_v47 = vsub.f32 %v3829_v23, %v3920_v14  ;;  %v3927_v1 = vsub.f32 %v3898_v20, %v3920_v14  ;;  %v3928_v31 = vsub.f32 %v3900_v15, %v3920_v14 }
 0x47e   : > { %v3929_v35 = vmul.f32 %v3921_v11, %v3921_v11  ;;  %v3930_v62 = vmul.f32 %v3922_v32, %v3922_v32  ;;  %v3931_v33 = vmul.f32 %v3923_v9, %v3923_v9  ;;  %v3932_v49 = vmul.f32 %v3924_v28, %v3924_v28 }
 0x47f   : > { %v3933_v13 = vmul.f32 %v3925_v43, %v3925_v43  ;;  %v3934_v27 = vmul.f32 %v3926_v47, %v3926_v47  ;;  %v3935_v54 = vmul.f32 %v3927_v1, %v3927_v1  ;;  %v3936_v0 = vmul.f32 %v3928_v31, %v3928_v31 }
 0x480   : > { %v3937_v21 = vadd.f32 %v3930_v62, %v3929_v35 }
 0x482   : > { %v3938_v42 = vadd.f32 %v3937_v21, %v3931_v33 }
 0x484   : > { %v3939_v22 = vadd.f32 %v3938_v42, %v3932_v49 }
 0x486   : > { %v3940_v55 = vadd.f32 %v3939_v22, %v3933_v13 }
 0x488   : > { %v3941_v59 = vadd.f32 %v3940_v55, %v3934_v27 }
 0x48a   : > { %v3942_v60 = vadd.f32 %v3941_v59, %v3935_v54 }
 0x48c   : > { %v3943_v18 = vadd.f32 %v3942_v60, %v3936_v0 }
 0x48e   : > { %3944 = vadd.xlane.f32.xlu1 %v3943_v18 }
 0x51b   : > { %v3945_v37 = vpop.xlane.xlu1 %3944 }
 0x51c   : > { %v3947_v58 = vsel %vm3946_vm12, %v3919_v38, %v3945_v37 }
 0x51d   : > { %3949 = vst.msk [vmem:[%s212_s18] sm:$0xff] %vm3948_vm13, %v3947_v58 }
 0x51e PF: > { %s14_s14 = sadd.s32 1, %s6021_s14   ;;  %s13989_s12 = smov %s6017_s13 }
 0x51f   : > { %p11_p5 = scmp.ge.s32.totalorder %s14_s14, 4   ;;  %s13990_s13 = smov %s13992_s15 }
 0x521   :  { %13 = sbr.rel (!%p11_p5) target bundleno = 2 (0x2), region = 71 }

</bundles_post_ra>
